<compile_context>
chip_gen: v7x
topology: tpu7x:2x2x1
jax: 0.10.0
libtpu: 0.0.40
codegen_flags: <defaults>
</compile_context>

<pallas_src>
import numpy as np
import jax
import jax.numpy as jnp
from jax import lax
from jax.experimental import pallas as pl
from jax.experimental.pallas import tpu as pltpu

BN_EPS = 1e-5
LRELU_SLOPE = 0.2

# (H, W, Cin, Cout, K, stride, pad, use_bn) per conv layer for
# in_channels=1, features=8, 64x64 input (small shapes consistent with module).
LAYER_CFG = (
    (64, 64, 1, 8, 4, 2, 1, False),
    (32, 32, 8, 16, 4, 2, 1, True),
    (16, 16, 16, 32, 4, 2, 1, True),
    (8, 8, 32, 64, 4, 2, 1, True),
    (4, 4, 64, 128, 4, 2, 1, True),
    (2, 2, 128, 1, 2, 1, 0, False),   # output conv -> sigmoid
)
OUT_LANES = 128  # final conv's single output channel padded to a full lane set


# ----------------------------- kernel helpers -------------------------------
def _row_select(oh_n, h_n, stride, pad, kh, dtype):
    """(OH, H) 0/1 matrix selecting input row stride*oh - pad + kh (zero pad)."""
    oh = lax.broadcasted_iota(jnp.int32, (oh_n, h_n), 0)
    h = lax.broadcasted_iota(jnp.int32, (oh_n, h_n), 1)
    return (h == stride * oh - pad + kh).astype(dtype)


def _channel_fold(ow_c, c, dtype):
    """(OW*C, C) 0/1 matrix: F[j, co] = 1 iff j % C == co (sums over ow)."""
    j = lax.broadcasted_iota(jnp.int32, (ow_c, c), 0)
    co = lax.broadcasted_iota(jnp.int32, (ow_c, c), 1)
    return (j % c == co).astype(dtype)


def _channel_bcast(c, ow_c, dtype):
    """(C, OW*C) 0/1 matrix: G[co, j] = 1 iff j % C == co (tiles per-channel row)."""
    co = lax.broadcasted_iota(jnp.int32, (c, ow_c), 0)
    j = lax.broadcasted_iota(jnp.int32, (c, ow_c), 1)
    return (j % c == co).astype(dtype)


def _discriminator_kernel(x_ref, *refs):
    """x_ref: (N, H0, W0*C0). refs: 6 block-banded weight refs, bn ref, out ref."""
    n_layers = len(LAYER_CFG)
    m_refs = refs[:n_layers]
    bn_ref = refs[n_layers]
    out_ref = refs[n_layers + 1]

    n = x_ref.shape[0]
    # Per-sample 2-D activations: rows = H, lanes = w*C + c (c fastest).
    acts = [x_ref[i].astype(jnp.float32) for i in range(n)]
    bn_idx = 0

    for li, (H, W, Cin, Cout, K, stride, pad, use_bn) in enumerate(LAYER_CFG):
        OH = (H + 2 * pad - K) // stride + 1
        OW = (W + 2 * pad - K) // stride + 1
        out_lanes = m_refs[li].shape[-1]          # OW*Cout (padded on last layer)
        last = li == n_layers - 1

        # Row-selection masks built once per layer (hoisted out of sample loop).
        sels = [_row_select(OH, H, stride, pad, kh, jnp.bfloat16) for kh in range(K)]

        pres = []
        for a in acts:
            a16 = a.astype(jnp.bfloat16)
            acc = jnp.zeros((OH, out_lanes), jnp.float32)
            for kh in range(K):
                rows = jnp.dot(sels[kh], a16, preferred_element_type=jnp.float32)
                acc = acc + jnp.dot(rows.astype(jnp.bfloat16), m_refs[li][kh],
                                    preferred_element_type=jnp.float32)
            pres.append(acc)

        if last:
            # Numerically stable sigmoid: 0.5 * (tanh(y/2) + 1)   (EUP tanh).
            outs = [0.5 * (jnp.tanh(0.5 * p) + 1.0) for p in pres]   # (1, 128) each
            out_ref[...] = jnp.concatenate(outs, axis=0).astype(out_ref.dtype)
            continue

        if use_bn:
            # Training-mode BatchNorm2d: per-channel stats over N*OH*OW,
            # single pass via sum / sum-of-squares, folded per channel on MXU.
            ow_c = OW * Cout
            cnt = float(n * OH * OW)
            s = jnp.zeros((1, ow_c), jnp.float32)
            sq = jnp.zeros((1, ow_c), jnp.float32)
            for p in pres:
                s = s + jnp.sum(p, axis=0, keepdims=True)
                sq = sq + jnp.sum(p * p, axis=0, keepdims=True)
            fold = _channel_fold(ow_c, Cout, jnp.float32)
            ch_sum = jnp.dot(s, fold, preferred_element_type=jnp.float32)   # (1, Cout)
            ch_sq = jnp.dot(sq, fold, preferred_element_type=jnp.float32)
            mean = ch_sum / cnt
            var = ch_sq / cnt - mean * mean                                 # biased var
            bn = bn_ref[bn_idx]                                             # (2, 128)
            bn_idx += 1
            gamma = bn[0:1, :Cout]
            beta = bn[1:2, :Cout]
            scale = gamma * lax.rsqrt(var + BN_EPS)
            shift = beta - mean * scale
            bcast = _channel_bcast(Cout, ow_c, jnp.float32)
            scale_b = jnp.dot(scale, bcast, preferred_element_type=jnp.float32)
            shift_b = jnp.dot(shift, bcast, preferred_element_type=jnp.float32)
            pres = [p * scale_b + shift_b for p in pres]
            # TODO(synk): BatchNorm running_mean/running_var buffer updates
            # (module state side effect) are not materialized.

        acts = [jnp.where(p >= 0.0, p, LRELU_SLOPE * p) for p in pres]      # LeakyReLU


# ----------------------------- wrapper / params ------------------------------
def _build_col_mats(w, w_in, stride, pad, out_cols=None):
    """w: (K, K, Cin, Cout) -> (K, W_in*Cin, OW*Cout) block-banded bf16 matrices.

    M_kh[w*Cin + c, ow*Cout + co] = w[kh, kw, c, co] with kw = w - (stride*ow - pad),
    zero where kw is out of range (this also implements the W-direction zero pad).
    """
    K, _, cin, cout = w.shape
    OW = (w_in + 2 * pad - K) // stride + 1
    wi = np.arange(w_in)[:, None]
    ow = np.arange(OW)[None, :]
    mats = []
    for kh in range(K):
        acc = jnp.zeros((w_in * cin, OW * cout), jnp.float32)
        for kw in range(K):
            sel = jnp.asarray(wi == stride * ow - pad + kw, jnp.float32)   # (W_in, OW)
            acc = acc + jnp.kron(sel, w[kh, kw].astype(jnp.float32))
        mats.append(acc)
    m = jnp.stack(mats, axis=0)
    if out_cols is not None and out_cols > OW * cout:
        m = jnp.pad(m, ((0, 0), (0, 0), (0, out_cols - OW * cout)))
    return m.astype(jnp.bfloat16)


def init_discriminator_params(key):
    """Conv weights ~ N(0, 0.02) in (KH, KW, Cin, Cout); BN gamma ~ N(1, 0.02)."""
    # TODO(synk): real PyTorch weights are (Cout, Cin, KH, KW); transpose to
    # (KH, KW, Cin, Cout) before calling _build_col_mats.
    keys = jax.random.split(key, 3 * len(LAYER_CFG))
    raw = []
    ki = 0
    for (H, W, Cin, Cout, K, stride, pad, use_bn) in LAYER_CFG:
        w = 0.02 * jax.random.normal(keys[ki], (K, K, Cin, Cout), jnp.float32)
        ki += 1
        if use_bn:
            gamma = 1.0 + 0.02 * jax.random.normal(keys[ki], (Cout,), jnp.float32)
            ki += 1
            beta = 0.02 * jax.random.normal(keys[ki], (Cout,), jnp.float32)
            ki += 1
        else:
            gamma = jnp.ones((Cout,), jnp.float32)
            beta = jnp.zeros((Cout,), jnp.float32)
        raw.append(dict(w=w, gamma=gamma, beta=beta))
    return raw


def prepare_kernel_operands(raw):
    col_mats = []
    bn = jnp.zeros((4, 2, 128), jnp.float32)
    bn_idx = 0
    n_layers = len(LAYER_CFG)
    for li, ((H, W, Cin, Cout, K, stride, pad, use_bn), p) in enumerate(
            zip(LAYER_CFG, raw)):
        last = li == n_layers - 1
        col_mats.append(_build_col_mats(p["w"], W, stride, pad,
                                        out_cols=OUT_LANES if last else None))
        if use_bn:
            bn = bn.at[bn_idx, 0, :Cout].set(p["gamma"])
            bn = bn.at[bn_idx, 1, :Cout].set(p["beta"])
            bn_idx += 1
    return col_mats, bn


@jax.jit
def discriminator_forward(x_nchw, col_mats, bn):
    n, c, h, w = x_nchw.shape
    x = jnp.transpose(x_nchw, (0, 2, 3, 1)).astype(jnp.float32)   # NHWC
    x2d = x.reshape(n, h, w * c)                                  # (N, H, W*C), c fastest
    n_in = 2 + len(LAYER_CFG)
    out = pl.pallas_call(
        _discriminator_kernel,
        out_shape=jax.ShapeDtypeStruct((n, OUT_LANES), jnp.float32),
        in_specs=[pl.BlockSpec(memory_space=pltpu.MemorySpace.VMEM)] * n_in,
        out_specs=pl.BlockSpec(memory_space=pltpu.MemorySpace.VMEM),
    )(x2d, *col_mats, bn)
    return out[:, :1]   # (N, 1) — matches x.reshape(-1, 1) on (N, 1, 1, 1)


def discriminator_reference(x_nchw, raw):
    """Pure-JAX (XLA) reference of the same forward pass, for validation."""
    x = jnp.transpose(x_nchw, (0, 2, 3, 1)).astype(jnp.float32)
    n_layers = len(LAYER_CFG)
    for li, ((H, W, Cin, Cout, K, stride, pad, use_bn), p) in enumerate(
            zip(LAYER_CFG, raw)):
        x = lax.conv_general_dilated(
            x, p["w"], window_strides=(stride, stride),
            padding=((pad, pad), (pad, pad)),
            dimension_numbers=("NHWC", "HWIO", "NHWC"))
        if use_bn:
            mean = jnp.mean(x, axis=(0, 1, 2), keepdims=True)
            var = jnp.mean(jnp.square(x - mean), axis=(0, 1, 2), keepdims=True)
            x = (x - mean) * lax.rsqrt(var + BN_EPS) * p["gamma"] + p["beta"]
        if li == n_layers - 1:
            x = jax.nn.sigmoid(x)
        else:
            x = jnp.where(x >= 0.0, x, LRELU_SLOPE * x)
    return x.reshape(-1, 1)


if __name__ == "__main__":
    key = jax.random.PRNGKey(0)
    k_in, k_par = jax.random.split(key)
    # Small deterministic input consistent with the module: N=2, C=1, 64x64
    # (64x64 spatial is required so the 5 stride-2 convs + 2x2 output conv
    #  collapse to 1x1).
    x = jax.random.normal(k_in, (2, 1, 64, 64), jnp.float32)

    raw = init_discriminator_params(k_par)
    col_mats, bn = prepare_kernel_operands(raw)

    out = discriminator_forward(x, col_mats, bn)
    out = jax.block_until_ready(out)

    assert out.shape == (2, 1), out.shape
    assert bool(jnp.all(jnp.isfinite(out)))
    assert bool(jnp.all((out > 0.0) & (out < 1.0)))   # sigmoid range

    ref = discriminator_reference(x, raw)
    err = float(jnp.max(jnp.abs(out - ref)))
    assert err < 5e-2, f"kernel/reference mismatch: {err}"

    print("KERNEL_OK")
</pallas_src>

<mosaic_0001>
module attributes {stable_mosaic.version = 11 : i64} {
  func.func @_discriminator_kernel(%arg0: memref<2x64x64xf32, #tpu.memory_space<vmem>>, %arg1: memref<4x64x256xbf16, #tpu.memory_space<vmem>>, %arg2: memref<4x256x256xbf16, #tpu.memory_space<vmem>>, %arg3: memref<4x256x256xbf16, #tpu.memory_space<vmem>>, %arg4: memref<4x256x256xbf16, #tpu.memory_space<vmem>>, %arg5: memref<4x256x256xbf16, #tpu.memory_space<vmem>>, %arg6: memref<2x256x128xbf16, #tpu.memory_space<vmem>>, %arg7: memref<4x2x128xf32, #tpu.memory_space<vmem>>, %arg8: memref<2x128xf32, #tpu.memory_space<vmem>>) attributes {dimension_semantics = [], scalar_prefetch = 0 : i64, scratch_operands = 0 : i64, tpu.core_type = #tpu.core_type<tc>} {
    %c0 = arith.constant 0 : index
    %c0_0 = arith.constant 0 : index
    %c0_1 = arith.constant 0 : index
    %0 = vector.load %arg0[%c0, %c0_0, %c0_1] : memref<2x64x64xf32, #tpu.memory_space<vmem>>, vector<1x64x64xf32>
    %1 = vector.shape_cast %0 : vector<1x64x64xf32> to vector<64x64xf32>
    %c1 = arith.constant 1 : index
    %c0_2 = arith.constant 0 : index
    %c0_3 = arith.constant 0 : index
    %2 = vector.load %arg0[%c1, %c0_2, %c0_3] : memref<2x64x64xf32, #tpu.memory_space<vmem>>, vector<1x64x64xf32>
    %3 = vector.shape_cast %2 : vector<1x64x64xf32> to vector<64x64xf32>
    %4 = tpu.iota {dimensions = array<i32: 0>} : vector<32x64xi32>
    %5 = tpu.iota {dimensions = array<i32: 1>} : vector<32x64xi32>
    %c2_i32 = arith.constant 2 : i32
    %6 = vector.broadcast %c2_i32 : i32 to vector<32x64xi32>
    %7 = arith.muli %6, %4 : vector<32x64xi32>
    %c1_i32 = arith.constant 1 : i32
    %8 = vector.broadcast %c1_i32 : i32 to vector<32x64xi32>
    %9 = arith.subi %7, %8 : vector<32x64xi32>
    %c0_i32 = arith.constant 0 : i32
    %10 = vector.broadcast %c0_i32 : i32 to vector<32x64xi32>
    %11 = arith.addi %9, %10 : vector<32x64xi32>
    %12 = arith.cmpi eq, %5, %11 : vector<32x64xi32>
    %13 = arith.extui %12 : vector<32x64xi1> to vector<32x64xi32>
    %14 = arith.sitofp %13 : vector<32x64xi32> to vector<32x64xf32>
    %15 = arith.truncf %14 : vector<32x64xf32> to vector<32x64xbf16>
    %16 = tpu.iota {dimensions = array<i32: 0>} : vector<32x64xi32>
    %17 = tpu.iota {dimensions = array<i32: 1>} : vector<32x64xi32>
    %c2_i32_4 = arith.constant 2 : i32
    %18 = vector.broadcast %c2_i32_4 : i32 to vector<32x64xi32>
    %19 = arith.muli %18, %16 : vector<32x64xi32>
    %c1_i32_5 = arith.constant 1 : i32
    %20 = vector.broadcast %c1_i32_5 : i32 to vector<32x64xi32>
    %21 = arith.subi %19, %20 : vector<32x64xi32>
    %c1_i32_6 = arith.constant 1 : i32
    %22 = vector.broadcast %c1_i32_6 : i32 to vector<32x64xi32>
    %23 = arith.addi %21, %22 : vector<32x64xi32>
    %24 = arith.cmpi eq, %17, %23 : vector<32x64xi32>
    %25 = arith.extui %24 : vector<32x64xi1> to vector<32x64xi32>
    %26 = arith.sitofp %25 : vector<32x64xi32> to vector<32x64xf32>
    %27 = arith.truncf %26 : vector<32x64xf32> to vector<32x64xbf16>
    %28 = tpu.iota {dimensions = array<i32: 0>} : vector<32x64xi32>
    %29 = tpu.iota {dimensions = array<i32: 1>} : vector<32x64xi32>
    %c2_i32_7 = arith.constant 2 : i32
    %30 = vector.broadcast %c2_i32_7 : i32 to vector<32x64xi32>
    %31 = arith.muli %30, %28 : vector<32x64xi32>
    %c1_i32_8 = arith.constant 1 : i32
    %32 = vector.broadcast %c1_i32_8 : i32 to vector<32x64xi32>
    %33 = arith.subi %31, %32 : vector<32x64xi32>
    %c2_i32_9 = arith.constant 2 : i32
    %34 = vector.broadcast %c2_i32_9 : i32 to vector<32x64xi32>
    %35 = arith.addi %33, %34 : vector<32x64xi32>
    %36 = arith.cmpi eq, %29, %35 : vector<32x64xi32>
    %37 = arith.extui %36 : vector<32x64xi1> to vector<32x64xi32>
    %38 = arith.sitofp %37 : vector<32x64xi32> to vector<32x64xf32>
    %39 = arith.truncf %38 : vector<32x64xf32> to vector<32x64xbf16>
    %40 = tpu.iota {dimensions = array<i32: 0>} : vector<32x64xi32>
    %41 = tpu.iota {dimensions = array<i32: 1>} : vector<32x64xi32>
    %c2_i32_10 = arith.constant 2 : i32
    %42 = vector.broadcast %c2_i32_10 : i32 to vector<32x64xi32>
    %43 = arith.muli %42, %40 : vector<32x64xi32>
    %c1_i32_11 = arith.constant 1 : i32
    %44 = vector.broadcast %c1_i32_11 : i32 to vector<32x64xi32>
    %45 = arith.subi %43, %44 : vector<32x64xi32>
    %c3_i32 = arith.constant 3 : i32
    %46 = vector.broadcast %c3_i32 : i32 to vector<32x64xi32>
    %47 = arith.addi %45, %46 : vector<32x64xi32>
    %48 = arith.cmpi eq, %41, %47 : vector<32x64xi32>
    %49 = arith.extui %48 : vector<32x64xi1> to vector<32x64xi32>
    %50 = arith.sitofp %49 : vector<32x64xi32> to vector<32x64xf32>
    %51 = arith.truncf %50 : vector<32x64xf32> to vector<32x64xbf16>
    %52 = arith.truncf %1 : vector<64x64xf32> to vector<64x64xbf16>
    %cst = arith.constant 0.000000e+00 : f32
    %53 = vector.broadcast %cst : f32 to vector<32x256xf32>
    %cst_12 = arith.constant dense<0.000000e+00> : vector<32x64xf32>
    %54 = tpu.matmul %15, %52, %cst_12 {dimension_numbers = #tpu.dot_dimension_numbers<[1], [0], [0], [1], [0, 0, 1, 1], [], []>} : vector<32x64xbf16>, vector<64x64xbf16>, vector<32x64xf32> -> vector<32x64xf32>
    %55 = arith.truncf %54 : vector<32x64xf32> to vector<32x64xbf16>
    %c0_13 = arith.constant 0 : index
    %c0_14 = arith.constant 0 : index
    %c0_15 = arith.constant 0 : index
    %56 = vector.load %arg1[%c0_13, %c0_14, %c0_15] : memref<4x64x256xbf16, #tpu.memory_space<vmem>>, vector<1x64x256xbf16>
    %57 = vector.shape_cast %56 : vector<1x64x256xbf16> to vector<64x256xbf16>
    %cst_16 = arith.constant dense<0.000000e+00> : vector<32x256xf32>
    %58 = tpu.matmul %55, %57, %cst_16 {dimension_numbers = #tpu.dot_dimension_numbers<[1], [0], [0], [1], [0, 0, 1, 1], [], []>} : vector<32x64xbf16>, vector<64x256xbf16>, vector<32x256xf32> -> vector<32x256xf32>
    %59 = arith.addf %53, %58 : vector<32x256xf32>
    %cst_17 = arith.constant dense<0.000000e+00> : vector<32x64xf32>
    %60 = tpu.matmul %27, %52, %cst_17 {dimension_numbers = #tpu.dot_dimension_numbers<[1], [0], [0], [1], [0, 0, 1, 1], [], []>} : vector<32x64xbf16>, vector<64x64xbf16>, vector<32x64xf32> -> vector<32x64xf32>
    %61 = arith.truncf %60 : vector<32x64xf32> to vector<32x64xbf16>
    %c1_18 = arith.constant 1 : index
    %c0_19 = arith.constant 0 : index
    %c0_20 = arith.constant 0 : index
    %62 = vector.load %arg1[%c1_18, %c0_19, %c0_20] : memref<4x64x256xbf16, #tpu.memory_space<vmem>>, vector<1x64x256xbf16>
    %63 = vector.shape_cast %62 : vector<1x64x256xbf16> to vector<64x256xbf16>
    %cst_21 = arith.constant dense<0.000000e+00> : vector<32x256xf32>
    %64 = tpu.matmul %61, %63, %cst_21 {dimension_numbers = #tpu.dot_dimension_numbers<[1], [0], [0], [1], [0, 0, 1, 1], [], []>} : vector<32x64xbf16>, vector<64x256xbf16>, vector<32x256xf32> -> vector<32x256xf32>
    %65 = arith.addf %59, %64 : vector<32x256xf32>
    %cst_22 = arith.constant dense<0.000000e+00> : vector<32x64xf32>
    %66 = tpu.matmul %39, %52, %cst_22 {dimension_numbers = #tpu.dot_dimension_numbers<[1], [0], [0], [1], [0, 0, 1, 1], [], []>} : vector<32x64xbf16>, vector<64x64xbf16>, vector<32x64xf32> -> vector<32x64xf32>
    %67 = arith.truncf %66 : vector<32x64xf32> to vector<32x64xbf16>
    %c2 = arith.constant 2 : index
    %c0_23 = arith.constant 0 : index
    %c0_24 = arith.constant 0 : index
    %68 = vector.load %arg1[%c2, %c0_23, %c0_24] : memref<4x64x256xbf16, #tpu.memory_space<vmem>>, vector<1x64x256xbf16>
    %69 = vector.shape_cast %68 : vector<1x64x256xbf16> to vector<64x256xbf16>
    %cst_25 = arith.constant dense<0.000000e+00> : vector<32x256xf32>
    %70 = tpu.matmul %67, %69, %cst_25 {dimension_numbers = #tpu.dot_dimension_numbers<[1], [0], [0], [1], [0, 0, 1, 1], [], []>} : vector<32x64xbf16>, vector<64x256xbf16>, vector<32x256xf32> -> vector<32x256xf32>
    %71 = arith.addf %65, %70 : vector<32x256xf32>
    %cst_26 = arith.constant dense<0.000000e+00> : vector<32x64xf32>
    %72 = tpu.matmul %51, %52, %cst_26 {dimension_numbers = #tpu.dot_dimension_numbers<[1], [0], [0], [1], [0, 0, 1, 1], [], []>} : vector<32x64xbf16>, vector<64x64xbf16>, vector<32x64xf32> -> vector<32x64xf32>
    %73 = arith.truncf %72 : vector<32x64xf32> to vector<32x64xbf16>
    %c3 = arith.constant 3 : index
    %c0_27 = arith.constant 0 : index
    %c0_28 = arith.constant 0 : index
    %74 = vector.load %arg1[%c3, %c0_27, %c0_28] : memref<4x64x256xbf16, #tpu.memory_space<vmem>>, vector<1x64x256xbf16>
    %75 = vector.shape_cast %74 : vector<1x64x256xbf16> to vector<64x256xbf16>
    %cst_29 = arith.constant dense<0.000000e+00> : vector<32x256xf32>
    %76 = tpu.matmul %73, %75, %cst_29 {dimension_numbers = #tpu.dot_dimension_numbers<[1], [0], [0], [1], [0, 0, 1, 1], [], []>} : vector<32x64xbf16>, vector<64x256xbf16>, vector<32x256xf32> -> vector<32x256xf32>
    %77 = arith.addf %71, %76 : vector<32x256xf32>
    %78 = arith.truncf %3 : vector<64x64xf32> to vector<64x64xbf16>
    %cst_30 = arith.constant 0.000000e+00 : f32
    %79 = vector.broadcast %cst_30 : f32 to vector<32x256xf32>
    %cst_31 = arith.constant dense<0.000000e+00> : vector<32x64xf32>
    %80 = tpu.matmul %15, %78, %cst_31 {dimension_numbers = #tpu.dot_dimension_numbers<[1], [0], [0], [1], [0, 0, 1, 1], [], []>} : vector<32x64xbf16>, vector<64x64xbf16>, vector<32x64xf32> -> vector<32x64xf32>
    %81 = arith.truncf %80 : vector<32x64xf32> to vector<32x64xbf16>
    %c0_32 = arith.constant 0 : index
    %c0_33 = arith.constant 0 : index
    %c0_34 = arith.constant 0 : index
    %82 = vector.load %arg1[%c0_32, %c0_33, %c0_34] : memref<4x64x256xbf16, #tpu.memory_space<vmem>>, vector<1x64x256xbf16>
    %83 = vector.shape_cast %82 : vector<1x64x256xbf16> to vector<64x256xbf16>
    %cst_35 = arith.constant dense<0.000000e+00> : vector<32x256xf32>
    %84 = tpu.matmul %81, %83, %cst_35 {dimension_numbers = #tpu.dot_dimension_numbers<[1], [0], [0], [1], [0, 0, 1, 1], [], []>} : vector<32x64xbf16>, vector<64x256xbf16>, vector<32x256xf32> -> vector<32x256xf32>
    %85 = arith.addf %79, %84 : vector<32x256xf32>
    %cst_36 = arith.constant dense<0.000000e+00> : vector<32x64xf32>
    %86 = tpu.matmul %27, %78, %cst_36 {dimension_numbers = #tpu.dot_dimension_numbers<[1], [0], [0], [1], [0, 0, 1, 1], [], []>} : vector<32x64xbf16>, vector<64x64xbf16>, vector<32x64xf32> -> vector<32x64xf32>
    %87 = arith.truncf %86 : vector<32x64xf32> to vector<32x64xbf16>
    %c1_37 = arith.constant 1 : index
    %c0_38 = arith.constant 0 : index
    %c0_39 = arith.constant 0 : index
    %88 = vector.load %arg1[%c1_37, %c0_38, %c0_39] : memref<4x64x256xbf16, #tpu.memory_space<vmem>>, vector<1x64x256xbf16>
    %89 = vector.shape_cast %88 : vector<1x64x256xbf16> to vector<64x256xbf16>
    %cst_40 = arith.constant dense<0.000000e+00> : vector<32x256xf32>
    %90 = tpu.matmul %87, %89, %cst_40 {dimension_numbers = #tpu.dot_dimension_numbers<[1], [0], [0], [1], [0, 0, 1, 1], [], []>} : vector<32x64xbf16>, vector<64x256xbf16>, vector<32x256xf32> -> vector<32x256xf32>
    %91 = arith.addf %85, %90 : vector<32x256xf32>
    %cst_41 = arith.constant dense<0.000000e+00> : vector<32x64xf32>
    %92 = tpu.matmul %39, %78, %cst_41 {dimension_numbers = #tpu.dot_dimension_numbers<[1], [0], [0], [1], [0, 0, 1, 1], [], []>} : vector<32x64xbf16>, vector<64x64xbf16>, vector<32x64xf32> -> vector<32x64xf32>
    %93 = arith.truncf %92 : vector<32x64xf32> to vector<32x64xbf16>
    %c2_42 = arith.constant 2 : index
    %c0_43 = arith.constant 0 : index
    %c0_44 = arith.constant 0 : index
    %94 = vector.load %arg1[%c2_42, %c0_43, %c0_44] : memref<4x64x256xbf16, #tpu.memory_space<vmem>>, vector<1x64x256xbf16>
    %95 = vector.shape_cast %94 : vector<1x64x256xbf16> to vector<64x256xbf16>
    %cst_45 = arith.constant dense<0.000000e+00> : vector<32x256xf32>
    %96 = tpu.matmul %93, %95, %cst_45 {dimension_numbers = #tpu.dot_dimension_numbers<[1], [0], [0], [1], [0, 0, 1, 1], [], []>} : vector<32x64xbf16>, vector<64x256xbf16>, vector<32x256xf32> -> vector<32x256xf32>
    %97 = arith.addf %91, %96 : vector<32x256xf32>
    %cst_46 = arith.constant dense<0.000000e+00> : vector<32x64xf32>
    %98 = tpu.matmul %51, %78, %cst_46 {dimension_numbers = #tpu.dot_dimension_numbers<[1], [0], [0], [1], [0, 0, 1, 1], [], []>} : vector<32x64xbf16>, vector<64x64xbf16>, vector<32x64xf32> -> vector<32x64xf32>
    %99 = arith.truncf %98 : vector<32x64xf32> to vector<32x64xbf16>
    %c3_47 = arith.constant 3 : index
    %c0_48 = arith.constant 0 : index
    %c0_49 = arith.constant 0 : index
    %100 = vector.load %arg1[%c3_47, %c0_48, %c0_49] : memref<4x64x256xbf16, #tpu.memory_space<vmem>>, vector<1x64x256xbf16>
    %101 = vector.shape_cast %100 : vector<1x64x256xbf16> to vector<64x256xbf16>
    %cst_50 = arith.constant dense<0.000000e+00> : vector<32x256xf32>
    %102 = tpu.matmul %99, %101, %cst_50 {dimension_numbers = #tpu.dot_dimension_numbers<[1], [0], [0], [1], [0, 0, 1, 1], [], []>} : vector<32x64xbf16>, vector<64x256xbf16>, vector<32x256xf32> -> vector<32x256xf32>
    %103 = arith.addf %97, %102 : vector<32x256xf32>
    %cst_51 = arith.constant 0.000000e+00 : f32
    %104 = vector.broadcast %cst_51 : f32 to vector<32x256xf32>
    %105 = arith.cmpf oge, %77, %104 : vector<32x256xf32>
    %cst_52 = arith.constant 2.000000e-01 : f32
    %106 = vector.broadcast %cst_52 : f32 to vector<32x256xf32>
    %107 = arith.mulf %106, %77 : vector<32x256xf32>
    %108 = arith.select %105, %77, %107 : vector<32x256xi1>, vector<32x256xf32>
    %cst_53 = arith.constant 0.000000e+00 : f32
    %109 = vector.broadcast %cst_53 : f32 to vector<32x256xf32>
    %110 = arith.cmpf oge, %103, %109 : vector<32x256xf32>
    %cst_54 = arith.constant 2.000000e-01 : f32
    %111 = vector.broadcast %cst_54 : f32 to vector<32x256xf32>
    %112 = arith.mulf %111, %103 : vector<32x256xf32>
    %113 = arith.select %110, %103, %112 : vector<32x256xi1>, vector<32x256xf32>
    %114 = tpu.iota {dimensions = array<i32: 0>} : vector<16x32xi32>
    %115 = tpu.iota {dimensions = array<i32: 1>} : vector<16x32xi32>
    %c2_i32_55 = arith.constant 2 : i32
    %116 = vector.broadcast %c2_i32_55 : i32 to vector<16x32xi32>
    %117 = arith.muli %116, %114 : vector<16x32xi32>
    %c1_i32_56 = arith.constant 1 : i32
    %118 = vector.broadcast %c1_i32_56 : i32 to vector<16x32xi32>
    %119 = arith.subi %117, %118 : vector<16x32xi32>
    %c0_i32_57 = arith.constant 0 : i32
    %120 = vector.broadcast %c0_i32_57 : i32 to vector<16x32xi32>
    %121 = arith.addi %119, %120 : vector<16x32xi32>
    %122 = arith.cmpi eq, %115, %121 : vector<16x32xi32>
    %123 = arith.extui %122 : vector<16x32xi1> to vector<16x32xi32>
    %124 = arith.sitofp %123 : vector<16x32xi32> to vector<16x32xf32>
    %125 = arith.truncf %124 : vector<16x32xf32> to vector<16x32xbf16>
    %126 = tpu.iota {dimensions = array<i32: 0>} : vector<16x32xi32>
    %127 = tpu.iota {dimensions = array<i32: 1>} : vector<16x32xi32>
    %c2_i32_58 = arith.constant 2 : i32
    %128 = vector.broadcast %c2_i32_58 : i32 to vector<16x32xi32>
    %129 = arith.muli %128, %126 : vector<16x32xi32>
    %c1_i32_59 = arith.constant 1 : i32
    %130 = vector.broadcast %c1_i32_59 : i32 to vector<16x32xi32>
    %131 = arith.subi %129, %130 : vector<16x32xi32>
    %c1_i32_60 = arith.constant 1 : i32
    %132 = vector.broadcast %c1_i32_60 : i32 to vector<16x32xi32>
    %133 = arith.addi %131, %132 : vector<16x32xi32>
    %134 = arith.cmpi eq, %127, %133 : vector<16x32xi32>
    %135 = arith.extui %134 : vector<16x32xi1> to vector<16x32xi32>
    %136 = arith.sitofp %135 : vector<16x32xi32> to vector<16x32xf32>
    %137 = arith.truncf %136 : vector<16x32xf32> to vector<16x32xbf16>
    %138 = tpu.iota {dimensions = array<i32: 0>} : vector<16x32xi32>
    %139 = tpu.iota {dimensions = array<i32: 1>} : vector<16x32xi32>
    %c2_i32_61 = arith.constant 2 : i32
    %140 = vector.broadcast %c2_i32_61 : i32 to vector<16x32xi32>
    %141 = arith.muli %140, %138 : vector<16x32xi32>
    %c1_i32_62 = arith.constant 1 : i32
    %142 = vector.broadcast %c1_i32_62 : i32 to vector<16x32xi32>
    %143 = arith.subi %141, %142 : vector<16x32xi32>
    %c2_i32_63 = arith.constant 2 : i32
    %144 = vector.broadcast %c2_i32_63 : i32 to vector<16x32xi32>
    %145 = arith.addi %143, %144 : vector<16x32xi32>
    %146 = arith.cmpi eq, %139, %145 : vector<16x32xi32>
    %147 = arith.extui %146 : vector<16x32xi1> to vector<16x32xi32>
    %148 = arith.sitofp %147 : vector<16x32xi32> to vector<16x32xf32>
    %149 = arith.truncf %148 : vector<16x32xf32> to vector<16x32xbf16>
    %150 = tpu.iota {dimensions = array<i32: 0>} : vector<16x32xi32>
    %151 = tpu.iota {dimensions = array<i32: 1>} : vector<16x32xi32>
    %c2_i32_64 = arith.constant 2 : i32
    %152 = vector.broadcast %c2_i32_64 : i32 to vector<16x32xi32>
    %153 = arith.muli %152, %150 : vector<16x32xi32>
    %c1_i32_65 = arith.constant 1 : i32
    %154 = vector.broadcast %c1_i32_65 : i32 to vector<16x32xi32>
    %155 = arith.subi %153, %154 : vector<16x32xi32>
    %c3_i32_66 = arith.constant 3 : i32
    %156 = vector.broadcast %c3_i32_66 : i32 to vector<16x32xi32>
    %157 = arith.addi %155, %156 : vector<16x32xi32>
    %158 = arith.cmpi eq, %151, %157 : vector<16x32xi32>
    %159 = arith.extui %158 : vector<16x32xi1> to vector<16x32xi32>
    %160 = arith.sitofp %159 : vector<16x32xi32> to vector<16x32xf32>
    %161 = arith.truncf %160 : vector<16x32xf32> to vector<16x32xbf16>
    %162 = arith.truncf %108 : vector<32x256xf32> to vector<32x256xbf16>
    %cst_67 = arith.constant 0.000000e+00 : f32
    %163 = vector.broadcast %cst_67 : f32 to vector<16x256xf32>
    %cst_68 = arith.constant dense<0.000000e+00> : vector<16x256xf32>
    %164 = tpu.matmul %125, %162, %cst_68 {dimension_numbers = #tpu.dot_dimension_numbers<[1], [0], [0], [1], [0, 0, 1, 1], [], []>} : vector<16x32xbf16>, vector<32x256xbf16>, vector<16x256xf32> -> vector<16x256xf32>
    %165 = arith.truncf %164 : vector<16x256xf32> to vector<16x256xbf16>
    %c0_69 = arith.constant 0 : index
    %c0_70 = arith.constant 0 : index
    %c0_71 = arith.constant 0 : index
    %166 = vector.load %arg2[%c0_69, %c0_70, %c0_71] : memref<4x256x256xbf16, #tpu.memory_space<vmem>>, vector<1x256x256xbf16>
    %167 = vector.shape_cast %166 : vector<1x256x256xbf16> to vector<256x256xbf16>
    %cst_72 = arith.constant dense<0.000000e+00> : vector<16x256xf32>
    %168 = tpu.matmul %165, %167, %cst_72 {dimension_numbers = #tpu.dot_dimension_numbers<[1], [0], [0], [1], [0, 0, 1, 1], [], []>} : vector<16x256xbf16>, vector<256x256xbf16>, vector<16x256xf32> -> vector<16x256xf32>
    %169 = arith.addf %163, %168 : vector<16x256xf32>
    %cst_73 = arith.constant dense<0.000000e+00> : vector<16x256xf32>
    %170 = tpu.matmul %137, %162, %cst_73 {dimension_numbers = #tpu.dot_dimension_numbers<[1], [0], [0], [1], [0, 0, 1, 1], [], []>} : vector<16x32xbf16>, vector<32x256xbf16>, vector<16x256xf32> -> vector<16x256xf32>
    %171 = arith.truncf %170 : vector<16x256xf32> to vector<16x256xbf16>
    %c1_74 = arith.constant 1 : index
    %c0_75 = arith.constant 0 : index
    %c0_76 = arith.constant 0 : index
    %172 = vector.load %arg2[%c1_74, %c0_75, %c0_76] : memref<4x256x256xbf16, #tpu.memory_space<vmem>>, vector<1x256x256xbf16>
    %173 = vector.shape_cast %172 : vector<1x256x256xbf16> to vector<256x256xbf16>
    %cst_77 = arith.constant dense<0.000000e+00> : vector<16x256xf32>
    %174 = tpu.matmul %171, %173, %cst_77 {dimension_numbers = #tpu.dot_dimension_numbers<[1], [0], [0], [1], [0, 0, 1, 1], [], []>} : vector<16x256xbf16>, vector<256x256xbf16>, vector<16x256xf32> -> vector<16x256xf32>
    %175 = arith.addf %169, %174 : vector<16x256xf32>
    %cst_78 = arith.constant dense<0.000000e+00> : vector<16x256xf32>
    %176 = tpu.matmul %149, %162, %cst_78 {dimension_numbers = #tpu.dot_dimension_numbers<[1], [0], [0], [1], [0, 0, 1, 1], [], []>} : vector<16x32xbf16>, vector<32x256xbf16>, vector<16x256xf32> -> vector<16x256xf32>
    %177 = arith.truncf %176 : vector<16x256xf32> to vector<16x256xbf16>
    %c2_79 = arith.constant 2 : index
    %c0_80 = arith.constant 0 : index
    %c0_81 = arith.constant 0 : index
    %178 = vector.load %arg2[%c2_79, %c0_80, %c0_81] : memref<4x256x256xbf16, #tpu.memory_space<vmem>>, vector<1x256x256xbf16>
    %179 = vector.shape_cast %178 : vector<1x256x256xbf16> to vector<256x256xbf16>
    %cst_82 = arith.constant dense<0.000000e+00> : vector<16x256xf32>
    %180 = tpu.matmul %177, %179, %cst_82 {dimension_numbers = #tpu.dot_dimension_numbers<[1], [0], [0], [1], [0, 0, 1, 1], [], []>} : vector<16x256xbf16>, vector<256x256xbf16>, vector<16x256xf32> -> vector<16x256xf32>
    %181 = arith.addf %175, %180 : vector<16x256xf32>
    %cst_83 = arith.constant dense<0.000000e+00> : vector<16x256xf32>
    %182 = tpu.matmul %161, %162, %cst_83 {dimension_numbers = #tpu.dot_dimension_numbers<[1], [0], [0], [1], [0, 0, 1, 1], [], []>} : vector<16x32xbf16>, vector<32x256xbf16>, vector<16x256xf32> -> vector<16x256xf32>
    %183 = arith.truncf %182 : vector<16x256xf32> to vector<16x256xbf16>
    %c3_84 = arith.constant 3 : index
    %c0_85 = arith.constant 0 : index
    %c0_86 = arith.constant 0 : index
    %184 = vector.load %arg2[%c3_84, %c0_85, %c0_86] : memref<4x256x256xbf16, #tpu.memory_space<vmem>>, vector<1x256x256xbf16>
    %185 = vector.shape_cast %184 : vector<1x256x256xbf16> to vector<256x256xbf16>
    %cst_87 = arith.constant dense<0.000000e+00> : vector<16x256xf32>
    %186 = tpu.matmul %183, %185, %cst_87 {dimension_numbers = #tpu.dot_dimension_numbers<[1], [0], [0], [1], [0, 0, 1, 1], [], []>} : vector<16x256xbf16>, vector<256x256xbf16>, vector<16x256xf32> -> vector<16x256xf32>
    %187 = arith.addf %181, %186 : vector<16x256xf32>
    %188 = arith.truncf %113 : vector<32x256xf32> to vector<32x256xbf16>
    %cst_88 = arith.constant 0.000000e+00 : f32
    %189 = vector.broadcast %cst_88 : f32 to vector<16x256xf32>
    %cst_89 = arith.constant dense<0.000000e+00> : vector<16x256xf32>
    %190 = tpu.matmul %125, %188, %cst_89 {dimension_numbers = #tpu.dot_dimension_numbers<[1], [0], [0], [1], [0, 0, 1, 1], [], []>} : vector<16x32xbf16>, vector<32x256xbf16>, vector<16x256xf32> -> vector<16x256xf32>
    %191 = arith.truncf %190 : vector<16x256xf32> to vector<16x256xbf16>
    %c0_90 = arith.constant 0 : index
    %c0_91 = arith.constant 0 : index
    %c0_92 = arith.constant 0 : index
    %192 = vector.load %arg2[%c0_90, %c0_91, %c0_92] : memref<4x256x256xbf16, #tpu.memory_space<vmem>>, vector<1x256x256xbf16>
    %193 = vector.shape_cast %192 : vector<1x256x256xbf16> to vector<256x256xbf16>
    %cst_93 = arith.constant dense<0.000000e+00> : vector<16x256xf32>
    %194 = tpu.matmul %191, %193, %cst_93 {dimension_numbers = #tpu.dot_dimension_numbers<[1], [0], [0], [1], [0, 0, 1, 1], [], []>} : vector<16x256xbf16>, vector<256x256xbf16>, vector<16x256xf32> -> vector<16x256xf32>
    %195 = arith.addf %189, %194 : vector<16x256xf32>
    %cst_94 = arith.constant dense<0.000000e+00> : vector<16x256xf32>
    %196 = tpu.matmul %137, %188, %cst_94 {dimension_numbers = #tpu.dot_dimension_numbers<[1], [0], [0], [1], [0, 0, 1, 1], [], []>} : vector<16x32xbf16>, vector<32x256xbf16>, vector<16x256xf32> -> vector<16x256xf32>
    %197 = arith.truncf %196 : vector<16x256xf32> to vector<16x256xbf16>
    %c1_95 = arith.constant 1 : index
    %c0_96 = arith.constant 0 : index
    %c0_97 = arith.constant 0 : index
    %198 = vector.load %arg2[%c1_95, %c0_96, %c0_97] : memref<4x256x256xbf16, #tpu.memory_space<vmem>>, vector<1x256x256xbf16>
    %199 = vector.shape_cast %198 : vector<1x256x256xbf16> to vector<256x256xbf16>
    %cst_98 = arith.constant dense<0.000000e+00> : vector<16x256xf32>
    %200 = tpu.matmul %197, %199, %cst_98 {dimension_numbers = #tpu.dot_dimension_numbers<[1], [0], [0], [1], [0, 0, 1, 1], [], []>} : vector<16x256xbf16>, vector<256x256xbf16>, vector<16x256xf32> -> vector<16x256xf32>
    %201 = arith.addf %195, %200 : vector<16x256xf32>
    %cst_99 = arith.constant dense<0.000000e+00> : vector<16x256xf32>
    %202 = tpu.matmul %149, %188, %cst_99 {dimension_numbers = #tpu.dot_dimension_numbers<[1], [0], [0], [1], [0, 0, 1, 1], [], []>} : vector<16x32xbf16>, vector<32x256xbf16>, vector<16x256xf32> -> vector<16x256xf32>
    %203 = arith.truncf %202 : vector<16x256xf32> to vector<16x256xbf16>
    %c2_100 = arith.constant 2 : index
    %c0_101 = arith.constant 0 : index
    %c0_102 = arith.constant 0 : index
    %204 = vector.load %arg2[%c2_100, %c0_101, %c0_102] : memref<4x256x256xbf16, #tpu.memory_space<vmem>>, vector<1x256x256xbf16>
    %205 = vector.shape_cast %204 : vector<1x256x256xbf16> to vector<256x256xbf16>
    %cst_103 = arith.constant dense<0.000000e+00> : vector<16x256xf32>
    %206 = tpu.matmul %203, %205, %cst_103 {dimension_numbers = #tpu.dot_dimension_numbers<[1], [0], [0], [1], [0, 0, 1, 1], [], []>} : vector<16x256xbf16>, vector<256x256xbf16>, vector<16x256xf32> -> vector<16x256xf32>
    %207 = arith.addf %201, %206 : vector<16x256xf32>
    %cst_104 = arith.constant dense<0.000000e+00> : vector<16x256xf32>
    %208 = tpu.matmul %161, %188, %cst_104 {dimension_numbers = #tpu.dot_dimension_numbers<[1], [0], [0], [1], [0, 0, 1, 1], [], []>} : vector<16x32xbf16>, vector<32x256xbf16>, vector<16x256xf32> -> vector<16x256xf32>
    %209 = arith.truncf %208 : vector<16x256xf32> to vector<16x256xbf16>
    %c3_105 = arith.constant 3 : index
    %c0_106 = arith.constant 0 : index
    %c0_107 = arith.constant 0 : index
    %210 = vector.load %arg2[%c3_105, %c0_106, %c0_107] : memref<4x256x256xbf16, #tpu.memory_space<vmem>>, vector<1x256x256xbf16>
    %211 = vector.shape_cast %210 : vector<1x256x256xbf16> to vector<256x256xbf16>
    %cst_108 = arith.constant dense<0.000000e+00> : vector<16x256xf32>
    %212 = tpu.matmul %209, %211, %cst_108 {dimension_numbers = #tpu.dot_dimension_numbers<[1], [0], [0], [1], [0, 0, 1, 1], [], []>} : vector<16x256xbf16>, vector<256x256xbf16>, vector<16x256xf32> -> vector<16x256xf32>
    %213 = arith.addf %207, %212 : vector<16x256xf32>
    %cst_109 = arith.constant 0.000000e+00 : f32
    %214 = vector.broadcast %cst_109 : f32 to vector<1x256xf32>
    %cst_110 = arith.constant 0.000000e+00 : f32
    %215 = vector.broadcast %cst_110 : f32 to vector<1x256xf32>
    %cst_111 = arith.constant dense<0.000000e+00> : vector<256xf32>
    %216 = vector.multi_reduction <add>, %187, %cst_111 [0] : vector<16x256xf32> to vector<256xf32>
    %217 = vector.shape_cast %216 : vector<256xf32> to vector<1x256xf32>
    %218 = arith.addf %214, %217 : vector<1x256xf32>
    %219 = arith.mulf %187, %187 : vector<16x256xf32>
    %cst_112 = arith.constant dense<0.000000e+00> : vector<256xf32>
    %220 = vector.multi_reduction <add>, %219, %cst_112 [0] : vector<16x256xf32> to vector<256xf32>
    %221 = vector.shape_cast %220 : vector<256xf32> to vector<1x256xf32>
    %222 = arith.addf %215, %221 : vector<1x256xf32>
    %cst_113 = arith.constant dense<0.000000e+00> : vector<256xf32>
    %223 = vector.multi_reduction <add>, %213, %cst_113 [0] : vector<16x256xf32> to vector<256xf32>
    %224 = vector.shape_cast %223 : vector<256xf32> to vector<1x256xf32>
    %225 = arith.addf %218, %224 : vector<1x256xf32>
    %226 = arith.mulf %213, %213 : vector<16x256xf32>
    %cst_114 = arith.constant dense<0.000000e+00> : vector<256xf32>
    %227 = vector.multi_reduction <add>, %226, %cst_114 [0] : vector<16x256xf32> to vector<256xf32>
    %228 = vector.shape_cast %227 : vector<256xf32> to vector<1x256xf32>
    %229 = arith.addf %222, %228 : vector<1x256xf32>
    %230 = tpu.iota {dimensions = array<i32: 0>} : vector<256x16xi32>
    %231 = tpu.iota {dimensions = array<i32: 1>} : vector<256x16xi32>
    %c16_i32 = arith.constant 16 : i32
    %c0_i32_115 = arith.constant 0 : i32
    %232 = arith.cmpi eq, %c16_i32, %c0_i32_115 : i32
    %c1_i32_116 = arith.constant 1 : i32
    %233 = arith.select %232, %c1_i32_116, %c16_i32 : i32
    %234 = vector.broadcast %233 : i32 to vector<256x16xi32>
    %235 = arith.remsi %230, %234 : vector<256x16xi32>
    %c0_i32_117 = arith.constant 0 : i32
    %236 = vector.broadcast %c0_i32_117 : i32 to vector<256x16xi32>
    %237 = arith.cmpi ne, %235, %236 : vector<256x16xi32>
    %c0_i32_118 = arith.constant 0 : i32
    %238 = vector.broadcast %c0_i32_118 : i32 to vector<256x16xi32>
    %239 = arith.cmpi slt, %235, %238 : vector<256x16xi32>
    %c0_i32_119 = arith.constant 0 : i32
    %240 = arith.cmpi slt, %233, %c0_i32_119 : i32
    %241 = vector.broadcast %240 : i1 to vector<256x16xi1>
    %242 = vector.broadcast %241 : vector<256x16xi1> to vector<256x16xi1>
    %243 = arith.xori %239, %242 : vector<256x16xi1>
    %244 = arith.andi %243, %237 : vector<256x16xi1>
    %245 = vector.broadcast %233 : i32 to vector<256x16xi32>
    %246 = arith.addi %235, %245 : vector<256x16xi32>
    %247 = arith.select %244, %246, %235 : vector<256x16xi1>, vector<256x16xi32>
    %248 = arith.cmpi eq, %247, %231 : vector<256x16xi32>
    %249 = arith.extui %248 : vector<256x16xi1> to vector<256x16xi32>
    %250 = arith.sitofp %249 : vector<256x16xi32> to vector<256x16xf32>
    %cst_120 = arith.constant dense<0.000000e+00> : vector<1x16xf32>
    %251 = tpu.matmul %225, %250, %cst_120 {dimension_numbers = #tpu.dot_dimension_numbers<[1], [0], [0], [1], [0, 0, 1, 1], [], []>} : vector<1x256xf32>, vector<256x16xf32>, vector<1x16xf32> -> vector<1x16xf32>
    %cst_121 = arith.constant dense<0.000000e+00> : vector<1x16xf32>
    %252 = tpu.matmul %229, %250, %cst_121 {dimension_numbers = #tpu.dot_dimension_numbers<[1], [0], [0], [1], [0, 0, 1, 1], [], []>} : vector<1x256xf32>, vector<256x16xf32>, vector<1x16xf32> -> vector<1x16xf32>
    %cst_122 = arith.constant 5.120000e+02 : f32
    %253 = vector.broadcast %cst_122 : f32 to vector<1x16xf32>
    %254 = arith.divf %251, %253 : vector<1x16xf32>
    %cst_123 = arith.constant 5.120000e+02 : f32
    %255 = vector.broadcast %cst_123 : f32 to vector<1x16xf32>
    %256 = arith.divf %252, %255 : vector<1x16xf32>
    %257 = arith.mulf %254, %254 : vector<1x16xf32>
    %258 = arith.subf %256, %257 : vector<1x16xf32>
    %c0_124 = arith.constant 0 : index
    %c0_125 = arith.constant 0 : index
    %c0_126 = arith.constant 0 : index
    %259 = vector.load %arg7[%c0_124, %c0_125, %c0_126] : memref<4x2x128xf32, #tpu.memory_space<vmem>>, vector<1x2x128xf32>
    %260 = vector.shape_cast %259 : vector<1x2x128xf32> to vector<2x128xf32>
    %261 = vector.extract_strided_slice %260 {offsets = [0, 0], sizes = [1, 16], strides = [1, 1]} : vector<2x128xf32> to vector<1x16xf32>
    %262 = vector.extract_strided_slice %260 {offsets = [1, 0], sizes = [1, 16], strides = [1, 1]} : vector<2x128xf32> to vector<1x16xf32>
    %cst_127 = arith.constant 9.99999974E-6 : f32
    %263 = vector.broadcast %cst_127 : f32 to vector<1x16xf32>
    %264 = arith.addf %258, %263 : vector<1x16xf32>
    %265 = math.rsqrt %264 : vector<1x16xf32>
    %266 = arith.mulf %261, %265 : vector<1x16xf32>
    %267 = arith.mulf %254, %266 : vector<1x16xf32>
    %268 = arith.subf %262, %267 : vector<1x16xf32>
    %269 = tpu.iota {dimensions = array<i32: 0>} : vector<16x256xi32>
    %270 = tpu.iota {dimensions = array<i32: 1>} : vector<16x256xi32>
    %c16_i32_128 = arith.constant 16 : i32
    %c0_i32_129 = arith.constant 0 : i32
    %271 = arith.cmpi eq, %c16_i32_128, %c0_i32_129 : i32
    %c1_i32_130 = arith.constant 1 : i32
    %272 = arith.select %271, %c1_i32_130, %c16_i32_128 : i32
    %273 = vector.broadcast %272 : i32 to vector<16x256xi32>
    %274 = arith.remsi %270, %273 : vector<16x256xi32>
    %c0_i32_131 = arith.constant 0 : i32
    %275 = vector.broadcast %c0_i32_131 : i32 to vector<16x256xi32>
    %276 = arith.cmpi ne, %274, %275 : vector<16x256xi32>
    %c0_i32_132 = arith.constant 0 : i32
    %277 = vector.broadcast %c0_i32_132 : i32 to vector<16x256xi32>
    %278 = arith.cmpi slt, %274, %277 : vector<16x256xi32>
    %c0_i32_133 = arith.constant 0 : i32
    %279 = arith.cmpi slt, %272, %c0_i32_133 : i32
    %280 = vector.broadcast %279 : i1 to vector<16x256xi1>
    %281 = vector.broadcast %280 : vector<16x256xi1> to vector<16x256xi1>
    %282 = arith.xori %278, %281 : vector<16x256xi1>
    %283 = arith.andi %282, %276 : vector<16x256xi1>
    %284 = vector.broadcast %272 : i32 to vector<16x256xi32>
    %285 = arith.addi %274, %284 : vector<16x256xi32>
    %286 = arith.select %283, %285, %274 : vector<16x256xi1>, vector<16x256xi32>
    %287 = arith.cmpi eq, %286, %269 : vector<16x256xi32>
    %288 = arith.extui %287 : vector<16x256xi1> to vector<16x256xi32>
    %289 = arith.sitofp %288 : vector<16x256xi32> to vector<16x256xf32>
    %cst_134 = arith.constant dense<0.000000e+00> : vector<1x256xf32>
    %290 = tpu.matmul %266, %289, %cst_134 {dimension_numbers = #tpu.dot_dimension_numbers<[1], [0], [0], [1], [0, 0, 1, 1], [], []>} : vector<1x16xf32>, vector<16x256xf32>, vector<1x256xf32> -> vector<1x256xf32>
    %cst_135 = arith.constant dense<0.000000e+00> : vector<1x256xf32>
    %291 = tpu.matmul %268, %289, %cst_135 {dimension_numbers = #tpu.dot_dimension_numbers<[1], [0], [0], [1], [0, 0, 1, 1], [], []>} : vector<1x16xf32>, vector<16x256xf32>, vector<1x256xf32> -> vector<1x256xf32>
    %292 = vector.broadcast %290 : vector<1x256xf32> to vector<16x256xf32>
    %293 = arith.mulf %187, %292 : vector<16x256xf32>
    %294 = vector.broadcast %291 : vector<1x256xf32> to vector<16x256xf32>
    %295 = arith.addf %293, %294 : vector<16x256xf32>
    %296 = vector.broadcast %290 : vector<1x256xf32> to vector<16x256xf32>
    %297 = arith.mulf %213, %296 : vector<16x256xf32>
    %298 = vector.broadcast %291 : vector<1x256xf32> to vector<16x256xf32>
    %299 = arith.addf %297, %298 : vector<16x256xf32>
    %cst_136 = arith.constant 0.000000e+00 : f32
    %300 = vector.broadcast %cst_136 : f32 to vector<16x256xf32>
    %301 = arith.cmpf oge, %295, %300 : vector<16x256xf32>
    %cst_137 = arith.constant 2.000000e-01 : f32
    %302 = vector.broadcast %cst_137 : f32 to vector<16x256xf32>
    %303 = arith.mulf %302, %295 : vector<16x256xf32>
    %304 = arith.select %301, %295, %303 : vector<16x256xi1>, vector<16x256xf32>
    %cst_138 = arith.constant 0.000000e+00 : f32
    %305 = vector.broadcast %cst_138 : f32 to vector<16x256xf32>
    %306 = arith.cmpf oge, %299, %305 : vector<16x256xf32>
    %cst_139 = arith.constant 2.000000e-01 : f32
    %307 = vector.broadcast %cst_139 : f32 to vector<16x256xf32>
    %308 = arith.mulf %307, %299 : vector<16x256xf32>
    %309 = arith.select %306, %299, %308 : vector<16x256xi1>, vector<16x256xf32>
    %310 = tpu.iota {dimensions = array<i32: 0>} : vector<8x16xi32>
    %311 = tpu.iota {dimensions = array<i32: 1>} : vector<8x16xi32>
    %c2_i32_140 = arith.constant 2 : i32
    %312 = vector.broadcast %c2_i32_140 : i32 to vector<8x16xi32>
    %313 = arith.muli %312, %310 : vector<8x16xi32>
    %c1_i32_141 = arith.constant 1 : i32
    %314 = vector.broadcast %c1_i32_141 : i32 to vector<8x16xi32>
    %315 = arith.subi %313, %314 : vector<8x16xi32>
    %c0_i32_142 = arith.constant 0 : i32
    %316 = vector.broadcast %c0_i32_142 : i32 to vector<8x16xi32>
    %317 = arith.addi %315, %316 : vector<8x16xi32>
    %318 = arith.cmpi eq, %311, %317 : vector<8x16xi32>
    %319 = arith.extui %318 : vector<8x16xi1> to vector<8x16xi32>
    %320 = arith.sitofp %319 : vector<8x16xi32> to vector<8x16xf32>
    %321 = arith.truncf %320 : vector<8x16xf32> to vector<8x16xbf16>
    %322 = tpu.iota {dimensions = array<i32: 0>} : vector<8x16xi32>
    %323 = tpu.iota {dimensions = array<i32: 1>} : vector<8x16xi32>
    %c2_i32_143 = arith.constant 2 : i32
    %324 = vector.broadcast %c2_i32_143 : i32 to vector<8x16xi32>
    %325 = arith.muli %324, %322 : vector<8x16xi32>
    %c1_i32_144 = arith.constant 1 : i32
    %326 = vector.broadcast %c1_i32_144 : i32 to vector<8x16xi32>
    %327 = arith.subi %325, %326 : vector<8x16xi32>
    %c1_i32_145 = arith.constant 1 : i32
    %328 = vector.broadcast %c1_i32_145 : i32 to vector<8x16xi32>
    %329 = arith.addi %327, %328 : vector<8x16xi32>
    %330 = arith.cmpi eq, %323, %329 : vector<8x16xi32>
    %331 = arith.extui %330 : vector<8x16xi1> to vector<8x16xi32>
    %332 = arith.sitofp %331 : vector<8x16xi32> to vector<8x16xf32>
    %333 = arith.truncf %332 : vector<8x16xf32> to vector<8x16xbf16>
    %334 = tpu.iota {dimensions = array<i32: 0>} : vector<8x16xi32>
    %335 = tpu.iota {dimensions = array<i32: 1>} : vector<8x16xi32>
    %c2_i32_146 = arith.constant 2 : i32
    %336 = vector.broadcast %c2_i32_146 : i32 to vector<8x16xi32>
    %337 = arith.muli %336, %334 : vector<8x16xi32>
    %c1_i32_147 = arith.constant 1 : i32
    %338 = vector.broadcast %c1_i32_147 : i32 to vector<8x16xi32>
    %339 = arith.subi %337, %338 : vector<8x16xi32>
    %c2_i32_148 = arith.constant 2 : i32
    %340 = vector.broadcast %c2_i32_148 : i32 to vector<8x16xi32>
    %341 = arith.addi %339, %340 : vector<8x16xi32>
    %342 = arith.cmpi eq, %335, %341 : vector<8x16xi32>
    %343 = arith.extui %342 : vector<8x16xi1> to vector<8x16xi32>
    %344 = arith.sitofp %343 : vector<8x16xi32> to vector<8x16xf32>
    %345 = arith.truncf %344 : vector<8x16xf32> to vector<8x16xbf16>
    %346 = tpu.iota {dimensions = array<i32: 0>} : vector<8x16xi32>
    %347 = tpu.iota {dimensions = array<i32: 1>} : vector<8x16xi32>
    %c2_i32_149 = arith.constant 2 : i32
    %348 = vector.broadcast %c2_i32_149 : i32 to vector<8x16xi32>
    %349 = arith.muli %348, %346 : vector<8x16xi32>
    %c1_i32_150 = arith.constant 1 : i32
    %350 = vector.broadcast %c1_i32_150 : i32 to vector<8x16xi32>
    %351 = arith.subi %349, %350 : vector<8x16xi32>
    %c3_i32_151 = arith.constant 3 : i32
    %352 = vector.broadcast %c3_i32_151 : i32 to vector<8x16xi32>
    %353 = arith.addi %351, %352 : vector<8x16xi32>
    %354 = arith.cmpi eq, %347, %353 : vector<8x16xi32>
    %355 = arith.extui %354 : vector<8x16xi1> to vector<8x16xi32>
    %356 = arith.sitofp %355 : vector<8x16xi32> to vector<8x16xf32>
    %357 = arith.truncf %356 : vector<8x16xf32> to vector<8x16xbf16>
    %358 = arith.truncf %304 : vector<16x256xf32> to vector<16x256xbf16>
    %cst_152 = arith.constant 0.000000e+00 : f32
    %359 = vector.broadcast %cst_152 : f32 to vector<8x256xf32>
    %cst_153 = arith.constant dense<0.000000e+00> : vector<8x256xf32>
    %360 = tpu.matmul %321, %358, %cst_153 {dimension_numbers = #tpu.dot_dimension_numbers<[1], [0], [0], [1], [0, 0, 1, 1], [], []>} : vector<8x16xbf16>, vector<16x256xbf16>, vector<8x256xf32> -> vector<8x256xf32>
    %361 = arith.truncf %360 : vector<8x256xf32> to vector<8x256xbf16>
    %c0_154 = arith.constant 0 : index
    %c0_155 = arith.constant 0 : index
    %c0_156 = arith.constant 0 : index
    %362 = vector.load %arg3[%c0_154, %c0_155, %c0_156] : memref<4x256x256xbf16, #tpu.memory_space<vmem>>, vector<1x256x256xbf16>
    %363 = vector.shape_cast %362 : vector<1x256x256xbf16> to vector<256x256xbf16>
    %cst_157 = arith.constant dense<0.000000e+00> : vector<8x256xf32>
    %364 = tpu.matmul %361, %363, %cst_157 {dimension_numbers = #tpu.dot_dimension_numbers<[1], [0], [0], [1], [0, 0, 1, 1], [], []>} : vector<8x256xbf16>, vector<256x256xbf16>, vector<8x256xf32> -> vector<8x256xf32>
    %365 = arith.addf %359, %364 : vector<8x256xf32>
    %cst_158 = arith.constant dense<0.000000e+00> : vector<8x256xf32>
    %366 = tpu.matmul %333, %358, %cst_158 {dimension_numbers = #tpu.dot_dimension_numbers<[1], [0], [0], [1], [0, 0, 1, 1], [], []>} : vector<8x16xbf16>, vector<16x256xbf16>, vector<8x256xf32> -> vector<8x256xf32>
    %367 = arith.truncf %366 : vector<8x256xf32> to vector<8x256xbf16>
    %c1_159 = arith.constant 1 : index
    %c0_160 = arith.constant 0 : index
    %c0_161 = arith.constant 0 : index
    %368 = vector.load %arg3[%c1_159, %c0_160, %c0_161] : memref<4x256x256xbf16, #tpu.memory_space<vmem>>, vector<1x256x256xbf16>
    %369 = vector.shape_cast %368 : vector<1x256x256xbf16> to vector<256x256xbf16>
    %cst_162 = arith.constant dense<0.000000e+00> : vector<8x256xf32>
    %370 = tpu.matmul %367, %369, %cst_162 {dimension_numbers = #tpu.dot_dimension_numbers<[1], [0], [0], [1], [0, 0, 1, 1], [], []>} : vector<8x256xbf16>, vector<256x256xbf16>, vector<8x256xf32> -> vector<8x256xf32>
    %371 = arith.addf %365, %370 : vector<8x256xf32>
    %cst_163 = arith.constant dense<0.000000e+00> : vector<8x256xf32>
    %372 = tpu.matmul %345, %358, %cst_163 {dimension_numbers = #tpu.dot_dimension_numbers<[1], [0], [0], [1], [0, 0, 1, 1], [], []>} : vector<8x16xbf16>, vector<16x256xbf16>, vector<8x256xf32> -> vector<8x256xf32>
    %373 = arith.truncf %372 : vector<8x256xf32> to vector<8x256xbf16>
    %c2_164 = arith.constant 2 : index
    %c0_165 = arith.constant 0 : index
    %c0_166 = arith.constant 0 : index
    %374 = vector.load %arg3[%c2_164, %c0_165, %c0_166] : memref<4x256x256xbf16, #tpu.memory_space<vmem>>, vector<1x256x256xbf16>
    %375 = vector.shape_cast %374 : vector<1x256x256xbf16> to vector<256x256xbf16>
    %cst_167 = arith.constant dense<0.000000e+00> : vector<8x256xf32>
    %376 = tpu.matmul %373, %375, %cst_167 {dimension_numbers = #tpu.dot_dimension_numbers<[1], [0], [0], [1], [0, 0, 1, 1], [], []>} : vector<8x256xbf16>, vector<256x256xbf16>, vector<8x256xf32> -> vector<8x256xf32>
    %377 = arith.addf %371, %376 : vector<8x256xf32>
    %cst_168 = arith.constant dense<0.000000e+00> : vector<8x256xf32>
    %378 = tpu.matmul %357, %358, %cst_168 {dimension_numbers = #tpu.dot_dimension_numbers<[1], [0], [0], [1], [0, 0, 1, 1], [], []>} : vector<8x16xbf16>, vector<16x256xbf16>, vector<8x256xf32> -> vector<8x256xf32>
    %379 = arith.truncf %378 : vector<8x256xf32> to vector<8x256xbf16>
    %c3_169 = arith.constant 3 : index
    %c0_170 = arith.constant 0 : index
    %c0_171 = arith.constant 0 : index
    %380 = vector.load %arg3[%c3_169, %c0_170, %c0_171] : memref<4x256x256xbf16, #tpu.memory_space<vmem>>, vector<1x256x256xbf16>
    %381 = vector.shape_cast %380 : vector<1x256x256xbf16> to vector<256x256xbf16>
    %cst_172 = arith.constant dense<0.000000e+00> : vector<8x256xf32>
    %382 = tpu.matmul %379, %381, %cst_172 {dimension_numbers = #tpu.dot_dimension_numbers<[1], [0], [0], [1], [0, 0, 1, 1], [], []>} : vector<8x256xbf16>, vector<256x256xbf16>, vector<8x256xf32> -> vector<8x256xf32>
    %383 = arith.addf %377, %382 : vector<8x256xf32>
    %384 = arith.truncf %309 : vector<16x256xf32> to vector<16x256xbf16>
    %cst_173 = arith.constant 0.000000e+00 : f32
    %385 = vector.broadcast %cst_173 : f32 to vector<8x256xf32>
    %cst_174 = arith.constant dense<0.000000e+00> : vector<8x256xf32>
    %386 = tpu.matmul %321, %384, %cst_174 {dimension_numbers = #tpu.dot_dimension_numbers<[1], [0], [0], [1], [0, 0, 1, 1], [], []>} : vector<8x16xbf16>, vector<16x256xbf16>, vector<8x256xf32> -> vector<8x256xf32>
    %387 = arith.truncf %386 : vector<8x256xf32> to vector<8x256xbf16>
    %c0_175 = arith.constant 0 : index
    %c0_176 = arith.constant 0 : index
    %c0_177 = arith.constant 0 : index
    %388 = vector.load %arg3[%c0_175, %c0_176, %c0_177] : memref<4x256x256xbf16, #tpu.memory_space<vmem>>, vector<1x256x256xbf16>
    %389 = vector.shape_cast %388 : vector<1x256x256xbf16> to vector<256x256xbf16>
    %cst_178 = arith.constant dense<0.000000e+00> : vector<8x256xf32>
    %390 = tpu.matmul %387, %389, %cst_178 {dimension_numbers = #tpu.dot_dimension_numbers<[1], [0], [0], [1], [0, 0, 1, 1], [], []>} : vector<8x256xbf16>, vector<256x256xbf16>, vector<8x256xf32> -> vector<8x256xf32>
    %391 = arith.addf %385, %390 : vector<8x256xf32>
    %cst_179 = arith.constant dense<0.000000e+00> : vector<8x256xf32>
    %392 = tpu.matmul %333, %384, %cst_179 {dimension_numbers = #tpu.dot_dimension_numbers<[1], [0], [0], [1], [0, 0, 1, 1], [], []>} : vector<8x16xbf16>, vector<16x256xbf16>, vector<8x256xf32> -> vector<8x256xf32>
    %393 = arith.truncf %392 : vector<8x256xf32> to vector<8x256xbf16>
    %c1_180 = arith.constant 1 : index
    %c0_181 = arith.constant 0 : index
    %c0_182 = arith.constant 0 : index
    %394 = vector.load %arg3[%c1_180, %c0_181, %c0_182] : memref<4x256x256xbf16, #tpu.memory_space<vmem>>, vector<1x256x256xbf16>
    %395 = vector.shape_cast %394 : vector<1x256x256xbf16> to vector<256x256xbf16>
    %cst_183 = arith.constant dense<0.000000e+00> : vector<8x256xf32>
    %396 = tpu.matmul %393, %395, %cst_183 {dimension_numbers = #tpu.dot_dimension_numbers<[1], [0], [0], [1], [0, 0, 1, 1], [], []>} : vector<8x256xbf16>, vector<256x256xbf16>, vector<8x256xf32> -> vector<8x256xf32>
    %397 = arith.addf %391, %396 : vector<8x256xf32>
    %cst_184 = arith.constant dense<0.000000e+00> : vector<8x256xf32>
    %398 = tpu.matmul %345, %384, %cst_184 {dimension_numbers = #tpu.dot_dimension_numbers<[1], [0], [0], [1], [0, 0, 1, 1], [], []>} : vector<8x16xbf16>, vector<16x256xbf16>, vector<8x256xf32> -> vector<8x256xf32>
    %399 = arith.truncf %398 : vector<8x256xf32> to vector<8x256xbf16>
    %c2_185 = arith.constant 2 : index
    %c0_186 = arith.constant 0 : index
    %c0_187 = arith.constant 0 : index
    %400 = vector.load %arg3[%c2_185, %c0_186, %c0_187] : memref<4x256x256xbf16, #tpu.memory_space<vmem>>, vector<1x256x256xbf16>
    %401 = vector.shape_cast %400 : vector<1x256x256xbf16> to vector<256x256xbf16>
    %cst_188 = arith.constant dense<0.000000e+00> : vector<8x256xf32>
    %402 = tpu.matmul %399, %401, %cst_188 {dimension_numbers = #tpu.dot_dimension_numbers<[1], [0], [0], [1], [0, 0, 1, 1], [], []>} : vector<8x256xbf16>, vector<256x256xbf16>, vector<8x256xf32> -> vector<8x256xf32>
    %403 = arith.addf %397, %402 : vector<8x256xf32>
    %cst_189 = arith.constant dense<0.000000e+00> : vector<8x256xf32>
    %404 = tpu.matmul %357, %384, %cst_189 {dimension_numbers = #tpu.dot_dimension_numbers<[1], [0], [0], [1], [0, 0, 1, 1], [], []>} : vector<8x16xbf16>, vector<16x256xbf16>, vector<8x256xf32> -> vector<8x256xf32>
    %405 = arith.truncf %404 : vector<8x256xf32> to vector<8x256xbf16>
    %c3_190 = arith.constant 3 : index
    %c0_191 = arith.constant 0 : index
    %c0_192 = arith.constant 0 : index
    %406 = vector.load %arg3[%c3_190, %c0_191, %c0_192] : memref<4x256x256xbf16, #tpu.memory_space<vmem>>, vector<1x256x256xbf16>
    %407 = vector.shape_cast %406 : vector<1x256x256xbf16> to vector<256x256xbf16>
    %cst_193 = arith.constant dense<0.000000e+00> : vector<8x256xf32>
    %408 = tpu.matmul %405, %407, %cst_193 {dimension_numbers = #tpu.dot_dimension_numbers<[1], [0], [0], [1], [0, 0, 1, 1], [], []>} : vector<8x256xbf16>, vector<256x256xbf16>, vector<8x256xf32> -> vector<8x256xf32>
    %409 = arith.addf %403, %408 : vector<8x256xf32>
    %cst_194 = arith.constant 0.000000e+00 : f32
    %410 = vector.broadcast %cst_194 : f32 to vector<1x256xf32>
    %cst_195 = arith.constant 0.000000e+00 : f32
    %411 = vector.broadcast %cst_195 : f32 to vector<1x256xf32>
    %cst_196 = arith.constant dense<0.000000e+00> : vector<256xf32>
    %412 = vector.multi_reduction <add>, %383, %cst_196 [0] : vector<8x256xf32> to vector<256xf32>
    %413 = vector.shape_cast %412 : vector<256xf32> to vector<1x256xf32>
    %414 = arith.addf %410, %413 : vector<1x256xf32>
    %415 = arith.mulf %383, %383 : vector<8x256xf32>
    %cst_197 = arith.constant dense<0.000000e+00> : vector<256xf32>
    %416 = vector.multi_reduction <add>, %415, %cst_197 [0] : vector<8x256xf32> to vector<256xf32>
    %417 = vector.shape_cast %416 : vector<256xf32> to vector<1x256xf32>
    %418 = arith.addf %411, %417 : vector<1x256xf32>
    %cst_198 = arith.constant dense<0.000000e+00> : vector<256xf32>
    %419 = vector.multi_reduction <add>, %409, %cst_198 [0] : vector<8x256xf32> to vector<256xf32>
    %420 = vector.shape_cast %419 : vector<256xf32> to vector<1x256xf32>
    %421 = arith.addf %414, %420 : vector<1x256xf32>
    %422 = arith.mulf %409, %409 : vector<8x256xf32>
    %cst_199 = arith.constant dense<0.000000e+00> : vector<256xf32>
    %423 = vector.multi_reduction <add>, %422, %cst_199 [0] : vector<8x256xf32> to vector<256xf32>
    %424 = vector.shape_cast %423 : vector<256xf32> to vector<1x256xf32>
    %425 = arith.addf %418, %424 : vector<1x256xf32>
    %426 = tpu.iota {dimensions = array<i32: 0>} : vector<256x32xi32>
    %427 = tpu.iota {dimensions = array<i32: 1>} : vector<256x32xi32>
    %c32_i32 = arith.constant 32 : i32
    %c0_i32_200 = arith.constant 0 : i32
    %428 = arith.cmpi eq, %c32_i32, %c0_i32_200 : i32
    %c1_i32_201 = arith.constant 1 : i32
    %429 = arith.select %428, %c1_i32_201, %c32_i32 : i32
    %430 = vector.broadcast %429 : i32 to vector<256x32xi32>
    %431 = arith.remsi %426, %430 : vector<256x32xi32>
    %c0_i32_202 = arith.constant 0 : i32
    %432 = vector.broadcast %c0_i32_202 : i32 to vector<256x32xi32>
    %433 = arith.cmpi ne, %431, %432 : vector<256x32xi32>
    %c0_i32_203 = arith.constant 0 : i32
    %434 = vector.broadcast %c0_i32_203 : i32 to vector<256x32xi32>
    %435 = arith.cmpi slt, %431, %434 : vector<256x32xi32>
    %c0_i32_204 = arith.constant 0 : i32
    %436 = arith.cmpi slt, %429, %c0_i32_204 : i32
    %437 = vector.broadcast %436 : i1 to vector<256x32xi1>
    %438 = vector.broadcast %437 : vector<256x32xi1> to vector<256x32xi1>
    %439 = arith.xori %435, %438 : vector<256x32xi1>
    %440 = arith.andi %439, %433 : vector<256x32xi1>
    %441 = vector.broadcast %429 : i32 to vector<256x32xi32>
    %442 = arith.addi %431, %441 : vector<256x32xi32>
    %443 = arith.select %440, %442, %431 : vector<256x32xi1>, vector<256x32xi32>
    %444 = arith.cmpi eq, %443, %427 : vector<256x32xi32>
    %445 = arith.extui %444 : vector<256x32xi1> to vector<256x32xi32>
    %446 = arith.sitofp %445 : vector<256x32xi32> to vector<256x32xf32>
    %cst_205 = arith.constant dense<0.000000e+00> : vector<1x32xf32>
    %447 = tpu.matmul %421, %446, %cst_205 {dimension_numbers = #tpu.dot_dimension_numbers<[1], [0], [0], [1], [0, 0, 1, 1], [], []>} : vector<1x256xf32>, vector<256x32xf32>, vector<1x32xf32> -> vector<1x32xf32>
    %cst_206 = arith.constant dense<0.000000e+00> : vector<1x32xf32>
    %448 = tpu.matmul %425, %446, %cst_206 {dimension_numbers = #tpu.dot_dimension_numbers<[1], [0], [0], [1], [0, 0, 1, 1], [], []>} : vector<1x256xf32>, vector<256x32xf32>, vector<1x32xf32> -> vector<1x32xf32>
    %cst_207 = arith.constant 1.280000e+02 : f32
    %449 = vector.broadcast %cst_207 : f32 to vector<1x32xf32>
    %450 = arith.divf %447, %449 : vector<1x32xf32>
    %cst_208 = arith.constant 1.280000e+02 : f32
    %451 = vector.broadcast %cst_208 : f32 to vector<1x32xf32>
    %452 = arith.divf %448, %451 : vector<1x32xf32>
    %453 = arith.mulf %450, %450 : vector<1x32xf32>
    %454 = arith.subf %452, %453 : vector<1x32xf32>
    %c1_209 = arith.constant 1 : index
    %c0_210 = arith.constant 0 : index
    %c0_211 = arith.constant 0 : index
    %455 = vector.load %arg7[%c1_209, %c0_210, %c0_211] : memref<4x2x128xf32, #tpu.memory_space<vmem>>, vector<1x2x128xf32>
    %456 = vector.shape_cast %455 : vector<1x2x128xf32> to vector<2x128xf32>
    %457 = vector.extract_strided_slice %456 {offsets = [0, 0], sizes = [1, 32], strides = [1, 1]} : vector<2x128xf32> to vector<1x32xf32>
    %458 = vector.extract_strided_slice %456 {offsets = [1, 0], sizes = [1, 32], strides = [1, 1]} : vector<2x128xf32> to vector<1x32xf32>
    %cst_212 = arith.constant 9.99999974E-6 : f32
    %459 = vector.broadcast %cst_212 : f32 to vector<1x32xf32>
    %460 = arith.addf %454, %459 : vector<1x32xf32>
    %461 = math.rsqrt %460 : vector<1x32xf32>
    %462 = arith.mulf %457, %461 : vector<1x32xf32>
    %463 = arith.mulf %450, %462 : vector<1x32xf32>
    %464 = arith.subf %458, %463 : vector<1x32xf32>
    %465 = tpu.iota {dimensions = array<i32: 0>} : vector<32x256xi32>
    %466 = tpu.iota {dimensions = array<i32: 1>} : vector<32x256xi32>
    %c32_i32_213 = arith.constant 32 : i32
    %c0_i32_214 = arith.constant 0 : i32
    %467 = arith.cmpi eq, %c32_i32_213, %c0_i32_214 : i32
    %c1_i32_215 = arith.constant 1 : i32
    %468 = arith.select %467, %c1_i32_215, %c32_i32_213 : i32
    %469 = vector.broadcast %468 : i32 to vector<32x256xi32>
    %470 = arith.remsi %466, %469 : vector<32x256xi32>
    %c0_i32_216 = arith.constant 0 : i32
    %471 = vector.broadcast %c0_i32_216 : i32 to vector<32x256xi32>
    %472 = arith.cmpi ne, %470, %471 : vector<32x256xi32>
    %c0_i32_217 = arith.constant 0 : i32
    %473 = vector.broadcast %c0_i32_217 : i32 to vector<32x256xi32>
    %474 = arith.cmpi slt, %470, %473 : vector<32x256xi32>
    %c0_i32_218 = arith.constant 0 : i32
    %475 = arith.cmpi slt, %468, %c0_i32_218 : i32
    %476 = vector.broadcast %475 : i1 to vector<32x256xi1>
    %477 = vector.broadcast %476 : vector<32x256xi1> to vector<32x256xi1>
    %478 = arith.xori %474, %477 : vector<32x256xi1>
    %479 = arith.andi %478, %472 : vector<32x256xi1>
    %480 = vector.broadcast %468 : i32 to vector<32x256xi32>
    %481 = arith.addi %470, %480 : vector<32x256xi32>
    %482 = arith.select %479, %481, %470 : vector<32x256xi1>, vector<32x256xi32>
    %483 = arith.cmpi eq, %482, %465 : vector<32x256xi32>
    %484 = arith.extui %483 : vector<32x256xi1> to vector<32x256xi32>
    %485 = arith.sitofp %484 : vector<32x256xi32> to vector<32x256xf32>
    %cst_219 = arith.constant dense<0.000000e+00> : vector<1x256xf32>
    %486 = tpu.matmul %462, %485, %cst_219 {dimension_numbers = #tpu.dot_dimension_numbers<[1], [0], [0], [1], [0, 0, 1, 1], [], []>} : vector<1x32xf32>, vector<32x256xf32>, vector<1x256xf32> -> vector<1x256xf32>
    %cst_220 = arith.constant dense<0.000000e+00> : vector<1x256xf32>
    %487 = tpu.matmul %464, %485, %cst_220 {dimension_numbers = #tpu.dot_dimension_numbers<[1], [0], [0], [1], [0, 0, 1, 1], [], []>} : vector<1x32xf32>, vector<32x256xf32>, vector<1x256xf32> -> vector<1x256xf32>
    %488 = vector.broadcast %486 : vector<1x256xf32> to vector<8x256xf32>
    %489 = arith.mulf %383, %488 : vector<8x256xf32>
    %490 = vector.broadcast %487 : vector<1x256xf32> to vector<8x256xf32>
    %491 = arith.addf %489, %490 : vector<8x256xf32>
    %492 = vector.broadcast %486 : vector<1x256xf32> to vector<8x256xf32>
    %493 = arith.mulf %409, %492 : vector<8x256xf32>
    %494 = vector.broadcast %487 : vector<1x256xf32> to vector<8x256xf32>
    %495 = arith.addf %493, %494 : vector<8x256xf32>
    %cst_221 = arith.constant 0.000000e+00 : f32
    %496 = vector.broadcast %cst_221 : f32 to vector<8x256xf32>
    %497 = arith.cmpf oge, %491, %496 : vector<8x256xf32>
    %cst_222 = arith.constant 2.000000e-01 : f32
    %498 = vector.broadcast %cst_222 : f32 to vector<8x256xf32>
    %499 = arith.mulf %498, %491 : vector<8x256xf32>
    %500 = arith.select %497, %491, %499 : vector<8x256xi1>, vector<8x256xf32>
    %cst_223 = arith.constant 0.000000e+00 : f32
    %501 = vector.broadcast %cst_223 : f32 to vector<8x256xf32>
    %502 = arith.cmpf oge, %495, %501 : vector<8x256xf32>
    %cst_224 = arith.constant 2.000000e-01 : f32
    %503 = vector.broadcast %cst_224 : f32 to vector<8x256xf32>
    %504 = arith.mulf %503, %495 : vector<8x256xf32>
    %505 = arith.select %502, %495, %504 : vector<8x256xi1>, vector<8x256xf32>
    %506 = tpu.iota {dimensions = array<i32: 0>} : vector<4x8xi32>
    %507 = tpu.iota {dimensions = array<i32: 1>} : vector<4x8xi32>
    %c2_i32_225 = arith.constant 2 : i32
    %508 = vector.broadcast %c2_i32_225 : i32 to vector<4x8xi32>
    %509 = arith.muli %508, %506 : vector<4x8xi32>
    %c1_i32_226 = arith.constant 1 : i32
    %510 = vector.broadcast %c1_i32_226 : i32 to vector<4x8xi32>
    %511 = arith.subi %509, %510 : vector<4x8xi32>
    %c0_i32_227 = arith.constant 0 : i32
    %512 = vector.broadcast %c0_i32_227 : i32 to vector<4x8xi32>
    %513 = arith.addi %511, %512 : vector<4x8xi32>
    %514 = arith.cmpi eq, %507, %513 : vector<4x8xi32>
    %515 = arith.extui %514 : vector<4x8xi1> to vector<4x8xi32>
    %516 = arith.sitofp %515 : vector<4x8xi32> to vector<4x8xf32>
    %517 = arith.truncf %516 : vector<4x8xf32> to vector<4x8xbf16>
    %518 = tpu.iota {dimensions = array<i32: 0>} : vector<4x8xi32>
    %519 = tpu.iota {dimensions = array<i32: 1>} : vector<4x8xi32>
    %c2_i32_228 = arith.constant 2 : i32
    %520 = vector.broadcast %c2_i32_228 : i32 to vector<4x8xi32>
    %521 = arith.muli %520, %518 : vector<4x8xi32>
    %c1_i32_229 = arith.constant 1 : i32
    %522 = vector.broadcast %c1_i32_229 : i32 to vector<4x8xi32>
    %523 = arith.subi %521, %522 : vector<4x8xi32>
    %c1_i32_230 = arith.constant 1 : i32
    %524 = vector.broadcast %c1_i32_230 : i32 to vector<4x8xi32>
    %525 = arith.addi %523, %524 : vector<4x8xi32>
    %526 = arith.cmpi eq, %519, %525 : vector<4x8xi32>
    %527 = arith.extui %526 : vector<4x8xi1> to vector<4x8xi32>
    %528 = arith.sitofp %527 : vector<4x8xi32> to vector<4x8xf32>
    %529 = arith.truncf %528 : vector<4x8xf32> to vector<4x8xbf16>
    %530 = tpu.iota {dimensions = array<i32: 0>} : vector<4x8xi32>
    %531 = tpu.iota {dimensions = array<i32: 1>} : vector<4x8xi32>
    %c2_i32_231 = arith.constant 2 : i32
    %532 = vector.broadcast %c2_i32_231 : i32 to vector<4x8xi32>
    %533 = arith.muli %532, %530 : vector<4x8xi32>
    %c1_i32_232 = arith.constant 1 : i32
    %534 = vector.broadcast %c1_i32_232 : i32 to vector<4x8xi32>
    %535 = arith.subi %533, %534 : vector<4x8xi32>
    %c2_i32_233 = arith.constant 2 : i32
    %536 = vector.broadcast %c2_i32_233 : i32 to vector<4x8xi32>
    %537 = arith.addi %535, %536 : vector<4x8xi32>
    %538 = arith.cmpi eq, %531, %537 : vector<4x8xi32>
    %539 = arith.extui %538 : vector<4x8xi1> to vector<4x8xi32>
    %540 = arith.sitofp %539 : vector<4x8xi32> to vector<4x8xf32>
    %541 = arith.truncf %540 : vector<4x8xf32> to vector<4x8xbf16>
    %542 = tpu.iota {dimensions = array<i32: 0>} : vector<4x8xi32>
    %543 = tpu.iota {dimensions = array<i32: 1>} : vector<4x8xi32>
    %c2_i32_234 = arith.constant 2 : i32
    %544 = vector.broadcast %c2_i32_234 : i32 to vector<4x8xi32>
    %545 = arith.muli %544, %542 : vector<4x8xi32>
    %c1_i32_235 = arith.constant 1 : i32
    %546 = vector.broadcast %c1_i32_235 : i32 to vector<4x8xi32>
    %547 = arith.subi %545, %546 : vector<4x8xi32>
    %c3_i32_236 = arith.constant 3 : i32
    %548 = vector.broadcast %c3_i32_236 : i32 to vector<4x8xi32>
    %549 = arith.addi %547, %548 : vector<4x8xi32>
    %550 = arith.cmpi eq, %543, %549 : vector<4x8xi32>
    %551 = arith.extui %550 : vector<4x8xi1> to vector<4x8xi32>
    %552 = arith.sitofp %551 : vector<4x8xi32> to vector<4x8xf32>
    %553 = arith.truncf %552 : vector<4x8xf32> to vector<4x8xbf16>
    %554 = arith.truncf %500 : vector<8x256xf32> to vector<8x256xbf16>
    %cst_237 = arith.constant 0.000000e+00 : f32
    %555 = vector.broadcast %cst_237 : f32 to vector<4x256xf32>
    %cst_238 = arith.constant dense<0.000000e+00> : vector<4x256xf32>
    %556 = tpu.matmul %517, %554, %cst_238 {dimension_numbers = #tpu.dot_dimension_numbers<[1], [0], [0], [1], [0, 0, 1, 1], [], []>} : vector<4x8xbf16>, vector<8x256xbf16>, vector<4x256xf32> -> vector<4x256xf32>
    %557 = arith.truncf %556 : vector<4x256xf32> to vector<4x256xbf16>
    %c0_239 = arith.constant 0 : index
    %c0_240 = arith.constant 0 : index
    %c0_241 = arith.constant 0 : index
    %558 = vector.load %arg4[%c0_239, %c0_240, %c0_241] : memref<4x256x256xbf16, #tpu.memory_space<vmem>>, vector<1x256x256xbf16>
    %559 = vector.shape_cast %558 : vector<1x256x256xbf16> to vector<256x256xbf16>
    %cst_242 = arith.constant dense<0.000000e+00> : vector<4x256xf32>
    %560 = tpu.matmul %557, %559, %cst_242 {dimension_numbers = #tpu.dot_dimension_numbers<[1], [0], [0], [1], [0, 0, 1, 1], [], []>} : vector<4x256xbf16>, vector<256x256xbf16>, vector<4x256xf32> -> vector<4x256xf32>
    %561 = arith.addf %555, %560 : vector<4x256xf32>
    %cst_243 = arith.constant dense<0.000000e+00> : vector<4x256xf32>
    %562 = tpu.matmul %529, %554, %cst_243 {dimension_numbers = #tpu.dot_dimension_numbers<[1], [0], [0], [1], [0, 0, 1, 1], [], []>} : vector<4x8xbf16>, vector<8x256xbf16>, vector<4x256xf32> -> vector<4x256xf32>
    %563 = arith.truncf %562 : vector<4x256xf32> to vector<4x256xbf16>
    %c1_244 = arith.constant 1 : index
    %c0_245 = arith.constant 0 : index
    %c0_246 = arith.constant 0 : index
    %564 = vector.load %arg4[%c1_244, %c0_245, %c0_246] : memref<4x256x256xbf16, #tpu.memory_space<vmem>>, vector<1x256x256xbf16>
    %565 = vector.shape_cast %564 : vector<1x256x256xbf16> to vector<256x256xbf16>
    %cst_247 = arith.constant dense<0.000000e+00> : vector<4x256xf32>
    %566 = tpu.matmul %563, %565, %cst_247 {dimension_numbers = #tpu.dot_dimension_numbers<[1], [0], [0], [1], [0, 0, 1, 1], [], []>} : vector<4x256xbf16>, vector<256x256xbf16>, vector<4x256xf32> -> vector<4x256xf32>
    %567 = arith.addf %561, %566 : vector<4x256xf32>
    %cst_248 = arith.constant dense<0.000000e+00> : vector<4x256xf32>
    %568 = tpu.matmul %541, %554, %cst_248 {dimension_numbers = #tpu.dot_dimension_numbers<[1], [0], [0], [1], [0, 0, 1, 1], [], []>} : vector<4x8xbf16>, vector<8x256xbf16>, vector<4x256xf32> -> vector<4x256xf32>
    %569 = arith.truncf %568 : vector<4x256xf32> to vector<4x256xbf16>
    %c2_249 = arith.constant 2 : index
    %c0_250 = arith.constant 0 : index
    %c0_251 = arith.constant 0 : index
    %570 = vector.load %arg4[%c2_249, %c0_250, %c0_251] : memref<4x256x256xbf16, #tpu.memory_space<vmem>>, vector<1x256x256xbf16>
    %571 = vector.shape_cast %570 : vector<1x256x256xbf16> to vector<256x256xbf16>
    %cst_252 = arith.constant dense<0.000000e+00> : vector<4x256xf32>
    %572 = tpu.matmul %569, %571, %cst_252 {dimension_numbers = #tpu.dot_dimension_numbers<[1], [0], [0], [1], [0, 0, 1, 1], [], []>} : vector<4x256xbf16>, vector<256x256xbf16>, vector<4x256xf32> -> vector<4x256xf32>
    %573 = arith.addf %567, %572 : vector<4x256xf32>
    %cst_253 = arith.constant dense<0.000000e+00> : vector<4x256xf32>
    %574 = tpu.matmul %553, %554, %cst_253 {dimension_numbers = #tpu.dot_dimension_numbers<[1], [0], [0], [1], [0, 0, 1, 1], [], []>} : vector<4x8xbf16>, vector<8x256xbf16>, vector<4x256xf32> -> vector<4x256xf32>
    %575 = arith.truncf %574 : vector<4x256xf32> to vector<4x256xbf16>
    %c3_254 = arith.constant 3 : index
    %c0_255 = arith.constant 0 : index
    %c0_256 = arith.constant 0 : index
    %576 = vector.load %arg4[%c3_254, %c0_255, %c0_256] : memref<4x256x256xbf16, #tpu.memory_space<vmem>>, vector<1x256x256xbf16>
    %577 = vector.shape_cast %576 : vector<1x256x256xbf16> to vector<256x256xbf16>
    %cst_257 = arith.constant dense<0.000000e+00> : vector<4x256xf32>
    %578 = tpu.matmul %575, %577, %cst_257 {dimension_numbers = #tpu.dot_dimension_numbers<[1], [0], [0], [1], [0, 0, 1, 1], [], []>} : vector<4x256xbf16>, vector<256x256xbf16>, vector<4x256xf32> -> vector<4x256xf32>
    %579 = arith.addf %573, %578 : vector<4x256xf32>
    %580 = arith.truncf %505 : vector<8x256xf32> to vector<8x256xbf16>
    %cst_258 = arith.constant 0.000000e+00 : f32
    %581 = vector.broadcast %cst_258 : f32 to vector<4x256xf32>
    %cst_259 = arith.constant dense<0.000000e+00> : vector<4x256xf32>
    %582 = tpu.matmul %517, %580, %cst_259 {dimension_numbers = #tpu.dot_dimension_numbers<[1], [0], [0], [1], [0, 0, 1, 1], [], []>} : vector<4x8xbf16>, vector<8x256xbf16>, vector<4x256xf32> -> vector<4x256xf32>
    %583 = arith.truncf %582 : vector<4x256xf32> to vector<4x256xbf16>
    %c0_260 = arith.constant 0 : index
    %c0_261 = arith.constant 0 : index
    %c0_262 = arith.constant 0 : index
    %584 = vector.load %arg4[%c0_260, %c0_261, %c0_262] : memref<4x256x256xbf16, #tpu.memory_space<vmem>>, vector<1x256x256xbf16>
    %585 = vector.shape_cast %584 : vector<1x256x256xbf16> to vector<256x256xbf16>
    %cst_263 = arith.constant dense<0.000000e+00> : vector<4x256xf32>
    %586 = tpu.matmul %583, %585, %cst_263 {dimension_numbers = #tpu.dot_dimension_numbers<[1], [0], [0], [1], [0, 0, 1, 1], [], []>} : vector<4x256xbf16>, vector<256x256xbf16>, vector<4x256xf32> -> vector<4x256xf32>
    %587 = arith.addf %581, %586 : vector<4x256xf32>
    %cst_264 = arith.constant dense<0.000000e+00> : vector<4x256xf32>
    %588 = tpu.matmul %529, %580, %cst_264 {dimension_numbers = #tpu.dot_dimension_numbers<[1], [0], [0], [1], [0, 0, 1, 1], [], []>} : vector<4x8xbf16>, vector<8x256xbf16>, vector<4x256xf32> -> vector<4x256xf32>
    %589 = arith.truncf %588 : vector<4x256xf32> to vector<4x256xbf16>
    %c1_265 = arith.constant 1 : index
    %c0_266 = arith.constant 0 : index
    %c0_267 = arith.constant 0 : index
    %590 = vector.load %arg4[%c1_265, %c0_266, %c0_267] : memref<4x256x256xbf16, #tpu.memory_space<vmem>>, vector<1x256x256xbf16>
    %591 = vector.shape_cast %590 : vector<1x256x256xbf16> to vector<256x256xbf16>
    %cst_268 = arith.constant dense<0.000000e+00> : vector<4x256xf32>
    %592 = tpu.matmul %589, %591, %cst_268 {dimension_numbers = #tpu.dot_dimension_numbers<[1], [0], [0], [1], [0, 0, 1, 1], [], []>} : vector<4x256xbf16>, vector<256x256xbf16>, vector<4x256xf32> -> vector<4x256xf32>
    %593 = arith.addf %587, %592 : vector<4x256xf32>
    %cst_269 = arith.constant dense<0.000000e+00> : vector<4x256xf32>
    %594 = tpu.matmul %541, %580, %cst_269 {dimension_numbers = #tpu.dot_dimension_numbers<[1], [0], [0], [1], [0, 0, 1, 1], [], []>} : vector<4x8xbf16>, vector<8x256xbf16>, vector<4x256xf32> -> vector<4x256xf32>
    %595 = arith.truncf %594 : vector<4x256xf32> to vector<4x256xbf16>
    %c2_270 = arith.constant 2 : index
    %c0_271 = arith.constant 0 : index
    %c0_272 = arith.constant 0 : index
    %596 = vector.load %arg4[%c2_270, %c0_271, %c0_272] : memref<4x256x256xbf16, #tpu.memory_space<vmem>>, vector<1x256x256xbf16>
    %597 = vector.shape_cast %596 : vector<1x256x256xbf16> to vector<256x256xbf16>
    %cst_273 = arith.constant dense<0.000000e+00> : vector<4x256xf32>
    %598 = tpu.matmul %595, %597, %cst_273 {dimension_numbers = #tpu.dot_dimension_numbers<[1], [0], [0], [1], [0, 0, 1, 1], [], []>} : vector<4x256xbf16>, vector<256x256xbf16>, vector<4x256xf32> -> vector<4x256xf32>
    %599 = arith.addf %593, %598 : vector<4x256xf32>
    %cst_274 = arith.constant dense<0.000000e+00> : vector<4x256xf32>
    %600 = tpu.matmul %553, %580, %cst_274 {dimension_numbers = #tpu.dot_dimension_numbers<[1], [0], [0], [1], [0, 0, 1, 1], [], []>} : vector<4x8xbf16>, vector<8x256xbf16>, vector<4x256xf32> -> vector<4x256xf32>
    %601 = arith.truncf %600 : vector<4x256xf32> to vector<4x256xbf16>
    %c3_275 = arith.constant 3 : index
    %c0_276 = arith.constant 0 : index
    %c0_277 = arith.constant 0 : index
    %602 = vector.load %arg4[%c3_275, %c0_276, %c0_277] : memref<4x256x256xbf16, #tpu.memory_space<vmem>>, vector<1x256x256xbf16>
    %603 = vector.shape_cast %602 : vector<1x256x256xbf16> to vector<256x256xbf16>
    %cst_278 = arith.constant dense<0.000000e+00> : vector<4x256xf32>
    %604 = tpu.matmul %601, %603, %cst_278 {dimension_numbers = #tpu.dot_dimension_numbers<[1], [0], [0], [1], [0, 0, 1, 1], [], []>} : vector<4x256xbf16>, vector<256x256xbf16>, vector<4x256xf32> -> vector<4x256xf32>
    %605 = arith.addf %599, %604 : vector<4x256xf32>
    %cst_279 = arith.constant 0.000000e+00 : f32
    %606 = vector.broadcast %cst_279 : f32 to vector<1x256xf32>
    %cst_280 = arith.constant 0.000000e+00 : f32
    %607 = vector.broadcast %cst_280 : f32 to vector<1x256xf32>
    %cst_281 = arith.constant dense<0.000000e+00> : vector<256xf32>
    %608 = vector.multi_reduction <add>, %579, %cst_281 [0] : vector<4x256xf32> to vector<256xf32>
    %609 = vector.shape_cast %608 : vector<256xf32> to vector<1x256xf32>
    %610 = arith.addf %606, %609 : vector<1x256xf32>
    %611 = arith.mulf %579, %579 : vector<4x256xf32>
    %cst_282 = arith.constant dense<0.000000e+00> : vector<256xf32>
    %612 = vector.multi_reduction <add>, %611, %cst_282 [0] : vector<4x256xf32> to vector<256xf32>
    %613 = vector.shape_cast %612 : vector<256xf32> to vector<1x256xf32>
    %614 = arith.addf %607, %613 : vector<1x256xf32>
    %cst_283 = arith.constant dense<0.000000e+00> : vector<256xf32>
    %615 = vector.multi_reduction <add>, %605, %cst_283 [0] : vector<4x256xf32> to vector<256xf32>
    %616 = vector.shape_cast %615 : vector<256xf32> to vector<1x256xf32>
    %617 = arith.addf %610, %616 : vector<1x256xf32>
    %618 = arith.mulf %605, %605 : vector<4x256xf32>
    %cst_284 = arith.constant dense<0.000000e+00> : vector<256xf32>
    %619 = vector.multi_reduction <add>, %618, %cst_284 [0] : vector<4x256xf32> to vector<256xf32>
    %620 = vector.shape_cast %619 : vector<256xf32> to vector<1x256xf32>
    %621 = arith.addf %614, %620 : vector<1x256xf32>
    %622 = tpu.iota {dimensions = array<i32: 0>} : vector<256x64xi32>
    %623 = tpu.iota {dimensions = array<i32: 1>} : vector<256x64xi32>
    %c64_i32 = arith.constant 64 : i32
    %c0_i32_285 = arith.constant 0 : i32
    %624 = arith.cmpi eq, %c64_i32, %c0_i32_285 : i32
    %c1_i32_286 = arith.constant 1 : i32
    %625 = arith.select %624, %c1_i32_286, %c64_i32 : i32
    %626 = vector.broadcast %625 : i32 to vector<256x64xi32>
    %627 = arith.remsi %622, %626 : vector<256x64xi32>
    %c0_i32_287 = arith.constant 0 : i32
    %628 = vector.broadcast %c0_i32_287 : i32 to vector<256x64xi32>
    %629 = arith.cmpi ne, %627, %628 : vector<256x64xi32>
    %c0_i32_288 = arith.constant 0 : i32
    %630 = vector.broadcast %c0_i32_288 : i32 to vector<256x64xi32>
    %631 = arith.cmpi slt, %627, %630 : vector<256x64xi32>
    %c0_i32_289 = arith.constant 0 : i32
    %632 = arith.cmpi slt, %625, %c0_i32_289 : i32
    %633 = vector.broadcast %632 : i1 to vector<256x64xi1>
    %634 = vector.broadcast %633 : vector<256x64xi1> to vector<256x64xi1>
    %635 = arith.xori %631, %634 : vector<256x64xi1>
    %636 = arith.andi %635, %629 : vector<256x64xi1>
    %637 = vector.broadcast %625 : i32 to vector<256x64xi32>
    %638 = arith.addi %627, %637 : vector<256x64xi32>
    %639 = arith.select %636, %638, %627 : vector<256x64xi1>, vector<256x64xi32>
    %640 = arith.cmpi eq, %639, %623 : vector<256x64xi32>
    %641 = arith.extui %640 : vector<256x64xi1> to vector<256x64xi32>
    %642 = arith.sitofp %641 : vector<256x64xi32> to vector<256x64xf32>
    %cst_290 = arith.constant dense<0.000000e+00> : vector<1x64xf32>
    %643 = tpu.matmul %617, %642, %cst_290 {dimension_numbers = #tpu.dot_dimension_numbers<[1], [0], [0], [1], [0, 0, 1, 1], [], []>} : vector<1x256xf32>, vector<256x64xf32>, vector<1x64xf32> -> vector<1x64xf32>
    %cst_291 = arith.constant dense<0.000000e+00> : vector<1x64xf32>
    %644 = tpu.matmul %621, %642, %cst_291 {dimension_numbers = #tpu.dot_dimension_numbers<[1], [0], [0], [1], [0, 0, 1, 1], [], []>} : vector<1x256xf32>, vector<256x64xf32>, vector<1x64xf32> -> vector<1x64xf32>
    %cst_292 = arith.constant 3.200000e+01 : f32
    %645 = vector.broadcast %cst_292 : f32 to vector<1x64xf32>
    %646 = arith.divf %643, %645 : vector<1x64xf32>
    %cst_293 = arith.constant 3.200000e+01 : f32
    %647 = vector.broadcast %cst_293 : f32 to vector<1x64xf32>
    %648 = arith.divf %644, %647 : vector<1x64xf32>
    %649 = arith.mulf %646, %646 : vector<1x64xf32>
    %650 = arith.subf %648, %649 : vector<1x64xf32>
    %c2_294 = arith.constant 2 : index
    %c0_295 = arith.constant 0 : index
    %c0_296 = arith.constant 0 : index
    %651 = vector.load %arg7[%c2_294, %c0_295, %c0_296] : memref<4x2x128xf32, #tpu.memory_space<vmem>>, vector<1x2x128xf32>
    %652 = vector.shape_cast %651 : vector<1x2x128xf32> to vector<2x128xf32>
    %653 = vector.extract_strided_slice %652 {offsets = [0, 0], sizes = [1, 64], strides = [1, 1]} : vector<2x128xf32> to vector<1x64xf32>
    %654 = vector.extract_strided_slice %652 {offsets = [1, 0], sizes = [1, 64], strides = [1, 1]} : vector<2x128xf32> to vector<1x64xf32>
    %cst_297 = arith.constant 9.99999974E-6 : f32
    %655 = vector.broadcast %cst_297 : f32 to vector<1x64xf32>
    %656 = arith.addf %650, %655 : vector<1x64xf32>
    %657 = math.rsqrt %656 : vector<1x64xf32>
    %658 = arith.mulf %653, %657 : vector<1x64xf32>
    %659 = arith.mulf %646, %658 : vector<1x64xf32>
    %660 = arith.subf %654, %659 : vector<1x64xf32>
    %661 = tpu.iota {dimensions = array<i32: 0>} : vector<64x256xi32>
    %662 = tpu.iota {dimensions = array<i32: 1>} : vector<64x256xi32>
    %c64_i32_298 = arith.constant 64 : i32
    %c0_i32_299 = arith.constant 0 : i32
    %663 = arith.cmpi eq, %c64_i32_298, %c0_i32_299 : i32
    %c1_i32_300 = arith.constant 1 : i32
    %664 = arith.select %663, %c1_i32_300, %c64_i32_298 : i32
    %665 = vector.broadcast %664 : i32 to vector<64x256xi32>
    %666 = arith.remsi %662, %665 : vector<64x256xi32>
    %c0_i32_301 = arith.constant 0 : i32
    %667 = vector.broadcast %c0_i32_301 : i32 to vector<64x256xi32>
    %668 = arith.cmpi ne, %666, %667 : vector<64x256xi32>
    %c0_i32_302 = arith.constant 0 : i32
    %669 = vector.broadcast %c0_i32_302 : i32 to vector<64x256xi32>
    %670 = arith.cmpi slt, %666, %669 : vector<64x256xi32>
    %c0_i32_303 = arith.constant 0 : i32
    %671 = arith.cmpi slt, %664, %c0_i32_303 : i32
    %672 = vector.broadcast %671 : i1 to vector<64x256xi1>
    %673 = vector.broadcast %672 : vector<64x256xi1> to vector<64x256xi1>
    %674 = arith.xori %670, %673 : vector<64x256xi1>
    %675 = arith.andi %674, %668 : vector<64x256xi1>
    %676 = vector.broadcast %664 : i32 to vector<64x256xi32>
    %677 = arith.addi %666, %676 : vector<64x256xi32>
    %678 = arith.select %675, %677, %666 : vector<64x256xi1>, vector<64x256xi32>
    %679 = arith.cmpi eq, %678, %661 : vector<64x256xi32>
    %680 = arith.extui %679 : vector<64x256xi1> to vector<64x256xi32>
    %681 = arith.sitofp %680 : vector<64x256xi32> to vector<64x256xf32>
    %cst_304 = arith.constant dense<0.000000e+00> : vector<1x256xf32>
    %682 = tpu.matmul %658, %681, %cst_304 {dimension_numbers = #tpu.dot_dimension_numbers<[1], [0], [0], [1], [0, 0, 1, 1], [], []>} : vector<1x64xf32>, vector<64x256xf32>, vector<1x256xf32> -> vector<1x256xf32>
    %cst_305 = arith.constant dense<0.000000e+00> : vector<1x256xf32>
    %683 = tpu.matmul %660, %681, %cst_305 {dimension_numbers = #tpu.dot_dimension_numbers<[1], [0], [0], [1], [0, 0, 1, 1], [], []>} : vector<1x64xf32>, vector<64x256xf32>, vector<1x256xf32> -> vector<1x256xf32>
    %684 = vector.broadcast %682 : vector<1x256xf32> to vector<4x256xf32>
    %685 = arith.mulf %579, %684 : vector<4x256xf32>
    %686 = vector.broadcast %683 : vector<1x256xf32> to vector<4x256xf32>
    %687 = arith.addf %685, %686 : vector<4x256xf32>
    %688 = vector.broadcast %682 : vector<1x256xf32> to vector<4x256xf32>
    %689 = arith.mulf %605, %688 : vector<4x256xf32>
    %690 = vector.broadcast %683 : vector<1x256xf32> to vector<4x256xf32>
    %691 = arith.addf %689, %690 : vector<4x256xf32>
    %cst_306 = arith.constant 0.000000e+00 : f32
    %692 = vector.broadcast %cst_306 : f32 to vector<4x256xf32>
    %693 = arith.cmpf oge, %687, %692 : vector<4x256xf32>
    %cst_307 = arith.constant 2.000000e-01 : f32
    %694 = vector.broadcast %cst_307 : f32 to vector<4x256xf32>
    %695 = arith.mulf %694, %687 : vector<4x256xf32>
    %696 = arith.select %693, %687, %695 : vector<4x256xi1>, vector<4x256xf32>
    %cst_308 = arith.constant 0.000000e+00 : f32
    %697 = vector.broadcast %cst_308 : f32 to vector<4x256xf32>
    %698 = arith.cmpf oge, %691, %697 : vector<4x256xf32>
    %cst_309 = arith.constant 2.000000e-01 : f32
    %699 = vector.broadcast %cst_309 : f32 to vector<4x256xf32>
    %700 = arith.mulf %699, %691 : vector<4x256xf32>
    %701 = arith.select %698, %691, %700 : vector<4x256xi1>, vector<4x256xf32>
    %702 = tpu.iota {dimensions = array<i32: 0>} : vector<2x4xi32>
    %703 = tpu.iota {dimensions = array<i32: 1>} : vector<2x4xi32>
    %c2_i32_310 = arith.constant 2 : i32
    %704 = vector.broadcast %c2_i32_310 : i32 to vector<2x4xi32>
    %705 = arith.muli %704, %702 : vector<2x4xi32>
    %c1_i32_311 = arith.constant 1 : i32
    %706 = vector.broadcast %c1_i32_311 : i32 to vector<2x4xi32>
    %707 = arith.subi %705, %706 : vector<2x4xi32>
    %c0_i32_312 = arith.constant 0 : i32
    %708 = vector.broadcast %c0_i32_312 : i32 to vector<2x4xi32>
    %709 = arith.addi %707, %708 : vector<2x4xi32>
    %710 = arith.cmpi eq, %703, %709 : vector<2x4xi32>
    %711 = arith.extui %710 : vector<2x4xi1> to vector<2x4xi32>
    %712 = arith.sitofp %711 : vector<2x4xi32> to vector<2x4xf32>
    %713 = arith.truncf %712 : vector<2x4xf32> to vector<2x4xbf16>
    %714 = tpu.iota {dimensions = array<i32: 0>} : vector<2x4xi32>
    %715 = tpu.iota {dimensions = array<i32: 1>} : vector<2x4xi32>
    %c2_i32_313 = arith.constant 2 : i32
    %716 = vector.broadcast %c2_i32_313 : i32 to vector<2x4xi32>
    %717 = arith.muli %716, %714 : vector<2x4xi32>
    %c1_i32_314 = arith.constant 1 : i32
    %718 = vector.broadcast %c1_i32_314 : i32 to vector<2x4xi32>
    %719 = arith.subi %717, %718 : vector<2x4xi32>
    %c1_i32_315 = arith.constant 1 : i32
    %720 = vector.broadcast %c1_i32_315 : i32 to vector<2x4xi32>
    %721 = arith.addi %719, %720 : vector<2x4xi32>
    %722 = arith.cmpi eq, %715, %721 : vector<2x4xi32>
    %723 = arith.extui %722 : vector<2x4xi1> to vector<2x4xi32>
    %724 = arith.sitofp %723 : vector<2x4xi32> to vector<2x4xf32>
    %725 = arith.truncf %724 : vector<2x4xf32> to vector<2x4xbf16>
    %726 = tpu.iota {dimensions = array<i32: 0>} : vector<2x4xi32>
    %727 = tpu.iota {dimensions = array<i32: 1>} : vector<2x4xi32>
    %c2_i32_316 = arith.constant 2 : i32
    %728 = vector.broadcast %c2_i32_316 : i32 to vector<2x4xi32>
    %729 = arith.muli %728, %726 : vector<2x4xi32>
    %c1_i32_317 = arith.constant 1 : i32
    %730 = vector.broadcast %c1_i32_317 : i32 to vector<2x4xi32>
    %731 = arith.subi %729, %730 : vector<2x4xi32>
    %c2_i32_318 = arith.constant 2 : i32
    %732 = vector.broadcast %c2_i32_318 : i32 to vector<2x4xi32>
    %733 = arith.addi %731, %732 : vector<2x4xi32>
    %734 = arith.cmpi eq, %727, %733 : vector<2x4xi32>
    %735 = arith.extui %734 : vector<2x4xi1> to vector<2x4xi32>
    %736 = arith.sitofp %735 : vector<2x4xi32> to vector<2x4xf32>
    %737 = arith.truncf %736 : vector<2x4xf32> to vector<2x4xbf16>
    %738 = tpu.iota {dimensions = array<i32: 0>} : vector<2x4xi32>
    %739 = tpu.iota {dimensions = array<i32: 1>} : vector<2x4xi32>
    %c2_i32_319 = arith.constant 2 : i32
    %740 = vector.broadcast %c2_i32_319 : i32 to vector<2x4xi32>
    %741 = arith.muli %740, %738 : vector<2x4xi32>
    %c1_i32_320 = arith.constant 1 : i32
    %742 = vector.broadcast %c1_i32_320 : i32 to vector<2x4xi32>
    %743 = arith.subi %741, %742 : vector<2x4xi32>
    %c3_i32_321 = arith.constant 3 : i32
    %744 = vector.broadcast %c3_i32_321 : i32 to vector<2x4xi32>
    %745 = arith.addi %743, %744 : vector<2x4xi32>
    %746 = arith.cmpi eq, %739, %745 : vector<2x4xi32>
    %747 = arith.extui %746 : vector<2x4xi1> to vector<2x4xi32>
    %748 = arith.sitofp %747 : vector<2x4xi32> to vector<2x4xf32>
    %749 = arith.truncf %748 : vector<2x4xf32> to vector<2x4xbf16>
    %750 = arith.truncf %696 : vector<4x256xf32> to vector<4x256xbf16>
    %cst_322 = arith.constant 0.000000e+00 : f32
    %751 = vector.broadcast %cst_322 : f32 to vector<2x256xf32>
    %cst_323 = arith.constant dense<0.000000e+00> : vector<2x256xf32>
    %752 = tpu.matmul %713, %750, %cst_323 {dimension_numbers = #tpu.dot_dimension_numbers<[1], [0], [0], [1], [0, 0, 1, 1], [], []>} : vector<2x4xbf16>, vector<4x256xbf16>, vector<2x256xf32> -> vector<2x256xf32>
    %753 = arith.truncf %752 : vector<2x256xf32> to vector<2x256xbf16>
    %c0_324 = arith.constant 0 : index
    %c0_325 = arith.constant 0 : index
    %c0_326 = arith.constant 0 : index
    %754 = vector.load %arg5[%c0_324, %c0_325, %c0_326] : memref<4x256x256xbf16, #tpu.memory_space<vmem>>, vector<1x256x256xbf16>
    %755 = vector.shape_cast %754 : vector<1x256x256xbf16> to vector<256x256xbf16>
    %cst_327 = arith.constant dense<0.000000e+00> : vector<2x256xf32>
    %756 = tpu.matmul %753, %755, %cst_327 {dimension_numbers = #tpu.dot_dimension_numbers<[1], [0], [0], [1], [0, 0, 1, 1], [], []>} : vector<2x256xbf16>, vector<256x256xbf16>, vector<2x256xf32> -> vector<2x256xf32>
    %757 = arith.addf %751, %756 : vector<2x256xf32>
    %cst_328 = arith.constant dense<0.000000e+00> : vector<2x256xf32>
    %758 = tpu.matmul %725, %750, %cst_328 {dimension_numbers = #tpu.dot_dimension_numbers<[1], [0], [0], [1], [0, 0, 1, 1], [], []>} : vector<2x4xbf16>, vector<4x256xbf16>, vector<2x256xf32> -> vector<2x256xf32>
    %759 = arith.truncf %758 : vector<2x256xf32> to vector<2x256xbf16>
    %c1_329 = arith.constant 1 : index
    %c0_330 = arith.constant 0 : index
    %c0_331 = arith.constant 0 : index
    %760 = vector.load %arg5[%c1_329, %c0_330, %c0_331] : memref<4x256x256xbf16, #tpu.memory_space<vmem>>, vector<1x256x256xbf16>
    %761 = vector.shape_cast %760 : vector<1x256x256xbf16> to vector<256x256xbf16>
    %cst_332 = arith.constant dense<0.000000e+00> : vector<2x256xf32>
    %762 = tpu.matmul %759, %761, %cst_332 {dimension_numbers = #tpu.dot_dimension_numbers<[1], [0], [0], [1], [0, 0, 1, 1], [], []>} : vector<2x256xbf16>, vector<256x256xbf16>, vector<2x256xf32> -> vector<2x256xf32>
    %763 = arith.addf %757, %762 : vector<2x256xf32>
    %cst_333 = arith.constant dense<0.000000e+00> : vector<2x256xf32>
    %764 = tpu.matmul %737, %750, %cst_333 {dimension_numbers = #tpu.dot_dimension_numbers<[1], [0], [0], [1], [0, 0, 1, 1], [], []>} : vector<2x4xbf16>, vector<4x256xbf16>, vector<2x256xf32> -> vector<2x256xf32>
    %765 = arith.truncf %764 : vector<2x256xf32> to vector<2x256xbf16>
    %c2_334 = arith.constant 2 : index
    %c0_335 = arith.constant 0 : index
    %c0_336 = arith.constant 0 : index
    %766 = vector.load %arg5[%c2_334, %c0_335, %c0_336] : memref<4x256x256xbf16, #tpu.memory_space<vmem>>, vector<1x256x256xbf16>
    %767 = vector.shape_cast %766 : vector<1x256x256xbf16> to vector<256x256xbf16>
    %cst_337 = arith.constant dense<0.000000e+00> : vector<2x256xf32>
    %768 = tpu.matmul %765, %767, %cst_337 {dimension_numbers = #tpu.dot_dimension_numbers<[1], [0], [0], [1], [0, 0, 1, 1], [], []>} : vector<2x256xbf16>, vector<256x256xbf16>, vector<2x256xf32> -> vector<2x256xf32>
    %769 = arith.addf %763, %768 : vector<2x256xf32>
    %cst_338 = arith.constant dense<0.000000e+00> : vector<2x256xf32>
    %770 = tpu.matmul %749, %750, %cst_338 {dimension_numbers = #tpu.dot_dimension_numbers<[1], [0], [0], [1], [0, 0, 1, 1], [], []>} : vector<2x4xbf16>, vector<4x256xbf16>, vector<2x256xf32> -> vector<2x256xf32>
    %771 = arith.truncf %770 : vector<2x256xf32> to vector<2x256xbf16>
    %c3_339 = arith.constant 3 : index
    %c0_340 = arith.constant 0 : index
    %c0_341 = arith.constant 0 : index
    %772 = vector.load %arg5[%c3_339, %c0_340, %c0_341] : memref<4x256x256xbf16, #tpu.memory_space<vmem>>, vector<1x256x256xbf16>
    %773 = vector.shape_cast %772 : vector<1x256x256xbf16> to vector<256x256xbf16>
    %cst_342 = arith.constant dense<0.000000e+00> : vector<2x256xf32>
    %774 = tpu.matmul %771, %773, %cst_342 {dimension_numbers = #tpu.dot_dimension_numbers<[1], [0], [0], [1], [0, 0, 1, 1], [], []>} : vector<2x256xbf16>, vector<256x256xbf16>, vector<2x256xf32> -> vector<2x256xf32>
    %775 = arith.addf %769, %774 : vector<2x256xf32>
    %776 = arith.truncf %701 : vector<4x256xf32> to vector<4x256xbf16>
    %cst_343 = arith.constant 0.000000e+00 : f32
    %777 = vector.broadcast %cst_343 : f32 to vector<2x256xf32>
    %cst_344 = arith.constant dense<0.000000e+00> : vector<2x256xf32>
    %778 = tpu.matmul %713, %776, %cst_344 {dimension_numbers = #tpu.dot_dimension_numbers<[1], [0], [0], [1], [0, 0, 1, 1], [], []>} : vector<2x4xbf16>, vector<4x256xbf16>, vector<2x256xf32> -> vector<2x256xf32>
    %779 = arith.truncf %778 : vector<2x256xf32> to vector<2x256xbf16>
    %c0_345 = arith.constant 0 : index
    %c0_346 = arith.constant 0 : index
    %c0_347 = arith.constant 0 : index
    %780 = vector.load %arg5[%c0_345, %c0_346, %c0_347] : memref<4x256x256xbf16, #tpu.memory_space<vmem>>, vector<1x256x256xbf16>
    %781 = vector.shape_cast %780 : vector<1x256x256xbf16> to vector<256x256xbf16>
    %cst_348 = arith.constant dense<0.000000e+00> : vector<2x256xf32>
    %782 = tpu.matmul %779, %781, %cst_348 {dimension_numbers = #tpu.dot_dimension_numbers<[1], [0], [0], [1], [0, 0, 1, 1], [], []>} : vector<2x256xbf16>, vector<256x256xbf16>, vector<2x256xf32> -> vector<2x256xf32>
    %783 = arith.addf %777, %782 : vector<2x256xf32>
    %cst_349 = arith.constant dense<0.000000e+00> : vector<2x256xf32>
    %784 = tpu.matmul %725, %776, %cst_349 {dimension_numbers = #tpu.dot_dimension_numbers<[1], [0], [0], [1], [0, 0, 1, 1], [], []>} : vector<2x4xbf16>, vector<4x256xbf16>, vector<2x256xf32> -> vector<2x256xf32>
    %785 = arith.truncf %784 : vector<2x256xf32> to vector<2x256xbf16>
    %c1_350 = arith.constant 1 : index
    %c0_351 = arith.constant 0 : index
    %c0_352 = arith.constant 0 : index
    %786 = vector.load %arg5[%c1_350, %c0_351, %c0_352] : memref<4x256x256xbf16, #tpu.memory_space<vmem>>, vector<1x256x256xbf16>
    %787 = vector.shape_cast %786 : vector<1x256x256xbf16> to vector<256x256xbf16>
    %cst_353 = arith.constant dense<0.000000e+00> : vector<2x256xf32>
    %788 = tpu.matmul %785, %787, %cst_353 {dimension_numbers = #tpu.dot_dimension_numbers<[1], [0], [0], [1], [0, 0, 1, 1], [], []>} : vector<2x256xbf16>, vector<256x256xbf16>, vector<2x256xf32> -> vector<2x256xf32>
    %789 = arith.addf %783, %788 : vector<2x256xf32>
    %cst_354 = arith.constant dense<0.000000e+00> : vector<2x256xf32>
    %790 = tpu.matmul %737, %776, %cst_354 {dimension_numbers = #tpu.dot_dimension_numbers<[1], [0], [0], [1], [0, 0, 1, 1], [], []>} : vector<2x4xbf16>, vector<4x256xbf16>, vector<2x256xf32> -> vector<2x256xf32>
    %791 = arith.truncf %790 : vector<2x256xf32> to vector<2x256xbf16>
    %c2_355 = arith.constant 2 : index
    %c0_356 = arith.constant 0 : index
    %c0_357 = arith.constant 0 : index
    %792 = vector.load %arg5[%c2_355, %c0_356, %c0_357] : memref<4x256x256xbf16, #tpu.memory_space<vmem>>, vector<1x256x256xbf16>
    %793 = vector.shape_cast %792 : vector<1x256x256xbf16> to vector<256x256xbf16>
    %cst_358 = arith.constant dense<0.000000e+00> : vector<2x256xf32>
    %794 = tpu.matmul %791, %793, %cst_358 {dimension_numbers = #tpu.dot_dimension_numbers<[1], [0], [0], [1], [0, 0, 1, 1], [], []>} : vector<2x256xbf16>, vector<256x256xbf16>, vector<2x256xf32> -> vector<2x256xf32>
    %795 = arith.addf %789, %794 : vector<2x256xf32>
    %cst_359 = arith.constant dense<0.000000e+00> : vector<2x256xf32>
    %796 = tpu.matmul %749, %776, %cst_359 {dimension_numbers = #tpu.dot_dimension_numbers<[1], [0], [0], [1], [0, 0, 1, 1], [], []>} : vector<2x4xbf16>, vector<4x256xbf16>, vector<2x256xf32> -> vector<2x256xf32>
    %797 = arith.truncf %796 : vector<2x256xf32> to vector<2x256xbf16>
    %c3_360 = arith.constant 3 : index
    %c0_361 = arith.constant 0 : index
    %c0_362 = arith.constant 0 : index
    %798 = vector.load %arg5[%c3_360, %c0_361, %c0_362] : memref<4x256x256xbf16, #tpu.memory_space<vmem>>, vector<1x256x256xbf16>
    %799 = vector.shape_cast %798 : vector<1x256x256xbf16> to vector<256x256xbf16>
    %cst_363 = arith.constant dense<0.000000e+00> : vector<2x256xf32>
    %800 = tpu.matmul %797, %799, %cst_363 {dimension_numbers = #tpu.dot_dimension_numbers<[1], [0], [0], [1], [0, 0, 1, 1], [], []>} : vector<2x256xbf16>, vector<256x256xbf16>, vector<2x256xf32> -> vector<2x256xf32>
    %801 = arith.addf %795, %800 : vector<2x256xf32>
    %cst_364 = arith.constant 0.000000e+00 : f32
    %802 = vector.broadcast %cst_364 : f32 to vector<1x256xf32>
    %cst_365 = arith.constant 0.000000e+00 : f32
    %803 = vector.broadcast %cst_365 : f32 to vector<1x256xf32>
    %cst_366 = arith.constant dense<0.000000e+00> : vector<256xf32>
    %804 = vector.multi_reduction <add>, %775, %cst_366 [0] : vector<2x256xf32> to vector<256xf32>
    %805 = vector.shape_cast %804 : vector<256xf32> to vector<1x256xf32>
    %806 = arith.addf %802, %805 : vector<1x256xf32>
    %807 = arith.mulf %775, %775 : vector<2x256xf32>
    %cst_367 = arith.constant dense<0.000000e+00> : vector<256xf32>
    %808 = vector.multi_reduction <add>, %807, %cst_367 [0] : vector<2x256xf32> to vector<256xf32>
    %809 = vector.shape_cast %808 : vector<256xf32> to vector<1x256xf32>
    %810 = arith.addf %803, %809 : vector<1x256xf32>
    %cst_368 = arith.constant dense<0.000000e+00> : vector<256xf32>
    %811 = vector.multi_reduction <add>, %801, %cst_368 [0] : vector<2x256xf32> to vector<256xf32>
    %812 = vector.shape_cast %811 : vector<256xf32> to vector<1x256xf32>
    %813 = arith.addf %806, %812 : vector<1x256xf32>
    %814 = arith.mulf %801, %801 : vector<2x256xf32>
    %cst_369 = arith.constant dense<0.000000e+00> : vector<256xf32>
    %815 = vector.multi_reduction <add>, %814, %cst_369 [0] : vector<2x256xf32> to vector<256xf32>
    %816 = vector.shape_cast %815 : vector<256xf32> to vector<1x256xf32>
    %817 = arith.addf %810, %816 : vector<1x256xf32>
    %818 = tpu.iota {dimensions = array<i32: 0>} : vector<256x128xi32>
    %819 = tpu.iota {dimensions = array<i32: 1>} : vector<256x128xi32>
    %c128_i32 = arith.constant 128 : i32
    %c0_i32_370 = arith.constant 0 : i32
    %820 = arith.cmpi eq, %c128_i32, %c0_i32_370 : i32
    %c1_i32_371 = arith.constant 1 : i32
    %821 = arith.select %820, %c1_i32_371, %c128_i32 : i32
    %822 = vector.broadcast %821 : i32 to vector<256x128xi32>
    %823 = arith.remsi %818, %822 : vector<256x128xi32>
    %c0_i32_372 = arith.constant 0 : i32
    %824 = vector.broadcast %c0_i32_372 : i32 to vector<256x128xi32>
    %825 = arith.cmpi ne, %823, %824 : vector<256x128xi32>
    %c0_i32_373 = arith.constant 0 : i32
    %826 = vector.broadcast %c0_i32_373 : i32 to vector<256x128xi32>
    %827 = arith.cmpi slt, %823, %826 : vector<256x128xi32>
    %c0_i32_374 = arith.constant 0 : i32
    %828 = arith.cmpi slt, %821, %c0_i32_374 : i32
    %829 = vector.broadcast %828 : i1 to vector<256x128xi1>
    %830 = vector.broadcast %829 : vector<256x128xi1> to vector<256x128xi1>
    %831 = arith.xori %827, %830 : vector<256x128xi1>
    %832 = arith.andi %831, %825 : vector<256x128xi1>
    %833 = vector.broadcast %821 : i32 to vector<256x128xi32>
    %834 = arith.addi %823, %833 : vector<256x128xi32>
    %835 = arith.select %832, %834, %823 : vector<256x128xi1>, vector<256x128xi32>
    %836 = arith.cmpi eq, %835, %819 : vector<256x128xi32>
    %837 = arith.extui %836 : vector<256x128xi1> to vector<256x128xi32>
    %838 = arith.sitofp %837 : vector<256x128xi32> to vector<256x128xf32>
    %cst_375 = arith.constant dense<0.000000e+00> : vector<1x128xf32>
    %839 = tpu.matmul %813, %838, %cst_375 {dimension_numbers = #tpu.dot_dimension_numbers<[1], [0], [0], [1], [0, 0, 1, 1], [], []>} : vector<1x256xf32>, vector<256x128xf32>, vector<1x128xf32> -> vector<1x128xf32>
    %cst_376 = arith.constant dense<0.000000e+00> : vector<1x128xf32>
    %840 = tpu.matmul %817, %838, %cst_376 {dimension_numbers = #tpu.dot_dimension_numbers<[1], [0], [0], [1], [0, 0, 1, 1], [], []>} : vector<1x256xf32>, vector<256x128xf32>, vector<1x128xf32> -> vector<1x128xf32>
    %cst_377 = arith.constant 8.000000e+00 : f32
    %841 = vector.broadcast %cst_377 : f32 to vector<1x128xf32>
    %842 = arith.divf %839, %841 : vector<1x128xf32>
    %cst_378 = arith.constant 8.000000e+00 : f32
    %843 = vector.broadcast %cst_378 : f32 to vector<1x128xf32>
    %844 = arith.divf %840, %843 : vector<1x128xf32>
    %845 = arith.mulf %842, %842 : vector<1x128xf32>
    %846 = arith.subf %844, %845 : vector<1x128xf32>
    %c3_379 = arith.constant 3 : index
    %c0_380 = arith.constant 0 : index
    %c0_381 = arith.constant 0 : index
    %847 = vector.load %arg7[%c3_379, %c0_380, %c0_381] : memref<4x2x128xf32, #tpu.memory_space<vmem>>, vector<1x2x128xf32>
    %848 = vector.shape_cast %847 : vector<1x2x128xf32> to vector<2x128xf32>
    %849 = vector.extract_strided_slice %848 {offsets = [0, 0], sizes = [1, 128], strides = [1, 1]} : vector<2x128xf32> to vector<1x128xf32>
    %850 = vector.extract_strided_slice %848 {offsets = [1, 0], sizes = [1, 128], strides = [1, 1]} : vector<2x128xf32> to vector<1x128xf32>
    %cst_382 = arith.constant 9.99999974E-6 : f32
    %851 = vector.broadcast %cst_382 : f32 to vector<1x128xf32>
    %852 = arith.addf %846, %851 : vector<1x128xf32>
    %853 = math.rsqrt %852 : vector<1x128xf32>
    %854 = arith.mulf %849, %853 : vector<1x128xf32>
    %855 = arith.mulf %842, %854 : vector<1x128xf32>
    %856 = arith.subf %850, %855 : vector<1x128xf32>
    %857 = tpu.iota {dimensions = array<i32: 0>} : vector<128x256xi32>
    %858 = tpu.iota {dimensions = array<i32: 1>} : vector<128x256xi32>
    %c128_i32_383 = arith.constant 128 : i32
    %c0_i32_384 = arith.constant 0 : i32
    %859 = arith.cmpi eq, %c128_i32_383, %c0_i32_384 : i32
    %c1_i32_385 = arith.constant 1 : i32
    %860 = arith.select %859, %c1_i32_385, %c128_i32_383 : i32
    %861 = vector.broadcast %860 : i32 to vector<128x256xi32>
    %862 = arith.remsi %858, %861 : vector<128x256xi32>
    %c0_i32_386 = arith.constant 0 : i32
    %863 = vector.broadcast %c0_i32_386 : i32 to vector<128x256xi32>
    %864 = arith.cmpi ne, %862, %863 : vector<128x256xi32>
    %c0_i32_387 = arith.constant 0 : i32
    %865 = vector.broadcast %c0_i32_387 : i32 to vector<128x256xi32>
    %866 = arith.cmpi slt, %862, %865 : vector<128x256xi32>
    %c0_i32_388 = arith.constant 0 : i32
    %867 = arith.cmpi slt, %860, %c0_i32_388 : i32
    %868 = vector.broadcast %867 : i1 to vector<128x256xi1>
    %869 = vector.broadcast %868 : vector<128x256xi1> to vector<128x256xi1>
    %870 = arith.xori %866, %869 : vector<128x256xi1>
    %871 = arith.andi %870, %864 : vector<128x256xi1>
    %872 = vector.broadcast %860 : i32 to vector<128x256xi32>
    %873 = arith.addi %862, %872 : vector<128x256xi32>
    %874 = arith.select %871, %873, %862 : vector<128x256xi1>, vector<128x256xi32>
    %875 = arith.cmpi eq, %874, %857 : vector<128x256xi32>
    %876 = arith.extui %875 : vector<128x256xi1> to vector<128x256xi32>
    %877 = arith.sitofp %876 : vector<128x256xi32> to vector<128x256xf32>
    %cst_389 = arith.constant dense<0.000000e+00> : vector<1x256xf32>
    %878 = tpu.matmul %854, %877, %cst_389 {dimension_numbers = #tpu.dot_dimension_numbers<[1], [0], [0], [1], [0, 0, 1, 1], [], []>} : vector<1x128xf32>, vector<128x256xf32>, vector<1x256xf32> -> vector<1x256xf32>
    %cst_390 = arith.constant dense<0.000000e+00> : vector<1x256xf32>
    %879 = tpu.matmul %856, %877, %cst_390 {dimension_numbers = #tpu.dot_dimension_numbers<[1], [0], [0], [1], [0, 0, 1, 1], [], []>} : vector<1x128xf32>, vector<128x256xf32>, vector<1x256xf32> -> vector<1x256xf32>
    %880 = vector.broadcast %878 : vector<1x256xf32> to vector<2x256xf32>
    %881 = arith.mulf %775, %880 : vector<2x256xf32>
    %882 = vector.broadcast %879 : vector<1x256xf32> to vector<2x256xf32>
    %883 = arith.addf %881, %882 : vector<2x256xf32>
    %884 = vector.broadcast %878 : vector<1x256xf32> to vector<2x256xf32>
    %885 = arith.mulf %801, %884 : vector<2x256xf32>
    %886 = vector.broadcast %879 : vector<1x256xf32> to vector<2x256xf32>
    %887 = arith.addf %885, %886 : vector<2x256xf32>
    %cst_391 = arith.constant 0.000000e+00 : f32
    %888 = vector.broadcast %cst_391 : f32 to vector<2x256xf32>
    %889 = arith.cmpf oge, %883, %888 : vector<2x256xf32>
    %cst_392 = arith.constant 2.000000e-01 : f32
    %890 = vector.broadcast %cst_392 : f32 to vector<2x256xf32>
    %891 = arith.mulf %890, %883 : vector<2x256xf32>
    %892 = arith.select %889, %883, %891 : vector<2x256xi1>, vector<2x256xf32>
    %cst_393 = arith.constant 0.000000e+00 : f32
    %893 = vector.broadcast %cst_393 : f32 to vector<2x256xf32>
    %894 = arith.cmpf oge, %887, %893 : vector<2x256xf32>
    %cst_394 = arith.constant 2.000000e-01 : f32
    %895 = vector.broadcast %cst_394 : f32 to vector<2x256xf32>
    %896 = arith.mulf %895, %887 : vector<2x256xf32>
    %897 = arith.select %894, %887, %896 : vector<2x256xi1>, vector<2x256xf32>
    %898 = tpu.iota {dimensions = array<i32: 0>} : vector<1x2xi32>
    %899 = tpu.iota {dimensions = array<i32: 1>} : vector<1x2xi32>
    %c1_i32_395 = arith.constant 1 : i32
    %900 = vector.broadcast %c1_i32_395 : i32 to vector<1x2xi32>
    %901 = arith.muli %900, %898 : vector<1x2xi32>
    %c0_i32_396 = arith.constant 0 : i32
    %902 = vector.broadcast %c0_i32_396 : i32 to vector<1x2xi32>
    %903 = arith.subi %901, %902 : vector<1x2xi32>
    %c0_i32_397 = arith.constant 0 : i32
    %904 = vector.broadcast %c0_i32_397 : i32 to vector<1x2xi32>
    %905 = arith.addi %903, %904 : vector<1x2xi32>
    %906 = arith.cmpi eq, %899, %905 : vector<1x2xi32>
    %907 = arith.extui %906 : vector<1x2xi1> to vector<1x2xi32>
    %908 = arith.sitofp %907 : vector<1x2xi32> to vector<1x2xf32>
    %909 = arith.truncf %908 : vector<1x2xf32> to vector<1x2xbf16>
    %910 = tpu.iota {dimensions = array<i32: 0>} : vector<1x2xi32>
    %911 = tpu.iota {dimensions = array<i32: 1>} : vector<1x2xi32>
    %c1_i32_398 = arith.constant 1 : i32
    %912 = vector.broadcast %c1_i32_398 : i32 to vector<1x2xi32>
    %913 = arith.muli %912, %910 : vector<1x2xi32>
    %c0_i32_399 = arith.constant 0 : i32
    %914 = vector.broadcast %c0_i32_399 : i32 to vector<1x2xi32>
    %915 = arith.subi %913, %914 : vector<1x2xi32>
    %c1_i32_400 = arith.constant 1 : i32
    %916 = vector.broadcast %c1_i32_400 : i32 to vector<1x2xi32>
    %917 = arith.addi %915, %916 : vector<1x2xi32>
    %918 = arith.cmpi eq, %911, %917 : vector<1x2xi32>
    %919 = arith.extui %918 : vector<1x2xi1> to vector<1x2xi32>
    %920 = arith.sitofp %919 : vector<1x2xi32> to vector<1x2xf32>
    %921 = arith.truncf %920 : vector<1x2xf32> to vector<1x2xbf16>
    %922 = arith.truncf %892 : vector<2x256xf32> to vector<2x256xbf16>
    %cst_401 = arith.constant 0.000000e+00 : f32
    %923 = vector.broadcast %cst_401 : f32 to vector<1x128xf32>
    %cst_402 = arith.constant dense<0.000000e+00> : vector<1x256xf32>
    %924 = tpu.matmul %909, %922, %cst_402 {dimension_numbers = #tpu.dot_dimension_numbers<[1], [0], [0], [1], [0, 0, 1, 1], [], []>} : vector<1x2xbf16>, vector<2x256xbf16>, vector<1x256xf32> -> vector<1x256xf32>
    %925 = arith.truncf %924 : vector<1x256xf32> to vector<1x256xbf16>
    %c0_403 = arith.constant 0 : index
    %c0_404 = arith.constant 0 : index
    %c0_405 = arith.constant 0 : index
    %926 = vector.load %arg6[%c0_403, %c0_404, %c0_405] : memref<2x256x128xbf16, #tpu.memory_space<vmem>>, vector<1x256x128xbf16>
    %927 = vector.shape_cast %926 : vector<1x256x128xbf16> to vector<256x128xbf16>
    %cst_406 = arith.constant dense<0.000000e+00> : vector<1x128xf32>
    %928 = tpu.matmul %925, %927, %cst_406 {dimension_numbers = #tpu.dot_dimension_numbers<[1], [0], [0], [1], [0, 0, 1, 1], [], []>} : vector<1x256xbf16>, vector<256x128xbf16>, vector<1x128xf32> -> vector<1x128xf32>
    %929 = arith.addf %923, %928 : vector<1x128xf32>
    %cst_407 = arith.constant dense<0.000000e+00> : vector<1x256xf32>
    %930 = tpu.matmul %921, %922, %cst_407 {dimension_numbers = #tpu.dot_dimension_numbers<[1], [0], [0], [1], [0, 0, 1, 1], [], []>} : vector<1x2xbf16>, vector<2x256xbf16>, vector<1x256xf32> -> vector<1x256xf32>
    %931 = arith.truncf %930 : vector<1x256xf32> to vector<1x256xbf16>
    %c1_408 = arith.constant 1 : index
    %c0_409 = arith.constant 0 : index
    %c0_410 = arith.constant 0 : index
    %932 = vector.load %arg6[%c1_408, %c0_409, %c0_410] : memref<2x256x128xbf16, #tpu.memory_space<vmem>>, vector<1x256x128xbf16>
    %933 = vector.shape_cast %932 : vector<1x256x128xbf16> to vector<256x128xbf16>
    %cst_411 = arith.constant dense<0.000000e+00> : vector<1x128xf32>
    %934 = tpu.matmul %931, %933, %cst_411 {dimension_numbers = #tpu.dot_dimension_numbers<[1], [0], [0], [1], [0, 0, 1, 1], [], []>} : vector<1x256xbf16>, vector<256x128xbf16>, vector<1x128xf32> -> vector<1x128xf32>
    %935 = arith.addf %929, %934 : vector<1x128xf32>
    %936 = arith.truncf %897 : vector<2x256xf32> to vector<2x256xbf16>
    %cst_412 = arith.constant 0.000000e+00 : f32
    %937 = vector.broadcast %cst_412 : f32 to vector<1x128xf32>
    %cst_413 = arith.constant dense<0.000000e+00> : vector<1x256xf32>
    %938 = tpu.matmul %909, %936, %cst_413 {dimension_numbers = #tpu.dot_dimension_numbers<[1], [0], [0], [1], [0, 0, 1, 1], [], []>} : vector<1x2xbf16>, vector<2x256xbf16>, vector<1x256xf32> -> vector<1x256xf32>
    %939 = arith.truncf %938 : vector<1x256xf32> to vector<1x256xbf16>
    %c0_414 = arith.constant 0 : index
    %c0_415 = arith.constant 0 : index
    %c0_416 = arith.constant 0 : index
    %940 = vector.load %arg6[%c0_414, %c0_415, %c0_416] : memref<2x256x128xbf16, #tpu.memory_space<vmem>>, vector<1x256x128xbf16>
    %941 = vector.shape_cast %940 : vector<1x256x128xbf16> to vector<256x128xbf16>
    %cst_417 = arith.constant dense<0.000000e+00> : vector<1x128xf32>
    %942 = tpu.matmul %939, %941, %cst_417 {dimension_numbers = #tpu.dot_dimension_numbers<[1], [0], [0], [1], [0, 0, 1, 1], [], []>} : vector<1x256xbf16>, vector<256x128xbf16>, vector<1x128xf32> -> vector<1x128xf32>
    %943 = arith.addf %937, %942 : vector<1x128xf32>
    %cst_418 = arith.constant dense<0.000000e+00> : vector<1x256xf32>
    %944 = tpu.matmul %921, %936, %cst_418 {dimension_numbers = #tpu.dot_dimension_numbers<[1], [0], [0], [1], [0, 0, 1, 1], [], []>} : vector<1x2xbf16>, vector<2x256xbf16>, vector<1x256xf32> -> vector<1x256xf32>
    %945 = arith.truncf %944 : vector<1x256xf32> to vector<1x256xbf16>
    %c1_419 = arith.constant 1 : index
    %c0_420 = arith.constant 0 : index
    %c0_421 = arith.constant 0 : index
    %946 = vector.load %arg6[%c1_419, %c0_420, %c0_421] : memref<2x256x128xbf16, #tpu.memory_space<vmem>>, vector<1x256x128xbf16>
    %947 = vector.shape_cast %946 : vector<1x256x128xbf16> to vector<256x128xbf16>
    %cst_422 = arith.constant dense<0.000000e+00> : vector<1x128xf32>
    %948 = tpu.matmul %945, %947, %cst_422 {dimension_numbers = #tpu.dot_dimension_numbers<[1], [0], [0], [1], [0, 0, 1, 1], [], []>} : vector<1x256xbf16>, vector<256x128xbf16>, vector<1x128xf32> -> vector<1x128xf32>
    %949 = arith.addf %943, %948 : vector<1x128xf32>
    %cst_423 = arith.constant 5.000000e-01 : f32
    %950 = vector.broadcast %cst_423 : f32 to vector<1x128xf32>
    %951 = arith.mulf %950, %935 : vector<1x128xf32>
    %952 = math.tanh %951 : vector<1x128xf32>
    %cst_424 = arith.constant 1.000000e+00 : f32
    %953 = vector.broadcast %cst_424 : f32 to vector<1x128xf32>
    %954 = arith.addf %952, %953 : vector<1x128xf32>
    %cst_425 = arith.constant 5.000000e-01 : f32
    %955 = vector.broadcast %cst_425 : f32 to vector<1x128xf32>
    %956 = arith.mulf %955, %954 : vector<1x128xf32>
    %cst_426 = arith.constant 5.000000e-01 : f32
    %957 = vector.broadcast %cst_426 : f32 to vector<1x128xf32>
    %958 = arith.mulf %957, %949 : vector<1x128xf32>
    %959 = math.tanh %958 : vector<1x128xf32>
    %cst_427 = arith.constant 1.000000e+00 : f32
    %960 = vector.broadcast %cst_427 : f32 to vector<1x128xf32>
    %961 = arith.addf %959, %960 : vector<1x128xf32>
    %cst_428 = arith.constant 5.000000e-01 : f32
    %962 = vector.broadcast %cst_428 : f32 to vector<1x128xf32>
    %963 = arith.mulf %962, %961 : vector<1x128xf32>
    %964 = tpu.concatenate %956, %963 in 0 : vector<1x128xf32>, vector<1x128xf32> -> vector<2x128xf32>
    %c0_429 = arith.constant 0 : index
    %c0_430 = arith.constant 0 : index
    %965 = vector.load %arg8[%c0_429, %c0_430] : memref<2x128xf32, #tpu.memory_space<vmem>>, vector<2x128xf32>
    tpu.vector_store %arg8[%c0_429, %c0_430], %964 {strides = array<i32>} : memref<2x128xf32, #tpu.memory_space<vmem>>, vector<2x128xf32>,
    return
  }
}

</mosaic_0001>

<bundles_post_ra>
// kernel: discriminator_forward.1
= control target key start
LH: loop header
LB: loop body
LE: loop exit
PB: predicated region body
PF: predicated region fallthrough
CT: control target
= control target key end

     0   :  { %13 = vsyncpa [#allocation3], 0  ;;  %s19401_s0 = inlined_call_operand.hbm [shape: f32[2,64,64], index: 0, kind: input, shape index: {}]   ;;  %s19402_s1 = inlined_call_operand.hbm [shape: bf16[4,64,256], index: 1, kind: input, shape index: {}]   ;;  %s19403_s2 = inlined_call_operand.hbm [shape: bf16[4,256,256], index: 2, kind: input, shape index: {}]   ;;  %s19404_s3 = inlined_call_operand.hbm [shape: bf16[4,256,256], index: 3, kind: input, shape index: {}]   ;;  %s19405_s4 = inlined_call_operand.hbm [shape: bf16[4,256,256], index: 4, kind: input, shape index: {}]   ;;  %s19406_s5 = inlined_call_operand.hbm [shape: bf16[4,256,256], index: 5, kind: input, shape index: {}]   ;;  %s19407_s6 = inlined_call_operand.hbm [shape: bf16[2,256,128], index: 6, kind: input, shape index: {}]   ;;  %s19408_s7 = inlined_call_operand.vmem [shape: f32[4,2,128], index: 7, kind: input, shape index: {}]   ;;  %s19409_s8 = inlined_call_operand.vmem [shape: f32[2,128], index: 8, kind: output, shape index: {}]  }
   0x1   :  { %14 = vsyncpa [#allocation5], 0 }
   0x2   :  { %15 = vsyncpa [#allocation8], 0 }
   0x3   :  { %16 = vsyncpa [#allocation11], 0  ;;  %s15187_s27 = smov [#allocation4]   ;;  %s15188_s29 = smov [#allocation7]  }
   0x4   :  { %s34_s28 = sshll.u32 %s15187_s27, 4  ;;  %s58_s30 = sshll.u32 %s15188_s29, 4  ;;  %s35_s28 = int_to_ptr.vmem [resolvable:$true] %s34_s28  ;;  %s15246_s30 = int_to_ptr.vmem [resolvable:$true] %s58_s30 }
   0x5   :  { %s15025_s11 = scalar_lea.hbm %s19402_s1, 4096 }
   0x6   :  { %p15026_p0 = scmp.ne.s32.totalorder %s19402_s1, %s15025_s11  ;;  %p15029_p1 = scmp.lt.u32.totalorder %s15025_s11, %s19402_s1 }
   0x8   :  { %p15031_p2 = pnand %p15029_p1, %p15026_p0 }
   0xa   :  { %15034 = shalt.err (!%p15031_p2)
}
   0xb   :  { %s15035_s16 = scalar_lea.vmem %s35_s28, 4096  ;;  %p15040_p4 = scmp.lt.s32.totalorder %s35_s28, %s35_s28 }
   0xc   :  { %p15036_p3 = scmp.ne.s32.totalorder %s35_s28, %s15035_s16  ;;  %p15041_p5 = scmp.lt.s32.totalorder %s15035_s16, %s15035_s16 }
   0xe   :  { %p15042_p6 = por %p15041_p5, %p15040_p4 }
  0x10   :  { %p15043_p7 = pnand %p15042_p6, %p15036_p3 }
  0x12   :  { %15046 = shalt.err (!%p15043_p7)
}
  0x13   :  { %s15189_s17 = smov 128   ;;  %s15190_s18 = smov 8  }
  0x14   :  { %40 = dma.hbm_to_vmem [thread:$0]  %s19402_s1, 4096, %s35_s28, [#allocation5], %s15189_s17, %s15189_s17, %s15190_s18  }
  0x15   :  { %s15047_s23 = scalar_lea.hbm %s19404_s3, 16384 }
  0x16   :  { %p15048_p8 = scmp.ne.s32.totalorder %s19404_s3, %s15047_s23  ;;  %p15051_p9 = scmp.lt.u32.totalorder %s15047_s23, %s19404_s3 }
  0x18   :  { %p15053_p10 = pnand %p15051_p9, %p15048_p8 }
  0x1a   :  { %15056 = shalt.err (!%p15053_p10)
}
  0x1b   :  { %s15057_s29 = scalar_lea.vmem %s15246_s30, 16384  ;;  %p15062_p12 = scmp.lt.s32.totalorder %s15246_s30, %s15246_s30 }
  0x1c   :  { %p15058_p11 = scmp.ne.s32.totalorder %s15246_s30, %s15057_s29  ;;  %p15063_p13 = scmp.lt.s32.totalorder %s15057_s29, %s15057_s29 }
  0x1e   :  { %p15064_p0 = por %p15063_p13, %p15062_p12 }
  0x20   :  { %p15065_p1 = pnand %p15064_p0, %p15058_p11 }
  0x22   :  { %15068 = shalt.err (!%p15065_p1)
}
  0x23   :  { %64 = dma.hbm_to_vmem [thread:$0]  %s19404_s3, 16384, %s15246_s30, [#allocation8], %s15189_s17, %s15189_s17, %s15190_s18  }
  0x24   :  { %s15191_s9 = smov [#allocation10]   ;;  %s15192_s11 = smov [#allocation2]  }
  0x25   :  { %s82_s10 = sshll.u32 %s15191_s9, 4  ;;  %s22_s12 = sshll.u32 %s15192_s11, 4  ;;  %s83_s10 = int_to_ptr.vmem [resolvable:$true] %s82_s10  ;;  %s15283_s12 = int_to_ptr.vmem [resolvable:$true] %s22_s12 }
  0x26   :  { %s15069_s15 = scalar_lea.hbm %s19406_s5, 16384 }
  0x27   :  { %p15070_p2 = scmp.ne.s32.totalorder %s19406_s5, %s15069_s15  ;;  %p15073_p3 = scmp.lt.u32.totalorder %s15069_s15, %s19406_s5 }
  0x29   :  { %p15075_p4 = pnand %p15073_p3, %p15070_p2 }
  0x2b   :  { %15078 = shalt.err (!%p15075_p4)
}
  0x2c   :  { %s15079_s3 = scalar_lea.vmem %s83_s10, 16384  ;;  %p15084_p6 = scmp.lt.s32.totalorder %s83_s10, %s83_s10 }
  0x2d   :  { %p15080_p5 = scmp.ne.s32.totalorder %s83_s10, %s15079_s3  ;;  %p15085_p7 = scmp.lt.s32.totalorder %s15079_s3, %s15079_s3 }
  0x2f   :  { %p15086_p8 = por %p15085_p7, %p15084_p6 }
  0x31   :  { %p15087_p9 = pnand %p15086_p8, %p15080_p5 }
  0x33   :  { %15090 = shalt.err (!%p15087_p9)
}
  0x34   :  { %88 = dma.hbm_to_vmem [thread:$0]  %s19406_s5, 16384, %s83_s10, [#allocation11], %s15189_s17, %s15189_s17, %s15190_s18  }
  0x35   :  { %s15091_s25 = scalar_lea.hbm %s19401_s0, 2048 }
  0x36   :  { %p15092_p10 = scmp.ne.s32.totalorder %s19401_s0, %s15091_s25  ;;  %p15095_p11 = scmp.lt.u32.totalorder %s15091_s25, %s19401_s0 }
  0x38   :  { %p15097_p12 = pnand %p15095_p11, %p15092_p10 }
  0x3a   :  { %15100 = shalt.err (!%p15097_p12)
}
  0x3b   :  { %s15101_s28 = scalar_lea.vmem %s15283_s12, 2048  ;;  %p15106_p0 = scmp.lt.s32.totalorder %s15283_s12, %s15283_s12 }
  0x3c   :  { %p15102_p13 = scmp.ne.s32.totalorder %s15283_s12, %s15101_s28  ;;  %p15107_p1 = scmp.lt.s32.totalorder %s15101_s28, %s15101_s28 }
  0x3e   :  { %p15108_p2 = por %p15107_p1, %p15106_p0 }
  0x40   :  { %p15109_p3 = pnand %p15108_p2, %p15102_p13 }
  0x42   :  { %15112 = shalt.err (!%p15109_p3)
}
  0x43   :  { %28 = dma.hbm_to_vmem [thread:$0]  %s19401_s0, 2048, %s15283_s12, [#allocation3], %s15189_s17, %s15189_s17, %s15190_s18  }
  0x44   :  { %s15193_s10 = smov [#allocation6]   ;;  %s15194_s13 = smov [#allocation9]  }
  0x45   :  { %s46_s11 = sshll.u32 %s15193_s10, 4  ;;  %s70_s14 = sshll.u32 %s15194_s13, 4  ;;  %s47_s11 = int_to_ptr.vmem [resolvable:$true] %s46_s11  ;;  %s15320_s14 = int_to_ptr.vmem [resolvable:$true] %s70_s14 }
  0x46   :  { %s15113_s19 = scalar_lea.hbm %s19403_s2, 16384 }
  0x47   :  { %p15114_p4 = scmp.ne.s32.totalorder %s19403_s2, %s15113_s19  ;;  %p15117_p5 = scmp.lt.u32.totalorder %s15113_s19, %s19403_s2 }
  0x49   :  { %p15119_p6 = pnand %p15117_p5, %p15114_p4 }
  0x4b   :  { %15122 = shalt.err (!%p15119_p6)
}
  0x4c   :  { %s15123_s0 = scalar_lea.vmem %s47_s11, 16384  ;;  %p15128_p8 = scmp.lt.s32.totalorder %s47_s11, %s47_s11 }
  0x4d   :  { %p15124_p7 = scmp.ne.s32.totalorder %s47_s11, %s15123_s0  ;;  %p15129_p9 = scmp.lt.s32.totalorder %s15123_s0, %s15123_s0 }
  0x4f   :  { %p15130_p10 = por %p15129_p9, %p15128_p8 }
  0x51   :  { %p15131_p11 = pnand %p15130_p10, %p15124_p7 }
  0x53   :  { %15134 = shalt.err (!%p15131_p11)
}
  0x54   :  { %52 = dma.hbm_to_vmem [thread:$0]  %s19403_s2, 16384, %s47_s11, [#allocation5], %s15189_s17, %s15189_s17, %s15190_s18  }
  0x55   :  { %s15135_s25 = scalar_lea.hbm %s19405_s4, 16384 }
  0x56   :  { %p15136_p12 = scmp.ne.s32.totalorder %s19405_s4, %s15135_s25  ;;  %p15139_p13 = scmp.lt.u32.totalorder %s15135_s25, %s19405_s4 }
  0x58   :  { %p15141_p0 = pnand %p15139_p13, %p15136_p12 }
  0x5a   :  { %15144 = shalt.err (!%p15141_p0)
}
  0x5b   :  { %s15145_s28 = scalar_lea.vmem %s15320_s14, 16384  ;;  %p15150_p2 = scmp.lt.s32.totalorder %s15320_s14, %s15320_s14 }
  0x5c   :  { %p15146_p1 = scmp.ne.s32.totalorder %s15320_s14, %s15145_s28  ;;  %p15151_p3 = scmp.lt.s32.totalorder %s15145_s28, %s15145_s28 }
  0x5e   :  { %p15152_p4 = por %p15151_p3, %p15150_p2 }
  0x60   :  { %p15153_p5 = pnand %p15152_p4, %p15146_p1 }
  0x62   :  { %15156 = shalt.err (!%p15153_p5)
}
  0x63   :  { %76 = dma.hbm_to_vmem [thread:$0]  %s19405_s4, 16384, %s15320_s14, [#allocation8], %s15189_s17, %s15189_s17, %s15190_s18  }
  0x64   :  { %s15195_s9 = smov [#allocation12]   ;;  %s15157_s15 = scalar_lea.hbm %s19407_s6, 4096 }
  0x65   :  { %s94_s10 = sshll.u32 %s15195_s9, 4  ;;  %p15158_p6 = scmp.ne.s32.totalorder %s19407_s6, %s15157_s15  ;;  %s95_s10 = int_to_ptr.vmem [resolvable:$true] %s94_s10 }
  0x66   :  { %p15161_p7 = scmp.lt.u32.totalorder %s15157_s15, %s19407_s6 }
  0x68   :  { %p15163_p8 = pnand %p15161_p7, %p15158_p6 }
  0x6a   :  { %15166 = shalt.err (!%p15163_p8)
}
  0x6b   :  { %s15167_s3 = scalar_lea.vmem %s95_s10, 4096  ;;  %p15172_p10 = scmp.lt.s32.totalorder %s95_s10, %s95_s10 }
  0x6c   :  { %p15168_p9 = scmp.ne.s32.totalorder %s95_s10, %s15167_s3  ;;  %p15173_p11 = scmp.lt.s32.totalorder %s15167_s3, %s15167_s3 }
  0x6e   :  { %p15174_p12 = por %p15173_p11, %p15172_p10 }
  0x70   :  { %p15175_p13 = pnand %p15174_p12, %p15168_p9 }
  0x72   :  { %15178 = shalt.err (!%p15175_p13)
}
  0x73   :  { %s15196_s4 = smov 64   ;;  %s15197_s17 = smov 4  }
  0x74   :  { %100 = dma.hbm_to_vmem [thread:$0]  %s19407_s6, 4096, %s95_s10, [#allocation11], %s15196_s4, %s15196_s4, %s15197_s17  }
  0x75   :  { %15179 = dma.done.wait [#allocation3], 2048  }
  0x76   :  { %15180 = vsyncadd [#allocation3], 4294965248 }
  0x77   :  { %15181 = dma.done.wait [#allocation5], 20480  }
  0x78   :  { %15182 = vsyncadd [#allocation5], 4294946816 }
  0x79   :  { %15183 = dma.done.wait [#allocation8], 32768  }
  0x7a   :  { %15184 = vsyncadd [#allocation8], 4294934528 }
  0x7b   :  { %15185 = dma.done.wait [#allocation11], 20480  }
  0x7c   :  { %15186 = vsyncadd [#allocation11], 4294946816  ;;  %v142_v0 = vlaneseq  ;;  %v125_v8 = vld [vmem:[#allocation2] sm:$0xff]  ;;  %v126_v9 = vld [vmem:[#allocation2 + $0x8] sm:$0xff]  ;;  %v19410_v12 = vmov 0.0   ;;  %vm19420_vm2 = vcmask 523264  }
  0x7d   :  { %v127_v10 = vld [vmem:[#allocation2 + $0x10] sm:$0xff]  ;;  %v15390_v14 = vpack.c.bf16 %v126_v9, %v125_v8  ;;  %v128_v15 = vld [vmem:[#allocation2 + $0x18] sm:$0xff]  ;;  %v129_v16 = vld [vmem:[#allocation2 + $0x20] sm:$0xff] }
  0x7e   :  { %v15369_v1 = vshrl.u32 %v142_v0, 7  ;;  %v15371_v2 = vand.u32 127, %v142_v0  ;;  %v130_v17 = vld [vmem:[#allocation2 + $0x28] sm:$0xff]  ;;  %v15395_v19 = vpack.c.bf16 %v128_v15, %v127_v10  ;;  %v131_v25 = vld [vmem:[#allocation2 + $0x30] sm:$0xff]  ;;  %v132_v26 = vld [vmem:[#allocation2 + $0x38] sm:$0xff] }
  0x7f   :  { %13541 = vmatprep.subr.bf16.mxu1 %v15390_v14  ;;  %13529 = vmatprep.subr.bf16.mxu0 %v15390_v14  ;;  %v15406_v24 = vpack.c.bf16 %v130_v17, %v129_v16  ;;  %v15431_v34 = vpack.c.bf16 %v132_v26, %v131_v25  ;;  %v14161_v36 = vld [vmem:[#allocation4 + $0x44] ss:$8 sps:$4 sm:$0xff]   ;;  %v14159_v44 = vld [vmem:[#allocation4 + $0x40] ss:$8 sps:$4 sm:$0xff]   ;;  %v14164_v46 = vld [vmem:[#allocation4 + $0x54] ss:$8 sps:$4 sm:$0xff]  }
  0x80   :  { %19696 = vst [vmem:[#allocation17_spill] sm:$0xff] %v15369_v1  ;;  %19697 = vst [vmem:[#allocation18_spill] sm:$0xff] %v15371_v2  ;;  %v15374_v3 = vadd.s32 8, %v15369_v1  ;;  %v149_v4 = vmul.u32 2, %v15369_v1  ;;  %v15380_v6 = vadd.s32 16, %v15369_v1  ;;  %v15383_v7 = vadd.s32 24, %v15369_v1  ;;  %13542 = vmatpush3.bf16.msra.mxu1 %v15390_v14  ;;  %13530 = vmatpush3.bf16.msra.mxu0 %v15390_v14 }
  0x81   :  { %13543 = vmatprep.subr.bf16.mxu1 %v15395_v19  ;;  %13531 = vmatprep.subr.bf16.mxu0 %v15395_v19  ;;  %v14162_v47 = vld [vmem:[#allocation4 + $0x50] ss:$8 sps:$4 sm:$0xff]   ;;  %v14167_v48 = vld [vmem:[#allocation4 + $0x64] ss:$8 sps:$4 sm:$0xff]   ;;  %v14165_v53 = vld [vmem:[#allocation4 + $0x60] ss:$8 sps:$4 sm:$0xff]  }
  0x82   :  { %19698 = vst [vmem:[#allocation19_spill] sm:$0xff] %v15374_v3  ;;  %v150_v5 = vmul.u32 2, %v15374_v3  ;;  %vm171_vm0 = vcmp.eq.s32.totalorder %v15371_v2, %v149_v4  ;;  %19699 = vst [vmem:[#allocation20_spill] sm:$0xff] %v15380_v6  ;;  %v15385_v11 = vadd.s32 4294967295, %v149_v4  ;;  %v151_v22 = vmul.u32 2, %v15380_v6  ;;  %v134_v62 = vld [vmem:[#allocation2 + $0x40] sm:$0xff] }
  0x83   :  { %19700 = vst [vmem:[#allocation21_spill] sm:$0xff] %v15383_v7  ;;  %v15388_v13 = vsel %vm171_vm0, 1.0, %v19410_v12  ;;  %v152_v23 = vmul.u32 2, %v15383_v7  ;;  %v135_v63 = vld [vmem:[#allocation2 + $0x48] sm:$0xff]  ;;  %v137_v8 = vld [vmem:[#allocation2 + $0x58] sm:$0xff]  ;;  %v140_v16 = vld [vmem:[#allocation2 + $0x70] sm:$0xff] }
  0x84   :  { %19701 = vst [vmem:[#allocation22_spill] sm:$0xff] %v15388_v13  ;;  %v15392_v18 = vadd.s32 4294967295, %v150_v5  ;;  %vm172_vm1 = vcmp.eq.s32.totalorder %v15371_v2, %v150_v5  ;;  %vm157_vm3 = vcmp.eq.s32.totalorder %v15371_v2, %v15385_v11  ;;  %v15416_v27 = vadd.s32 4294967295, %v151_v22  ;;  %13544 = vmatpush3.bf16.msra.mxu1 %v15395_v19  ;;  %13532 = vmatpush3.bf16.msra.mxu0 %v15395_v19  ;;  %v136_v5 = vld [vmem:[#allocation2 + $0x50] sm:$0xff]  ;;  %v141_v17 = vld [vmem:[#allocation2 + $0x78] sm:$0xff] }
  0x85   :  { %v11863_v20 = vsel %vm172_vm1, 1.0, %v19410_v12  ;;  %v15418_v28 = vadd.s32 4294967295, %v152_v23  ;;  %v15421_v29 = vsel %vm157_vm3, 1.0, %v19410_v12  ;;  %v185_v32 = vadd.s32 2, %v15385_v11  ;;  %13545 = vmatprep.subr.bf16.mxu1 %v15406_v24  ;;  %13533 = vmatprep.subr.bf16.mxu0 %v15406_v24 }
  0x86   :  { %v15401_v21 = vpack.c.bf16 %v11863_v20, %v15388_v13  ;;  %vm158_vm4 = vcmp.eq.s32.totalorder %v15371_v2, %v15392_v18  ;;  %19702 = vst [vmem:[#allocation23_spill] sm:$0xff] %v15421_v29  ;;  %v186_v33 = vadd.s32 2, %v15392_v18  ;;  %vm173_vm5 = vcmp.eq.s32.totalorder %v15371_v2, %v151_v22  ;;  %v15533_v20 = vld [vmem:[#allocation4 + $0x74] ss:$8 sps:$4 sm:$0xff]   ;;  %v15535_v22 = vld [vmem:[#allocation4 + $0x70] ss:$8 sps:$4 sm:$0xff]  }
  0x87   :  { %v11859_v30 = vsel %vm158_vm4, 1.0, %v19410_v12  ;;  %vm174_vm6 = vcmp.eq.s32.totalorder %v15371_v2, %v152_v23  ;;  %vm159_vm7 = vcmp.eq.s32.totalorder %v15371_v2, %v15416_v27  ;;  %vm160_vm8 = vcmp.eq.s32.totalorder %v15371_v2, %v15418_v28  ;;  %v15539_v23 = vld [vmem:[#allocation4 + $0x4] ss:$8 sps:$4 sm:$0xff]   ;;  %v15942_v13 = vld [vmem:[#allocation6 + $0x214] ss:$8 sps:$4 sm:$0xff]  }
  0x88   :  { %13549 = vmatprep.mubr.msk.bf16.mxu1 %vm19420_vm2, %v15401_v21  ;;  %v15426_v31 = vpack.c.bf16 %v11859_v30, %v15421_v29  ;;  %vm189_vm9 = vcmp.eq.s32.totalorder %v15371_v2, %v185_v32  ;;  %vm190_vm10 = vcmp.eq.s32.totalorder %v15371_v2, %v186_v33  ;;  %v11864_v35 = vsel %vm173_vm5, 1.0, %v19410_v12  ;;  %13546 = vmatpush3.bf16.msra.mxu1 %v15406_v24 }
  0x89   :  { %v11865_v37 = vsel %vm174_vm6, 1.0, %v19410_v12  ;;  %13534 = vmatpush3.bf16.msra.mxu0 %v15406_v24  ;;  %v11860_v38 = vsel %vm159_vm7, 1.0, %v19410_v12  ;;  %v11861_v39 = vsel %vm160_vm8, 1.0, %v19410_v12  ;;  %13547 = vmatprep.subr.bf16.mxu1 %v15431_v34  ;;  %v15455_v40 = vsel %vm189_vm9, 1.0, %v19410_v12 }
  0x8a   :  { %13537 = vmatprep.mubr.msk.bf16.mxu0 %vm19420_vm2, %v15426_v31  ;;  %13535 = vmatprep.subr.bf16.mxu0 %v15431_v34  ;;  %19703 = vst [vmem:[#allocation24_spill] sm:$0xff] %v15455_v40  ;;  %v11867_v41 = vsel %vm190_vm10, 1.0, %v19410_v12  ;;  %v15458_v42 = vpack.c.bf16 %v11865_v37, %v11864_v35  ;;  %v15460_v43 = vpack.c.bf16 %v11861_v39, %v11860_v38  ;;  %v187_v49 = vadd.s32 2, %v15416_v27  ;;  %v15545_v35 = vld [vmem:[#allocation4] ss:$8 sps:$4 sm:$0xff]  }
  0x8b   :  { %v15465_v45 = vpack.c.bf16 %v11867_v41, %v15455_v40  ;;  %v188_v50 = vadd.s32 2, %v15418_v28  ;;  %v203_v51 = vadd.s32 3, %v15385_v11  ;;  %v204_v52 = vadd.s32 3, %v15392_v18  ;;  %v138_v11 = vld [vmem:[#allocation2 + $0x60] sm:$0xff]  ;;  %v15547_v39 = vld [vmem:[#allocation4 + $0x14] ss:$8 sps:$4 sm:$0xff]  }
  0x8c   :  { %13548 = vmatpush3.bf16.msra.mxu1 %v15431_v34  ;;  %vm191_vm11 = vcmp.eq.s32.totalorder %v15371_v2, %v187_v49  ;;  %v205_v60 = vadd.s32 3, %v15416_v27  ;;  %v206_v61 = vadd.s32 3, %v15418_v28  ;;  %v901_v9 = vpack.c.bf16 %v135_v63, %v134_v62  ;;  %v15569_v49 = vld [vmem:[#allocation4 + $0x84] ss:$8 sps:$4 sm:$0xff]   ;;  %v15589_v62 = vld [vmem:[#allocation4 + $0xb4] ss:$8 sps:$4 sm:$0xff]  }
  0x8d   :  { %13536 = vmatpush3.bf16.msra.mxu0 %v15431_v34  ;;  %13553 = vmatprep.subr.bf16.mxu1 %v15390_v14  ;;  %vm192_vm12 = vcmp.eq.s32.totalorder %v15371_v2, %v188_v50  ;;  %vm207_vm13 = vcmp.eq.s32.totalorder %v15371_v2, %v203_v51  ;;  %vm208_vm14 = vcmp.eq.s32.totalorder %v15371_v2, %v204_v52  ;;  %v11868_v54 = vsel %vm191_vm11, 1.0, %v19410_v12  ;;  %v15593_v63 = vld [vmem:[#allocation4 + $0xb0] ss:$8 sps:$4 sm:$0xff]  }
  0x8e   :  { %403 = vmatprep.subr.bf16.mxu0 %v14161_v36  ;;  %v11869_v55 = vsel %vm192_vm12, 1.0, %v19410_v12  ;;  %v15491_v56 = vsel %vm207_vm13, 1.0, %v19410_v12  ;;  %v11871_v57 = vsel %vm208_vm14, 1.0, %v19410_v12  ;;  %vm209_vm15 = vcmp.eq.s32.totalorder %v15371_v2, %v205_v60  ;;  %v15583_v60 = vld [vmem:[#allocation4 + $0xa4] ss:$8 sps:$4 sm:$0xff]  }
  0x8f   :  { %13550 = vmatmul.mubr.msk.bf16.vlgmr.msra.gmra.mrb[0].mxu1 %vm19420_vm2, %v15458_v42  ;;  %19704 = vst [vmem:[#allocation25_spill] sm:$0xff] %v15491_v56  ;;  %v15494_v58 = vpack.c.bf16 %v11869_v55, %v11868_v54  ;;  %v15498_v59 = vpack.c.bf16 %v11871_v57, %v15491_v56  ;;  %vm210_vm0 = vcmp.eq.s32.totalorder %v15371_v2, %v206_v61  ;;  %v11872_v0 = vsel %vm209_vm15, 1.0, %v19410_v12  ;;  %v15572_v54 = vld [vmem:[#allocation4 + $0x80] ss:$8 sps:$4 sm:$0xff]   ;;  %v15575_v57 = vld [vmem:[#allocation4 + $0x94] ss:$8 sps:$4 sm:$0xff]  }
  0x90   :  { %13538 = vmatmul.mubr.msk.bf16.vlgmr.msra.gmra.mrb[0].mxu0 %vm19420_vm2, %v15460_v43  ;;  %13554 = vmatpush3.bf16.msra.mxu1 %v15390_v14  ;;  %v11873_v4 = vsel %vm210_vm0, 1.0, %v19410_v12  ;;  %v902_v15 = vpack.c.bf16 %v137_v8, %v136_v5  ;;  %v15586_v61 = vld [vmem:[#allocation4 + $0xa0] ss:$8 sps:$4 sm:$0xff]   ;;  %vm19421_vm10 = vcmask 261120   ;;  %v15936_v56 = vld [vmem:[#allocation6 + $0x204] ss:$8 sps:$4 sm:$0xff]  }
  0x91   :  { %13561 = vmatprep.mubr.msk.bf16.mxu1 %vm19420_vm2, %v15465_v45  ;;  %13555 = vmatprep.subr.bf16.mxu1 %v15395_v19  ;;  %v220_v10 = vpack.c.bf16 %v11873_v4, %v11872_v0  ;;  %v15597_v4 = vld [vmem:[#allocation4 + $0xc4] ss:$8 sps:$4 sm:$0xff]  }
  0x92   :  { %404 = vmatpush1.bf16.msra.mxu0 %v14159_v44  ;;  %v15558_v44 = vld [vmem:[#allocation4 + $0x20] ss:$8 sps:$4 sm:$0xff]  }
  0x93   :  { %405 = vmatprep.subr.bf16.mxu0 %v14164_v46  ;;  %v15561_v46 = vld [vmem:[#allocation4 + $0x34] ss:$8 sps:$4 sm:$0xff]  }
  0x94   :  { %13556 = vmatpush3.bf16.msra.mxu1 %v15395_v19 }
  0x95   :  { %13557 = vmatprep.subr.bf16.mxu1 %v15406_v24 }
  0x96   :  { %406 = vmatpush1.bf16.msra.mxu0 %v14162_v47  ;;  %v15565_v47 = vld [vmem:[#allocation4 + $0x30] ss:$8 sps:$4 sm:$0xff]  }
  0x97   :  { %407 = vmatprep.subr.bf16.mxu0 %v14167_v48 }
  0x98   :  { %13558 = vmatpush3.bf16.msra.mxu1 %v15406_v24 }
  0x99   :  { %13559 = vmatprep.subr.bf16.mxu1 %v15431_v34 }
  0x9a   :  { %408 = vmatpush1.bf16.msra.mxu0 %v14165_v53 }
  0x9b   :  { %409 = vmatprep.subr.bf16.mxu0 %v15533_v20 }
  0x9c   :  { %13560 = vmatpush3.bf16.msra.mxu1 %v15431_v34 }
  0x9d   :  { %13565 = vmatprep.subr.bf16.mxu1 %v15390_v14 }
  0x9e   :  { %410 = vmatpush1.bf16.msra.mxu0 %v15535_v22 }
  0x9f   :  { %13562 = vmatmul.mubr.msk.bf16.vlgmr.msra.gmra.mrb[4].mxu1 %vm19420_vm2, %v15494_v58  ;;  %502 = vmatprep.subr.bf16.mxu0 %v15539_v23 }
  0xa0   :  { %13566 = vmatpush3.bf16.msra.mxu1 %v15390_v14  ;;  %13573 = vmatprep.mubr.msk.bf16.mxu1 %vm19420_vm2, %v15498_v59  ;;  %v139_v14 = vld [vmem:[#allocation2 + $0x68] sm:$0xff] }
  0xa1   :  { %13567 = vmatprep.subr.bf16.mxu1 %v15395_v19  ;;  %v903_v18 = vpack.c.bf16 %v139_v14, %v138_v11  ;;  %v15600_v11 = vld [vmem:[#allocation4 + $0xc0] ss:$8 sps:$4 sm:$0xff]  }
  0xa4   :  { %13568 = vmatpush3.bf16.msra.mxu1 %v15395_v19  ;;  %v904_v19 = vpack.c.bf16 %v141_v17, %v140_v16  ;;  %v15607_v16 = vld [vmem:[#allocation4 + $0xd0] ss:$8 sps:$4 sm:$0xff]   ;;  %v15611_v17 = vld [vmem:[#allocation4 + $0xe4] ss:$8 sps:$4 sm:$0xff]  }
  0xa5   :  { %13569 = vmatprep.subr.bf16.mxu1 %v15406_v24 }
  0xa8   :  { %13570 = vmatpush3.bf16.msra.mxu1 %v15406_v24  ;;  %v19412_v24 = vmov 0  }
  0xa9   :  { %13571 = vmatprep.subr.bf16.mxu1 %v15431_v34  ;;  %435 = vmatprep.mubr.bf16.mxu0 %v19412_v24 }
  0xac   :  { %13572 = vmatpush3.bf16.msra.mxu1 %v15431_v34 }
  0xad   :  { %13577 = vmatprep.subr.bf16.mxu1 %v901_v9 }
  0xaf   :  { %13574 = vmatmul.mubr.msk.bf16.vlgmr.msra.gmra.mrb[8].mxu1 %vm19420_vm2, %v220_v10 }
  0xb0   :  { %13578 = vmatpush3.bf16.msra.mxu1 %v901_v9  ;;  %13585 = vmatprep.mubr.msk.bf16.mxu1 %vm19420_vm2, %v15426_v31 }
  0xb1   :  { %13579 = vmatprep.subr.bf16.mxu1 %v902_v15 }
  0xb4   :  { %13580 = vmatpush3.bf16.msra.mxu1 %v902_v15 }
  0xb5   :  { %13581 = vmatprep.subr.bf16.mxu1 %v903_v18 }
  0xb8   :  { %13582 = vmatpush3.bf16.msra.mxu1 %v903_v18 }
  0xb9   :  { %13583 = vmatprep.subr.bf16.mxu1 %v904_v19 }
  0xbc   :  { %13584 = vmatpush3.bf16.msra.mxu1 %v904_v19 }
  0xbd   :  { %13589 = vmatprep.subr.bf16.mxu1 %v901_v9 }
  0xbf   :  { %13586 = vmatmul.mubr.msk.bf16.vlgmr.msra.gmra.mrb[12].mxu1 %vm19420_vm2, %v15460_v43  ;;  %v15555_v43 = vld [vmem:[#allocation4 + $0x24] ss:$8 sps:$4 sm:$0xff]  }
  0xc0   :  { %13590 = vmatpush3.bf16.msra.mxu1 %v901_v9  ;;  %13597 = vmatprep.mubr.msk.bf16.mxu1 %vm19420_vm2, %v15401_v21 }
  0xc1   :  { %13591 = vmatprep.subr.bf16.mxu1 %v902_v15 }
  0xc4   :  { %13592 = vmatpush3.bf16.msra.mxu1 %v902_v15 }
  0xc5   :  { %13593 = vmatprep.subr.bf16.mxu1 %v903_v18 }
  0xc8   :  { %13594 = vmatpush3.bf16.msra.mxu1 %v903_v18 }
  0xc9   :  { %13595 = vmatprep.subr.bf16.mxu1 %v904_v19 }
  0xcc   :  { %13596 = vmatpush3.bf16.msra.mxu1 %v904_v19 }
  0xcd   :  { %13601 = vmatprep.subr.bf16.mxu1 %v901_v9 }
  0xcf   :  { %13598 = vmatmul.mubr.msk.bf16.vlgmr.msra.gmra.mrb[16].mxu1 %vm19420_vm2, %v15458_v42  ;;  %v15551_v42 = vld [vmem:[#allocation4 + $0x10] ss:$8 sps:$4 sm:$0xff]  }
  0xd0   :  { %13602 = vmatpush3.bf16.msra.mxu1 %v901_v9  ;;  %13609 = vmatprep.mubr.msk.bf16.mxu1 %vm19420_vm2, %v15465_v45 }
  0xd1   :  { %13603 = vmatprep.subr.bf16.mxu1 %v902_v15 }
  0xd4   :  { %13604 = vmatpush3.bf16.msra.mxu1 %v902_v15 }
  0xd5   :  { %13605 = vmatprep.subr.bf16.mxu1 %v903_v18 }
  0xd8   :  { %13606 = vmatpush3.bf16.msra.mxu1 %v903_v18 }
  0xd9   :  { %13607 = vmatprep.subr.bf16.mxu1 %v904_v19 }
  0xdc   :  { %13608 = vmatpush3.bf16.msra.mxu1 %v904_v19 }
  0xdd   :  { %13613 = vmatprep.subr.bf16.mxu1 %v901_v9 }
  0xdf   :  { %13610 = vmatmul.mubr.msk.bf16.vlgmr.msra.gmra.mrb[20].mxu1 %vm19420_vm2, %v15494_v58  ;;  %v15579_v58 = vld [vmem:[#allocation4 + $0x90] ss:$8 sps:$4 sm:$0xff]  }
  0xe0   :  { %13614 = vmatpush3.bf16.msra.mxu1 %v901_v9  ;;  %13621 = vmatprep.mubr.msk.bf16.mxu1 %vm19420_vm2, %v15498_v59 }
  0xe1   :  { %13615 = vmatprep.subr.bf16.mxu1 %v902_v15 }
  0xe4   :  { %13616 = vmatpush3.bf16.msra.mxu1 %v902_v15  ;;  %v15603_v15 = vld [vmem:[#allocation4 + $0xd4] ss:$8 sps:$4 sm:$0xff]  }
  0xe5   :  { %13617 = vmatprep.subr.bf16.mxu1 %v903_v18 }
  0xe8   :  { %13618 = vmatpush3.bf16.msra.mxu1 %v903_v18  ;;  %v15614_v18 = vld [vmem:[#allocation4 + $0xe0] ss:$8 sps:$4 sm:$0xff]  }
  0xe9   :  { %13619 = vmatprep.subr.bf16.mxu1 %v904_v19 }
  0xec   :  { %13620 = vmatpush3.bf16.msra.mxu1 %v904_v19  ;;  %v15617_v19 = vld [vmem:[#allocation4 + $0xf4] ss:$8 sps:$4 sm:$0xff]  }
  0xef   :  { %13622 = vmatmul.mubr.msk.bf16.vlgmr.msra.gmra.mrb[24].mxu1 %vm19420_vm2, %v220_v10 }
  0xf0   :  { %1448 = vmatprep.mubr.bf16.mxu1 %v19412_v24 }
 0x162   :  { %v13551_v25 = vpop.f32.mrb[0].mxu1 }
 0x163   :  { %v13539_v26 = vpop.f32.mrb[0].mxu0  ;;  %v331_v27 = vpop.f32.mrb[1].mxu1 }
 0x164   :  { %v266_v28 = vpop.f32.mrb[1].mxu0  ;;  %v13552_v30 = vpop.f32.mrb[2].mxu1 }
 0x165   :  { %v13540_v32 = vpop.f32.mrb[2].mxu0  ;;  %v347_v33 = vpack.c.bf16 %v13552_v30, %v13551_v25  ;;  %v334_v34 = vpop.f32.mrb[3].mxu1  ;;  %v15621_v25 = vld [vmem:[#allocation4 + $0xf0] ss:$8 sps:$4 sm:$0xff]  }
 0x166   :  { %v282_v36 = vpack.c.bf16 %v13540_v32, %v13539_v26  ;;  %v269_v37 = vpop.f32.mrb[3].mxu0  ;;  %v346_v38 = vpack.c.bf16 %v334_v34, %v331_v27  ;;  %v15019_v34 = vld [vmem:[#allocation4 + $0x44] ss:$8 sps:$4 sm:$0xff]  }
 0x167   :  { %v281_v41 = vpack.c.bf16 %v269_v37, %v266_v28  ;;  %v15021_v37 = vld [vmem:[#allocation4 + $0x54] ss:$8 sps:$4 sm:$0xff]  }
 0x168   :  { %11886 = vmatmul.mubr.msk.bf16.vlgmr.msra.gmra.mrb[4].mxu0 %vm19420_vm2, %v346_v38  ;;  %v15022_v38 = vld [vmem:[#allocation4 + $0x50] ss:$8 sps:$4 sm:$0xff]  }
 0x169   :  { %503 = vmatpush1.bf16.msra.mxu0 %v15545_v35  ;;  %445 = vmatprep.mubr.bf16.mxu0 %v19412_v24 }
 0x16a   :  { %504 = vmatprep.subr.bf16.mxu0 %v15547_v39 }
 0x16d   :  { %505 = vmatpush1.bf16.msra.mxu0 %v15551_v42 }
 0x16e   :  { %506 = vmatprep.subr.bf16.mxu0 %v15555_v43 }
 0x170   :  { %11887 = vmatmul.mubr.msk.bf16.gmra.mrb[8].mxu0 %vm19420_vm2, %v347_v33 }
 0x171   :  { %507 = vmatpush1.bf16.msra.mxu0 %v15558_v44  ;;  %534 = vmatprep.mubr.bf16.mxu0 %v19412_v24 }
 0x172   :  { %v13563_v48 = vpop.f32.mrb[4].mxu1  ;;  %508 = vmatprep.subr.bf16.mxu0 %v15561_v46 }
 0x173   :  { %v595_v50 = vpop.f32.mrb[5].mxu1 }
 0x174   :  { %v13564_v51 = vpop.f32.mrb[6].mxu1 }
 0x175   :  { %v611_v52 = vpack.c.bf16 %v13564_v51, %v13563_v48  ;;  %509 = vmatpush1.bf16.msra.mxu0 %v15565_v47  ;;  %v598_v53 = vpop.f32.mrb[7].mxu1  ;;  %v15024_v48 = vld [vmem:[#allocation4 + $0x60] ss:$8 sps:$4 sm:$0xff]  }
 0x176   :  { %v610_v55 = vpack.c.bf16 %v598_v53, %v595_v50  ;;  %667 = vmatprep.subr.bf16.mxu0 %v15569_v49 }
 0x178   :  { %11896 = vmatmul.mubr.msk.bf16.vlgmr.msra.gmra.mrb[4].mxu0 %vm19420_vm2, %v281_v41  ;;  %v15023_v41 = vld [vmem:[#allocation4 + $0x64] ss:$8 sps:$4 sm:$0xff]  }
 0x179   :  { %668 = vmatpush1.bf16.msra.mxu0 %v15572_v54  ;;  %544 = vmatprep.mubr.bf16.mxu0 %v19412_v24 }
 0x17a   :  { %669 = vmatprep.subr.bf16.mxu0 %v15575_v57 }
 0x17d   :  { %670 = vmatpush1.bf16.msra.mxu0 %v15579_v58 }
 0x17e   :  { %671 = vmatprep.subr.bf16.mxu0 %v15583_v60 }
 0x180   :  { %11897 = vmatmul.mubr.msk.bf16.gmra.mrb[8].mxu0 %vm19420_vm2, %v282_v36  ;;  %v15020_v36 = vld [vmem:[#allocation4 + $0x40] ss:$8 sps:$4 sm:$0xff]  }
 0x181   :  { %672 = vmatpush1.bf16.msra.mxu0 %v15586_v61  ;;  %699 = vmatprep.mubr.bf16.mxu0 %v19412_v24 }
 0x182   :  { %v13575_v0 = vpop.f32.mrb[8].mxu1  ;;  %673 = vmatprep.subr.bf16.mxu0 %v15589_v62 }
 0x183   :  { %v768_v5 = vpop.f32.mrb[9].mxu1 }
 0x184   :  { %v13576_v8 = vpop.f32.mrb[10].mxu1 }
 0x185   :  { %v784_v9 = vpack.c.bf16 %v13576_v8, %v13575_v0  ;;  %674 = vmatpush1.bf16.msra.mxu0 %v15593_v63  ;;  %v771_v10 = vpop.f32.mrb[11].mxu1 }
 0x186   :  { %v783_v14 = vpack.c.bf16 %v771_v10, %v768_v5  ;;  %840 = vmatprep.subr.bf16.mxu0 %v15597_v4 }
 0x188   :  { %11908 = vmatmul.mubr.msk.bf16.vlgmr.msra.gmra.mrb[4].mxu0 %vm19420_vm2, %v610_v55 }
 0x189   :  { %841 = vmatpush1.bf16.msra.mxu0 %v15600_v11  ;;  %709 = vmatprep.mubr.bf16.mxu0 %v19412_v24 }
 0x18a   :  { %842 = vmatprep.subr.bf16.mxu0 %v15603_v15 }
 0x18d   :  { %843 = vmatpush1.bf16.msra.mxu0 %v15607_v16 }
 0x18e   :  { %844 = vmatprep.subr.bf16.mxu0 %v15611_v17 }
 0x190   :  { %11909 = vmatmul.mubr.msk.bf16.gmra.mrb[8].mxu0 %vm19420_vm2, %v611_v52 }
 0x191   :  { %845 = vmatpush1.bf16.msra.mxu0 %v15614_v18  ;;  %872 = vmatprep.mubr.bf16.mxu0 %v19412_v24 }
 0x192   :  { %v13587_v26 = vpop.f32.mrb[12].mxu1  ;;  %846 = vmatprep.subr.bf16.mxu0 %v15617_v19 }
 0x193   :  { %v939_v27 = vpop.f32.mrb[13].mxu1 }
 0x194   :  { %v13588_v28 = vpop.f32.mrb[14].mxu1 }
 0x195   :  { %v955_v30 = vpack.c.bf16 %v13588_v28, %v13587_v26  ;;  %847 = vmatpush1.bf16.msra.mxu0 %v15621_v25  ;;  %v942_v32 = vpop.f32.mrb[15].mxu1 }
 0x196   :  { %v954_v33 = vpack.c.bf16 %v942_v32, %v939_v27  ;;  %1013 = vmatprep.subr.bf16.mxu0 %v15019_v34 }
 0x198   :  { %11920 = vmatmul.mubr.msk.bf16.vlgmr.msra.gmra.mrb[4].mxu0 %vm19420_vm2, %v783_v14 }
 0x199   :  { %1014 = vmatpush1.bf16.msra.mxu0 %v15020_v36  ;;  %882 = vmatprep.mubr.bf16.mxu0 %v19412_v24 }
 0x19a   :  { %1015 = vmatprep.subr.bf16.mxu0 %v15021_v37 }
 0x19d   :  { %1016 = vmatpush1.bf16.msra.mxu0 %v15022_v38  ;;  %v15676_v38 = vld [vmem:[#allocation6 + $0x104] ss:$8 sps:$4 sm:$0xff]  }
 0x19e   :  { %1017 = vmatprep.subr.bf16.mxu0 %v15023_v41  ;;  %v15680_v41 = vld [vmem:[#allocation6 + $0x100] ss:$8 sps:$4 sm:$0xff]  }
 0x1a0   :  { %11921 = vmatmul.mubr.msk.bf16.gmra.mrb[8].mxu0 %vm19420_vm2, %v784_v9 }
 0x1a1   :  { %1018 = vmatpush1.bf16.msra.mxu0 %v15024_v48  ;;  %1045 = vmatprep.mubr.bf16.mxu0 %v19412_v24  ;;  %v15683_v48 = vld [vmem:[#allocation6 + $0x114] ss:$8 sps:$4 sm:$0xff]  }
 0x1a2   :  { %v13599_v50 = vpop.f32.mrb[16].mxu1  ;;  %1019 = vmatprep.subr.bf16.mxu0 %v15533_v20 }
 0x1a3   :  { %v990_v51 = vpop.f32.mrb[17].mxu1 }
 0x1a4   :  { %v13600_v52 = vpop.f32.mrb[18].mxu1 }
 0x1a5   :  { %v1006_v53 = vpack.c.bf16 %v13600_v52, %v13599_v50  ;;  %v993_v55 = vpop.f32.mrb[19].mxu1  ;;  %1020 = vmatpush1.bf16.msra.mxu0 %v15535_v22  ;;  %v15691_v50 = vld [vmem:[#allocation6 + $0x110] ss:$8 sps:$4 sm:$0xff]   ;;  %v15697_v52 = vld [vmem:[#allocation6 + $0x120] ss:$8 sps:$4 sm:$0xff]  }
 0x1a6   :  { %v1005_v0 = vpack.c.bf16 %v993_v55, %v990_v51  ;;  %1072 = vmatprep.subr.bf16.mxu0 %v15539_v23  ;;  %v15694_v51 = vld [vmem:[#allocation6 + $0x124] ss:$8 sps:$4 sm:$0xff]   ;;  %v15703_v55 = vld [vmem:[#allocation6 + $0x130] ss:$8 sps:$4 sm:$0xff]  }
 0x1a8   :  { %11926 = vmatmul.mubr.msk.bf16.vlgmr.msra.gmra.mrb[12].mxu0 %vm19420_vm2, %v1005_v0  ;;  %v15706_v0 = vld [vmem:[#allocation6 + $0x144] ss:$8 sps:$4 sm:$0xff]  }
 0x1a9   :  { %1073 = vmatpush1.bf16.msra.mxu0 %v15545_v35  ;;  %1055 = vmatprep.mubr.bf16.mxu0 %v19412_v24 }
 0x1aa   :  { %1074 = vmatprep.subr.bf16.mxu0 %v15547_v39 }
 0x1ad   :  { %1075 = vmatpush1.bf16.msra.mxu0 %v15551_v42 }
 0x1ae   :  { %1076 = vmatprep.subr.bf16.mxu0 %v15555_v43 }
 0x1b0   :  { %11927 = vmatmul.mubr.msk.bf16.gmra.mrb[16].mxu0 %vm19420_vm2, %v1006_v53  ;;  %v15700_v53 = vld [vmem:[#allocation6 + $0x134] ss:$8 sps:$4 sm:$0xff]  }
 0x1b1   :  { %1077 = vmatpush1.bf16.msra.mxu0 %v15558_v44  ;;  %1104 = vmatprep.mubr.bf16.mxu0 %v19412_v24 }
 0x1b2   :  { %1078 = vmatprep.subr.bf16.mxu0 %v15561_v46  ;;  %v13611_v20 = vpop.f32.mrb[20].mxu1 }
 0x1b3   :  { %v1159_v22 = vpop.f32.mrb[21].mxu1 }
 0x1b4   :  { %v13612_v23 = vpop.f32.mrb[22].mxu1 }
 0x1b5   :  { %1079 = vmatpush1.bf16.msra.mxu0 %v15565_v47  ;;  %v1175_v35 = vpack.c.bf16 %v13612_v23, %v13611_v20  ;;  %v1162_v5 = vpop.f32.mrb[23].mxu1  ;;  %v15709_v20 = vld [vmem:[#allocation6 + $0x140] ss:$8 sps:$4 sm:$0xff]   ;;  %v15715_v23 = vld [vmem:[#allocation6 + $0x150] ss:$8 sps:$4 sm:$0xff]  }
 0x1b6   :  { %1182 = vmatprep.subr.bf16.mxu0 %v15569_v49  ;;  %v1174_v39 = vpack.c.bf16 %v1162_v5, %v1159_v22  ;;  %v15712_v22 = vld [vmem:[#allocation6 + $0x154] ss:$8 sps:$4 sm:$0xff]   ;;  %v15721_v5 = vld [vmem:[#allocation6 + $0x160] ss:$8 sps:$4 sm:$0xff]  }
 0x1b8   :  { %11928 = vmatmul.mubr.msk.bf16.vlgmr.msra.gmra.mrb[12].mxu0 %vm19420_vm2, %v954_v33 }
 0x1b9   :  { %1183 = vmatpush1.bf16.msra.mxu0 %v15572_v54  ;;  %1114 = vmatprep.mubr.bf16.mxu0 %v19412_v24 }
 0x1ba   :  { %1184 = vmatprep.subr.bf16.mxu0 %v15575_v57 }
 0x1bd   :  { %1185 = vmatpush1.bf16.msra.mxu0 %v15579_v58 }
 0x1be   :  { %1186 = vmatprep.subr.bf16.mxu0 %v15583_v60 }
 0x1c0   :  { %11929 = vmatmul.mubr.msk.bf16.gmra.mrb[16].mxu0 %vm19420_vm2, %v955_v30 }
 0x1c1   :  { %1187 = vmatpush1.bf16.msra.mxu0 %v15586_v61  ;;  %1214 = vmatprep.mubr.bf16.mxu0 %v19412_v24 }
 0x1c2   :  { %1188 = vmatprep.subr.bf16.mxu0 %v15589_v62  ;;  %v13623_v42 = vpop.f32.mrb[24].mxu1 }
 0x1c3   :  { %v1277_v43 = vpop.f32.mrb[25].mxu1 }
 0x1c4   :  { %v13624_v44 = vpop.f32.mrb[26].mxu1 }
 0x1c5   :  { %1189 = vmatpush1.bf16.msra.mxu0 %v15593_v63  ;;  %v1293_v46 = vpack.c.bf16 %v13624_v44, %v13623_v42  ;;  %v1280_v47 = vpop.f32.mrb[27].mxu1  ;;  %v15727_v42 = vld [vmem:[#allocation6 + $0x170] ss:$8 sps:$4 sm:$0xff]   ;;  %v15733_v44 = vld [vmem:[#allocation6 + $0x180] ss:$8 sps:$4 sm:$0xff]  }
 0x1c6   :  { %1300 = vmatprep.subr.bf16.mxu0 %v15597_v4  ;;  %v1292_v49 = vpack.c.bf16 %v1280_v47, %v1277_v43  ;;  %v15730_v43 = vld [vmem:[#allocation6 + $0x184] ss:$8 sps:$4 sm:$0xff]   ;;  %v15739_v47 = vld [vmem:[#allocation6 + $0x190] ss:$8 sps:$4 sm:$0xff]  }
 0x1c8   :  { %11932 = vmatmul.mubr.msk.bf16.vlgmr.msra.gmra.mrb[12].mxu0 %vm19420_vm2, %v1174_v39  ;;  %v15724_v39 = vld [vmem:[#allocation6 + $0x174] ss:$8 sps:$4 sm:$0xff]  }
 0x1c9   :  { %1301 = vmatpush1.bf16.msra.mxu0 %v15600_v11  ;;  %1224 = vmatprep.mubr.bf16.mxu0 %v19412_v24 }
 0x1ca   :  { %1302 = vmatprep.subr.bf16.mxu0 %v15603_v15 }
 0x1cd   :  { %1303 = vmatpush1.bf16.msra.mxu0 %v15607_v16 }
 0x1ce   :  { %1304 = vmatprep.subr.bf16.mxu0 %v15611_v17 }
 0x1d0   :  { %11933 = vmatmul.mubr.msk.bf16.gmra.mrb[16].mxu0 %vm19420_vm2, %v1175_v35  ;;  %v15718_v35 = vld [vmem:[#allocation6 + $0x164] ss:$8 sps:$4 sm:$0xff]  }
 0x1d1   :  { %1305 = vmatpush1.bf16.msra.mxu0 %v15614_v18  ;;  %1332 = vmatprep.mubr.bf16.mxu0 %v19412_v24 }
 0x1d2   :  { %1306 = vmatprep.subr.bf16.mxu0 %v15617_v19 }
 0x1d5   :  { %1307 = vmatpush1.bf16.msra.mxu0 %v15621_v25 }
 0x1d8   :  { %11936 = vmatmul.mubr.msk.bf16.vlgmr.msra.gmra.mrb[12].mxu0 %vm19420_vm2, %v1292_v49  ;;  %v15742_v49 = vld [vmem:[#allocation6 + $0x1a4] ss:$8 sps:$4 sm:$0xff]  }
 0x1d9   :  { %1342 = vmatprep.mubr.bf16.mxu0 %v19412_v24 }
 0x1e0   :  { %11937 = vmatmul.mubr.msk.bf16.gmra.mrb[16].mxu0 %vm19420_vm2, %v1293_v46  ;;  %v15736_v46 = vld [vmem:[#allocation6 + $0x194] ss:$8 sps:$4 sm:$0xff]  }
 0x1e1   :  { %2013 = vmatprep.mubr.bf16.mxu0 %v19412_v24 }
 0x26b   :  { %v874_v54 = vpop.f32.mrb[4].mxu0 }
 0x26c   :  { %v1369_v57 = vmul.f32 0.2, %v874_v54  ;;  %v876_v58 = vpop.f32.mrb[5].mxu0  ;;  %vm1361_vm1 = vcmp.ge.f32.partialorder %v874_v54, 0.0 }
 0x26d   :  { %v1370_v60 = vmul.f32 0.2, %v876_v58  ;;  %v878_v61 = vpop.f32.mrb[6].mxu0  ;;  %vm1362_vm3 = vcmp.ge.f32.partialorder %v876_v58, 0.0 }
 0x26e   :  { %vm1363_vm4 = vcmp.ge.f32.partialorder %v878_v61, 0.0  ;;  %v1371_v62 = vmul.f32 0.2, %v878_v61  ;;  %v880_v63 = vpop.f32.mrb[7].mxu0  ;;  %v1377_v8 = vsel %vm1361_vm1, %v874_v54, %v1369_v57 }
 0x26f   :  { %vm1364_vm5 = vcmp.ge.f32.partialorder %v880_v63, 0.0  ;;  %v1372_v4 = vmul.f32 0.2, %v880_v63  ;;  %v1378_v10 = vsel %vm1362_vm3, %v876_v58, %v1370_v60  ;;  %v15744_v60 = vld [vmem:[#allocation6 + $0x1a0] ss:$8 sps:$4 sm:$0xff]  }
 0x270   :  { %v1379_v9 = vsel %vm1363_vm4, %v878_v61, %v1371_v62 }
 0x271   :  { %v1409_v11 = vpack.c.bf16 %v1379_v9, %v1377_v8  ;;  %v1380_v14 = vsel %vm1364_vm5, %v880_v63, %v1372_v4  ;;  %v15747_v63 = vld [vmem:[#allocation6 + $0x1b4] ss:$8 sps:$4 sm:$0xff]  }
 0x272   :  { %v1410_v15 = vpack.c.bf16 %v1380_v14, %v1378_v10 }
 0x273   :  { %v884_v16 = vpop.f32.mrb[8].mxu0 }
 0x274   :  { %v1373_v17 = vmul.f32 0.2, %v884_v16  ;;  %v886_v18 = vpop.f32.mrb[9].mxu0  ;;  %1416 = vmatprep.subr.bf16.mxu1 %v1410_v15  ;;  %1981 = vmatprep.subr.bf16.mxu0 %v1410_v15  ;;  %vm1365_vm6 = vcmp.ge.f32.partialorder %v884_v16, 0.0 }
 0x275   :  { %v1374_v19 = vmul.f32 0.2, %v886_v18  ;;  %v888_v25 = vpop.f32.mrb[10].mxu0  ;;  %1417 = vmatpush1.bf16.msra.mxu1 %v1409_v11  ;;  %1982 = vmatpush1.bf16.msra.mxu0 %v1409_v11  ;;  %vm1366_vm7 = vcmp.ge.f32.partialorder %v886_v18, 0.0 }
 0x276   :  { %vm1367_vm8 = vcmp.ge.f32.partialorder %v888_v25, 0.0  ;;  %v1375_v26 = vmul.f32 0.2, %v888_v25  ;;  %v890_v27 = vpop.f32.mrb[11].mxu0  ;;  %v1381_v30 = vsel %vm1365_vm6, %v884_v16, %v1373_v17  ;;  %v15753_v17 = vld [vmem:[#allocation6 + $0x1b0] ss:$8 sps:$4 sm:$0xff]  }
 0x277   :  { %vm1368_vm9 = vcmp.ge.f32.partialorder %v890_v27, 0.0  ;;  %v1376_v28 = vmul.f32 0.2, %v890_v27  ;;  %v1382_v33 = vsel %vm1366_vm7, %v886_v18, %v1374_v19  ;;  %v15758_v19 = vld [vmem:[#allocation6 + $0x1c4] ss:$8 sps:$4 sm:$0xff]  }
 0x278   :  { %v1383_v32 = vsel %vm1367_vm8, %v888_v25, %v1375_v26 }
 0x279   :  { %v1411_v34 = vpack.c.bf16 %v1383_v32, %v1381_v30  ;;  %v1384_v36 = vsel %vm1368_vm9, %v890_v27, %v1376_v28  ;;  %v15761_v28 = vld [vmem:[#allocation6 + $0x1c0] ss:$8 sps:$4 sm:$0xff]  }
 0x27a   :  { %v1412_v37 = vpack.c.bf16 %v1384_v36, %v1382_v33  ;;  %v14248_v33 = vld [vmem:[#allocation6 + $0x1d4] ss:$8 sps:$4 sm:$0xff]  }
 0x27c   :  { %1418 = vmatprep.subr.bf16.mxu1 %v1412_v37  ;;  %1983 = vmatprep.subr.bf16.mxu0 %v1412_v37 }
 0x27d   :  { %1419 = vmatpush1.bf16.msra.mxu1 %v1411_v34  ;;  %1984 = vmatpush1.bf16.msra.mxu0 %v1411_v34 }
 0x27e   :  { %1495 = vmatprep.subr.bf16.mxu1 %v1410_v15  ;;  %2268 = vmatprep.subr.bf16.mxu0 %v1410_v15 }
 0x280   :  { %11938 = vmatmul.mubr.msk.bf16.vlgmr.msra.gmra.mrb[28].mxu1 %vm19421_vm10, %v15426_v31  ;;  %12004 = vmatmul.mubr.msk.bf16.vlgmr.msra.gmra.mrb[20].mxu0 %vm19421_vm10, %v15465_v45 }
 0x281   :  { %1496 = vmatpush1.bf16.msra.mxu1 %v1409_v11  ;;  %2269 = vmatpush1.bf16.msra.mxu0 %v1409_v11 }
 0x282   :  { %1497 = vmatprep.subr.bf16.mxu1 %v1412_v37  ;;  %2270 = vmatprep.subr.bf16.mxu0 %v1412_v37 }
 0x283   :  { %1527 = vmatprep.mubr.bf16.mxu1 %v19412_v24  ;;  %2300 = vmatprep.mubr.bf16.mxu0 %v19412_v24 }
 0x285   :  { %1498 = vmatpush1.bf16.msra.mxu1 %v1411_v34  ;;  %2271 = vmatpush1.bf16.msra.mxu0 %v1411_v34 }
 0x286   :  { %1733 = vmatprep.subr.bf16.mxu1 %v15676_v38 }
 0x288   :  { %11939 = vmatmul.mubr.msk.bf16.vlgmr.msra.gmra.mrb[32].mxu1 %vm19421_vm10, %v15401_v21  ;;  %12037 = vmatmul.mubr.msk.bf16.vlgmr.msra.gmra.mrb[24].mxu0 %vm19421_vm10, %v15498_v59 }
 0x289   :  { %2589 = vmatprep.mubr.bf16.mxu0 %v19412_v24  ;;  %1734 = vmatpush1.bf16.msra.mxu1 %v15680_v41 }
 0x28a   :  { %1735 = vmatprep.subr.bf16.mxu1 %v15683_v48 }
 0x28d   :  { %1736 = vmatpush1.bf16.msra.mxu1 %v15691_v50 }
 0x28e   :  { %1737 = vmatprep.subr.bf16.mxu1 %v15694_v51 }
 0x291   :  { %1738 = vmatpush1.bf16.msra.mxu1 %v15697_v52 }
 0x292   :  { %1739 = vmatprep.subr.bf16.mxu1 %v15700_v53 }
 0x295   :  { %1740 = vmatpush1.bf16.msra.mxu1 %v15703_v55 }
 0x296   :  { %1741 = vmatprep.subr.bf16.mxu1 %v15706_v0 }
 0x299   :  { %1742 = vmatpush1.bf16.msra.mxu1 %v15709_v20 }
 0x29a   :  { %1743 = vmatprep.subr.bf16.mxu1 %v15712_v22 }
 0x29d   :  { %1744 = vmatpush1.bf16.msra.mxu1 %v15715_v23 }
 0x29e   :  { %1745 = vmatprep.subr.bf16.mxu1 %v15718_v35 }
 0x2a1   :  { %1746 = vmatpush1.bf16.msra.mxu1 %v15721_v5 }
 0x2a2   :  { %1747 = vmatprep.subr.bf16.mxu1 %v15724_v39 }
 0x2a5   :  { %1748 = vmatpush1.bf16.msra.mxu1 %v15727_v42 }
 0x2a6   :  { %1749 = vmatprep.subr.bf16.mxu1 %v15730_v43 }
 0x2a9   :  { %1750 = vmatpush1.bf16.msra.mxu1 %v15733_v44 }
 0x2aa   :  { %1751 = vmatprep.subr.bf16.mxu1 %v15736_v46 }
 0x2ab   :  { %v1334_v54 = vpop.f32.mrb[12].mxu0 }
 0x2ac   :  { %v1393_v57 = vmul.f32 0.2, %v1334_v54  ;;  %v1336_v58 = vpop.f32.mrb[13].mxu0  ;;  %vm1385_vm11 = vcmp.ge.f32.partialorder %v1334_v54, 0.0 }
 0x2ad   :  { %v1394_v61 = vmul.f32 0.2, %v1336_v58  ;;  %v1338_v62 = vpop.f32.mrb[14].mxu0  ;;  %1752 = vmatpush1.bf16.msra.mxu1 %v15739_v47  ;;  %vm1386_vm12 = vcmp.ge.f32.partialorder %v1336_v58, 0.0 }
 0x2ae   :  { %vm1387_vm13 = vcmp.ge.f32.partialorder %v1338_v62, 0.0  ;;  %v1395_v4 = vmul.f32 0.2, %v1338_v62  ;;  %v1340_v8 = vpop.f32.mrb[15].mxu0  ;;  %1753 = vmatprep.subr.bf16.mxu1 %v15742_v49  ;;  %v1401_v10 = vsel %vm1385_vm11, %v1334_v54, %v1393_v57 }
 0x2af   :  { %vm1388_vm14 = vcmp.ge.f32.partialorder %v1340_v8, 0.0  ;;  %v1396_v9 = vmul.f32 0.2, %v1340_v8  ;;  %v1402_v14 = vsel %vm1386_vm12, %v1336_v58, %v1394_v61 }
 0x2b0   :  { %v1403_v11 = vsel %vm1387_vm13, %v1338_v62, %v1395_v4  ;;  %v14246_v4 = vld [vmem:[#allocation6 + $0x1d0] ss:$8 sps:$4 sm:$0xff]  }
 0x2b1   :  { %v15750_v15 = vpack.c.bf16 %v1403_v11, %v1401_v10  ;;  %v1404_v16 = vsel %vm1388_vm14, %v1340_v8, %v1396_v9  ;;  %1754 = vmatpush1.bf16.msra.mxu1 %v15744_v60  ;;  %v14251_v9 = vld [vmem:[#allocation6 + $0x1e4] ss:$8 sps:$4 sm:$0xff]  }
 0x2b2   :  { %v15755_v18 = vpack.c.bf16 %v1404_v16, %v1402_v14  ;;  %1755 = vmatprep.subr.bf16.mxu1 %v15747_v63  ;;  %v15836_v14 = vld [vmem:[#allocation6] ss:$8 sps:$4 sm:$0xff]   ;;  %v15930_v16 = vld [vmem:[#allocation6 + $0xf4] ss:$8 sps:$4 sm:$0xff]  }
 0x2b3   :  { %v1344_v25 = vpop.f32.mrb[16].mxu0 }
 0x2b4   :  { %v1397_v26 = vmul.f32 0.2, %v1344_v25  ;;  %v1346_v27 = vpop.f32.mrb[17].mxu0  ;;  %2557 = vmatprep.subr.bf16.mxu0 %v15755_v18  ;;  %vm1389_vm15 = vcmp.ge.f32.partialorder %v1344_v25, 0.0 }
 0x2b5   :  { %v1398_v30 = vmul.f32 0.2, %v1346_v27  ;;  %v1348_v32 = vpop.f32.mrb[18].mxu0  ;;  %2558 = vmatpush1.bf16.msra.mxu0 %v15750_v15  ;;  %1756 = vmatpush1.bf16.msra.mxu1 %v15753_v17  ;;  %vm1390_vm0 = vcmp.ge.f32.partialorder %v1346_v27, 0.0 }
 0x2b6   :  { %vm1391_vm1 = vcmp.ge.f32.partialorder %v1348_v32, 0.0  ;;  %v1399_v34 = vmul.f32 0.2, %v1348_v32  ;;  %v1350_v36 = vpop.f32.mrb[19].mxu0  ;;  %1757 = vmatprep.subr.bf16.mxu1 %v15758_v19  ;;  %v1405_v54 = vsel %vm1389_vm15, %v1344_v25, %v1397_v26  ;;  %v15846_v25 = vld [vmem:[#allocation6 + $0x24] ss:$8 sps:$4 sm:$0xff]  }
 0x2b7   :  { %vm1392_vm3 = vcmp.ge.f32.partialorder %v1350_v36, 0.0  ;;  %v1400_v37 = vmul.f32 0.2, %v1350_v36  ;;  %v1406_v58 = vsel %vm1390_vm0, %v1346_v27, %v1398_v30  ;;  %v15849_v26 = vld [vmem:[#allocation6 + $0x20] ss:$8 sps:$4 sm:$0xff]  }
 0x2b8   :  { %v1407_v57 = vsel %vm1391_vm1, %v1348_v32, %v1399_v34  ;;  %v15852_v27 = vld [vmem:[#allocation6 + $0x34] ss:$8 sps:$4 sm:$0xff]   ;;  %v15858_v30 = vld [vmem:[#allocation6 + $0x44] ss:$8 sps:$4 sm:$0xff]   ;;  %v15861_v32 = vld [vmem:[#allocation6 + $0x40] ss:$8 sps:$4 sm:$0xff]  }
 0x2b9   :  { %v15766_v61 = vpack.c.bf16 %v1407_v57, %v1405_v54  ;;  %v1408_v62 = vsel %vm1392_vm3, %v1350_v36, %v1400_v37  ;;  %1758 = vmatpush1.bf16.msra.mxu1 %v15761_v28  ;;  %v15867_v34 = vld [vmem:[#allocation6 + $0x50] ss:$8 sps:$4 sm:$0xff]   ;;  %v15870_v36 = vld [vmem:[#allocation6 + $0x64] ss:$8 sps:$4 sm:$0xff]   ;;  %v15873_v37 = vld [vmem:[#allocation6 + $0x60] ss:$8 sps:$4 sm:$0xff]  }
 0x2ba   :  { %v15769_v8 = vpack.c.bf16 %v1408_v62, %v1406_v58  ;;  %1759 = vmatprep.subr.bf16.mxu1 %v14248_v33  ;;  %v15876_v54 = vld [vmem:[#allocation6 + $0x74] ss:$8 sps:$4 sm:$0xff]   ;;  %v15879_v57 = vld [vmem:[#allocation6 + $0x70] ss:$8 sps:$4 sm:$0xff]   ;;  %v15882_v58 = vld [vmem:[#allocation6 + $0x84] ss:$8 sps:$4 sm:$0xff]  }
 0x2bb   :  { %v15885_v62 = vld [vmem:[#allocation6 + $0x80] ss:$8 sps:$4 sm:$0xff]  }
 0x2bc   :  { %2559 = vmatprep.subr.bf16.mxu0 %v15769_v8 }
 0x2bd   :  { %2560 = vmatpush1.bf16.msra.mxu0 %v15766_v61  ;;  %1760 = vmatpush1.bf16.msra.mxu1 %v14246_v4 }
 0x2be   :  { %2602 = vmatprep.subr.bf16.mxu0 %v15755_v18  ;;  %1761 = vmatprep.subr.bf16.mxu1 %v14251_v9 }
 0x2c0   :  { %12070 = vmatmul.mubr.msk.bf16.vlgmr.msra.gmra.mrb[28].mxu0 %vm19421_vm10, %v15426_v31  ;;  %v14249_v31 = vld [vmem:[#allocation6 + $0x1e0] ss:$8 sps:$4 sm:$0xff]  }
 0x2c1   :  { %2603 = vmatpush1.bf16.msra.mxu0 %v15750_v15  ;;  %2634 = vmatprep.mubr.bf16.mxu0 %v19412_v24  ;;  %v15927_v24 = vld [vmem:[#allocation6 + $0xe0] ss:$8 sps:$4 sm:$0xff]  }
 0x2c2   :  { %2604 = vmatprep.subr.bf16.mxu0 %v15769_v8  ;;  %1762 = vmatpush1.bf16.msra.mxu1 %v14249_v31 }
 0x2c5   :  { %2605 = vmatpush1.bf16.msra.mxu0 %v15766_v61 }
 0x2c6   :  { %2647 = vmatprep.subr.bf16.mxu0 %v15676_v38  ;;  %v14252_v38 = vld [vmem:[#allocation6 + $0x1f0] ss:$8 sps:$4 sm:$0xff]  }
 0x2c8   :  { %12071 = vmatmul.mubr.msk.bf16.vlgmr.msra.gmra.mrb[32].mxu0 %vm19421_vm10, %v15401_v21  ;;  %v14254_v21 = vld [vmem:[#allocation6 + $0x1f4] ss:$8 sps:$4 sm:$0xff]  }
 0x2c9   :  { %2648 = vmatpush1.bf16.msra.mxu0 %v15680_v41  ;;  %1763 = vmatprep.subr.bf16.mxu1 %v14254_v21  ;;  %v14257_v41 = vld [vmem:[#allocation6 + $0x4] ss:$8 sps:$4 sm:$0xff]  }
 0x2ca   :  { %2649 = vmatprep.subr.bf16.mxu0 %v15683_v48  ;;  %1764 = vmatpush1.bf16.msra.mxu1 %v14252_v38 }
 0x2cb   :  { %1936 = vmatprep.subr.bf16.mxu1 %v14257_v41 }
 0x2cd   :  { %2650 = vmatpush1.bf16.msra.mxu0 %v15691_v50 }
 0x2ce   :  { %2651 = vmatprep.subr.bf16.mxu0 %v15694_v51 }
 0x2d1   :  { %2652 = vmatpush1.bf16.msra.mxu0 %v15697_v52 }
 0x2d2   :  { %2653 = vmatprep.subr.bf16.mxu0 %v15700_v53 }
 0x2d5   :  { %2654 = vmatpush1.bf16.msra.mxu0 %v15703_v55 }
 0x2d6   :  { %2655 = vmatprep.subr.bf16.mxu0 %v15706_v0 }
 0x2d9   :  { %2656 = vmatpush1.bf16.msra.mxu0 %v15709_v20 }
 0x2da   :  { %2657 = vmatprep.subr.bf16.mxu0 %v15712_v22 }
 0x2dd   :  { %2658 = vmatpush1.bf16.msra.mxu0 %v15715_v23 }
 0x2de   :  { %2659 = vmatprep.subr.bf16.mxu0 %v15718_v35 }
 0x2e1   :  { %2660 = vmatpush1.bf16.msra.mxu0 %v15721_v5  ;;  %v15933_v5 = vld [vmem:[#allocation6 + $0xf0] ss:$8 sps:$4 sm:$0xff]  }
 0x2e2   :  { %2661 = vmatprep.subr.bf16.mxu0 %v15724_v39 }
 0x2e5   :  { %2662 = vmatpush1.bf16.msra.mxu0 %v15727_v42 }
 0x2e6   :  { %2663 = vmatprep.subr.bf16.mxu0 %v15730_v43 }
 0x2e9   :  { %2664 = vmatpush1.bf16.msra.mxu0 %v15733_v44 }
 0x2ea   :  { %2665 = vmatprep.subr.bf16.mxu0 %v15736_v46 }
 0x2ed   :  { %2666 = vmatpush1.bf16.msra.mxu0 %v15739_v47 }
 0x2ee   :  { %2667 = vmatprep.subr.bf16.mxu0 %v15742_v49 }
 0x2f1   :  { %2668 = vmatpush1.bf16.msra.mxu0 %v15744_v60 }
 0x2f2   :  { %2669 = vmatprep.subr.bf16.mxu0 %v15747_v63 }
 0x2f5   :  { %2670 = vmatpush1.bf16.msra.mxu0 %v15753_v17  ;;  %v15840_v17 = vld [vmem:[#allocation6 + $0x14] ss:$8 sps:$4 sm:$0xff]  }
 0x2f6   :  { %2671 = vmatprep.subr.bf16.mxu0 %v15758_v19  ;;  %v15843_v19 = vld [vmem:[#allocation6 + $0x10] ss:$8 sps:$4 sm:$0xff]  }
 0x2f9   :  { %2672 = vmatpush1.bf16.msra.mxu0 %v15761_v28  ;;  %v15855_v28 = vld [vmem:[#allocation6 + $0x30] ss:$8 sps:$4 sm:$0xff]  }
 0x2fa   :  { %2673 = vmatprep.subr.bf16.mxu0 %v14248_v33  ;;  %v15864_v33 = vld [vmem:[#allocation6 + $0x54] ss:$8 sps:$4 sm:$0xff]  }
 0x2fd   :  { %2674 = vmatpush1.bf16.msra.mxu0 %v14246_v4  ;;  %v15888_v4 = vld [vmem:[#allocation6 + $0x94] ss:$8 sps:$4 sm:$0xff]  }
 0x2fe   :  { %2675 = vmatprep.subr.bf16.mxu0 %v14251_v9  ;;  %v15894_v9 = vld [vmem:[#allocation6 + $0xa4] ss:$8 sps:$4 sm:$0xff]  }
 0x301   :  { %2676 = vmatpush1.bf16.msra.mxu0 %v14249_v31  ;;  %v15891_v31 = vld [vmem:[#allocation6 + $0x90] ss:$8 sps:$4 sm:$0xff]  }
 0x302   :  { %2677 = vmatprep.subr.bf16.mxu0 %v14254_v21  ;;  %v15897_v21 = vld [vmem:[#allocation6 + $0xa0] ss:$8 sps:$4 sm:$0xff]  }
 0x305   :  { %2678 = vmatpush1.bf16.msra.mxu0 %v14252_v38  ;;  %v15900_v38 = vld [vmem:[#allocation6 + $0xb4] ss:$8 sps:$4 sm:$0xff]  }
 0x306   :  { %2690 = vmatprep.subr.bf16.mxu0 %v14257_v41  ;;  %v15903_v41 = vld [vmem:[#allocation6 + $0xb0] ss:$8 sps:$4 sm:$0xff]  }
 0x353   :  { %v15808_v48 = vpop.f32.mrb[28].mxu1  ;;  %v15810_v50 = vpop.f32.mrb[20].mxu0 }
 0x354   :  { %v1452_v51 = vpop.f32.mrb[29].mxu1  ;;  %v15812_v52 = vpop.f32.mrb[21].mxu0 }
 0x355   :  { %v15814_v53 = vpop.f32.mrb[30].mxu1  ;;  %v15816_v55 = vpop.f32.mrb[22].mxu0 }
 0x356   :  { %v1456_v20 = vpop.f32.mrb[31].mxu1  ;;  %v15822_v23 = vpop.f32.mrb[23].mxu0  ;;  %v19705_v7 = vpack.c.bf16 %v15814_v53, %v15808_v48  ;;  %v15967_v48 = vld [vmem:[#allocation6 + $0x230] ss:$8 sps:$4 sm:$0xff]   ;;  %v15975_v53 = vld [vmem:[#allocation6 + $0x240] ss:$8 sps:$4 sm:$0xff]  }
 0x357   :  { %v1460_v35 = vpack.c.bf16 %v1456_v20, %v1452_v51  ;;  %v15906_v51 = vld [vmem:[#allocation6 + $0xc4] ss:$8 sps:$4 sm:$0xff]   ;;  %v15909_v20 = vld [vmem:[#allocation6 + $0xc0] ss:$8 sps:$4 sm:$0xff]  }
 0x35b   :  { %v1529_v39 = vpop.f32.mrb[32].mxu1  ;;  %v15826_v42 = vpop.f32.mrb[24].mxu0 }
 0x35c   :  { %v1531_v43 = vpop.f32.mrb[33].mxu1  ;;  %v15828_v44 = vpop.f32.mrb[25].mxu0 }
 0x35d   :  { %v1533_v46 = vpop.f32.mrb[34].mxu1  ;;  %v15830_v47 = vpop.f32.mrb[26].mxu0 }
 0x35e   :  { %v1538_v49 = vpack.c.bf16 %v1533_v46, %v1529_v39  ;;  %v1535_v60 = vpop.f32.mrb[35].mxu1  ;;  %v15834_v10 = vpop.f32.mrb[27].mxu0 }
 0x35f   :  { %v1539_v11 = vpack.c.bf16 %v1535_v60, %v1531_v43  ;;  %v15917_v43 = vld [vmem:[#allocation6 + $0xd0] ss:$8 sps:$4 sm:$0xff]  }
 0x361   :  { %1765 = vmatprep.mubr.bf16.mxu1 %v1539_v11 }
 0x362   :  { %1766 = vmatmul.mubr.bf16.vlgmr.msra.gmra.mrb[36].mxu1 %v1538_v49  ;;  %v15920_v49 = vld [vmem:[#allocation6 + $0xe4] ss:$8 sps:$4 sm:$0xff]  }
 0x363   :  { %1937 = vmatpush1.bf16.msra.mxu1 %v15836_v14  ;;  %1968 = vmatprep.mubr.bf16.mxu1 %v1460_v35  ;;  %v15912_v35 = vld [vmem:[#allocation6 + $0xd4] ss:$8 sps:$4 sm:$0xff]  }
 0x364   :  { %1938 = vmatprep.subr.bf16.mxu1 %v15840_v17 }
 0x367   :  { %1939 = vmatpush1.bf16.msra.mxu1 %v15843_v19 }
 0x368   :  { %1940 = vmatprep.subr.bf16.mxu1 %v15846_v25 }
 0x36b   :  { %1941 = vmatpush1.bf16.msra.mxu1 %v15849_v26 }
 0x36c   :  { %1942 = vmatprep.subr.bf16.mxu1 %v15852_v27 }
 0x36f   :  { %1943 = vmatpush1.bf16.msra.mxu1 %v15855_v28 }
 0x370   :  { %1944 = vmatprep.subr.bf16.mxu1 %v15858_v30 }
 0x373   :  { %1945 = vmatpush1.bf16.msra.mxu1 %v15861_v32 }
 0x374   :  { %1946 = vmatprep.subr.bf16.mxu1 %v15864_v33 }
 0x377   :  { %1947 = vmatpush1.bf16.msra.mxu1 %v15867_v34 }
 0x378   :  { %1948 = vmatprep.subr.bf16.mxu1 %v15870_v36 }
 0x37b   :  { %1949 = vmatpush1.bf16.msra.mxu1 %v15873_v37 }
 0x37c   :  { %1950 = vmatprep.subr.bf16.mxu1 %v15876_v54 }
 0x37f   :  { %1951 = vmatpush1.bf16.msra.mxu1 %v15879_v57 }
 0x380   :  { %1952 = vmatprep.subr.bf16.mxu1 %v15882_v58 }
 0x383   :  { %1953 = vmatpush1.bf16.msra.mxu1 %v15885_v62 }
 0x384   :  { %1954 = vmatprep.subr.bf16.mxu1 %v15888_v4 }
 0x387   :  { %1955 = vmatpush1.bf16.msra.mxu1 %v15891_v31 }
 0x388   :  { %1956 = vmatprep.subr.bf16.mxu1 %v15894_v9 }
 0x38b   :  { %1957 = vmatpush1.bf16.msra.mxu1 %v15897_v21 }
 0x38c   :  { %1958 = vmatprep.subr.bf16.mxu1 %v15900_v38 }
 0x38f   :  { %1959 = vmatpush1.bf16.msra.mxu1 %v15903_v41 }
 0x390   :  { %1960 = vmatprep.subr.bf16.mxu1 %v15906_v51 }
 0x393   :  { %1961 = vmatpush1.bf16.msra.mxu1 %v15909_v20  ;;  %v15915_v39 = vpop.f32.mrb[28].mxu0 }
 0x394   :  { %v2593_v46 = vpop.f32.mrb[29].mxu0  ;;  %1962 = vmatprep.subr.bf16.mxu1 %v15912_v35 }
 0x395   :  { %v15922_v60 = vpop.f32.mrb[30].mxu0 }
 0x396   :  { %v2597_v12 = vpop.f32.mrb[31].mxu0 }
 0x397   :  { %1963 = vmatpush1.bf16.msra.mxu1 %v15917_v43  ;;  %v2601_v63 = vpack.c.bf16 %v2597_v12, %v2593_v46  ;;  %v15939_v46 = vld [vmem:[#allocation6 + $0x200] ss:$8 sps:$4 sm:$0xff]  }
 0x398   :  { %1964 = vmatprep.subr.bf16.mxu1 %v15920_v49 }
 0x39b   :  { %1965 = vmatpush1.bf16.msra.mxu1 %v15927_v24  ;;  %v2636_v22 = vpop.f32.mrb[32].mxu0 }
 0x39c   :  { %v2638_v0 = vpop.f32.mrb[33].mxu0  ;;  %1966 = vmatprep.subr.bf16.mxu1 %v15930_v16 }
 0x39d   :  { %v2640_v11 = vpop.f32.mrb[34].mxu0 }
 0x39e   :  { %v2645_v40 = vpack.c.bf16 %v2640_v11, %v2636_v22  ;;  %v2642_v29 = vpop.f32.mrb[35].mxu0  ;;  %v19706_v22 = vpack.c.bf16 %v15822_v23, %v15812_v52  ;;  %v15951_v11 = vld [vmem:[#allocation6 + $0x210] ss:$8 sps:$4 sm:$0xff]   ;;  %v15971_v52 = vld [vmem:[#allocation6 + $0x244] ss:$8 sps:$4 sm:$0xff]  }
 0x39f   :  { %1967 = vmatpush1.bf16.msra.mxu1 %v15933_v5  ;;  %v2646_v12 = vpack.c.bf16 %v2642_v29, %v2638_v0  ;;  %v15954_v29 = vld [vmem:[#allocation6 + $0x224] ss:$8 sps:$4 sm:$0xff]   ;;  %v15979_v0 = vld [vmem:[#allocation6 + $0x254] ss:$8 sps:$4 sm:$0xff]   ;;  %v15983_v23 = vld [vmem:[#allocation6 + $0x250] ss:$8 sps:$4 sm:$0xff]  }
 0x3a0   :  { %2219 = vmatprep.subr.bf16.mxu1 %v15936_v56 }
 0x3a1   :  { %2679 = vmatprep.mubr.bf16.mxu0 %v2646_v12  ;;  %v16147_v12 = vld [vmem:[#allocation6 + $0x380] ss:$8 sps:$4 sm:$0xff]  }
 0x3a2   :  { %1969 = vmatmul.mubr.bf16.vlgmr.msra.gmra.mrb[36].mxu1 %v19705_v7  ;;  %2680 = vmatmul.mubr.bf16.vlgmr.msra.gmra.mrb[36].mxu0 %v2645_v40  ;;  %v15959_v7 = vld [vmem:[#allocation6 + $0x220] ss:$8 sps:$4 sm:$0xff]   ;;  %v15963_v40 = vld [vmem:[#allocation6 + $0x234] ss:$8 sps:$4 sm:$0xff]  }
 0x3a3   :  { %2220 = vmatpush1.bf16.msra.mxu1 %v15939_v46  ;;  %2251 = vmatprep.mubr.bf16.mxu1 %v19706_v22  ;;  %v16155_v22 = vld [vmem:[#allocation6 + $0x390] ss:$8 sps:$4 sm:$0xff]  }
 0x3a4   :  { %2691 = vmatpush1.bf16.msra.mxu0 %v15836_v14  ;;  %2722 = vmatprep.mubr.bf16.mxu0 %v2601_v63  ;;  %v15987_v63 = vld [vmem:[#allocation6 + $0x264] ss:$8 sps:$4 sm:$0xff]   ;;  %v15991_v14 = vld [vmem:[#allocation6 + $0x260] ss:$8 sps:$4 sm:$0xff]  }
 0x3a5   :  { %2221 = vmatprep.subr.bf16.mxu1 %v15942_v13  ;;  %2692 = vmatprep.subr.bf16.mxu0 %v15840_v17  ;;  %v15995_v17 = vld [vmem:[#allocation6 + $0x274] ss:$8 sps:$4 sm:$0xff]  }
 0x3a7   :  { %2222 = vmatpush1.bf16.msra.mxu1 %v15951_v11 }
 0x3a8   :  { %2693 = vmatpush1.bf16.msra.mxu0 %v15843_v19  ;;  %2223 = vmatprep.subr.bf16.mxu1 %v15954_v29  ;;  %v15999_v19 = vld [vmem:[#allocation6 + $0x270] ss:$8 sps:$4 sm:$0xff]  }
 0x3a9   :  { %2694 = vmatprep.subr.bf16.mxu0 %v15846_v25  ;;  %v16003_v25 = vld [vmem:[#allocation6 + $0x284] ss:$8 sps:$4 sm:$0xff]  }
 0x3ab   :  { %2224 = vmatpush1.bf16.msra.mxu1 %v15959_v7 }
 0x3ac   :  { %2695 = vmatpush1.bf16.msra.mxu0 %v15849_v26  ;;  %2225 = vmatprep.subr.bf16.mxu1 %v15963_v40  ;;  %v16007_v26 = vld [vmem:[#allocation6 + $0x280] ss:$8 sps:$4 sm:$0xff]  }
 0x3ad   :  { %2696 = vmatprep.subr.bf16.mxu0 %v15852_v27  ;;  %v16011_v27 = vld [vmem:[#allocation6 + $0x294] ss:$8 sps:$4 sm:$0xff]  }
 0x3af   :  { %2226 = vmatpush1.bf16.msra.mxu1 %v15967_v48 }
 0x3b0   :  { %2697 = vmatpush1.bf16.msra.mxu0 %v15855_v28  ;;  %2227 = vmatprep.subr.bf16.mxu1 %v15971_v52  ;;  %v16015_v28 = vld [vmem:[#allocation6 + $0x290] ss:$8 sps:$4 sm:$0xff]  }
 0x3b1   :  { %2698 = vmatprep.subr.bf16.mxu0 %v15858_v30  ;;  %v16019_v30 = vld [vmem:[#allocation6 + $0x2a4] ss:$8 sps:$4 sm:$0xff]  }
 0x3b3   :  { %2228 = vmatpush1.bf16.msra.mxu1 %v15975_v53 }
 0x3b4   :  { %2699 = vmatpush1.bf16.msra.mxu0 %v15861_v32  ;;  %2229 = vmatprep.subr.bf16.mxu1 %v15979_v0  ;;  %v16023_v32 = vld [vmem:[#allocation6 + $0x2a0] ss:$8 sps:$4 sm:$0xff]  }
 0x3b5   :  { %2700 = vmatprep.subr.bf16.mxu0 %v15864_v33  ;;  %v16027_v33 = vld [vmem:[#allocation6 + $0x2b4] ss:$8 sps:$4 sm:$0xff]  }
 0x3b7   :  { %2230 = vmatpush1.bf16.msra.mxu1 %v15983_v23 }
 0x3b8   :  { %2701 = vmatpush1.bf16.msra.mxu0 %v15867_v34  ;;  %2231 = vmatprep.subr.bf16.mxu1 %v15987_v63  ;;  %v16031_v34 = vld [vmem:[#allocation6 + $0x2b0] ss:$8 sps:$4 sm:$0xff]  }
 0x3b9   :  { %2702 = vmatprep.subr.bf16.mxu0 %v15870_v36  ;;  %v16035_v36 = vld [vmem:[#allocation6 + $0x2c4] ss:$8 sps:$4 sm:$0xff]  }
 0x3bb   :  { %2232 = vmatpush1.bf16.msra.mxu1 %v15991_v14 }
 0x3bc   :  { %2703 = vmatpush1.bf16.msra.mxu0 %v15873_v37  ;;  %2233 = vmatprep.subr.bf16.mxu1 %v15995_v17  ;;  %v16039_v37 = vld [vmem:[#allocation6 + $0x2c0] ss:$8 sps:$4 sm:$0xff]  }
 0x3bd   :  { %2704 = vmatprep.subr.bf16.mxu0 %v15876_v54  ;;  %v16043_v54 = vld [vmem:[#allocation6 + $0x2d4] ss:$8 sps:$4 sm:$0xff]  }
 0x3bf   :  { %2234 = vmatpush1.bf16.msra.mxu1 %v15999_v19 }
 0x3c0   :  { %2705 = vmatpush1.bf16.msra.mxu0 %v15879_v57  ;;  %2235 = vmatprep.subr.bf16.mxu1 %v16003_v25  ;;  %v16047_v57 = vld [vmem:[#allocation6 + $0x2d0] ss:$8 sps:$4 sm:$0xff]  }
 0x3c1   :  { %2706 = vmatprep.subr.bf16.mxu0 %v15882_v58  ;;  %v16051_v58 = vld [vmem:[#allocation6 + $0x2e4] ss:$8 sps:$4 sm:$0xff]  }
 0x3c3   :  { %2236 = vmatpush1.bf16.msra.mxu1 %v16007_v26 }
 0x3c4   :  { %2707 = vmatpush1.bf16.msra.mxu0 %v15885_v62  ;;  %2237 = vmatprep.subr.bf16.mxu1 %v16011_v27  ;;  %v16055_v62 = vld [vmem:[#allocation6 + $0x2e0] ss:$8 sps:$4 sm:$0xff]  }
 0x3c5   :  { %2708 = vmatprep.subr.bf16.mxu0 %v15888_v4  ;;  %v16059_v4 = vld [vmem:[#allocation6 + $0x2f4] ss:$8 sps:$4 sm:$0xff]  }
 0x3c7   :  { %2238 = vmatpush1.bf16.msra.mxu1 %v16015_v28 }
 0x3c8   :  { %2709 = vmatpush1.bf16.msra.mxu0 %v15891_v31  ;;  %2239 = vmatprep.subr.bf16.mxu1 %v16019_v30  ;;  %v16063_v31 = vld [vmem:[#allocation6 + $0x2f0] ss:$8 sps:$4 sm:$0xff]  }
 0x3c9   :  { %2710 = vmatprep.subr.bf16.mxu0 %v15894_v9  ;;  %v16067_v9 = vld [vmem:[#allocation6 + $0x304] ss:$8 sps:$4 sm:$0xff]  }
 0x3cb   :  { %2240 = vmatpush1.bf16.msra.mxu1 %v16023_v32 }
 0x3cc   :  { %2711 = vmatpush1.bf16.msra.mxu0 %v15897_v21  ;;  %2241 = vmatprep.subr.bf16.mxu1 %v16027_v33  ;;  %v16071_v21 = vld [vmem:[#allocation6 + $0x300] ss:$8 sps:$4 sm:$0xff]  }
 0x3cd   :  { %2712 = vmatprep.subr.bf16.mxu0 %v15900_v38  ;;  %v16076_v38 = vld [vmem:[#allocation6 + $0x314] ss:$8 sps:$4 sm:$0xff]  }
 0x3cf   :  { %2242 = vmatpush1.bf16.msra.mxu1 %v16031_v34 }
 0x3d0   :  { %2713 = vmatpush1.bf16.msra.mxu0 %v15903_v41  ;;  %2243 = vmatprep.subr.bf16.mxu1 %v16035_v36  ;;  %v19708_v41 = vpack.c.bf16 %v15922_v60, %v15915_v39  ;;  %v16131_v39 = vld [vmem:[#allocation6 + $0x360] ss:$8 sps:$4 sm:$0xff]   ;;  %v16143_v60 = vld [vmem:[#allocation6 + $0x384] ss:$8 sps:$4 sm:$0xff]  }
 0x3d1   :  { %2714 = vmatprep.subr.bf16.mxu0 %v15906_v51  ;;  %v16091_v51 = vld [vmem:[#allocation6 + $0x324] ss:$8 sps:$4 sm:$0xff]  }
 0x3d3   :  { %2244 = vmatpush1.bf16.msra.mxu1 %v16039_v37 }
 0x3d4   :  { %2715 = vmatpush1.bf16.msra.mxu0 %v15909_v20  ;;  %2245 = vmatprep.subr.bf16.mxu1 %v16043_v54  ;;  %v16111_v20 = vld [vmem:[#allocation6 + $0x344] ss:$8 sps:$4 sm:$0xff]  }
 0x3d5   :  { %2716 = vmatprep.subr.bf16.mxu0 %v15912_v35  ;;  %v16115_v35 = vld [vmem:[#allocation6 + $0x340] ss:$8 sps:$4 sm:$0xff]  }
 0x3d7   :  { %2246 = vmatpush1.bf16.msra.mxu1 %v16047_v57 }
 0x3d8   :  { %2717 = vmatpush1.bf16.msra.mxu0 %v15917_v43  ;;  %2247 = vmatprep.subr.bf16.mxu1 %v16051_v58  ;;  %v16135_v43 = vld [vmem:[#allocation6 + $0x374] ss:$8 sps:$4 sm:$0xff]  }
 0x3d9   :  { %2718 = vmatprep.subr.bf16.mxu0 %v15920_v49  ;;  %v16139_v49 = vld [vmem:[#allocation6 + $0x370] ss:$8 sps:$4 sm:$0xff]  }
 0x3db   :  { %2248 = vmatpush1.bf16.msra.mxu1 %v16055_v62 }
 0x3dc   :  { %2719 = vmatpush1.bf16.msra.mxu0 %v15927_v24  ;;  %2249 = vmatprep.subr.bf16.mxu1 %v16059_v4  ;;  %v19707_v24 = vpack.c.bf16 %v15816_v55, %v15810_v50  ;;  %v19710_v50 = vmov 0   ;;  %v16097_v55 = vld [vmem:[#allocation6 + $0x320] ss:$8 sps:$4 sm:$0xff]  }
 0x3dd   :  { %2720 = vmatprep.subr.bf16.mxu0 %v15930_v16  ;;  %v16085_v16 = vld [vmem:[#allocation6 + $0x310] ss:$8 sps:$4 sm:$0xff]  }
 0x3df   :  { %2250 = vmatpush1.bf16.msra.mxu1 %v16063_v31 }
 0x3e0   :  { %2721 = vmatpush1.bf16.msra.mxu0 %v15933_v5  ;;  %2506 = vmatprep.subr.bf16.mxu1 %v16067_v9  ;;  %v19709_v5 = vpack.c.bf16 %v15834_v10, %v15828_v44  ;;  %v16101_v44 = vld [vmem:[#allocation6 + $0x334] ss:$8 sps:$4 sm:$0xff]   ;;  %v16107_v10 = vld [vmem:[#allocation6 + $0x330] ss:$8 sps:$4 sm:$0xff]  }
 0x3e1   :  { %2733 = vmatprep.subr.bf16.mxu0 %v15755_v18 }
 0x3e2   :  { %2252 = vmatmul.mubr.bf16.vlgmr.msra.gmra.mrb[36].mxu1 %v19707_v24 }
 0x3e3   :  { %2723 = vmatmul.mubr.bf16.vlgmr.msra.gmra.mrb[36].mxu0 %v19708_v41  ;;  %2507 = vmatpush1.bf16.msra.mxu1 %v16071_v21 }
 0x3e4   :  { %2538 = vmatprep.mubr.bf16.mxu1 %v19709_v5  ;;  %2734 = vmatpush1.bf16.msra.mxu0 %v15750_v15 }
 0x3e5   :  { %2735 = vmatprep.subr.bf16.mxu0 %v15769_v8  ;;  %2508 = vmatprep.subr.bf16.mxu1 %v16076_v38 }
 0x3e6   :  { %2765 = vmatprep.mubr.bf16.mxu0 %v19710_v50 }
 0x3e7   :  { %2509 = vmatpush1.bf16.msra.mxu1 %v16085_v16 }
 0x3e8   :  { %2736 = vmatpush1.bf16.msra.mxu0 %v15766_v61  ;;  %2510 = vmatprep.subr.bf16.mxu1 %v16091_v51 }
 0x3e9   :  { %2778 = vmatprep.subr.bf16.mxu0 %v15936_v56  ;;  %v16123_v56 = vld [vmem:[#allocation6 + $0x350] ss:$8 sps:$4 sm:$0xff]  }
 0x3eb   :  { %12072 = vmatmul.mubr.msk.bf16.vlgmr.msra.gmra.mrb[40].mxu0 %vm19421_vm10, %v15465_v45  ;;  %2511 = vmatpush1.bf16.msra.mxu1 %v16097_v55  ;;  %v16119_v45 = vld [vmem:[#allocation6 + $0x354] ss:$8 sps:$4 sm:$0xff]  }
 0x3ec   :  { %2779 = vmatpush1.bf16.msra.mxu0 %v15939_v46  ;;  %2512 = vmatprep.subr.bf16.mxu1 %v16101_v44  ;;  %v16151_v46 = vld [vmem:[#allocation6 + $0x394] ss:$8 sps:$4 sm:$0xff]  }
 0x3ed   :  { %2780 = vmatprep.subr.bf16.mxu0 %v15942_v13  ;;  %v16127_v13 = vld [vmem:[#allocation6 + $0x364] ss:$8 sps:$4 sm:$0xff]  }
 0x3ef   :  { %2513 = vmatpush1.bf16.msra.mxu1 %v16107_v10 }
 0x3f0   :  { %2781 = vmatpush1.bf16.msra.mxu0 %v15951_v11  ;;  %2514 = vmatprep.subr.bf16.mxu1 %v16111_v20  ;;  %v16159_v11 = vld [vmem:[#allocation6 + $0x3a4] ss:$8 sps:$4 sm:$0xff]  }
 0x3f1   :  { %2782 = vmatprep.subr.bf16.mxu0 %v15954_v29  ;;  %v16163_v29 = vld [vmem:[#allocation6 + $0x3a0] ss:$8 sps:$4 sm:$0xff]  }
 0x3f3   :  { %2515 = vmatpush1.bf16.msra.mxu1 %v16115_v35 }
 0x3f4   :  { %2783 = vmatpush1.bf16.msra.mxu0 %v15959_v7  ;;  %2516 = vmatprep.subr.bf16.mxu1 %v16119_v45  ;;  %v16167_v7 = vld [vmem:[#allocation6 + $0x3b4] ss:$8 sps:$4 sm:$0xff]  }
 0x3f5   :  { %2784 = vmatprep.subr.bf16.mxu0 %v15963_v40  ;;  %v16171_v40 = vld [vmem:[#allocation6 + $0x3b0] ss:$8 sps:$4 sm:$0xff]  }
 0x3f7   :  { %2517 = vmatpush1.bf16.msra.mxu1 %v16123_v56 }
 0x3f8   :  { %2785 = vmatpush1.bf16.msra.mxu0 %v15967_v48  ;;  %2518 = vmatprep.subr.bf16.mxu1 %v16127_v13  ;;  %v16175_v48 = vld [vmem:[#allocation6 + $0x3c4] ss:$8 sps:$4 sm:$0xff]  }
 0x3f9   :  { %2786 = vmatprep.subr.bf16.mxu0 %v15971_v52  ;;  %v16179_v52 = vld [vmem:[#allocation6 + $0x3c0] ss:$8 sps:$4 sm:$0xff]  }
 0x3fb   :  { %2519 = vmatpush1.bf16.msra.mxu1 %v16131_v39 }
 0x3fc   :  { %2787 = vmatpush1.bf16.msra.mxu0 %v15975_v53  ;;  %2520 = vmatprep.subr.bf16.mxu1 %v16135_v43  ;;  %v16183_v53 = vld [vmem:[#allocation6 + $0x3d4] ss:$8 sps:$4 sm:$0xff]  }
 0x3fd   :  { %2788 = vmatprep.subr.bf16.mxu0 %v15979_v0  ;;  %v16187_v0 = vld [vmem:[#allocation6 + $0x3d0] ss:$8 sps:$4 sm:$0xff]  }
 0x3ff   :  { %2521 = vmatpush1.bf16.msra.mxu1 %v16139_v49 }
 0x400   :  { %2789 = vmatpush1.bf16.msra.mxu0 %v15983_v23  ;;  %2522 = vmatprep.subr.bf16.mxu1 %v16143_v60  ;;  %v16191_v23 = vld [vmem:[#allocation6 + $0x3e4] ss:$8 sps:$4 sm:$0xff]  }
 0x401   :  { %2790 = vmatprep.subr.bf16.mxu0 %v15987_v63  ;;  %v16195_v63 = vld [vmem:[#allocation6 + $0x3e0] ss:$8 sps:$4 sm:$0xff]  }
 0x403   :  { %2523 = vmatpush1.bf16.msra.mxu1 %v16147_v12 }
 0x404   :  { %2791 = vmatpush1.bf16.msra.mxu0 %v15991_v14  ;;  %2524 = vmatprep.subr.bf16.mxu1 %v16151_v46  ;;  %v16199_v14 = vld [vmem:[#allocation6 + $0x3f4] ss:$8 sps:$4 sm:$0xff]  }
 0x405   :  { %2792 = vmatprep.subr.bf16.mxu0 %v15995_v17  ;;  %v16203_v17 = vld [vmem:[#allocation6 + $0x3f0] ss:$8 sps:$4 sm:$0xff]  }
 0x407   :  { %2525 = vmatpush1.bf16.msra.mxu1 %v16155_v22 }
 0x408   :  { %2793 = vmatpush1.bf16.msra.mxu0 %v15999_v19  ;;  %2526 = vmatprep.subr.bf16.mxu1 %v16159_v11  ;;  %v19711_v19 = vpack.c.bf16 %v15830_v47, %v15826_v42 }
 0x409   :  { %2794 = vmatprep.subr.bf16.mxu0 %v16003_v25 }
 0x40b   :  { %2527 = vmatpush1.bf16.msra.mxu1 %v16163_v29 }
 0x40c   :  { %2795 = vmatpush1.bf16.msra.mxu0 %v16007_v26  ;;  %2528 = vmatprep.subr.bf16.mxu1 %v16167_v7 }
 0x40d   :  { %2796 = vmatprep.subr.bf16.mxu0 %v16011_v27 }
 0x40f   :  { %2529 = vmatpush1.bf16.msra.mxu1 %v16171_v40 }
 0x410   :  { %2797 = vmatpush1.bf16.msra.mxu0 %v16015_v28  ;;  %2530 = vmatprep.subr.bf16.mxu1 %v16175_v48 }
 0x411   :  { %2798 = vmatprep.subr.bf16.mxu0 %v16019_v30 }
 0x413   :  { %2531 = vmatpush1.bf16.msra.mxu1 %v16179_v52 }
 0x414   :  { %2799 = vmatpush1.bf16.msra.mxu0 %v16023_v32  ;;  %2532 = vmatprep.subr.bf16.mxu1 %v16183_v53 }
 0x415   :  { %2800 = vmatprep.subr.bf16.mxu0 %v16027_v33 }
 0x417   :  { %2533 = vmatpush1.bf16.msra.mxu1 %v16187_v0 }
 0x418   :  { %2801 = vmatpush1.bf16.msra.mxu0 %v16031_v34  ;;  %2534 = vmatprep.subr.bf16.mxu1 %v16191_v23 }
 0x419   :  { %2802 = vmatprep.subr.bf16.mxu0 %v16035_v36 }
 0x41b   :  { %2535 = vmatpush1.bf16.msra.mxu1 %v16195_v63 }
 0x41c   :  { %2803 = vmatpush1.bf16.msra.mxu0 %v16039_v37  ;;  %2536 = vmatprep.subr.bf16.mxu1 %v16199_v14 }
 0x41d   :  { %2804 = vmatprep.subr.bf16.mxu0 %v16043_v54 }
 0x41f   :  { %2537 = vmatpush1.bf16.msra.mxu1 %v16203_v17 }
 0x420   :  { %2805 = vmatpush1.bf16.msra.mxu0 %v16047_v57  ;;  %v16285_v57 = vadd.s32 128, %v15369_v1 }
 0x421   :  { %2806 = vmatprep.subr.bf16.mxu0 %v16051_v58  ;;  %v16288_v58 = vadd.s32 136, %v15369_v1 }
 0x422   :  { %2539 = vmatmul.mubr.bf16.vlgmr.msra.gmra.mrb[36].mxu1 %v19711_v19  ;;  %19716 = vst [vmem:[#allocation30_spill] sm:$0xff] %v16285_v57  ;;  %v16442_v19 = vadd.s32 176, %v15369_v1 }
 0x423   :  { %19717 = vst [vmem:[#allocation31_spill] sm:$0xff] %v16288_v58  ;;  %v3140_v24 = vand.u32 15, %v16288_v58 }
 0x424   :  { %2807 = vmatpush1.bf16.msra.mxu0 %v16055_v62  ;;  %v3021_v62 = vand.u32 15, %v15369_v1  ;;  %19749 = vst [vmem:[#allocation38_spill] sm:$0xff] %v16442_v19 }
 0x425   :  { %2808 = vmatprep.subr.bf16.mxu0 %v16059_v4  ;;  %v3028_v4 = vand.u32 15, %v15374_v3  ;;  %vm16325_vm8 = vcmp.eq.s32.totalorder %v3140_v24, %v15371_v2  ;;  %v16491_v24 = vadd.s32 72, %v15369_v1 }
 0x426   :  { %vm16302_vm4 = vcmp.eq.s32.totalorder %v3021_v62, %v15371_v2  ;;  %v16471_v62 = vadd.s32 200, %v15369_v1 }
 0x427   :  { %vm16308_vm5 = vcmp.eq.s32.totalorder %v3028_v4, %v15371_v2  ;;  %v19759_v4 = vmov 0  ;;  %19764 = vst [vmem:[#allocation45_spill] sm:$0xff] %v16491_v24 }
 0x428   :  { %2809 = vmatpush1.bf16.msra.mxu0 %v16063_v31  ;;  %v16293_v31 = vadd.s32 144, %v15369_v1  ;;  %vm19423_vm9 = vmpackc.low %vm16308_vm5, %vm16302_vm4  ;;  %19758 = vst [vmem:[#allocation43_spill] sm:$0xff] %v16471_v62 }
 0x429   :  { %2825 = vmatprep.subr.bf16.mxu0 %v15755_v18 }
 0x42a   :  { %19718 = vst [vmem:[#allocation32_spill] sm:$0xff] %v16293_v31 }
 0x4be   :  { %v2767_v25 = vpop.f32.mrb[40].mxu0 }
 0x4bf   :  { %v2769_v26 = vpop.f32.mrb[41].mxu0 }
 0x4c0   :  { %v2771_v27 = vpop.f32.mrb[42].mxu0 }
 0x4c1   :  { %v2776_v28 = vpack.c.bf16 %v2771_v27, %v2767_v25  ;;  %v2773_v30 = vpop.f32.mrb[43].mxu0  ;;  %v16445_v25 = vadd.s32 184, %v15369_v1  ;;  %v16451_v27 = vadd.s32 56, %v15369_v1 }
 0x4c2   :  { %v2777_v32 = vpack.c.bf16 %v2773_v30, %v2769_v26  ;;  %v16448_v26 = vadd.s32 48, %v15369_v1 }
 0x4c3   :  { %19750 = vst [vmem:[#allocation39_spill] sm:$0xff] %v16445_v25  ;;  %19752 = vst [vmem:[#allocation41_spill] sm:$0xff] %v16451_v27  ;;  %v3182_v30 = vand.u32 15, %v16445_v25 }
 0x4c4   :  { %2810 = vmatprep.mubr.bf16.mxu0 %v2777_v32  ;;  %19751 = vst [vmem:[#allocation40_spill] sm:$0xff] %v16448_v26  ;;  %v3063_v32 = vand.u32 15, %v16448_v26 }
 0x4c5   :  { %2811 = vmatmul.mubr.bf16.vlgmr.msra.gmra.mrb[36].mxu0 %v2776_v28  ;;  %v3175_v28 = vand.u32 15, %v16442_v19 }
 0x4c6   :  { %2826 = vmatpush1.bf16.msra.mxu0 %v15750_v15  ;;  %2857 = vmatprep.mubr.bf16.mxu0 %v19710_v50 }
 0x4c7   :  { %2827 = vmatprep.subr.bf16.mxu0 %v15769_v8 }
 0x4ca   :  { %2828 = vmatpush1.bf16.msra.mxu0 %v15766_v61 }
 0x4cb   :  { %2870 = vmatprep.subr.bf16.mxu0 %v16067_v9  ;;  %v16296_v9 = vadd.s32 152, %v15369_v1 }
 0x4cd   :  { %12073 = vmatmul.mubr.msk.bf16.vlgmr.msra.gmra.mrb[44].mxu0 %vm19421_vm10, %v15498_v59  ;;  %19719 = vst [vmem:[#allocation33_spill] sm:$0xff] %v16296_v9 }
 0x4ce   :  { %2871 = vmatpush1.bf16.msra.mxu0 %v16071_v21  ;;  %v3035_v21 = vand.u32 15, %v15380_v6 }
 0x4cf   :  { %2872 = vmatprep.subr.bf16.mxu0 %v16076_v38  ;;  %v3133_v38 = vand.u32 15, %v16285_v57 }
 0x4d0   :  { %vm16315_vm6 = vcmp.eq.s32.totalorder %v3035_v21, %v15371_v2  ;;  %v19761_v21 = vmov 0 }
 0x4d1   :  { %vm16320_vm7 = vcmp.eq.s32.totalorder %v3133_v38, %v15371_v2  ;;  %v16488_v38 = vadd.s32 64, %v15369_v1 }
 0x4d2   :  { %2873 = vmatpush1.bf16.msra.mxu0 %v16085_v16  ;;  %v19722_v16 = vld [vmem:[#allocation21_spill] sm:$0xff]  ;;  %vm19427_vm12 = vmpackc.low %vm16325_vm8, %vm16320_vm7 }
 0x4d3   :  { %2874 = vmatprep.subr.bf16.mxu0 %v16091_v51  ;;  %v3042_v5 = vand.u32 15, %v19722_v16  ;;  %19763 = vst [vmem:[#allocation44_spill] sm:$0xff] %v16488_v38  ;;  %v19854_v51 = vld [vmem:[#allocation17_spill] sm:$0xff] }
 0x4d5   :  { %vm16334_vm11 = vcmp.eq.s32.totalorder %v3042_v5, %v15371_v2 }
 0x4d6   :  { %2875 = vmatpush1.bf16.msra.mxu0 %v16097_v55  ;;  %v3147_v55 = vand.u32 15, %v16293_v31  ;;  %vm19426_vm0 = vmpackc.low %vm16334_vm11, %vm16315_vm6 }
 0x4d7   :  { %2876 = vmatprep.subr.bf16.mxu0 %v16101_v44  ;;  %v3154_v44 = vand.u32 15, %v16296_v9 }
 0x4d8   :  { %vm16346_vm13 = vcmp.eq.s32.totalorder %v3147_v55, %v15371_v2  ;;  %v3196_v55 = vand.u32 15, %v16471_v62 }
 0x4d9   :  { %vm16351_vm14 = vcmp.eq.s32.totalorder %v3154_v44, %v15371_v2  ;;  %v3077_v44 = vand.u32 15, %v16488_v38 }
 0x4da   :  { %2877 = vmatpush1.bf16.msra.mxu0 %v16107_v10  ;;  %vm19422_vm15 = vmpackc.low %vm16351_vm14, %vm16346_vm13 }
 0x4db   :  { %2878 = vmatprep.subr.bf16.mxu0 %v16111_v20 }
 0x4de   :  { %2879 = vmatpush1.bf16.msra.mxu0 %v16115_v35 }
 0x4df   :  { %2880 = vmatprep.subr.bf16.mxu0 %v16119_v45  ;;  %v19857_v45 = vld [vmem:[#allocation19_spill] sm:$0xff] }
 0x4e2   :  { %2881 = vmatpush1.bf16.msra.mxu0 %v16123_v56  ;;  %v16339_v56 = vadd.s32 160, %v15369_v1 }
 0x4e3   :  { %2882 = vmatprep.subr.bf16.mxu0 %v16127_v13 }
 0x4e4   :  { %19733 = vst [vmem:[#allocation34_spill] sm:$0xff] %v16339_v56 }
 0x4e6   :  { %2883 = vmatpush1.bf16.msra.mxu0 %v16131_v39 }
 0x4e7   :  { %2884 = vmatprep.subr.bf16.mxu0 %v16135_v43  ;;  %v16356_v43 = vadd.s32 168, %v15369_v1 }
 0x4e9   :  { %19738 = vst [vmem:[#allocation35_spill] sm:$0xff] %v16356_v43 }
 0x4ea   :  { %2885 = vmatpush1.bf16.msra.mxu0 %v16139_v49  ;;  %v16359_v49 = vadd.s32 32, %v15369_v1 }
 0x4eb   :  { %2886 = vmatprep.subr.bf16.mxu0 %v16143_v60  ;;  %v19441_v60 = vmov 1.0|1.0  }
 0x4ec   :  { %19739 = vst [vmem:[#allocation36_spill] sm:$0xff] %v16359_v49  ;;  %13626 = vmatprep.subr.msk.bf16.mxu1 %vm19427_vm12, %v19441_v60  ;;  %vm16478_vm12 = vcmp.eq.s32.totalorder %v3063_v32, %v15371_v2 }
 0x4ed   :  { %13628 = vmatpush3.bf16.msk.msra.mxu1 %vm19423_vm9, %v19441_v60  ;;  %v19760_v4 = vsel %vm16478_vm12, 4294967295, %v19759_v4 }
 0x4ee   :  { %2887 = vmatpush1.bf16.msra.mxu0 %v16147_v12  ;;  %v3161_v12 = vand.u32 15, %v16339_v56  ;;  %13630 = vmatprep.subr.msk.bf16.mxu1 %vm19422_vm15, %v19441_v60 }
 0x4ef   :  { %2888 = vmatprep.subr.bf16.mxu0 %v16151_v46  ;;  %v16373_v46 = vadd.s32 40, %v15369_v1 }
 0x4f0   :  { %vm16394_vm1 = vcmp.eq.s32.totalorder %v3161_v12, %v15371_v2  ;;  %v3084_v12 = vand.u32 15, %v16491_v24  ;;  %v16639_v24 = vadd.s32 248, %v15369_v1 }
 0x4f1   :  { %19740 = vst [vmem:[#allocation37_spill] sm:$0xff] %v16373_v46  ;;  %13632 = vmatpush3.bf16.msk.msra.mxu1 %vm19426_vm0, %v19441_v60 }
 0x4f2   :  { %2889 = vmatpush1.bf16.msra.mxu0 %v16155_v22  ;;  %v3168_v22 = vand.u32 15, %v16356_v43  ;;  %19795 = vst [vmem:[#allocation55_spill] sm:$0xff] %v16639_v24 }
 0x4f3   :  { %2890 = vmatprep.subr.bf16.mxu0 %v16159_v11  ;;  %v3049_v11 = vand.u32 15, %v16359_v49 }
 0x4f4   :  { %vm16400_vm3 = vcmp.eq.s32.totalorder %v3168_v22, %v15371_v2  ;;  %v19765_v22 = vmov 0 }
 0x4f5   :  { %v16245_v59 = vpop.f32.mrb[36].mxu1  ;;  %vm16405_vm2 = vcmp.eq.s32.totalorder %v3049_v11, %v15371_v2  ;;  %vm19425_vm10 = vmpackc.low %vm16400_vm3, %vm16394_vm1  ;;  %v19767_v11 = vmov 0 }
 0x4f6   :  { %19712 = vst [vmem:[#allocation26_spill] sm:$0xff] %v16245_v59  ;;  %v16247_v15 = vpop.f32.mrb[37].mxu1  ;;  %2891 = vmatpush1.bf16.msra.mxu0 %v16163_v29  ;;  %v2933_v61 = vmul.f32 %v16245_v59, %v16245_v59  ;;  %v19741_v29 = vmov 0  ;;  %13634 = vmatprep.subr.msk.bf16.mxu1 %vm19425_vm10, %v19441_v60  ;;  %vm16463_vm10 = vcmp.eq.s32.totalorder %v3182_v30, %v15371_v2 }
 0x4f7   :  { %19713 = vst [vmem:[#allocation27_spill] sm:$0xff] %v16247_v15  ;;  %v16250_v18 = vpop.f32.mrb[38].mxu1  ;;  %2892 = vmatprep.subr.bf16.mxu0 %v16167_v7  ;;  %v2934_v33 = vmul.f32 %v16247_v15, %v16247_v15  ;;  %v19742_v29 = vsel %vm16394_vm1, 4294967295, %v19741_v29  ;;  %v3056_v7 = vand.u32 15, %v16373_v46  ;;  %vm19812_vm1 = vmpackc.low %vm16325_vm8, %vm16320_vm7 }
 0x4f8   :  { %19714 = vst [vmem:[#allocation28_spill] sm:$0xff] %v16250_v18  ;;  %v16257_v8 = vadd.f32 %v16250_v18, %v16245_v59  ;;  %v2935_v42 = vmul.f32 %v16250_v18, %v16250_v18  ;;  %v16261_v47 = vpop.f32.mrb[39].mxu1  ;;  %vm19817_vm7 = vmpackc.low %vm16308_vm5, %vm16302_vm4  ;;  %vm19820_vm4 = vnez %v19742_v29 }
 0x4f9   :  { %19715 = vst [vmem:[#allocation29_spill] sm:$0xff] %v16261_v47  ;;  %v16267_v34 = vadd.f32 %v16261_v47, %v16247_v15  ;;  %v2936_v36 = vmul.f32 %v16261_v47, %v16261_v47  ;;  %vm16414_vm15 = vcmp.eq.s32.totalorder %v3056_v7, %v15371_v2  ;;  %v16524_v7 = vadd.s32 208, %v15369_v1  ;;  %vm19818_vm8 = vmpackc.low %vm16351_vm14, %vm16346_vm13 }
 0x4fa   :  { %v16271_v37 = vadd.f32 %v2935_v42, %v2933_v61  ;;  %2893 = vmatpush1.bf16.msra.mxu0 %v16171_v40  ;;  %vm19424_vm9 = vmpackc.low %vm16414_vm15, %vm16405_vm2  ;;  %v3070_v61 = vand.u32 15, %v16451_v27  ;;  %v19753_v42 = vmov 0 }
 0x4fb   :  { %v16274_v54 = vadd.f32 %v2936_v36, %v2934_v33  ;;  %2894 = vmatprep.subr.bf16.mxu0 %v16175_v48  ;;  %v19745_v48 = vmov 0  ;;  %13636 = vmatpush3.bf16.msk.msra.mxu1 %vm19424_vm9, %v19441_v60  ;;  %vm16458_vm9 = vcmp.eq.s32.totalorder %v3175_v28, %v15371_v2  ;;  %v19755_v33 = vmov 0  ;;  %19769 = vst [vmem:[#allocation46_spill] sm:$0xff] %v16524_v7  ;;  %vm19821_vm5 = vmpackc.low %vm16400_vm3, %vm19820_vm4 }
 0x4fc   :  { %v19746_v48 = vsel %vm16405_vm2, 4294967295, %v19745_v48  ;;  %v19754_v42 = vsel %vm16458_vm9, 4294967295, %v19753_v42  ;;  %v19756_v33 = vsel %vm16463_vm10, 4294967295, %v19755_v33  ;;  %v16468_v36 = vadd.s32 192, %v15369_v1  ;;  %vm19430_vm0 = vmpackc.low %vm16463_vm10, %vm16458_vm9 }
 0x4fd   :  { %vm16483_vm2 = vcmp.eq.s32.totalorder %v3070_v61, %v15371_v2  ;;  %13638 = vmatprep.subr.msk.bf16.mxu1 %vm19430_vm0, %v19441_v60  ;;  %vm16519_vm9 = vcmp.eq.s32.totalorder %v3196_v55, %v15371_v2  ;;  %v19777_v61 = vmov 0  ;;  %v16580_v55 = vadd.s32 224, %v15369_v1 }
 0x4fe   :  { %2895 = vmatpush1.bf16.msra.mxu0 %v16179_v52  ;;  %v19747_v52 = vmov 0  ;;  %19757 = vst [vmem:[#allocation42_spill] sm:$0xff] %v16468_v36  ;;  %v19762_v21 = vsel %vm16483_vm2, 4294967295, %v19761_v21  ;;  %v3189_v5 = vand.u32 15, %v16468_v36  ;;  %v19768_v11 = vsel %vm16519_vm9, 4294967295, %v19767_v11 }
 0x4ff   :  { %2896 = vmatprep.subr.bf16.mxu0 %v16183_v53  ;;  %v19748_v52 = vsel %vm16414_vm15, 4294967295, %v19747_v52  ;;  %vm19432_vm15 = vmpackc.low %vm16483_vm2, %vm16478_vm12  ;;  %vm16534_vm12 = vcmp.eq.s32.totalorder %v3077_v44, %v15371_v2  ;;  %vm16539_vm2 = vcmp.eq.s32.totalorder %v3084_v12, %v15371_v2  ;;  %19781 = vst [vmem:[#allocation50_spill] sm:$0xff] %v16580_v55  ;;  %v16583_v44 = vadd.s32 232, %v15369_v1 }
 0x500   :  { %13640 = vmatpush3.bf16.msk.msra.mxu1 %vm19432_vm15, %v19441_v60  ;;  %vm16514_vm0 = vcmp.eq.s32.totalorder %v3189_v5, %v15371_v2  ;;  %vm19438_vm10 = vmpackc.low %vm16539_vm2, %vm16534_vm12  ;;  %v19779_v5 = vmov 0  ;;  %v19783_v12 = vmov 0  ;;  %vm19823_vm13 = vnez %v19746_v48 }
 0x501   :  { %v19766_v22 = vsel %vm16514_vm0, 4294967295, %v19765_v22  ;;  %vm19436_vm15 = vmpackc.low %vm16519_vm9, %vm16514_vm0  ;;  %19782 = vst [vmem:[#allocation51_spill] sm:$0xff] %v16583_v44  ;;  %vm19829_vm3 = vnez %v19760_v4  ;;  %v3642_v4 = vld [vmem:[%s19408_s7] sm:$0x3] }
 0x502   :  { %2897 = vmatpush1.bf16.msra.mxu0 %v16187_v0  ;;  %13642 = vmatprep.subr.msk.bf16.mxu1 %vm19436_vm15, %v19441_v60 }
 0x503   :  { %2898 = vmatprep.subr.bf16.mxu0 %v16191_v23 }
 0x504   :  { %13644 = vmatpush3.bf16.msk.msra.mxu1 %vm19438_vm10, %v19441_v60  ;;  %v16603_v60 = vadd.s32 104, %v15369_v1 }
 0x506   :  { %2899 = vmatpush1.bf16.msra.mxu0 %v16195_v63  ;;  %19788 = vst [vmem:[#allocation53_spill] sm:$0xff] %v16603_v60 }
 0x507   :  { %2900 = vmatprep.subr.bf16.mxu0 %v16199_v14 }
 0x50a   :  { %2901 = vmatpush1.bf16.msra.mxu0 %v16203_v17 }
 0x5a0   :  { %v2859_v53 = vpop.f32.mrb[44].mxu0 }
 0x5a1   :  { %v2861_v0 = vpop.f32.mrb[45].mxu0 }
 0x5a2   :  { %v2863_v23 = vpop.f32.mrb[46].mxu0 }
 0x5a3   :  { %v2868_v63 = vpack.c.bf16 %v2863_v23, %v2859_v53  ;;  %v2865_v14 = vpop.f32.mrb[47].mxu0  ;;  %v16527_v53 = vadd.s32 216, %v15369_v1  ;;  %v19773_v23 = vmov 0 }
 0x5a4   :  { %v2869_v17 = vpack.c.bf16 %v2865_v14, %v2861_v0  ;;  %v19771_v0 = vmov 0  ;;  %v19774_v23 = vsel %vm16539_vm2, 4294967295, %v19773_v23  ;;  %v16547_v14 = vadd.s32 88, %v15369_v1 }
 0x5a5   :  { %19770 = vst [vmem:[#allocation47_spill] sm:$0xff] %v16527_v53  ;;  %v19772_v0 = vsel %vm16534_vm12, 4294967295, %v19771_v0  ;;  %v3210_v28 = vand.u32 15, %v16527_v53  ;;  %v3112_v53 = vand.u32 15, %v16603_v60  ;;  %v16656_v60 = vadd.s32 112, %v15369_v1 }
 0x5a6   :  { %2902 = vmatprep.mubr.bf16.mxu0 %v2869_v17  ;;  %19776 = vst [vmem:[#allocation49_spill] sm:$0xff] %v16547_v14  ;;  %v3203_v17 = vand.u32 15, %v16524_v7  ;;  %v3098_v32 = vand.u32 15, %v16547_v14  ;;  %v19789_v14 = vmov 1.0|1.0   ;;  %v19790_v7 = vmov 0 }
 0x5a7   :  { %2903 = vmatmul.mubr.bf16.vlgmr.msra.gmra.mrb[36].mxu0 %v2868_v63  ;;  %v16544_v63 = vadd.s32 80, %v15369_v1  ;;  %vm16575_vm0 = vcmp.eq.s32.totalorder %v3210_v28, %v15371_v2  ;;  %v16600_v28 = vadd.s32 96, %v15369_v1  ;;  %19800 = vst [vmem:[#allocation56_spill] sm:$0xff] %v16656_v60  ;;  %v3119_v38 = vand.u32 15, %v16656_v60 }
 0x5a8   :  { %4013 = vmatprep.mubr.bf16.mxu0 %v19710_v50  ;;  %vm16570_vm15 = vcmp.eq.s32.totalorder %v3203_v17, %v15371_v2  ;;  %v19780_v5 = vsel %vm16575_vm0, 4294967295, %v19779_v5  ;;  %vm16595_vm2 = vcmp.eq.s32.totalorder %v3098_v32, %v15371_v2  ;;  %v19785_v17 = vmov 0 }
 0x5a9   :  { %19775 = vst [vmem:[#allocation48_spill] sm:$0xff] %v16544_v63  ;;  %v3091_v30 = vand.u32 15, %v16544_v63  ;;  %v19778_v61 = vsel %vm16570_vm15, 4294967295, %v19777_v61  ;;  %vm19450_vm10 = vmpackc.low %vm16575_vm0, %vm16570_vm15  ;;  %v19786_v17 = vsel %vm16595_vm2, 4294967295, %v19785_v17  ;;  %v3224_v32 = vand.u32 15, %v16583_v44 }
 0x5aa   :  { %19787 = vst [vmem:[#allocation52_spill] sm:$0xff] %v16600_v28  ;;  %13646 = vmatprep.subr.msk.bf16.mxu1 %vm19450_vm10, %v19789_v14  ;;  %v3105_v63 = vand.u32 15, %v16600_v28  ;;  %v16636_v44 = vadd.s32 240, %v15369_v1  ;;  %v16659_v28 = vadd.s32 120, %v15369_v1  ;;  %v19806_v60 = vmov 0 }
 0x5ab   :  { %vm16590_vm12 = vcmp.eq.s32.totalorder %v3091_v30, %v15371_v2  ;;  %v3217_v30 = vand.u32 15, %v16580_v55  ;;  %vm16631_vm15 = vcmp.eq.s32.totalorder %v3224_v32, %v15371_v2  ;;  %v19792_v55 = vmov 0 }
 0x5ac   :  { %v19784_v12 = vsel %vm16590_vm12, 4294967295, %v19783_v12  ;;  %vm19460_vm9 = vmpackc.low %vm16595_vm2, %vm16590_vm12  ;;  %v19793_v55 = vsel %vm16631_vm15, 4294967295, %v19792_v55  ;;  %19794 = vst [vmem:[#allocation54_spill] sm:$0xff] %v16636_v44  ;;  %vm16646_vm12 = vcmp.eq.s32.totalorder %v3105_v63, %v15371_v2  ;;  %vm16651_vm2 = vcmp.eq.s32.totalorder %v3112_v53, %v15371_v2 }
 0x5ad   :  { %13648 = vmatpush3.bf16.msk.msra.mxu1 %vm19460_vm9, %v19789_v14  ;;  %vm16626_vm10 = vcmp.eq.s32.totalorder %v3217_v30, %v15371_v2  ;;  %v19796_v30 = vmov 0  ;;  %v19798_v32 = vmov 0  ;;  %19801 = vst [vmem:[#allocation57_spill] sm:$0xff] %v16659_v28  ;;  %vm19479_vm0 = vmpackc.low %vm16651_vm2, %vm16646_vm12  ;;  %v3231_v53 = vand.u32 15, %v16636_v44 }
 0x5ae   :  { %v19791_v7 = vsel %vm16626_vm10, 4294967295, %v19790_v7  ;;  %vm19472_vm9 = vmpackc.low %vm16631_vm15, %vm16626_vm10  ;;  %v19797_v30 = vsel %vm16646_vm12, 4294967295, %v19796_v30  ;;  %v19799_v32 = vsel %vm16651_vm2, 4294967295, %v19798_v32  ;;  %v3238_v63 = vand.u32 15, %v16639_v24 }
 0x5af   :  { %13650 = vmatprep.subr.msk.bf16.mxu1 %vm19472_vm9, %v19789_v14  ;;  %v3126_v62 = vand.u32 15, %v16659_v28  ;;  %vm16682_vm9 = vcmp.eq.s32.totalorder %v3231_v53, %v15371_v2  ;;  %v19809_v53 = vmov 0  ;;  %v2945_v28 = vrot.slane %v16274_v54, 4 }
 0x5b0   :  { %vm16687_vm10 = vcmp.eq.s32.totalorder %v3238_v63, %v15371_v2  ;;  %v2938_v63 = vrot.slane %v16271_v37, 4 }
 0x5b1   :  { %13652 = vmatpush3.bf16.msk.msra.mxu1 %vm19479_vm0, %v19789_v14  ;;  %vm13653_vm12 = vmpackc.low %vm16687_vm10, %vm16682_vm9  ;;  %vm16696_vm0 = vcmp.eq.s32.totalorder %v3119_v38, %v15371_v2  ;;  %vm16701_vm2 = vcmp.eq.s32.totalorder %v3126_v62, %v15371_v2  ;;  %v2918_v62 = vrot.slane %v16257_v8, 4  ;;  %v2925_v38 = vrot.slane %v16267_v34, 4 }
 0x5b2   :  { %v19807_v60 = vsel %vm16696_vm0, 4294967295, %v19806_v60  ;;  %v19810_v53 = vsel %vm16701_vm2, 4294967295, %v19809_v53  ;;  %13654 = vmatprep.subr.msk.bf16.mxu1 %vm13653_vm12, %v19789_v14  ;;  %vm13655_vm15 = vmpackc.low %vm16701_vm2, %vm16696_vm0  ;;  %v2939_v35 = vadd.f32 %v2938_v63, %v16271_v37  ;;  %v2946_v20 = vadd.f32 %v2945_v28, %v16274_v54 }
 0x5b3   :  { %19808 = vst [vmem:[#allocation58_spill] sm:$0xff] %v19807_v60  ;;  %19811 = vst [vmem:[#allocation59_spill] sm:$0xff] %v19810_v53  ;;  %v2919_v24 = vadd.f32 %v2918_v62, %v16257_v8  ;;  %v2926_v27 = vadd.f32 %v2925_v38, %v16267_v34 }
 0x5b4   :  { %v2940_v38 = vrot.slane %v2939_v35, 2  ;;  %v2947_v16 = vrot.slane %v2946_v20, 2 }
 0x5b5   :  { %13656 = vmatpush3.bf16.msk.msra.mxu1 %vm13655_vm15, %v19789_v14  ;;  %v2920_v46 = vrot.slane %v2919_v24, 2  ;;  %v2927_v62 = vrot.slane %v2926_v27, 2 }
 0x5b6   :  { %13658 = vmatprep.subr.msk.bf16.mxu1 %vm19812_vm1, %v19789_v14  ;;  %v2948_v3 = vadd.f32 %v2947_v16, %v2946_v20  ;;  %vm19819_vm1 = vmpackc.low %vm16334_vm11, %vm16315_vm6  ;;  %vm19826_vm6 = vnez %v19754_v42 }
 0x5b7   :  { %v2921_v31 = vadd.f32 %v2920_v46, %v2919_v24  ;;  %v2928_v47 = vadd.f32 %v2927_v62, %v2926_v27 }
 0x5b8   :  { %v2949_v24 = vrot.slane %v2948_v3, 1 }
 0x5b9   :  { %v2922_v1 = vrot.slane %v2921_v31, 1 }
 0x67a   :  { %v16733_v26 = vpop.f32.mrb[36].mxu0 }
 0x67b   :  { %19813 = vst [vmem:[#allocation60_spill] sm:$0xff] %v16733_v26  ;;  %v16736_v25 = vpop.f32.mrb[37].mxu0  ;;  %v2969_v49 = vmul.f32 %v16733_v26, %v16733_v26 }
 0x67c   :  { %19814 = vst [vmem:[#allocation61_spill] sm:$0xff] %v16736_v25  ;;  %v16739_v19 = vpop.f32.mrb[38].mxu0  ;;  %v2970_v37 = vmul.f32 %v16736_v25, %v16736_v25 }
 0x67d   :  { %19815 = vst [vmem:[#allocation62_spill] sm:$0xff] %v16739_v19  ;;  %v2953_v43 = vadd.f32 %v16739_v19, %v16733_v26  ;;  %v2971_v8 = vmul.f32 %v16739_v19, %v16739_v19  ;;  %v16747_v34 = vpop.f32.mrb[39].mxu0  ;;  %v2941_v26 = vadd.f32 %v2940_v38, %v2939_v35 }
 0x67e   :  { %19816 = vst [vmem:[#allocation63_spill] sm:$0xff] %v16747_v34  ;;  %v2960_v54 = vadd.f32 %v16747_v34, %v16736_v25  ;;  %v2972_v28 = vmul.f32 %v16747_v34, %v16747_v34 }
 0x67f   :  { %v2954_v63 = vrot.slane %v2953_v43, 4  ;;  %v2973_v56 = vadd.f32 %v2971_v8, %v2969_v49  ;;  %v2929_v8 = vrot.slane %v2928_v47, 1  ;;  %v2942_v46 = vrot.slane %v2941_v26, 1 }
 0x680   :  { %v2961_v6 = vrot.slane %v2960_v54, 4  ;;  %v2980_v9 = vadd.f32 %v2972_v28, %v2970_v37 }
 0x681   :  { %v2955_v58 = vadd.f32 %v2954_v63, %v2953_v43  ;;  %v2974_v57 = vrot.slane %v2973_v56, 4  ;;  %v2943_v16 = vadd.f32 %v2942_v46, %v2941_v26  ;;  %v19867_v46 = vld [vmem:[#allocation29_spill] sm:$0xff] }
 0x682   :  { %v2962_v15 = vadd.f32 %v2961_v6, %v2960_v54  ;;  %v2981_v19 = vrot.slane %v2980_v9, 4  ;;  %v2923_v6 = vadd.f32 %v2922_v1, %v2921_v31  ;;  %v2930_v54 = vadd.f32 %v2929_v8, %v2928_v47  ;;  %v19864_v28 = vld [vmem:[#allocation60_spill] sm:$0xff]  ;;  %v19866_v8 = vld [vmem:[#allocation27_spill] sm:$0xff] }
 0x683   :  { %v2956_v18 = vrot.slane %v2955_v58, 2  ;;  %v2975_v59 = vadd.f32 %v2974_v57, %v2973_v56 }
 0x684   :  { %v2963_v50 = vrot.slane %v2962_v15, 2  ;;  %v2982_v25 = vadd.f32 %v2981_v19, %v2980_v9  ;;  %v19865_v63 = vld [vmem:[#allocation62_spill] sm:$0xff] }
 0x685   :  { %v2957_v34 = vadd.f32 %v2956_v18, %v2955_v58  ;;  %v2976_v2 = vrot.slane %v2975_v59, 2  ;;  %v2950_v58 = vadd.f32 %v2949_v24, %v2948_v3  ;;  %v19851_v3 = vmov 0.0   ;;  %v19868_v24 = vld [vmem:[#allocation61_spill] sm:$0xff] }
 0x686   :  { %v2964_v60 = vadd.f32 %v2963_v50, %v2962_v15  ;;  %v2983_v49 = vrot.slane %v2982_v25, 2 }
 0x687   :  { %v2958_v53 = vrot.slane %v2957_v34, 1  ;;  %v2977_v37 = vadd.f32 %v2976_v2, %v2975_v59  ;;  %v19852_v59 = vld [vmem:[#allocation18_spill] sm:$0xff] }
 0x688   :  { %v2965_v43 = vrot.slane %v2964_v60, 1  ;;  %v2984_v27 = vadd.f32 %v2983_v49, %v2982_v25  ;;  %v16847_v47 = vadd.s32 128, %v19852_v59  ;;  %v3656_v31 = vand.u32 15, %v19852_v59 }
 0x689   :  { %v2959_v62 = vadd.f32 %v2958_v53, %v2957_v34  ;;  %v2978_v35 = vrot.slane %v2977_v37, 1  ;;  %v19863_v53 = vld [vmem:[#allocation28_spill] sm:$0xff] }
 0x68a   :  { %v2966_v57 = vadd.f32 %v2965_v43, %v2964_v60  ;;  %v2985_v56 = vrot.slane %v2984_v27, 1  ;;  %19853 = vst [vmem:[#allocation59_spill] sm:$0xff] %v16847_v47  ;;  %v3663_v41 = vand.u32 15, %v16847_v47  ;;  %vm16852_vm10 = vcmp.eq.s32.totalorder %v3656_v31, %v19854_v51 }
 0x68b   :  { %v2967_v9 = vadd.f32 %v2959_v62, %v2923_v6  ;;  %v2979_v19 = vadd.f32 %v2978_v35, %v2977_v37  ;;  %vm16857_vm9 = vcmp.eq.s32.totalorder %v3656_v31, %v19857_v45  ;;  %v19869_v6 = vld [vmem:[#allocation63_spill] sm:$0xff] }
 0x68c   :  { %v2968_v18 = vadd.f32 %v2966_v57, %v2930_v54  ;;  %v2986_v50 = vadd.f32 %v2985_v56, %v2984_v27  ;;  %vm3677_vm2 = vcmp.eq.s32.totalorder %v3663_v41, %v19854_v51 }
 0x68d   :  { %v2987_v15 = vadd.f32 %v2979_v19, %v2943_v16 }
 0x68e   :  { %3561 = vmatprep.mubr.f32.mxu1 %v2968_v18  ;;  %v2988_v20 = vadd.f32 %v2986_v50, %v2950_v58 }
 0x68f   :  { %3562 = vmatmul.mubr.f32.vlgmr.msra.gmra.mrb[40].mxu1 %v2967_v9 }
 0x690   :  { %13660 = vmatpush3.bf16.msk.msra.mxu1 %vm19817_vm7, %v19789_v14  ;;  %3631 = vmatprep.mubr.f32.mxu1 %v2988_v20  ;;  %vm19822_vm7 = vnez %v19748_v52 }
 0x691   :  { %13662 = vmatprep.subr.msk.bf16.mxu1 %vm19818_vm8, %v19789_v14  ;;  %vm19824_vm14 = vmpackc.low %vm19822_vm7, %vm19823_vm13  ;;  %vm19825_vm8 = vnez %v19756_v33  ;;  %vm19832_vm7 = vnez %v19766_v22 }
 0x692   :  { %vm19827_vm11 = vmpackc.low %vm19825_vm8, %vm19826_vm6  ;;  %vm19835_vm8 = vnez %v19772_v0 }
 0x694   :  { %13664 = vmatpush3.bf16.msk.msra.mxu1 %vm19819_vm1, %v19789_v14  ;;  %vm19828_vm1 = vnez %v19762_v21 }
 0x695   :  { %13666 = vmatprep.subr.msk.bf16.mxu1 %vm19821_vm5, %v19789_v14  ;;  %vm19830_vm4 = vmpackc.low %vm19828_vm1, %vm19829_vm3  ;;  %vm19831_vm5 = vnez %v19768_v11  ;;  %vm19838_vm1 = vnez %v19778_v61  ;;  %v19860_v61 = vmov 0  }
 0x696   :  { %vm19833_vm13 = vmpackc.low %vm19831_vm5, %vm19832_vm7  ;;  %vm19841_vm5 = vnez %v19784_v12 }
 0x698   :  { %13668 = vmatpush3.bf16.msk.msra.mxu1 %vm19824_vm14, %v19789_v14  ;;  %vm19834_vm14 = vnez %v19774_v23 }
 0x699   :  { %13670 = vmatprep.subr.msk.bf16.mxu1 %vm19827_vm11, %v19789_v14  ;;  %vm19836_vm6 = vmpackc.low %vm19834_vm14, %vm19835_vm8  ;;  %vm19837_vm11 = vnez %v19780_v5  ;;  %vm19844_vm14 = vnez %v19791_v7  ;;  %v16889_v5 = vsub.s32 0, %v19854_v51 }
 0x69a   :  { %vm19839_vm3 = vmpackc.low %vm19837_vm11, %vm19838_vm1  ;;  %vm19847_vm11 = vnez %v19797_v30  ;;  %v19862_v30 = vld [vmem:[#allocation26_spill] sm:$0xff] }
 0x69b   :  { %19861 = vst [vmem:[#allocation58_spill] sm:$0xff] %v16889_v5 }
 0x69c   :  { %13672 = vmatpush3.bf16.msk.msra.mxu1 %vm19830_vm4, %v19789_v14  ;;  %vm19840_vm4 = vnez %v19786_v17 }
 0x69d   :  { %13674 = vmatprep.subr.msk.bf16.mxu1 %vm19833_vm13, %v19789_v14  ;;  %vm19842_vm7 = vmpackc.low %vm19840_vm4, %vm19841_vm5  ;;  %vm19843_vm13 = vnez %v19793_v55 }
 0x69e   :  { %vm19845_vm8 = vmpackc.low %vm19843_vm13, %vm19844_vm14 }
 0x6a0   :  { %13676 = vmatpush3.bf16.msk.msra.mxu1 %vm19836_vm6, %v19789_v14  ;;  %vm19846_vm6 = vnez %v19799_v32 }
 0x6a1   :  { %13678 = vmatprep.subr.msk.bf16.mxu1 %vm19839_vm3, %v19789_v14  ;;  %vm19848_vm1 = vmpackc.low %vm19846_vm6, %vm19847_vm11  ;;  %vm3688_vm3 = vcmask 130048  }
 0x6a4   :  { %13680 = vmatpush3.bf16.msk.msra.mxu1 %vm19842_vm7, %v19789_v14 }
 0x6a5   :  { %13682 = vmatprep.subr.msk.bf16.mxu1 %vm19845_vm8, %v19789_v14 }
 0x6a8   :  { %13684 = vmatpush3.bf16.msk.msra.mxu1 %vm19848_vm1, %v19789_v14 }
 0x6a9   :  { %13686 = vmatprep.subr.msk.bf16.mxu1 %vm13653_vm12, %v19789_v14  ;;  %vm3679_vm12 = vcmp.eq.s32.totalorder %v3663_v41, %v19857_v45 }
 0x6aa   :  { %vm13689_vm0 = vmpackc.low %vm3679_vm12, %vm3677_vm2 }
 0x6ac   :  { %13688 = vmatpush3.bf16.msk.msra.mxu1 %vm13655_vm15, %v19789_v14  ;;  %vm13691_vm15 = vmpackc.low %vm16857_vm9, %vm16852_vm10 }
 0x6ad   :  { %13690 = vmatprep.subr.msk.bf16.mxu1 %vm13689_vm0, %v19789_v14 }
 0x6af   :  { %3632 = vmatmul.mubr.f32.vlgmr.msra.gmra.mrb[42].mxu1 %v2987_v15 }
 0x6b0   :  { %3756 = vmatprep.mubr.f32.mxu1 %v19851_v3  ;;  %13692 = vmatpush1.bf16.msk.msra.mxu1 %vm13691_vm15, %v19789_v14 }
 0x6b1   :  { %13694 = vmatprep.subr.msk.bf16.mxu1 %vm13689_vm0, %v19789_v14 }
 0x762   :  { %v13193_v39 = vpop.f32.mrb[40].mxu1 }
 0x763   :  { %v13194_v60 = vpop.f32.mrb[41].mxu1 }
 0x764   :  { %v13195_v29 = vadd.f32 %v13194_v60, %v13193_v39 }
 0x766   :  { %v3638_v40 = vmul.f32 0.001953125, %v13195_v29 }
 0x768   :  { %v3640_v26 = vmul.f32 %v3638_v40, %v3638_v40 }
 0x782   :  { %v13228_v48 = vpop.f32.mrb[42].mxu1 }
 0x783   :  { %v13229_v52 = vpop.f32.mrb[43].mxu1 }
 0x784   :  { %v13230_v25 = vadd.f32 %v13229_v52, %v13228_v48 }
 0x786   :  { %v3639_v42 = vmul.f32 0.001953125, %v13230_v25  ;;  %v14401_v25 = vld [vmem:[#allocation7 + $0x104] ss:$8 sps:$4 sm:$0xff]  }
 0x788   :  { %v3641_v33 = vsub.f32 %v3639_v42, %v3640_v26 }
 0x78a   :  { %v3643_v36 = vadd.f32 1e-05, %v3641_v33 }
 0x78c   :  { %15007 = vrsqrt.f32 %v3643_v36  ;;  %v19870_v36 = vld [vmem:[#allocation22_spill] sm:$0xff] }
 0x796   :  { %v15008_v21 = vpop.eup %15007 }
 0x797   :  { %v3645_v22 = vmul.f32 %v15008_v21, %v3642_v4 }
 0x799   :  { %v3646_v11 = vmul.f32 %v3645_v22, %v3638_v40  ;;  %12178 = vmatmul.mubr.msk.f32.vlgmr.msra.gmra.mrb[44].mxu1 %vm3688_vm3, %v3645_v22 }
 0x79a   :  { %13696 = vmatpush1.bf16.msk.msra.mxu1 %vm13691_vm15, %v19789_v14  ;;  %3831 = vmatprep.mubr.f32.mxu1 %v19851_v3 }
 0x79b   :  { %v3648_v7 = vrot.slane %v3646_v11, 7 }
 0x79d   :  { %v3650_v0 = vsub.f32 %v3642_v4, %v3648_v7  ;;  %v16905_v4 = vpack.c.bf16 %v19870_v36, %v19870_v36  ;;  %v16948_v36 = vld [vmem:[#allocation7 + $0x14] ss:$8 sps:$4 sm:$0xff]  }
 0x79f   :  { %v3764_v23 = vrot.slane %v3650_v0, 1  ;;  %19871 = vst [vmem:[#allocation26_spill] sm:$0xff] %v16905_v4  ;;  %v19872_v0 = vld [vmem:[#allocation23_spill] sm:$0xff] }
 0x7a1   :  { %12183 = vmatmul.mubr.msk.f32.vlgmr.msra.gmra.mrb[46].mxu1 %vm3688_vm3, %v3764_v23  ;;  %v16912_v23 = vpack.c.bf16 %v19872_v0, %v19872_v0 }
 0x7a2   :  { %3935 = vmatprep.mubr.bf16.mxu1 %v19860_v61 }
 0x7a3   :  { %19873 = vst [vmem:[#allocation28_spill] sm:$0xff] %v16912_v23 }
 0x86c   :  { %v3758_v55 = vpop.f32.mrb[44].mxu1 }
 0x86d   :  { %v3841_v44 = vrot.slane %v3758_v55, %v16889_v5  ;;  %v3760_v12 = vpop.f32.mrb[45].mxu1 }
 0x86e   :  { %v3845_v17 = vrot.slane %v3760_v12, %v16889_v5  ;;  %v14404_v12 = vld [vmem:[#allocation7 + $0x114] ss:$8 sps:$4 sm:$0xff]  }
 0x86f   :  { %v3846_v32 = vmul.f32 %v3841_v44, %v19862_v30  ;;  %v3848_v34 = vmul.f32 %v3841_v44, %v19863_v53  ;;  %v3862_v38 = vmul.f32 %v3841_v44, %v19864_v28  ;;  %v3864_v49 = vmul.f32 %v3841_v44, %v19865_v63  ;;  %v14399_v44 = vld [vmem:[#allocation7 + $0x100] ss:$8 sps:$4 sm:$0xff]   ;;  %v14407_v30 = vld [vmem:[#allocation7 + $0x124] ss:$8 sps:$4 sm:$0xff]   ;;  %v14410_v28 = vld [vmem:[#allocation7 + $0x134] ss:$8 sps:$4 sm:$0xff]  }
 0x870   :  { %v3847_v37 = vmul.f32 %v3845_v17, %v19866_v8  ;;  %v3849_v43 = vmul.f32 %v3845_v17, %v19867_v46  ;;  %v3863_v27 = vmul.f32 %v3845_v17, %v19868_v24  ;;  %v3865_v62 = vmul.f32 %v3845_v17, %v19869_v6  ;;  %v14402_v17 = vld [vmem:[#allocation7 + $0x110] ss:$8 sps:$4 sm:$0xff]   ;;  %v14413_v63 = vld [vmem:[#allocation7 + $0x144] ss:$8 sps:$4 sm:$0xff]   ;;  %v14416_v46 = vld [vmem:[#allocation7 + $0x154] ss:$8 sps:$4 sm:$0xff]  }
 0x871   :  { %v14419_v24 = vld [vmem:[#allocation7 + $0x164] ss:$8 sps:$4 sm:$0xff]   ;;  %v14422_v6 = vld [vmem:[#allocation7 + $0x174] ss:$8 sps:$4 sm:$0xff]  }
 0x874   :  { %v3833_v35 = vpop.f32.mrb[46].mxu1 }
 0x875   :  { %v3853_v54 = vrot.slane %v3833_v35, %v16889_v5  ;;  %v3835_v57 = vpop.f32.mrb[47].mxu1  ;;  %v14425_v35 = vld [vmem:[#allocation7 + $0x184] ss:$8 sps:$4 sm:$0xff]  }
 0x876   :  { %v3857_v56 = vrot.slane %v3835_v57, %v16889_v5  ;;  %v14428_v57 = vld [vmem:[#allocation7 + $0x194] ss:$8 sps:$4 sm:$0xff]  }
 0x877   :  { %v3858_v9 = vadd.f32 %v3853_v54, %v3846_v32  ;;  %v3860_v16 = vadd.f32 %v3853_v54, %v3848_v34  ;;  %v3866_v19 = vadd.f32 %v3862_v38, %v3853_v54  ;;  %v3868_v18 = vadd.f32 %v3864_v49, %v3853_v54  ;;  %v19874_v32 = vld [vmem:[#allocation24_spill] sm:$0xff]  ;;  %v14405_v34 = vld [vmem:[#allocation7 + $0x120] ss:$8 sps:$4 sm:$0xff]  }
 0x878   :  { %v3859_v58 = vadd.f32 %v3857_v56, %v3847_v37  ;;  %v3861_v50 = vadd.f32 %v3857_v56, %v3849_v43  ;;  %v3867_v15 = vadd.f32 %v3863_v27, %v3857_v56  ;;  %v3869_v20 = vadd.f32 %v3865_v62, %v3857_v56  ;;  %v14408_v38 = vld [vmem:[#allocation7 + $0x130] ss:$8 sps:$4 sm:$0xff]   ;;  %v19876_v49 = vld [vmem:[#allocation25_spill] sm:$0xff] }
 0x879   :  { %vm3870_vm4 = vcmp.ge.f32.partialorder %v3858_v9, 0.0  ;;  %vm3872_vm5 = vcmp.ge.f32.partialorder %v3860_v16, 0.0  ;;  %v3874_v1 = vmul.f32 0.2, %v3858_v9  ;;  %v3876_v2 = vmul.f32 0.2, %v3860_v16 }
 0x87a   :  { %vm3871_vm7 = vcmp.ge.f32.partialorder %v3859_v58, 0.0  ;;  %vm3873_vm13 = vcmp.ge.f32.partialorder %v3861_v50, 0.0  ;;  %v3875_v31 = vmul.f32 0.2, %v3859_v58  ;;  %v3877_v41 = vmul.f32 0.2, %v3861_v50 }
 0x87b   :  { %v3878_v10 = vsel %vm3870_vm4, %v3858_v9, %v3874_v1  ;;  %v3880_v13 = vsel %vm3872_vm5, %v3860_v16, %v3876_v2  ;;  %vm3883_vm14 = vcmp.ge.f32.partialorder %v3867_v15, 0.0  ;;  %vm3885_vm8 = vcmp.ge.f32.partialorder %v3869_v20, 0.0  ;;  %v14411_v37 = vld [vmem:[#allocation7 + $0x140] ss:$8 sps:$4 sm:$0xff]   ;;  %v14414_v43 = vld [vmem:[#allocation7 + $0x150] ss:$8 sps:$4 sm:$0xff]  }
 0x87c   :  { %v3879_v39 = vsel %vm3871_vm7, %v3859_v58, %v3875_v31  ;;  %v3881_v60 = vsel %vm3873_vm13, %v3861_v50, %v3877_v41  ;;  %v3898_v29 = vpack.c.bf16 %v3880_v13, %v3878_v10  ;;  %v3887_v40 = vmul.f32 0.2, %v3867_v15  ;;  %v14417_v27 = vld [vmem:[#allocation7 + $0x160] ss:$8 sps:$4 sm:$0xff]   ;;  %v14420_v62 = vld [vmem:[#allocation7 + $0x170] ss:$8 sps:$4 sm:$0xff]  }
 0x87d   :  { %v3899_v48 = vpack.c.bf16 %v3881_v60, %v3879_v39  ;;  %v3889_v52 = vmul.f32 0.2, %v3869_v20  ;;  %vm3882_vm6 = vcmp.ge.f32.partialorder %v3866_v19, 0.0  ;;  %vm3884_vm11 = vcmp.ge.f32.partialorder %v3868_v18, 0.0  ;;  %v14423_v54 = vld [vmem:[#allocation7 + $0x180] ss:$8 sps:$4 sm:$0xff]  }
 0x87e   :  { %v3891_v26 = vsel %vm3883_vm14, %v3867_v15, %v3887_v40  ;;  %v3886_v42 = vmul.f32 0.2, %v3866_v19  ;;  %v3888_v33 = vmul.f32 0.2, %v3868_v18  ;;  %v16923_v53 = vpack.c.bf16 %v19874_v32, %v19874_v32  ;;  %v14426_v56 = vld [vmem:[#allocation7 + $0x190] ss:$8 sps:$4 sm:$0xff]  }
 0x87f   :  { %3903 = vmatprep.subr.bf16.mxu1 %v3899_v48  ;;  %3981 = vmatprep.subr.bf16.mxu0 %v3899_v48  ;;  %v3893_v21 = vsel %vm3885_vm8, %v3869_v20, %v3889_v52  ;;  %v16931_v8 = vpack.c.bf16 %v19876_v49, %v19876_v49  ;;  %v14431_v9 = vld [vmem:[#allocation7 + $0x1a4] ss:$8 sps:$4 sm:$0xff]   ;;  %v14429_v16 = vld [vmem:[#allocation7 + $0x1a0] ss:$8 sps:$4 sm:$0xff]   ;;  %v14440_v15 = vld [vmem:[#allocation7 + $0x1d4] ss:$8 sps:$4 sm:$0xff]  }
 0x880   :  { %3904 = vmatpush1.bf16.msra.mxu1 %v3898_v29  ;;  %3982 = vmatpush1.bf16.msra.mxu0 %v3898_v29  ;;  %v16908_v22 = vpack.c.bf16 %v3893_v21, %v3891_v26  ;;  %v3890_v11 = vsel %vm3882_vm6, %v3866_v19, %v3886_v42  ;;  %v3892_v7 = vsel %vm3884_vm11, %v3868_v18, %v3888_v33  ;;  %v14434_v19 = vld [vmem:[#allocation7 + $0x1b4] ss:$8 sps:$4 sm:$0xff]   ;;  %v14432_v18 = vld [vmem:[#allocation7 + $0x1b0] ss:$8 sps:$4 sm:$0xff]   ;;  %v14437_v58 = vld [vmem:[#allocation7 + $0x1c4] ss:$8 sps:$4 sm:$0xff]  }
 0x881   :  { %4462 = vmatprep.subr.bf16.mxu0 %v3899_v48  ;;  %v16914_v55 = vpack.c.bf16 %v3892_v7, %v3890_v11  ;;  %4217 = vmatprep.subr.bf16.mxu1 %v14401_v25  ;;  %19875 = vst [vmem:[#allocation60_spill] sm:$0xff] %v16923_v53  ;;  %19877 = vst [vmem:[#allocation62_spill] sm:$0xff] %v16931_v8  ;;  %v14435_v50 = vld [vmem:[#allocation7 + $0x1c0] ss:$8 sps:$4 sm:$0xff]   ;;  %v14438_v20 = vld [vmem:[#allocation7 + $0x1d0] ss:$8 sps:$4 sm:$0xff]  }
 0x882   :  { %v14443_v1 = vld [vmem:[#allocation7 + $0x1e4] ss:$8 sps:$4 sm:$0xff]   ;;  %v14441_v2 = vld [vmem:[#allocation7 + $0x1e0] ss:$8 sps:$4 sm:$0xff]   ;;  %v14444_v31 = vld [vmem:[#allocation7 + $0x1f0] ss:$8 sps:$4 sm:$0xff]  }
 0x883   :  { %12185 = vmatmul.mubr.msk.bf16.vlgmr.msra.gmra.mrb[48].mxu0 %vm3688_vm3, %v16905_v4  ;;  %12184 = vmatmul.mubr.msk.bf16.vlgmr.msra.gmra.mrb[48].mxu1 %vm3688_vm3, %v16912_v23  ;;  %v14446_v41 = vld [vmem:[#allocation7 + $0x1f4] ss:$8 sps:$4 sm:$0xff]   ;;  %v14449_v10 = vld [vmem:[#allocation7 + $0x4] ss:$8 sps:$4 sm:$0xff]   ;;  %v16946_v52 = vld [vmem:[#allocation7] ss:$8 sps:$4 sm:$0xff]  }
 0x884   :  { %4463 = vmatpush1.bf16.msra.mxu0 %v3898_v29  ;;  %4494 = vmatprep.mubr.bf16.mxu0 %v19860_v61  ;;  %v14450_v11 = vld [vmem:[#allocation7 + $0x10] ss:$8 sps:$4 sm:$0xff]   ;;  %v14455_v7 = vld [vmem:[#allocation7 + $0x24] ss:$8 sps:$4 sm:$0xff]   ;;  %v14458_v32 = vld [vmem:[#allocation7 + $0x34] ss:$8 sps:$4 sm:$0xff]  }
 0x885   :  { %4744 = vmatprep.subr.bf16.mxu0 %v3899_v48  ;;  %4218 = vmatpush1.bf16.msra.mxu1 %v14399_v44 }
 0x886   :  { %4219 = vmatprep.subr.bf16.mxu1 %v14404_v12 }
 0x889   :  { %4220 = vmatpush1.bf16.msra.mxu1 %v14402_v17 }
 0x88a   :  { %4221 = vmatprep.subr.bf16.mxu1 %v14407_v30 }
 0x88b   :  { %12250 = vmatmul.mubr.msk.bf16.vlgmr.msra.gmra.mrb[52].mxu0 %vm3688_vm3, %v16923_v53 }
 0x88c   :  { %4745 = vmatpush1.bf16.msra.mxu0 %v3898_v29  ;;  %4776 = vmatprep.mubr.bf16.mxu0 %v19860_v61 }
 0x88d   :  { %5025 = vmatprep.subr.bf16.mxu0 %v16908_v22  ;;  %4222 = vmatpush1.bf16.msra.mxu1 %v14405_v34 }
 0x88e   :  { %4223 = vmatprep.subr.bf16.mxu1 %v14410_v28 }
 0x891   :  { %4224 = vmatpush1.bf16.msra.mxu1 %v14408_v38 }
 0x892   :  { %4225 = vmatprep.subr.bf16.mxu1 %v14413_v63 }
 0x893   :  { %12283 = vmatmul.mubr.msk.bf16.vlgmr.msra.gmra.mrb[56].mxu0 %vm3688_vm3, %v16931_v8 }
 0x894   :  { %5026 = vmatpush1.bf16.msra.mxu0 %v16914_v55  ;;  %5057 = vmatprep.mubr.bf16.mxu0 %v19860_v61 }
 0x895   :  { %5068 = vmatprep.subr.bf16.mxu0 %v16908_v22  ;;  %4226 = vmatpush1.bf16.msra.mxu1 %v14411_v37 }
 0x896   :  { %4227 = vmatprep.subr.bf16.mxu1 %v14416_v46 }
 0x899   :  { %4228 = vmatpush1.bf16.msra.mxu1 %v14414_v43 }
 0x89a   :  { %4229 = vmatprep.subr.bf16.mxu1 %v14419_v24 }
 0x89b   :  { %12316 = vmatmul.mubr.msk.bf16.vlgmr.msra.gmra.mrb[60].mxu0 %vm3688_vm3, %v16912_v23 }
 0x89c   :  { %5069 = vmatpush1.bf16.msra.mxu0 %v16914_v55  ;;  %5100 = vmatprep.mubr.bf16.mxu0 %v19860_v61 }
 0x89d   :  { %4230 = vmatpush1.bf16.msra.mxu1 %v14417_v27  ;;  %5111 = vmatprep.subr.bf16.mxu0 %v14401_v25 }
 0x89e   :  { %4231 = vmatprep.subr.bf16.mxu1 %v14422_v6 }
 0x8a1   :  { %4232 = vmatpush1.bf16.msra.mxu1 %v14420_v62 }
 0x8a2   :  { %4233 = vmatprep.subr.bf16.mxu1 %v14425_v35 }
 0x8a3   :  { %12317 = vmatmul.mubr.msk.bf16.vlgmr.msra.gmra.mrb[64].mxu0 %vm3688_vm3, %v16905_v4 }
 0x8a4   :  { %5112 = vmatpush1.bf16.msra.mxu0 %v14399_v44 }
 0x8a5   :  { %4234 = vmatpush1.bf16.msra.mxu1 %v14423_v54  ;;  %5113 = vmatprep.subr.bf16.mxu0 %v14404_v12 }
 0x8a6   :  { %4235 = vmatprep.subr.bf16.mxu1 %v14428_v57 }
 0x8a8   :  { %5114 = vmatpush1.bf16.msra.mxu0 %v14402_v17  ;;  %v14453_v17 = vld [vmem:[#allocation7 + $0x20] ss:$8 sps:$4 sm:$0xff]  }
 0x8a9   :  { %4236 = vmatpush1.bf16.msra.mxu1 %v14426_v56  ;;  %5115 = vmatprep.subr.bf16.mxu0 %v14407_v30 }
 0x8aa   :  { %4237 = vmatprep.subr.bf16.mxu1 %v14431_v9 }
 0x8ac   :  { %5116 = vmatpush1.bf16.msra.mxu0 %v14405_v34  ;;  %v14456_v34 = vld [vmem:[#allocation7 + $0x30] ss:$8 sps:$4 sm:$0xff]  }
 0x8ad   :  { %4238 = vmatpush1.bf16.msra.mxu1 %v14429_v16  ;;  %5117 = vmatprep.subr.bf16.mxu0 %v14410_v28  ;;  %v14461_v28 = vld [vmem:[#allocation7 + $0x44] ss:$8 sps:$4 sm:$0xff]  }
 0x8ae   :  { %4239 = vmatprep.subr.bf16.mxu1 %v14434_v19 }
 0x8b0   :  { %5118 = vmatpush1.bf16.msra.mxu0 %v14408_v38 }
 0x8b1   :  { %4240 = vmatpush1.bf16.msra.mxu1 %v14432_v18  ;;  %5119 = vmatprep.subr.bf16.mxu0 %v14413_v63 }
 0x8b2   :  { %4241 = vmatprep.subr.bf16.mxu1 %v14437_v58 }
 0x8b4   :  { %5120 = vmatpush1.bf16.msra.mxu0 %v14411_v37  ;;  %v14459_v37 = vld [vmem:[#allocation7 + $0x40] ss:$8 sps:$4 sm:$0xff]  }
 0x8b5   :  { %4242 = vmatpush1.bf16.msra.mxu1 %v14435_v50  ;;  %5121 = vmatprep.subr.bf16.mxu0 %v14416_v46 }
 0x8b6   :  { %4243 = vmatprep.subr.bf16.mxu1 %v14440_v15 }
 0x8b8   :  { %5122 = vmatpush1.bf16.msra.mxu0 %v14414_v43  ;;  %v14464_v43 = vld [vmem:[#allocation7 + $0x54] ss:$8 sps:$4 sm:$0xff]  }
 0x8b9   :  { %4244 = vmatpush1.bf16.msra.mxu1 %v14438_v20  ;;  %5123 = vmatprep.subr.bf16.mxu0 %v14419_v24  ;;  %v14462_v24 = vld [vmem:[#allocation7 + $0x50] ss:$8 sps:$4 sm:$0xff]  }
 0x8ba   :  { %4245 = vmatprep.subr.bf16.mxu1 %v14443_v1 }
 0x8bc   :  { %5124 = vmatpush1.bf16.msra.mxu0 %v14417_v27  ;;  %v14467_v27 = vld [vmem:[#allocation7 + $0x64] ss:$8 sps:$4 sm:$0xff]  }
 0x8bd   :  { %4246 = vmatpush1.bf16.msra.mxu1 %v14441_v2  ;;  %5125 = vmatprep.subr.bf16.mxu0 %v14422_v6 }
 0x8be   :  { %4247 = vmatprep.subr.bf16.mxu1 %v14446_v41 }
 0x8c0   :  { %5126 = vmatpush1.bf16.msra.mxu0 %v14420_v62 }
 0x8c1   :  { %5127 = vmatprep.subr.bf16.mxu0 %v14425_v35  ;;  %4248 = vmatpush1.bf16.msra.mxu1 %v14444_v31 }
 0x8c2   :  { %4418 = vmatprep.subr.bf16.mxu1 %v14449_v10 }
 0x8c4   :  { %5128 = vmatpush1.bf16.msra.mxu0 %v14423_v54  ;;  %v14465_v54 = vld [vmem:[#allocation7 + $0x60] ss:$8 sps:$4 sm:$0xff]  }
 0x8c5   :  { %5129 = vmatprep.subr.bf16.mxu0 %v14428_v57 }
 0x8c8   :  { %5130 = vmatpush1.bf16.msra.mxu0 %v14426_v56  ;;  %v14470_v56 = vld [vmem:[#allocation7 + $0x74] ss:$8 sps:$4 sm:$0xff]  }
 0x8c9   :  { %5131 = vmatprep.subr.bf16.mxu0 %v14431_v9  ;;  %v14468_v9 = vld [vmem:[#allocation7 + $0x70] ss:$8 sps:$4 sm:$0xff]  }
 0x8cc   :  { %5132 = vmatpush1.bf16.msra.mxu0 %v14429_v16  ;;  %v14473_v16 = vld [vmem:[#allocation7 + $0x84] ss:$8 sps:$4 sm:$0xff]  }
 0x8cd   :  { %5133 = vmatprep.subr.bf16.mxu0 %v14434_v19 }
 0x8d0   :  { %5134 = vmatpush1.bf16.msra.mxu0 %v14432_v18 }
 0x8d1   :  { %5135 = vmatprep.subr.bf16.mxu0 %v14437_v58 }
 0x8d4   :  { %5136 = vmatpush1.bf16.msra.mxu0 %v14435_v50 }
 0x8d5   :  { %5137 = vmatprep.subr.bf16.mxu0 %v14440_v15  ;;  %v14471_v15 = vld [vmem:[#allocation7 + $0x80] ss:$8 sps:$4 sm:$0xff]  }
 0x8d8   :  { %5138 = vmatpush1.bf16.msra.mxu0 %v14438_v20 }
 0x8d9   :  { %5139 = vmatprep.subr.bf16.mxu0 %v14443_v1 }
 0x8dc   :  { %5140 = vmatpush1.bf16.msra.mxu0 %v14441_v2  ;;  %v14476_v2 = vld [vmem:[#allocation7 + $0x94] ss:$8 sps:$4 sm:$0xff]  }
 0x8dd   :  { %5141 = vmatprep.subr.bf16.mxu0 %v14446_v41  ;;  %v14474_v41 = vld [vmem:[#allocation7 + $0x90] ss:$8 sps:$4 sm:$0xff]  }
 0x8e0   :  { %5142 = vmatpush1.bf16.msra.mxu0 %v14444_v31 }
 0x8e1   :  { %5152 = vmatprep.subr.bf16.mxu0 %v14449_v10  ;;  %v14479_v10 = vld [vmem:[#allocation7 + $0xa4] ss:$8 sps:$4 sm:$0xff]  }
 0x956   :  { %v4015_v13 = vpop.f32.mrb[48].mxu0  ;;  %v16944_v39 = vpop.f32.mrb[48].mxu1 }
 0x957   :  { %v4017_v60 = vpop.f32.mrb[49].mxu0  ;;  %v3939_v29 = vpop.f32.mrb[49].mxu1  ;;  %v4022_v42 = vpack.c.bf16 %v4015_v13, %v4015_v13  ;;  %v14477_v13 = vld [vmem:[#allocation7 + $0xa0] ss:$8 sps:$4 sm:$0xff]  }
 0x958   :  { %v4023_v40 = vpack.c.bf16 %v4017_v60, %v4017_v60  ;;  %v4019_v48 = vpop.f32.mrb[50].mxu0  ;;  %v3945_v25 = vpack.c.bf16 %v3939_v29, %v3939_v29  ;;  %v3941_v26 = vpop.f32.mrb[50].mxu1  ;;  %v14482_v60 = vld [vmem:[#allocation7 + $0xb4] ss:$8 sps:$4 sm:$0xff]   ;;  %v14480_v29 = vld [vmem:[#allocation7 + $0xb0] ss:$8 sps:$4 sm:$0xff]  }
 0x959   :  { %v4020_v33 = vpop.f32.mrb[51].mxu0  ;;  %v3942_v21 = vpop.f32.mrb[51].mxu1  ;;  %v14483_v48 = vld [vmem:[#allocation7 + $0xc0] ss:$8 sps:$4 sm:$0xff]   ;;  %v14491_v26 = vld [vmem:[#allocation7 + $0xe4] ss:$8 sps:$4 sm:$0xff]  }
 0x95a   :  { %4249 = vmatprep.mubr.bf16.mxu1 %v4023_v40  ;;  %v14485_v40 = vld [vmem:[#allocation7 + $0xc4] ss:$8 sps:$4 sm:$0xff]   ;;  %v14494_v33 = vld [vmem:[#allocation7 + $0xf4] ss:$8 sps:$4 sm:$0xff]  }
 0x95b   :  { %4250 = vmatmul.mubr.bf16.vlgmr.msra.gmra.mrb[52].mxu1 %v4022_v42  ;;  %v14489_v42 = vld [vmem:[#allocation7 + $0xe0] ss:$8 sps:$4 sm:$0xff]   ;;  %v16964_v21 = vld [vmem:[#allocation7 + $0x204] ss:$8 sps:$4 sm:$0xff]  }
 0x95c   :  { %4419 = vmatpush1.bf16.msra.mxu1 %v16946_v52  ;;  %4450 = vmatprep.mubr.bf16.mxu1 %v3945_v25  ;;  %v14486_v25 = vld [vmem:[#allocation7 + $0xd0] ss:$8 sps:$4 sm:$0xff]  }
 0x95d   :  { %4420 = vmatprep.subr.bf16.mxu1 %v16948_v36 }
 0x95e   :  { %v16952_v0 = vpop.f32.mrb[52].mxu0 }
 0x95f   :  { %v16954_v44 = vpop.f32.mrb[53].mxu0 }
 0x960   :  { %4421 = vmatpush1.bf16.msra.mxu1 %v14450_v11  ;;  %v4500_v12 = vpop.f32.mrb[54].mxu0 }
 0x961   :  { %4422 = vmatprep.subr.bf16.mxu1 %v14455_v7  ;;  %v4501_v30 = vpop.f32.mrb[55].mxu0  ;;  %v16971_v12 = vld [vmem:[#allocation7 + $0x214] ss:$8 sps:$4 sm:$0xff]  }
 0x962   :  { %v16976_v30 = vld [vmem:[#allocation7 + $0x210] ss:$8 sps:$4 sm:$0xff]  }
 0x964   :  { %4423 = vmatpush1.bf16.msra.mxu1 %v14453_v17 }
 0x965   :  { %4424 = vmatprep.subr.bf16.mxu1 %v14458_v32 }
 0x966   :  { %v16956_v38 = vpop.f32.mrb[56].mxu0 }
 0x967   :  { %v16958_v63 = vpop.f32.mrb[57].mxu0 }
 0x968   :  { %4425 = vmatpush1.bf16.msra.mxu1 %v14456_v34  ;;  %v4782_v49 = vpop.f32.mrb[58].mxu0 }
 0x969   :  { %4426 = vmatprep.subr.bf16.mxu1 %v14461_v28  ;;  %v4783_v46 = vpop.f32.mrb[59].mxu0  ;;  %v16994_v49 = vld [vmem:[#allocation7 + $0x240] ss:$8 sps:$4 sm:$0xff]  }
 0x96a   :  { %v17000_v46 = vld [vmem:[#allocation7 + $0x250] ss:$8 sps:$4 sm:$0xff]  }
 0x96c   :  { %4427 = vmatpush1.bf16.msra.mxu1 %v14459_v37 }
 0x96d   :  { %4428 = vmatprep.subr.bf16.mxu1 %v14464_v43 }
 0x96e   :  { %v16960_v6 = vpop.f32.mrb[60].mxu0 }
 0x96f   :  { %v5061_v62 = vpop.f32.mrb[61].mxu0 }
 0x970   :  { %4429 = vmatpush1.bf16.msra.mxu1 %v14462_v24  ;;  %v5063_v35 = vpop.f32.mrb[62].mxu0  ;;  %v5067_v31 = vpack.c.bf16 %v5061_v62, %v5061_v62  ;;  %v17012_v62 = vld [vmem:[#allocation7 + $0x270] ss:$8 sps:$4 sm:$0xff]  }
 0x971   :  { %4430 = vmatprep.subr.bf16.mxu1 %v14467_v27  ;;  %v5064_v57 = vpop.f32.mrb[63].mxu0  ;;  %v17015_v35 = vld [vmem:[#allocation7 + $0x284] ss:$8 sps:$4 sm:$0xff]  }
 0x972   :  { %v17021_v57 = vld [vmem:[#allocation7 + $0x294] ss:$8 sps:$4 sm:$0xff]  }
 0x974   :  { %4431 = vmatpush1.bf16.msra.mxu1 %v14465_v54 }
 0x975   :  { %4432 = vmatprep.subr.bf16.mxu1 %v14470_v56 }
 0x976   :  { %v5102_v19 = vpop.f32.mrb[64].mxu0 }
 0x977   :  { %v5104_v18 = vpop.f32.mrb[65].mxu0  ;;  %v5109_v20 = vpack.c.bf16 %v5102_v19, %v5102_v19  ;;  %v17039_v19 = vld [vmem:[#allocation7 + $0x2b4] ss:$8 sps:$4 sm:$0xff]  }
 0x978   :  { %4433 = vmatpush1.bf16.msra.mxu1 %v14468_v9  ;;  %v5110_v58 = vpack.c.bf16 %v5104_v18, %v5104_v18  ;;  %v5106_v50 = vpop.f32.mrb[66].mxu0  ;;  %v17044_v18 = vld [vmem:[#allocation7 + $0x2b0] ss:$8 sps:$4 sm:$0xff]  }
 0x979   :  { %4434 = vmatprep.subr.bf16.mxu1 %v14473_v16  ;;  %v5107_v1 = vpop.f32.mrb[67].mxu0  ;;  %v17052_v50 = vld [vmem:[#allocation7 + $0x2c0] ss:$8 sps:$4 sm:$0xff]  }
 0x97a   :  { %5143 = vmatprep.mubr.bf16.mxu0 %v5110_v58  ;;  %v17048_v58 = vld [vmem:[#allocation7 + $0x2c4] ss:$8 sps:$4 sm:$0xff]  }
 0x97b   :  { %5144 = vmatmul.mubr.bf16.vlgmr.msra.gmra.mrb[68].mxu0 %v5109_v20  ;;  %v17060_v20 = vld [vmem:[#allocation7 + $0x2d0] ss:$8 sps:$4 sm:$0xff]   ;;  %v17064_v1 = vld [vmem:[#allocation7 + $0x2e4] ss:$8 sps:$4 sm:$0xff]  }
 0x97c   :  { %4435 = vmatpush1.bf16.msra.mxu1 %v14471_v15  ;;  %5153 = vmatpush1.bf16.msra.mxu0 %v16946_v52  ;;  %v14488_v52 = vld [vmem:[#allocation7 + $0xd4] ss:$8 sps:$4 sm:$0xff]  }
 0x97d   :  { %5184 = vmatprep.mubr.bf16.mxu0 %v5067_v31  ;;  %4436 = vmatprep.subr.bf16.mxu1 %v14476_v2  ;;  %v17072_v31 = vld [vmem:[#allocation7 + $0x2f4] ss:$8 sps:$4 sm:$0xff]  }
 0x97e   :  { %5154 = vmatprep.subr.bf16.mxu0 %v16948_v36  ;;  %v14492_v36 = vld [vmem:[#allocation7 + $0xf0] ss:$8 sps:$4 sm:$0xff]  }
 0x980   :  { %4437 = vmatpush1.bf16.msra.mxu1 %v14474_v41  ;;  %5155 = vmatpush1.bf16.msra.mxu0 %v14450_v11  ;;  %v3944_v11 = vpack.c.bf16 %v16944_v39, %v16944_v39  ;;  %v16979_v39 = vld [vmem:[#allocation7 + $0x224] ss:$8 sps:$4 sm:$0xff]  }
 0x981   :  { %4438 = vmatprep.subr.bf16.mxu1 %v14479_v10  ;;  %5156 = vmatprep.subr.bf16.mxu0 %v14455_v7  ;;  %v16968_v7 = vld [vmem:[#allocation7 + $0x200] ss:$8 sps:$4 sm:$0xff]  }
 0x984   :  { %4439 = vmatpush1.bf16.msra.mxu1 %v14477_v13  ;;  %5157 = vmatpush1.bf16.msra.mxu0 %v14453_v17  ;;  %v4504_v17 = vpack.c.bf16 %v16954_v44, %v16954_v44  ;;  %v16985_v44 = vld [vmem:[#allocation7 + $0x234] ss:$8 sps:$4 sm:$0xff]  }
 0x985   :  { %4440 = vmatprep.subr.bf16.mxu1 %v14482_v60  ;;  %5158 = vmatprep.subr.bf16.mxu0 %v14458_v32  ;;  %v16982_v32 = vld [vmem:[#allocation7 + $0x220] ss:$8 sps:$4 sm:$0xff]  }
 0x988   :  { %4441 = vmatpush1.bf16.msra.mxu1 %v14480_v29  ;;  %5159 = vmatpush1.bf16.msra.mxu0 %v14456_v34  ;;  %v16988_v34 = vld [vmem:[#allocation7 + $0x230] ss:$8 sps:$4 sm:$0xff]  }
 0x989   :  { %4442 = vmatprep.subr.bf16.mxu1 %v14485_v40  ;;  %5160 = vmatprep.subr.bf16.mxu0 %v14461_v28  ;;  %v16991_v28 = vld [vmem:[#allocation7 + $0x244] ss:$8 sps:$4 sm:$0xff]  }
 0x98c   :  { %4443 = vmatpush1.bf16.msra.mxu1 %v14483_v48  ;;  %5161 = vmatpush1.bf16.msra.mxu0 %v14459_v37  ;;  %v16997_v37 = vld [vmem:[#allocation7 + $0x254] ss:$8 sps:$4 sm:$0xff]  }
 0x98d   :  { %4444 = vmatprep.subr.bf16.mxu1 %v14488_v52  ;;  %5162 = vmatprep.subr.bf16.mxu0 %v14464_v43  ;;  %v17003_v43 = vld [vmem:[#allocation7 + $0x264] ss:$8 sps:$4 sm:$0xff]  }
 0x990   :  { %4445 = vmatpush1.bf16.msra.mxu1 %v14486_v25  ;;  %5163 = vmatpush1.bf16.msra.mxu0 %v14462_v24  ;;  %v17006_v24 = vld [vmem:[#allocation7 + $0x260] ss:$8 sps:$4 sm:$0xff]  }
 0x991   :  { %4446 = vmatprep.subr.bf16.mxu1 %v14491_v26  ;;  %5164 = vmatprep.subr.bf16.mxu0 %v14467_v27  ;;  %v17009_v27 = vld [vmem:[#allocation7 + $0x274] ss:$8 sps:$4 sm:$0xff]  }
 0x994   :  { %4447 = vmatpush1.bf16.msra.mxu1 %v14489_v42  ;;  %5165 = vmatpush1.bf16.msra.mxu0 %v14465_v54  ;;  %v17018_v54 = vld [vmem:[#allocation7 + $0x280] ss:$8 sps:$4 sm:$0xff]  }
 0x995   :  { %4448 = vmatprep.subr.bf16.mxu1 %v14494_v33  ;;  %5166 = vmatprep.subr.bf16.mxu0 %v14470_v56  ;;  %v5066_v56 = vpack.c.bf16 %v16960_v6, %v16960_v6  ;;  %v17036_v6 = vld [vmem:[#allocation7 + $0x2a0] ss:$8 sps:$4 sm:$0xff]  }
 0x998   :  { %4449 = vmatpush1.bf16.msra.mxu1 %v14492_v36  ;;  %5167 = vmatpush1.bf16.msra.mxu0 %v14468_v9  ;;  %v17027_v9 = vld [vmem:[#allocation7 + $0x290] ss:$8 sps:$4 sm:$0xff]  }
 0x999   :  { %4698 = vmatprep.subr.bf16.mxu1 %v16964_v21  ;;  %5168 = vmatprep.subr.bf16.mxu0 %v14473_v16  ;;  %v17031_v16 = vld [vmem:[#allocation7 + $0x2a4] ss:$8 sps:$4 sm:$0xff]  }
 0x99b   :  { %4451 = vmatmul.mubr.bf16.vlgmr.msra.gmra.mrb[52].mxu1 %v3944_v11  ;;  %v17136_v11 = vld [vmem:[#allocation7 + $0x360] ss:$8 sps:$4 sm:$0xff]  }
 0x99c   :  { %4699 = vmatpush1.bf16.msra.mxu1 %v16968_v7  ;;  %4730 = vmatprep.mubr.bf16.mxu1 %v4504_v17  ;;  %v17148_v17 = vld [vmem:[#allocation7 + $0x384] ss:$8 sps:$4 sm:$0xff]  }
 0x99d   :  { %5169 = vmatpush1.bf16.msra.mxu0 %v14471_v15  ;;  %4700 = vmatprep.subr.bf16.mxu1 %v16971_v12  ;;  %v17056_v15 = vld [vmem:[#allocation7 + $0x2d4] ss:$8 sps:$4 sm:$0xff]  }
 0x99e   :  { %5170 = vmatprep.subr.bf16.mxu0 %v14476_v2  ;;  %v17068_v2 = vld [vmem:[#allocation7 + $0x2e0] ss:$8 sps:$4 sm:$0xff]  }
 0x9a0   :  { %4701 = vmatpush1.bf16.msra.mxu1 %v16976_v30 }
 0x9a1   :  { %5171 = vmatpush1.bf16.msra.mxu0 %v14474_v41  ;;  %4702 = vmatprep.subr.bf16.mxu1 %v16979_v39  ;;  %v17076_v41 = vld [vmem:[#allocation7 + $0x2f0] ss:$8 sps:$4 sm:$0xff]  }
 0x9a2   :  { %5172 = vmatprep.subr.bf16.mxu0 %v14479_v10  ;;  %v17080_v10 = vld [vmem:[#allocation7 + $0x304] ss:$8 sps:$4 sm:$0xff]  }
 0x9a4   :  { %4703 = vmatpush1.bf16.msra.mxu1 %v16982_v32 }
 0x9a5   :  { %5173 = vmatpush1.bf16.msra.mxu0 %v14477_v13  ;;  %4704 = vmatprep.subr.bf16.mxu1 %v16985_v44  ;;  %v17084_v13 = vld [vmem:[#allocation7 + $0x300] ss:$8 sps:$4 sm:$0xff]  }
 0x9a6   :  { %5174 = vmatprep.subr.bf16.mxu0 %v14482_v60  ;;  %v4503_v60 = vpack.c.bf16 %v16952_v0, %v16952_v0  ;;  %v17100_v0 = vld [vmem:[#allocation7 + $0x324] ss:$8 sps:$4 sm:$0xff]  }
 0x9a8   :  { %4705 = vmatpush1.bf16.msra.mxu1 %v16988_v34 }
 0x9a9   :  { %5175 = vmatpush1.bf16.msra.mxu0 %v14480_v29  ;;  %4706 = vmatprep.subr.bf16.mxu1 %v16991_v28  ;;  %v17090_v29 = vld [vmem:[#allocation7 + $0x314] ss:$8 sps:$4 sm:$0xff]  }
 0x9aa   :  { %5176 = vmatprep.subr.bf16.mxu0 %v14485_v40  ;;  %v4786_v40 = vpack.c.bf16 %v16958_v63, %v16958_v63  ;;  %v17108_v63 = vld [vmem:[#allocation7 + $0x334] ss:$8 sps:$4 sm:$0xff]  }
 0x9ac   :  { %4707 = vmatpush1.bf16.msra.mxu1 %v16994_v49 }
 0x9ad   :  { %5177 = vmatpush1.bf16.msra.mxu0 %v14483_v48  ;;  %4708 = vmatprep.subr.bf16.mxu1 %v16997_v37  ;;  %v17096_v48 = vld [vmem:[#allocation7 + $0x310] ss:$8 sps:$4 sm:$0xff]  }
 0x9ae   :  { %5178 = vmatprep.subr.bf16.mxu0 %v14488_v52  ;;  %v17104_v52 = vld [vmem:[#allocation7 + $0x320] ss:$8 sps:$4 sm:$0xff]  }
 0x9b0   :  { %4709 = vmatpush1.bf16.msra.mxu1 %v17000_v46 }
 0x9b1   :  { %5179 = vmatpush1.bf16.msra.mxu0 %v14486_v25  ;;  %4710 = vmatprep.subr.bf16.mxu1 %v17003_v43  ;;  %v17112_v25 = vld [vmem:[#allocation7 + $0x330] ss:$8 sps:$4 sm:$0xff]  }
 0x9b2   :  { %5180 = vmatprep.subr.bf16.mxu0 %v14491_v26  ;;  %v17116_v26 = vld [vmem:[#allocation7 + $0x344] ss:$8 sps:$4 sm:$0xff]  }
 0x9b4   :  { %4711 = vmatpush1.bf16.msra.mxu1 %v17006_v24 }
 0x9b5   :  { %5181 = vmatpush1.bf16.msra.mxu0 %v14489_v42  ;;  %4712 = vmatprep.subr.bf16.mxu1 %v17009_v27  ;;  %v17120_v42 = vld [vmem:[#allocation7 + $0x340] ss:$8 sps:$4 sm:$0xff]  }
 0x9b6   :  { %5182 = vmatprep.subr.bf16.mxu0 %v14494_v33  ;;  %v17124_v33 = vld [vmem:[#allocation7 + $0x354] ss:$8 sps:$4 sm:$0xff]  }
 0x9b8   :  { %4713 = vmatpush1.bf16.msra.mxu1 %v17012_v62 }
 0x9b9   :  { %5183 = vmatpush1.bf16.msra.mxu0 %v14492_v36  ;;  %4714 = vmatprep.subr.bf16.mxu1 %v17015_v35  ;;  %v17128_v36 = vld [vmem:[#allocation7 + $0x350] ss:$8 sps:$4 sm:$0xff]  }
 0x9ba   :  { %5193 = vmatprep.subr.bf16.mxu0 %v16908_v22 }
 0x9bc   :  { %5185 = vmatmul.mubr.bf16.vlgmr.msra.gmra.mrb[68].mxu0 %v5066_v56  ;;  %4715 = vmatpush1.bf16.msra.mxu1 %v17018_v54 }
 0x9bd   :  { %5194 = vmatpush1.bf16.msra.mxu0 %v16914_v55  ;;  %4716 = vmatprep.subr.bf16.mxu1 %v17021_v57 }
 0x9be   :  { %5225 = vmatprep.mubr.bf16.mxu0 %v19860_v61  ;;  %5236 = vmatprep.subr.bf16.mxu0 %v16964_v21  ;;  %v17132_v21 = vld [vmem:[#allocation7 + $0x364] ss:$8 sps:$4 sm:$0xff]  }
 0x9c0   :  { %4717 = vmatpush1.bf16.msra.mxu1 %v17027_v9 }
 0x9c1   :  { %4718 = vmatprep.subr.bf16.mxu1 %v17031_v16 }
 0x9c4   :  { %12318 = vmatmul.mubr.msk.bf16.vlgmr.msra.gmra.mrb[72].mxu0 %vm3688_vm3, %v16923_v53  ;;  %4719 = vmatpush1.bf16.msra.mxu1 %v17036_v6 }
 0x9c5   :  { %5237 = vmatpush1.bf16.msra.mxu0 %v16968_v7  ;;  %4720 = vmatprep.subr.bf16.mxu1 %v17039_v19  ;;  %v17140_v7 = vld [vmem:[#allocation7 + $0x374] ss:$8 sps:$4 sm:$0xff]  }
 0x9c6   :  { %5238 = vmatprep.subr.bf16.mxu0 %v16971_v12  ;;  %v17144_v12 = vld [vmem:[#allocation7 + $0x370] ss:$8 sps:$4 sm:$0xff]  }
 0x9c8   :  { %4721 = vmatpush1.bf16.msra.mxu1 %v17044_v18 }
 0x9c9   :  { %5239 = vmatpush1.bf16.msra.mxu0 %v16976_v30  ;;  %4722 = vmatprep.subr.bf16.mxu1 %v17048_v58  ;;  %v17152_v30 = vld [vmem:[#allocation7 + $0x380] ss:$8 sps:$4 sm:$0xff]  }
 0x9ca   :  { %5240 = vmatprep.subr.bf16.mxu0 %v16979_v39  ;;  %v17156_v39 = vld [vmem:[#allocation7 + $0x394] ss:$8 sps:$4 sm:$0xff]  }
 0x9cc   :  { %4723 = vmatpush1.bf16.msra.mxu1 %v17052_v50 }
 0x9cd   :  { %5241 = vmatpush1.bf16.msra.mxu0 %v16982_v32  ;;  %4724 = vmatprep.subr.bf16.mxu1 %v17056_v15  ;;  %v14570_v32 = vld [vmem:[#allocation7 + $0x390] ss:$8 sps:$4 sm:$0xff]  }
 0x9ce   :  { %5242 = vmatprep.subr.bf16.mxu0 %v16985_v44  ;;  %v14575_v44 = vld [vmem:[#allocation7 + $0x3a4] ss:$8 sps:$4 sm:$0xff]  }
 0x9d0   :  { %4725 = vmatpush1.bf16.msra.mxu1 %v17060_v20 }
 0x9d1   :  { %5243 = vmatpush1.bf16.msra.mxu0 %v16988_v34  ;;  %4726 = vmatprep.subr.bf16.mxu1 %v17064_v1  ;;  %v14573_v34 = vld [vmem:[#allocation7 + $0x3a0] ss:$8 sps:$4 sm:$0xff]  }
 0x9d2   :  { %5244 = vmatprep.subr.bf16.mxu0 %v16991_v28  ;;  %v14578_v28 = vld [vmem:[#allocation7 + $0x3b4] ss:$8 sps:$4 sm:$0xff]  }
 0x9d4   :  { %4727 = vmatpush1.bf16.msra.mxu1 %v17068_v2 }
 0x9d5   :  { %5245 = vmatpush1.bf16.msra.mxu0 %v16994_v49  ;;  %4728 = vmatprep.subr.bf16.mxu1 %v17072_v31  ;;  %v14576_v49 = vld [vmem:[#allocation7 + $0x3b0] ss:$8 sps:$4 sm:$0xff]  }
 0x9d6   :  { %5246 = vmatprep.subr.bf16.mxu0 %v16997_v37  ;;  %v14581_v37 = vld [vmem:[#allocation7 + $0x3c4] ss:$8 sps:$4 sm:$0xff]  }
 0x9d8   :  { %4729 = vmatpush1.bf16.msra.mxu1 %v17076_v41 }
 0x9d9   :  { %5247 = vmatpush1.bf16.msra.mxu0 %v17000_v46  ;;  %4980 = vmatprep.subr.bf16.mxu1 %v17080_v10  ;;  %v14579_v46 = vld [vmem:[#allocation7 + $0x3c0] ss:$8 sps:$4 sm:$0xff]  }
 0x9da   :  { %5248 = vmatprep.subr.bf16.mxu0 %v17003_v43  ;;  %v14584_v43 = vld [vmem:[#allocation7 + $0x3d4] ss:$8 sps:$4 sm:$0xff]  }
 0x9db   :  { %4731 = vmatmul.mubr.bf16.vlgmr.msra.gmra.mrb[52].mxu1 %v4503_v60 }
 0x9dc   :  { %4981 = vmatpush1.bf16.msra.mxu1 %v17084_v13  ;;  %5012 = vmatprep.mubr.bf16.mxu1 %v4786_v40 }
 0x9dd   :  { %5249 = vmatpush1.bf16.msra.mxu0 %v17006_v24  ;;  %4982 = vmatprep.subr.bf16.mxu1 %v17090_v29  ;;  %v14582_v24 = vld [vmem:[#allocation7 + $0x3d0] ss:$8 sps:$4 sm:$0xff]  }
 0x9de   :  { %5250 = vmatprep.subr.bf16.mxu0 %v17009_v27  ;;  %v14587_v27 = vld [vmem:[#allocation7 + $0x3e4] ss:$8 sps:$4 sm:$0xff]  }
 0x9e0   :  { %4983 = vmatpush1.bf16.msra.mxu1 %v17096_v48 }
 0x9e1   :  { %5251 = vmatpush1.bf16.msra.mxu0 %v17012_v62  ;;  %4984 = vmatprep.subr.bf16.mxu1 %v17100_v0  ;;  %v14585_v62 = vld [vmem:[#allocation7 + $0x3e0] ss:$8 sps:$4 sm:$0xff]  }
 0x9e2   :  { %5252 = vmatprep.subr.bf16.mxu0 %v17015_v35  ;;  %v14590_v35 = vld [vmem:[#allocation7 + $0x3f4] ss:$8 sps:$4 sm:$0xff]  }
 0x9e4   :  { %4985 = vmatpush1.bf16.msra.mxu1 %v17104_v52 }
 0x9e5   :  { %5253 = vmatpush1.bf16.msra.mxu0 %v17018_v54  ;;  %4986 = vmatprep.subr.bf16.mxu1 %v17108_v63  ;;  %v14588_v54 = vld [vmem:[#allocation7 + $0x3f0] ss:$8 sps:$4 sm:$0xff]  }
 0x9e6   :  { %5254 = vmatprep.subr.bf16.mxu0 %v17021_v57 }
 0x9e8   :  { %4987 = vmatpush1.bf16.msra.mxu1 %v17112_v25 }
 0x9e9   :  { %5255 = vmatpush1.bf16.msra.mxu0 %v17027_v9  ;;  %4988 = vmatprep.subr.bf16.mxu1 %v17116_v26 }
 0x9ea   :  { %5256 = vmatprep.subr.bf16.mxu0 %v17031_v16 }
 0x9ec   :  { %4989 = vmatpush1.bf16.msra.mxu1 %v17120_v42 }
 0x9ed   :  { %5257 = vmatpush1.bf16.msra.mxu0 %v17036_v6  ;;  %4990 = vmatprep.subr.bf16.mxu1 %v17124_v33 }
 0x9ee   :  { %5258 = vmatprep.subr.bf16.mxu0 %v17039_v19 }
 0x9f0   :  { %4991 = vmatpush1.bf16.msra.mxu1 %v17128_v36 }
 0x9f1   :  { %5259 = vmatpush1.bf16.msra.mxu0 %v17044_v18  ;;  %4992 = vmatprep.subr.bf16.mxu1 %v17132_v21 }
 0x9f2   :  { %5260 = vmatprep.subr.bf16.mxu0 %v17048_v58 }
 0x9f4   :  { %4993 = vmatpush1.bf16.msra.mxu1 %v17136_v11 }
 0x9f5   :  { %5261 = vmatpush1.bf16.msra.mxu0 %v17052_v50  ;;  %4994 = vmatprep.subr.bf16.mxu1 %v17140_v7  ;;  %v19880_v50 = vld [vmem:[#allocation30_spill] sm:$0xff] }
 0x9f6   :  { %5262 = vmatprep.subr.bf16.mxu0 %v17056_v15  ;;  %v5541_v15 = vand.u32 31, %v19880_v50 }
 0x9f8   :  { %4995 = vmatpush1.bf16.msra.mxu1 %v17144_v12  ;;  %vm17203_vm1 = vcmp.eq.s32.totalorder %v5541_v15, %v19852_v59 }
 0x9f9   :  { %5263 = vmatpush1.bf16.msra.mxu0 %v17060_v20  ;;  %4996 = vmatprep.subr.bf16.mxu1 %v17148_v17  ;;  %v19881_v20 = vld [vmem:[#allocation31_spill] sm:$0xff] }
 0x9fa   :  { %5264 = vmatprep.subr.bf16.mxu0 %v17064_v1  ;;  %v5548_v1 = vand.u32 31, %v19881_v20 }
 0x9fc   :  { %4997 = vmatpush1.bf16.msra.mxu1 %v17152_v30  ;;  %vm17208_vm10 = vcmp.eq.s32.totalorder %v5548_v1, %v19852_v59 }
 0x9fd   :  { %5265 = vmatpush1.bf16.msra.mxu0 %v17068_v2  ;;  %4998 = vmatprep.subr.bf16.mxu1 %v17156_v39  ;;  %v5429_v2 = vand.u32 31, %v19854_v51  ;;  %vm19534_vm12 = vmpackc.low %vm17208_vm10, %vm17203_vm1 }
 0x9fe   :  { %5266 = vmatprep.subr.bf16.mxu0 %v17072_v31  ;;  %v5436_v31 = vand.u32 31, %v19857_v45 }
 0x9ff   :  { %vm17213_vm9 = vcmp.eq.s32.totalorder %v5429_v2, %v19852_v59  ;;  %v19926_v2 = vld [vmem:[#allocation42_spill] sm:$0xff] }
 0xa00   :  { %4999 = vmatpush1.bf16.msra.mxu1 %v14570_v32  ;;  %vm17218_vm2 = vcmp.eq.s32.totalorder %v5436_v31, %v19852_v59  ;;  %v5597_v31 = vand.u32 31, %v19926_v2 }
 0xa01   :  { %5267 = vmatpush1.bf16.msra.mxu0 %v17076_v41  ;;  %5000 = vmatprep.subr.bf16.mxu1 %v14575_v44  ;;  %v19882_v41 = vld [vmem:[#allocation32_spill] sm:$0xff]  ;;  %vm19533_vm5 = vmpackc.low %vm17218_vm2, %vm17213_vm9 }
 0xa02   :  { %5279 = vmatprep.subr.bf16.mxu0 %v16908_v22  ;;  %v4785_v22 = vpack.c.bf16 %v16956_v38, %v16956_v38 }
 0xa04   :  { %5001 = vmatpush1.bf16.msra.mxu1 %v14573_v34 }
 0xa05   :  { %5002 = vmatprep.subr.bf16.mxu1 %v14578_v28 }
 0xa08   :  { %5003 = vmatpush1.bf16.msra.mxu1 %v14576_v49 }
 0xa09   :  { %5004 = vmatprep.subr.bf16.mxu1 %v14581_v37 }
 0xa0c   :  { %5005 = vmatpush1.bf16.msra.mxu1 %v14579_v46 }
 0xa0d   :  { %5006 = vmatprep.subr.bf16.mxu1 %v14584_v43 }
 0xa10   :  { %5007 = vmatpush1.bf16.msra.mxu1 %v14582_v24 }
 0xa11   :  { %5008 = vmatprep.subr.bf16.mxu1 %v14587_v27 }
 0xa14   :  { %5009 = vmatpush1.bf16.msra.mxu1 %v14585_v62 }
 0xa15   :  { %5010 = vmatprep.subr.bf16.mxu1 %v14590_v35 }
 0xa18   :  { %5011 = vmatpush1.bf16.msra.mxu1 %v14588_v54 }
 0xa19   :  { %13698 = vmatprep.subr.msk.bf16.mxu1 %vm19534_vm12, %v19789_v14 }
 0xa1b   :  { %5013 = vmatmul.mubr.bf16.vlgmr.msra.gmra.mrb[52].mxu1 %v4785_v22 }
 0xa1c   :  { %13700 = vmatpush3.bf16.msk.msra.mxu1 %vm19533_vm5, %v19789_v14 }
 0xa97   :  { %v5227_v57 = vpop.f32.mrb[72].mxu0 }
 0xa98   :  { %v5229_v56 = vpop.f32.mrb[73].mxu0  ;;  %v5234_v6 = vpack.c.bf16 %v5227_v57, %v5227_v57  ;;  %v19918_v57 = vmov 0 }
 0xa99   :  { %v5235_v9 = vpack.c.bf16 %v5229_v56, %v5229_v56  ;;  %v5231_v16 = vpop.f32.mrb[74].mxu0  ;;  %v19920_v56 = vmov 0 }
 0xa9a   :  { %v5232_v19 = vpop.f32.mrb[75].mxu0  ;;  %v19924_v16 = vmov 0 }
 0xa9b   :  { %5268 = vmatprep.mubr.bf16.mxu0 %v5235_v9  ;;  %v19922_v9 = vmov 0 }
 0xa9c   :  { %5269 = vmatmul.mubr.bf16.vlgmr.msra.gmra.mrb[68].mxu0 %v5234_v6 }
 0xa9d   :  { %5280 = vmatpush1.bf16.msra.mxu0 %v16914_v55  ;;  %5311 = vmatprep.mubr.bf16.mxu0 %v19860_v61 }
 0xa9e   :  { %5322 = vmatprep.subr.bf16.mxu0 %v17080_v10  ;;  %v5555_v10 = vand.u32 31, %v19882_v41 }
 0xaa0   :  { %vm17227_vm15 = vcmp.eq.s32.totalorder %v5555_v10, %v19852_v59  ;;  %v19927_v10 = vld [vmem:[#allocation43_spill] sm:$0xff] }
 0xaa4   :  { %12319 = vmatmul.mubr.msk.bf16.vlgmr.msra.gmra.mrb[76].mxu0 %vm3688_vm3, %v16931_v8 }
 0xaa5   :  { %5323 = vmatpush1.bf16.msra.mxu0 %v17084_v13  ;;  %v19883_v13 = vld [vmem:[#allocation33_spill] sm:$0xff] }
 0xaa6   :  { %5324 = vmatprep.subr.bf16.mxu0 %v17090_v29  ;;  %v5562_v60 = vand.u32 31, %v19883_v13  ;;  %v19884_v29 = vld [vmem:[#allocation20_spill] sm:$0xff] }
 0xaa7   :  { %v5443_v40 = vand.u32 31, %v19884_v29 }
 0xaa8   :  { %vm17232_vm0 = vcmp.eq.s32.totalorder %v5562_v60, %v19852_v59  ;;  %v5604_v60 = vand.u32 31, %v19927_v10  ;;  %v19959_v10 = vld [vmem:[#allocation55_spill] sm:$0xff] }
 0xaa9   :  { %5325 = vmatpush1.bf16.msra.mxu0 %v17096_v48  ;;  %v19885_v48 = vld [vmem:[#allocation21_spill] sm:$0xff]  ;;  %vm17237_vm3 = vcmp.eq.s32.totalorder %v5443_v40, %v19852_v59  ;;  %vm19532_vm7 = vmpackc.low %vm17232_vm0, %vm17227_vm15  ;;  %v19928_v40 = vld [vmem:[#allocation44_spill] sm:$0xff]  ;;  %v5646_v2 = vand.u32 31, %v19959_v10 }
 0xaaa   :  { %5326 = vmatprep.subr.bf16.mxu0 %v17100_v0  ;;  %v5450_v0 = vand.u32 31, %v19885_v48  ;;  %13702 = vmatprep.subr.msk.bf16.mxu1 %vm19532_vm7, %v19789_v14 }
 0xaac   :  { %vm17242_vm4 = vcmp.eq.s32.totalorder %v5450_v0, %v19852_v59  ;;  %v5485_v0 = vand.u32 31, %v19928_v40 }
 0xaad   :  { %5327 = vmatpush1.bf16.msra.mxu0 %v17104_v52  ;;  %vm19538_vm13 = vmpackc.low %vm17242_vm4, %vm17237_vm3 }
 0xaae   :  { %5328 = vmatprep.subr.bf16.mxu0 %v17108_v63  ;;  %13704 = vmatpush3.bf16.msk.msra.mxu1 %vm19538_vm13, %v19789_v14 }
 0xab1   :  { %5329 = vmatpush1.bf16.msra.mxu0 %v17112_v25 }
 0xab2   :  { %5330 = vmatprep.subr.bf16.mxu0 %v17116_v26 }
 0xab5   :  { %5331 = vmatpush1.bf16.msra.mxu0 %v17120_v42  ;;  %v19894_v42 = vmov 0 }
 0xab6   :  { %5332 = vmatprep.subr.bf16.mxu0 %v17124_v33  ;;  %v19895_v42 = vsel %vm17227_vm15, 4294967295, %v19894_v42  ;;  %v19896_v33 = vmov 0 }
 0xab7   :  { %v19897_v33 = vsel %vm17232_vm0, 4294967295, %v19896_v33 }
 0xab9   :  { %5333 = vmatpush1.bf16.msra.mxu0 %v17128_v36  ;;  %v19898_v36 = vmov 0 }
 0xaba   :  { %5334 = vmatprep.subr.bf16.mxu0 %v17132_v21  ;;  %v19899_v36 = vsel %vm17237_vm3, 4294967295, %v19898_v36 }
 0xabd   :  { %5335 = vmatpush1.bf16.msra.mxu0 %v17136_v11  ;;  %v19902_v11 = vld [vmem:[#allocation34_spill] sm:$0xff] }
 0xabe   :  { %5336 = vmatprep.subr.bf16.mxu0 %v17140_v7  ;;  %v5569_v7 = vand.u32 31, %v19902_v11 }
 0xac0   :  { %vm17283_vm14 = vcmp.eq.s32.totalorder %v5569_v7, %v19852_v59  ;;  %v19929_v7 = vld [vmem:[#allocation45_spill] sm:$0xff] }
 0xac1   :  { %5337 = vmatpush1.bf16.msra.mxu0 %v17144_v12  ;;  %v19903_v12 = vld [vmem:[#allocation35_spill] sm:$0xff] }
 0xac2   :  { %5338 = vmatprep.subr.bf16.mxu0 %v17148_v17  ;;  %v5576_v17 = vand.u32 31, %v19903_v12 }
 0xac4   :  { %vm17288_vm8 = vcmp.eq.s32.totalorder %v5576_v17, %v19852_v59  ;;  %v5492_v17 = vand.u32 31, %v19929_v7  ;;  %v19954_v7 = vmov 0 }
 0xac5   :  { %5339 = vmatpush1.bf16.msra.mxu0 %v17152_v30  ;;  %v19904_v30 = vld [vmem:[#allocation36_spill] sm:$0xff]  ;;  %vm19539_vm6 = vmpackc.low %vm17288_vm8, %vm17283_vm14 }
 0xac6   :  { %5340 = vmatprep.subr.bf16.mxu0 %v17156_v39  ;;  %v5457_v39 = vand.u32 31, %v19904_v30  ;;  %13706 = vmatprep.subr.msk.bf16.mxu1 %vm19539_vm6, %v19789_v14 }
 0xac8   :  { %vm17297_vm11 = vcmp.eq.s32.totalorder %v5457_v39, %v19852_v59  ;;  %v19930_v39 = vmov 0 }
 0xac9   :  { %5341 = vmatpush1.bf16.msra.mxu0 %v14570_v32  ;;  %v19905_v32 = vld [vmem:[#allocation37_spill] sm:$0xff] }
 0xaca   :  { %5342 = vmatprep.subr.bf16.mxu0 %v14575_v44  ;;  %v5464_v44 = vand.u32 31, %v19905_v32 }
 0xacc   :  { %vm17302_vm7 = vcmp.eq.s32.totalorder %v5464_v44, %v19852_v59  ;;  %v19932_v44 = vmov 0 }
 0xacd   :  { %5343 = vmatpush1.bf16.msra.mxu0 %v14573_v34  ;;  %v19906_v34 = vld [vmem:[#allocation38_spill] sm:$0xff]  ;;  %vm19542_vm15 = vmpackc.low %vm17302_vm7, %vm17297_vm11 }
 0xace   :  { %5344 = vmatprep.subr.bf16.mxu0 %v14578_v28  ;;  %v5583_v28 = vand.u32 31, %v19906_v34  ;;  %13708 = vmatpush3.bf16.msk.msra.mxu1 %vm19542_vm15, %v19789_v14 }
 0xad0   :  { %vm17309_vm5 = vcmp.eq.s32.totalorder %v5583_v28, %v19852_v59  ;;  %v19934_v28 = vmov 0 }
 0xad1   :  { %5345 = vmatpush1.bf16.msra.mxu0 %v14576_v49  ;;  %v19907_v49 = vld [vmem:[#allocation39_spill] sm:$0xff]  ;;  %v19919_v57 = vsel %vm17309_vm5, 4294967295, %v19918_v57 }
 0xad2   :  { %5346 = vmatprep.subr.bf16.mxu0 %v14581_v37  ;;  %v5590_v37 = vand.u32 31, %v19907_v49 }
 0xad4   :  { %vm17314_vm12 = vcmp.eq.s32.totalorder %v5590_v37, %v19852_v59  ;;  %v19936_v37 = vmov 0 }
 0xad5   :  { %5347 = vmatpush1.bf16.msra.mxu0 %v14579_v46  ;;  %v19921_v56 = vsel %vm17314_vm12, 4294967295, %v19920_v56  ;;  %vm19541_vm0 = vmpackc.low %vm17314_vm12, %vm17309_vm5 }
 0xad6   :  { %5348 = vmatprep.subr.bf16.mxu0 %v14584_v43  ;;  %13710 = vmatprep.subr.msk.bf16.mxu1 %vm19541_vm0, %v19789_v14  ;;  %vm17381_vm0 = vcmp.eq.s32.totalorder %v5604_v60, %v19852_v59  ;;  %v19944_v60 = vmov 0 }
 0xad7   :  { %v19933_v44 = vsel %vm17381_vm0, 4294967295, %v19932_v44 }
 0xad9   :  { %5349 = vmatpush1.bf16.msra.mxu0 %v14582_v24  ;;  %v19912_v24 = vmov 0 }
 0xada   :  { %5350 = vmatprep.subr.bf16.mxu0 %v14587_v27  ;;  %v19913_v24 = vsel %vm17297_vm11, 4294967295, %v19912_v24  ;;  %vm17507_vm11 = vcmp.eq.s32.totalorder %v5646_v2, %v19852_v59 }
 0xadd   :  { %5351 = vmatpush1.bf16.msra.mxu0 %v14585_v62  ;;  %v19916_v62 = vld [vmem:[#allocation40_spill] sm:$0xff] }
 0xade   :  { %5352 = vmatprep.subr.bf16.mxu0 %v14590_v35  ;;  %v5471_v35 = vand.u32 31, %v19916_v62 }
 0xae0   :  { %vm17339_vm3 = vcmp.eq.s32.totalorder %v5471_v35, %v19852_v59  ;;  %v19938_v35 = vld [vmem:[#allocation46_spill] sm:$0xff] }
 0xae1   :  { %5353 = vmatpush1.bf16.msra.mxu0 %v14588_v54  ;;  %v19917_v54 = vld [vmem:[#allocation41_spill] sm:$0xff]  ;;  %v19923_v9 = vsel %vm17339_vm3, 4294967295, %v19922_v9 }
 0xae2   :  { %v5478_v22 = vand.u32 31, %v19917_v54 }
 0xae4   :  { %vm17344_vm13 = vcmp.eq.s32.totalorder %v5478_v22, %v19852_v59  ;;  %v5611_v22 = vand.u32 31, %v19938_v35 }
 0xae5   :  { %v19925_v16 = vsel %vm17344_vm13, 4294967295, %v19924_v16  ;;  %vm19540_vm6 = vmpackc.low %vm17344_vm13, %vm17339_vm3  ;;  %vm17390_vm3 = vcmp.eq.s32.totalorder %v5485_v0, %v19852_v59  ;;  %vm17395_vm13 = vcmp.eq.s32.totalorder %v5492_v17, %v19852_v59  ;;  %v19946_v0 = vmov 0 }
 0xae6   :  { %13712 = vmatpush3.bf16.msk.msra.mxu1 %vm19540_vm6, %v19789_v14  ;;  %vm17376_vm6 = vcmp.eq.s32.totalorder %v5597_v31, %v19852_v59  ;;  %v19935_v28 = vsel %vm17390_vm3, 4294967295, %v19934_v28  ;;  %v19937_v37 = vsel %vm17395_vm13, 4294967295, %v19936_v37  ;;  %vm19549_vm5 = vmpackc.low %vm17395_vm13, %vm17390_vm3  ;;  %v19942_v31 = vmov 0 }
 0xae7   :  { %v19931_v39 = vsel %vm17376_vm6, 4294967295, %v19930_v39  ;;  %vm19546_vm15 = vmpackc.low %vm17381_vm0, %vm17376_vm6  ;;  %v19948_v17 = vmov 0 }
 0xae8   :  { %13714 = vmatprep.subr.msk.bf16.mxu1 %vm19546_vm15, %v19789_v14  ;;  %vm17420_vm15 = vcmp.eq.s32.totalorder %v5611_v22, %v19852_v59  ;;  %v19950_v22 = vld [vmem:[#allocation50_spill] sm:$0xff] }
 0xae9   :  { %v19943_v31 = vsel %vm17420_vm15, 4294967295, %v19942_v31 }
 0xaea   :  { %13716 = vmatpush3.bf16.msk.msra.mxu1 %vm19549_vm5, %v19789_v14 }
 0xaee   :  { %v17190_v55 = vpop.f32.mrb[52].mxu1 }
 0xaef   :  { %19878 = vst [vmem:[#allocation27_spill] sm:$0xff] %v17190_v55  ;;  %v17192_v38 = vpop.f32.mrb[53].mxu1 }
 0xaf0   :  { %19879 = vst [vmem:[#allocation29_spill] sm:$0xff] %v17192_v38  ;;  %v5018_v18 = vpop.f32.mrb[54].mxu1 }
 0xaf1   :  { %v5019_v58 = vpop.f32.mrb[55].mxu1 }
 0xb77   :  { %v5313_v6 = vpop.f32.mrb[76].mxu0 }
 0xb78   :  { %v5315_v19 = vpop.f32.mrb[77].mxu0  ;;  %v5320_v15 = vpack.c.bf16 %v5313_v6, %v5313_v6  ;;  %v19939_v6 = vld [vmem:[#allocation47_spill] sm:$0xff] }
 0xb79   :  { %v5321_v18 = vpack.c.bf16 %v5315_v19, %v5315_v19  ;;  %v5317_v58 = vpop.f32.mrb[78].mxu0  ;;  %v5618_v19 = vand.u32 31, %v19939_v6  ;;  %v19953_v6 = vld [vmem:[#allocation53_spill] sm:$0xff] }
 0xb7a   :  { %v5318_v1 = vpop.f32.mrb[79].mxu0  ;;  %v5520_v35 = vand.u32 31, %v19953_v6  ;;  %v19964_v6 = vld [vmem:[#allocation56_spill] sm:$0xff] }
 0xb7b   :  { %5354 = vmatprep.mubr.bf16.mxu0 %v5321_v18  ;;  %v19940_v18 = vld [vmem:[#allocation48_spill] sm:$0xff]  ;;  %vm17425_vm6 = vcmp.eq.s32.totalorder %v5618_v19, %v19852_v59  ;;  %v5625_v19 = vand.u32 31, %v19950_v22  ;;  %v19956_v22 = vmov 0 }
 0xb7c   :  { %5355 = vmatmul.mubr.bf16.vlgmr.msra.gmra.mrb[68].mxu0 %v5320_v15  ;;  %v5499_v58 = vand.u32 31, %v19940_v18  ;;  %v19941_v15 = vld [vmem:[#allocation49_spill] sm:$0xff]  ;;  %v19945_v60 = vsel %vm17425_vm6, 4294967295, %v19944_v60  ;;  %vm19552_vm3 = vmpackc.low %vm17425_vm6, %vm17420_vm15 }
 0xb7d   :  { %6175 = vmatprep.mubr.f32.mxu0 %v19851_v3  ;;  %v5506_v1 = vand.u32 31, %v19941_v15  ;;  %13718 = vmatprep.subr.msk.bf16.mxu1 %vm19552_vm3, %v19789_v14  ;;  %vm17464_vm3 = vcmp.eq.s32.totalorder %v5625_v19, %v19852_v59  ;;  %v19960_v19 = vmov 0 }
 0xb7e   :  { %vm17434_vm5 = vcmp.eq.s32.totalorder %v5499_v58, %v19852_v59  ;;  %v19951_v58 = vld [vmem:[#allocation51_spill] sm:$0xff]  ;;  %v19955_v7 = vsel %vm17464_vm3, 4294967295, %v19954_v7 }
 0xb7f   :  { %v19947_v0 = vsel %vm17434_vm5, 4294967295, %v19946_v0  ;;  %vm17439_vm13 = vcmp.eq.s32.totalorder %v5506_v1, %v19852_v59  ;;  %v5632_v15 = vand.u32 31, %v19951_v58  ;;  %v19952_v1 = vld [vmem:[#allocation52_spill] sm:$0xff]  ;;  %v19958_v58 = vld [vmem:[#allocation54_spill] sm:$0xff] }
 0xb80   :  { %v19949_v17 = vsel %vm17439_vm13, 4294967295, %v19948_v17  ;;  %vm19554_vm0 = vmpackc.low %vm17439_vm13, %vm17434_vm5  ;;  %v5513_v18 = vand.u32 31, %v19952_v1  ;;  %v5639_v40 = vand.u32 31, %v19958_v58  ;;  %vm17485_vm13 = vcmp.eq.s32.totalorder %v5520_v35, %v19852_v59  ;;  %v19965_v58 = vld [vmem:[#allocation57_spill] sm:$0xff] }
 0xb81   :  { %13720 = vmatpush3.bf16.msk.msra.mxu1 %vm19554_vm0, %v19789_v14  ;;  %vm17469_vm15 = vcmp.eq.s32.totalorder %v5632_v15, %v19852_v59  ;;  %v5527_v1 = vand.u32 31, %v19964_v6  ;;  %v5534_v54 = vand.u32 31, %v19965_v58  ;;  %v5365_v58 = vrot.slane %v17190_v55, 4 }
 0xb82   :  { %v19957_v22 = vsel %vm17469_vm15, 4294967295, %v19956_v22  ;;  %vm19560_vm0 = vmpackc.low %vm17469_vm15, %vm17464_vm3  ;;  %vm17480_vm5 = vcmp.eq.s32.totalorder %v5513_v18, %v19852_v59  ;;  %vm17502_vm12 = vcmp.eq.s32.totalorder %v5639_v40, %v19852_v59  ;;  %v19970_v40 = vmov 0 }
 0xb83   :  { %v19961_v19 = vsel %vm17480_vm5, 4294967295, %v19960_v19  ;;  %13722 = vmatprep.subr.msk.bf16.mxu1 %vm19560_vm0, %v19789_v14  ;;  %vm19563_vm6 = vmpackc.low %vm17485_vm13, %vm17480_vm5  ;;  %vm17522_vm3 = vcmp.eq.s32.totalorder %v5527_v1, %v19852_v59  ;;  %vm17527_vm15 = vcmp.eq.s32.totalorder %v5534_v54, %v19852_v59  ;;  %v5379_v54 = vmul.f32 %v17190_v55, %v17190_v55 }
 0xb84   :  { %vm19586_vm0 = vmpackc.low %vm17507_vm11, %vm17502_vm12  ;;  %v19971_v40 = vsel %vm17522_vm3, 4294967295, %v19970_v40  ;;  %v5380_v1 = vmul.f32 %v17192_v38, %v17192_v38  ;;  %v5371_v6 = vrot.slane %v17192_v38, 4  ;;  %v5366_v49 = vadd.f32 %v5365_v58, %v17190_v55 }
 0xb85   :  { %13724 = vmatpush3.bf16.msk.msra.mxu1 %vm19563_vm6, %v19789_v14  ;;  %vm19585_vm6 = vmpackc.low %vm17527_vm15, %vm17522_vm3  ;;  %v5381_v10 = vrot.slane %v5379_v54, 4 }
 0xb86   :  { %13726 = vmatprep.subr.msk.bf16.mxu1 %vm19586_vm0, %v19789_v14  ;;  %vm19974_vm5 = vmpackc.low %vm17208_vm10, %vm17203_vm1  ;;  %v5387_v62 = vrot.slane %v5380_v1, 4  ;;  %v5372_v63 = vadd.f32 %v5371_v6, %v17192_v38  ;;  %v5367_v32 = vrot.slane %v5366_v49, 2  ;;  %vm19978_vm10 = vnez %v19897_v33 }
 0xb87   :  { %v5382_v34 = vadd.f32 %v5381_v10, %v5379_v54  ;;  %vm19977_vm1 = vmpackc.low %vm17218_vm2, %vm17213_vm9  ;;  %vm19981_vm0 = vnez %v19899_v36  ;;  %vm19984_vm2 = vnez %v19913_v24 }
 0xb88   :  { %v5388_v52 = vadd.f32 %v5387_v62, %v5380_v1  ;;  %v5373_v30 = vrot.slane %v5372_v63, 2  ;;  %v5368_v62 = vadd.f32 %v5367_v32, %v5366_v49  ;;  %vm19982_vm3 = vmpackc.low %vm17242_vm4, %vm19981_vm0  ;;  %vm19987_vm0 = vnez %v19919_v57 }
 0xb89   :  { %13728 = vmatpush3.bf16.msk.msra.mxu1 %vm19585_vm6, %v19789_v14  ;;  %v5383_v11 = vrot.slane %v5382_v34, 2  ;;  %vm19983_vm9 = vmpackc.low %vm17288_vm8, %vm17283_vm14  ;;  %vm19989_vm4 = vnez %v19925_v16  ;;  %vm19990_vm14 = vnez %v19923_v9 }
 0xb8a   :  { %13730 = vmatprep.subr.msk.bf16.mxu1 %vm19974_vm5, %v19789_v14  ;;  %v5389_v50 = vrot.slane %v5388_v52, 2  ;;  %v5374_v53 = vadd.f32 %v5373_v30, %v5372_v63  ;;  %v5369_v45 = vrot.slane %v5368_v62, 1  ;;  %vm19979_vm5 = vnez %v19895_v42  ;;  %vm19991_vm8 = vmpackc.low %vm19989_vm4, %vm19990_vm14 }
 0xb8b   :  { %v5384_v38 = vadd.f32 %v5383_v11, %v5382_v34  ;;  %vm19980_vm6 = vmpackc.low %vm19978_vm10, %vm19979_vm5  ;;  %vm19992_vm10 = vnez %v19933_v44  ;;  %vm20001_vm4 = vnez %v19949_v17  ;;  %vm20002_vm14 = vnez %v19947_v0 }
 0xb8c   :  { %v5390_v29 = vadd.f32 %v5389_v50, %v5388_v52  ;;  %v5375_v32 = vrot.slane %v5374_v53, 1 }
 0xb8e   :  { %v5391_v30 = vrot.slane %v5390_v29, 1  ;;  %v5376_v34 = vadd.f32 %v5375_v32, %v5374_v53  ;;  %v20015_v53 = vld [vmem:[#allocation19_spill] sm:$0xff] }
 0xc4f   :  { %v17561_v12 = vpop.f32.mrb[68].mxu0 }
 0xc50   :  { %19975 = vst [vmem:[#allocation61_spill] sm:$0xff] %v17561_v12  ;;  %v5395_v13 = vrot.slane %v17561_v12, 4  ;;  %v5409_v41 = vmul.f32 %v17561_v12, %v17561_v12  ;;  %v17566_v20 = vpop.f32.mrb[69].mxu0 }
 0xc51   :  { %19976 = vst [vmem:[#allocation63_spill] sm:$0xff] %v17566_v20  ;;  %v5401_v8 = vrot.slane %v17566_v20, 4  ;;  %v5410_v6 = vmul.f32 %v17566_v20, %v17566_v20  ;;  %v5360_v10 = vpop.f32.mrb[70].mxu0 }
 0xc52   :  { %v5396_v58 = vadd.f32 %v5395_v13, %v17561_v12  ;;  %v5411_v54 = vrot.slane %v5409_v41, 4  ;;  %v5361_v1 = vpop.f32.mrb[71].mxu0  ;;  %v5385_v12 = vrot.slane %v5384_v38, 1 }
 0xc53   :  { %v5402_v23 = vadd.f32 %v5401_v8, %v17566_v20  ;;  %v5417_v4 = vrot.slane %v5410_v6, 4  ;;  %v5370_v8 = vadd.f32 %v5369_v45, %v5368_v62 }
 0xc54   :  { %v5397_v55 = vrot.slane %v5396_v58, 2  ;;  %v5412_v5 = vadd.f32 %v5411_v54, %v5409_v41  ;;  %v5386_v50 = vadd.f32 %v5385_v12, %v5384_v38  ;;  %v20016_v38 = vld [vmem:[#allocation20_spill] sm:$0xff] }
 0xc55   :  { %v5403_v3 = vrot.slane %v5402_v23, 2  ;;  %v5418_v48 = vadd.f32 %v5417_v4, %v5410_v6  ;;  %v5392_v6 = vadd.f32 %v5391_v30, %v5390_v29  ;;  %v14594_v29 = vld [vmem:[#allocation9 + $0x110] ss:$8 sps:$4 sm:$0xff]  }
 0xc56   :  { %v5398_v51 = vadd.f32 %v5397_v55, %v5396_v58  ;;  %v5413_v59 = vrot.slane %v5412_v5, 2 }
 0xc57   :  { %v5404_v47 = vadd.f32 %v5403_v3, %v5402_v23  ;;  %v5419_v10 = vrot.slane %v5418_v48, 2  ;;  %v20029_v35 = vld [vmem:[#allocation61_spill] sm:$0xff] }
 0xc58   :  { %v5399_v49 = vrot.slane %v5398_v51, 1  ;;  %v5414_v13 = vadd.f32 %v5413_v59, %v5412_v5  ;;  %v20012_v59 = vld [vmem:[#allocation59_spill] sm:$0xff]  ;;  %v20014_v5 = vld [vmem:[#allocation17_spill] sm:$0xff] }
 0xc59   :  { %v5405_v1 = vrot.slane %v5404_v47, 1  ;;  %v5420_v63 = vadd.f32 %v5419_v10, %v5418_v48  ;;  %v20031_v62 = vld [vmem:[#allocation63_spill] sm:$0xff]  ;;  %v14599_v48 = vld [vmem:[#allocation9 + $0x124] ss:$8 sps:$4 sm:$0xff]  }
 0xc5a   :  { %v5400_v20 = vadd.f32 %v5399_v49, %v5398_v51  ;;  %v5415_v11 = vrot.slane %v5414_v13, 1  ;;  %v20013_v51 = vld [vmem:[#allocation18_spill] sm:$0xff] }
 0xc5b   :  { %v5406_v41 = vadd.f32 %v5405_v1, %v5404_v47  ;;  %v5421_v54 = vrot.slane %v5420_v63, 1  ;;  %v6071_v47 = vand.u32 31, %v20012_v59  ;;  %v6064_v45 = vand.u32 31, %v20013_v51 }
 0xc5c   :  { %v5407_v4 = vadd.f32 %v5400_v20, %v5370_v8  ;;  %v5416_v52 = vadd.f32 %v5415_v11, %v5414_v13  ;;  %v20017_v20 = vld [vmem:[#allocation21_spill] sm:$0xff] }
 0xc5d   :  { %v5408_v55 = vadd.f32 %v5406_v41, %v5376_v34  ;;  %v5422_v3 = vadd.f32 %v5421_v54, %v5420_v63 }
 0xc5e   :  { %v5423_v23 = vadd.f32 %v5416_v52, %v5386_v50 }
 0xc5f   :  { %5969 = vmatprep.mubr.f32.mxu1 %v5408_v55  ;;  %v5424_v58 = vadd.f32 %v5422_v3, %v5392_v6  ;;  %v14593_v55 = vld [vmem:[#allocation9 + $0x104] ss:$8 sps:$4 sm:$0xff]   ;;  %v14591_v3 = vld [vmem:[#allocation9 + $0x100] ss:$8 sps:$4 sm:$0xff]  }
 0xc60   :  { %5970 = vmatmul.mubr.f32.vlgmr.msra.gmra.mrb[56].mxu1 %v5407_v4 }
 0xc61   :  { %13732 = vmatpush3.bf16.msk.msra.mxu1 %vm19977_vm1, %v19789_v14  ;;  %6039 = vmatprep.mubr.f32.mxu1 %v5424_v58  ;;  %vm19986_vm1 = vnez %v19921_v56  ;;  %v12416_v56 = vld [vmem:[%s19408_s7 + $0x2] sm:$0x3]  ;;  %v20032_v58 = vld [vmem:[#allocation26_spill] sm:$0xff] }
 0xc62   :  { %13734 = vmatprep.subr.msk.bf16.mxu1 %vm19980_vm6, %v19789_v14  ;;  %vm19985_vm6 = vmpackc.low %vm17302_vm7, %vm19984_vm2  ;;  %vm19993_vm7 = vnez %v19931_v39  ;;  %vm19996_vm2 = vnez %v19935_v28  ;;  %v20025_v39 = vmov 0.0  }
 0xc63   :  { %vm19994_vm5 = vmpackc.low %vm19992_vm10, %vm19993_vm7  ;;  %vm20004_vm10 = vnez %v19957_v22  ;;  %vm20005_vm7 = vnez %v19955_v7 }
 0xc65   :  { %13736 = vmatpush3.bf16.msk.msra.mxu1 %vm19982_vm3, %v19789_v14  ;;  %vm19988_vm3 = vmpackc.low %vm19986_vm1, %vm19987_vm0  ;;  %vm19998_vm1 = vnez %v19945_v60  ;;  %vm19999_vm0 = vnez %v19943_v31  ;;  %v20027_v60 = vld [vmem:[#allocation58_spill] sm:$0xff] }
 0xc66   :  { %13738 = vmatprep.subr.msk.bf16.mxu1 %vm19983_vm9, %v19789_v14  ;;  %vm19995_vm9 = vnez %v19937_v37 }
 0xc69   :  { %13740 = vmatpush3.bf16.msk.msra.mxu1 %vm19985_vm6, %v19789_v14  ;;  %vm19997_vm6 = vmpackc.low %vm19995_vm9, %vm19996_vm2  ;;  %vm20007_vm9 = vnez %v19961_v19  ;;  %v20028_v19 = vld [vmem:[#allocation27_spill] sm:$0xff] }
 0xc6a   :  { %13742 = vmatprep.subr.msk.bf16.mxu1 %vm19988_vm3, %v19789_v14  ;;  %vm20000_vm3 = vmpackc.low %vm19998_vm1, %vm19999_vm0  ;;  %vm20010_vm1 = vnez %v19971_v40  ;;  %v20030_v40 = vld [vmem:[#allocation29_spill] sm:$0xff] }
 0xc6b   :  { %vm20008_vm2 = vmpackc.low %vm17485_vm13, %vm20007_vm9  ;;  %vm6085_vm13 = vcmp.eq.s32.totalorder %v6071_v47, %v20014_v5 }
 0xc6c   :  { %vm20011_vm0 = vmpackc.low %vm17527_vm15, %vm20010_vm1  ;;  %vm6091_vm15 = vcmp.eq.s32.totalorder %v6071_v47, %v20017_v20 }
 0xc6d   :  { %13744 = vmatpush3.bf16.msk.msra.mxu1 %vm19991_vm8, %v19789_v14  ;;  %vm20003_vm8 = vmpackc.low %vm20001_vm4, %vm20002_vm14  ;;  %vm6089_vm14 = vcmp.eq.s32.totalorder %v6071_v47, %v20016_v38 }
 0xc6e   :  { %13746 = vmatprep.subr.msk.bf16.mxu1 %vm19994_vm5, %v19789_v14  ;;  %vm20006_vm5 = vmpackc.low %vm20004_vm10, %vm20005_vm7  ;;  %vm6090_vm10 = vcmp.eq.s32.totalorder %v6064_v45, %v20017_v20 }
 0xc71   :  { %13748 = vmatpush3.bf16.msk.msra.mxu1 %vm19997_vm6, %v19789_v14  ;;  %vm20009_vm6 = vmpackc.low %vm17507_vm11, %vm17502_vm12  ;;  %vm6084_vm12 = vcmp.eq.s32.totalorder %v6064_v45, %v20014_v5  ;;  %vm6086_vm11 = vcmp.eq.s32.totalorder %v6064_v45, %v20015_v53 }
 0xc72   :  { %13750 = vmatprep.subr.msk.bf16.mxu1 %vm20000_vm3, %v19789_v14  ;;  %vm6087_vm3 = vcmp.eq.s32.totalorder %v6071_v47, %v20015_v53  ;;  %vm17675_vm7 = vmpackc.low %vm6086_vm11, %vm6084_vm12  ;;  %v20033_v47 = vld [vmem:[#allocation28_spill] sm:$0xff] }
 0xc73   :  { %vm13761_vm4 = vmpackc.low %vm6087_vm3, %vm6085_vm13  ;;  %vm19590_vm13 = vcmask 1043456   ;;  %vm6295_vm3 = vcmask 64512  }
 0xc74   :  { %13762 = vmatprep.subr.msk.bf16.mxu0 %vm13761_vm4, %v19789_v14 }
 0xc75   :  { %13752 = vmatpush3.bf16.msk.msra.mxu1 %vm20003_vm8, %v19789_v14  ;;  %vm6088_vm8 = vcmp.eq.s32.totalorder %v6064_v45, %v20016_v38  ;;  %13764 = vmatpush1.bf16.msk.msra.mxu0 %vm17675_vm7, %v19789_v14 }
 0xc76   :  { %13754 = vmatprep.subr.msk.bf16.mxu1 %vm20006_vm5, %v19789_v14  ;;  %vm17682_vm5 = vmpackc.low %vm6091_vm15, %vm6089_vm14 }
 0xc77   :  { %13766 = vmatprep.subr.msk.bf16.mxu0 %vm17682_vm5, %v19789_v14  ;;  %vm17689_vm9 = vmpackc.low %vm6090_vm10, %vm6088_vm8 }
 0xc79   :  { %13756 = vmatpush3.bf16.msk.msra.mxu1 %vm20008_vm2, %v19789_v14  ;;  %13768 = vmatpush1.bf16.msk.msra.mxu0 %vm17689_vm9, %v19789_v14  ;;  %vm20024_vm2 = vcmask 261120  }
 0xc7a   :  { %13758 = vmatprep.subr.msk.bf16.mxu1 %vm20009_vm6, %v19789_v14  ;;  %13770 = vmatprep.subr.msk.bf16.mxu0 %vm13761_vm4, %v19789_v14  ;;  %vm20026_vm6 = vmmov %vm20024_vm2 }
 0xc7d   :  { %13760 = vmatpush3.bf16.msk.msra.mxu1 %vm20011_vm0, %v19789_v14 }
 0xc80   :  { %6040 = vmatmul.mubr.f32.vlgmr.msra.gmra.mrb[58].mxu1 %v5423_v23  ;;  %v14596_v23 = vld [vmem:[#allocation9 + $0x114] ss:$8 sps:$4 sm:$0xff]  }
 0xc81   :  { %6337 = vmatprep.mubr.bf16.mxu1 %v19860_v61 }
 0xd33   :  { %v13263_v26 = vpop.f32.mrb[56].mxu1 }
 0xd34   :  { %v13264_v42 = vpop.f32.mrb[57].mxu1 }
 0xd35   :  { %v13265_v33 = vadd.f32 %v13264_v42, %v13263_v26  ;;  %v14597_v42 = vld [vmem:[#allocation9 + $0x120] ss:$8 sps:$4 sm:$0xff]  }
 0xd37   :  { %v6046_v36 = vmul.f32 0.0078125, %v13265_v33  ;;  %v14602_v33 = vld [vmem:[#allocation9 + $0x134] ss:$8 sps:$4 sm:$0xff]  }
 0xd39   :  { %v6048_v43 = vmul.f32 %v6046_v36, %v6046_v36 }
 0xd53   :  { %v13298_v21 = vpop.f32.mrb[58].mxu1 }
 0xd54   :  { %v13299_v12 = vpop.f32.mrb[59].mxu1 }
 0xd55   :  { %v13300_v46 = vadd.f32 %v13299_v12, %v13298_v21  ;;  %v20034_v21 = vld [vmem:[#allocation60_spill] sm:$0xff] }
 0xd57   :  { %v6047_v24 = vmul.f32 0.0078125, %v13300_v46  ;;  %v14600_v46 = vld [vmem:[#allocation9 + $0x130] ss:$8 sps:$4 sm:$0xff]  }
 0xd59   :  { %v6049_v27 = vsub.f32 %v6047_v24, %v6048_v43  ;;  %v14605_v43 = vld [vmem:[#allocation9 + $0x144] ss:$8 sps:$4 sm:$0xff]  }
 0xd5b   :  { %v6052_v57 = vadd.f32 1e-05, %v6049_v27  ;;  %v14603_v27 = vld [vmem:[#allocation9 + $0x140] ss:$8 sps:$4 sm:$0xff]  }
 0xd5d   :  { %15009 = vrsqrt.f32 %v6052_v57  ;;  %v14608_v57 = vld [vmem:[#allocation9 + $0x154] ss:$8 sps:$4 sm:$0xff]  }
 0xd67   :  { %v15010_v9 = vpop.eup %15009 }
 0xd68   :  { %v6054_v16 = vmul.f32 %v15010_v9, %v12416_v56 }
 0xd6a   :  { %v6055_v7 = vmul.f32 %v6054_v16, %v6046_v36  ;;  %12433 = vmatmul.mubr.msk.f32.vlgmr.msra.gmra.mrb[80].mxu0 %vm20024_vm2, %v6054_v16  ;;  %v14606_v16 = vld [vmem:[#allocation9 + $0x150] ss:$8 sps:$4 sm:$0xff]  }
 0xd6b   :  { %13772 = vmatpush1.bf16.msk.msra.mxu0 %vm17675_vm7, %v19789_v14  ;;  %6250 = vmatprep.mubr.f32.mxu0 %v20025_v39 }
 0xd6c   :  { %13774 = vmatprep.subr.msk.bf16.mxu0 %vm17682_vm5, %v19789_v14  ;;  %v6057_v44 = vrot.slane %v6055_v7, 7  ;;  %v14611_v7 = vld [vmem:[#allocation9 + $0x164] ss:$8 sps:$4 sm:$0xff]  }
 0xd6e   :  { %v6059_v28 = vsub.f32 %v12416_v56, %v6057_v44  ;;  %v20035_v56 = vld [vmem:[#allocation62_spill] sm:$0xff] }
 0xd6f   :  { %13776 = vmatpush1.bf16.msk.msra.mxu0 %vm17689_vm9, %v19789_v14  ;;  %v14609_v44 = vld [vmem:[#allocation9 + $0x160] ss:$8 sps:$4 sm:$0xff]  }
 0xd70   :  { %v6183_v37 = vrot.slane %v6059_v28, 1  ;;  %v14614_v28 = vld [vmem:[#allocation9 + $0x174] ss:$8 sps:$4 sm:$0xff]  }
 0xd72   :  { %12442 = vmatmul.mubr.msk.f32.vlgmr.msra.gmra.mrb[82].mxu0 %vm20026_vm6, %v6183_v37  ;;  %v14612_v37 = vld [vmem:[#allocation9 + $0x170] ss:$8 sps:$4 sm:$0xff]  }
 0xd73   :  { %6414 = vmatprep.mubr.bf16.mxu0 %v19860_v61 }
 0xe3d   :  { %v6177_v31 = vpop.f32.mrb[80].mxu0 }
 0xe3e   :  { %v6260_v0 = vrot.slane %v6177_v31, %v20027_v60  ;;  %v6179_v17 = vpop.f32.mrb[81].mxu0  ;;  %v14617_v31 = vld [vmem:[#allocation9 + $0x184] ss:$8 sps:$4 sm:$0xff]  }
 0xe3f   :  { %v6264_v22 = vrot.slane %v6179_v17, %v20027_v60  ;;  %v14620_v17 = vld [vmem:[#allocation9 + $0x194] ss:$8 sps:$4 sm:$0xff]  }
 0xe40   :  { %v6265_v15 = vmul.f32 %v6260_v0, %v20028_v19  ;;  %v6277_v18 = vmul.f32 %v6260_v0, %v20029_v35  ;;  %v14615_v0 = vld [vmem:[#allocation9 + $0x180] ss:$8 sps:$4 sm:$0xff]   ;;  %v14623_v19 = vld [vmem:[#allocation9 + $0x1a4] ss:$8 sps:$4 sm:$0xff]   ;;  %v14626_v35 = vld [vmem:[#allocation9 + $0x1b4] ss:$8 sps:$4 sm:$0xff]  }
 0xe41   :  { %v6266_v2 = vmul.f32 %v6264_v22, %v20030_v40  ;;  %v6278_v10 = vmul.f32 %v6264_v22, %v20031_v62  ;;  %v14618_v22 = vld [vmem:[#allocation9 + $0x190] ss:$8 sps:$4 sm:$0xff]   ;;  %v14629_v40 = vld [vmem:[#allocation9 + $0x1c4] ss:$8 sps:$4 sm:$0xff]   ;;  %v14632_v62 = vld [vmem:[#allocation9 + $0x1d4] ss:$8 sps:$4 sm:$0xff]  }
 0xe45   :  { %v6252_v32 = vpop.f32.mrb[82].mxu0 }
 0xe46   :  { %v6270_v49 = vrot.slane %v6252_v32, %v20027_v60  ;;  %v6254_v13 = vpop.f32.mrb[83].mxu0  ;;  %v14635_v32 = vld [vmem:[#allocation9 + $0x1e4] ss:$8 sps:$4 sm:$0xff]  }
 0xe47   :  { %v6274_v1 = vrot.slane %v6254_v13, %v20027_v60  ;;  %v14636_v13 = vld [vmem:[#allocation9 + $0x1f0] ss:$8 sps:$4 sm:$0xff]  }
 0xe48   :  { %v6275_v30 = vadd.f32 %v6270_v49, %v6265_v15  ;;  %v6279_v63 = vadd.f32 %v6277_v18, %v6270_v49  ;;  %v14621_v15 = vld [vmem:[#allocation9 + $0x1a0] ss:$8 sps:$4 sm:$0xff]   ;;  %v14624_v18 = vld [vmem:[#allocation9 + $0x1b0] ss:$8 sps:$4 sm:$0xff]  }
 0xe49   :  { %v6276_v8 = vadd.f32 %v6274_v1, %v6266_v2  ;;  %v6280_v11 = vadd.f32 %v6278_v10, %v6274_v1  ;;  %v14627_v2 = vld [vmem:[#allocation9 + $0x1c0] ss:$8 sps:$4 sm:$0xff]   ;;  %v14630_v10 = vld [vmem:[#allocation9 + $0x1d0] ss:$8 sps:$4 sm:$0xff]   ;;  %v14638_v1 = vld [vmem:[#allocation9 + $0x1f4] ss:$8 sps:$4 sm:$0xff]  }
 0xe4a   :  { %vm6281_vm1 = vcmp.ge.f32.partialorder %v6275_v30, 0.0  ;;  %v6283_v34 = vmul.f32 0.2, %v6275_v30  ;;  %v6289_v25 = vmul.f32 0.2, %v6279_v63  ;;  %vm6287_vm11 = vcmp.ge.f32.partialorder %v6279_v63, 0.0 }
 0xe4b   :  { %vm6282_vm0 = vcmp.ge.f32.partialorder %v6276_v8, 0.0  ;;  %v6284_v41 = vmul.f32 0.2, %v6276_v8  ;;  %v6290_v45 = vmul.f32 0.2, %v6280_v11  ;;  %vm6288_vm12 = vcmp.ge.f32.partialorder %v6280_v11, 0.0 }
 0xe4c   :  { %v6285_v54 = vsel %vm6281_vm1, %v6275_v30, %v6283_v34  ;;  %v6291_v12 = vsel %vm6287_vm11, %v6279_v63, %v6289_v25  ;;  %v14633_v49 = vld [vmem:[#allocation9 + $0x1e0] ss:$8 sps:$4 sm:$0xff]   ;;  %v14641_v30 = vld [vmem:[#allocation9 + $0x4] ss:$8 sps:$4 sm:$0xff]  }
 0xe4d   :  { %v6286_v4 = vsel %vm6282_vm0, %v6276_v8, %v6284_v41  ;;  %v6293_v50 = vpack.c.bf16 %v6285_v54, %v6285_v54  ;;  %v6292_v26 = vsel %vm6288_vm12, %v6280_v11, %v6290_v45  ;;  %v7422_v24 = vpack.c.bf16 %v6291_v12, %v6291_v12  ;;  %v14642_v45 = vld [vmem:[#allocation9 + $0x10] ss:$8 sps:$4 sm:$0xff]   ;;  %v14650_v12 = vld [vmem:[#allocation9 + $0x34] ss:$8 sps:$4 sm:$0xff]  }
 0xe4e   :  { %v6294_v52 = vpack.c.bf16 %v6286_v4, %v6286_v4  ;;  %v17731_v36 = vpack.c.bf16 %v6292_v26, %v6292_v26  ;;  %v17755_v4 = vld [vmem:[#allocation9] ss:$8 sps:$4 sm:$0xff]  }
 0xe4f   :  { %v6300_v6 = vsel %vm19590_vm13, %v6293_v50, 0  ;;  %v17741_v9 = vsel %vm19590_vm13, %v7422_v24, 0 }
 0xe50   :  { %12443 = vmatprep.subr.msk.bf16.mxu1 %vm19590_vm13, %v6294_v52  ;;  %12445 = vmatprep.subr.msk.bf16.mxu0 %vm19590_vm13, %v6294_v52 }
 0xe51   :  { %6306 = vmatpush1.bf16.msra.mxu1 %v6300_v6  ;;  %6383 = vmatpush1.bf16.msra.mxu0 %v6300_v6 }
 0xe52   :  { %12511 = vmatprep.subr.msk.bf16.mxu0 %vm19590_vm13, %v6294_v52  ;;  %6618 = vmatprep.subr.bf16.mxu1 %v14593_v55 }
 0xe54   :  { %12446 = vmatmul.mubr.msk.bf16.vlgmr.msra.gmra.mrb[84].mxu0 %vm6295_vm3, %v20032_v58  ;;  %12444 = vmatmul.mubr.msk.bf16.vlgmr.msra.gmra.mrb[60].mxu1 %vm6295_vm3, %v20033_v47 }
 0xe55   :  { %6863 = vmatpush1.bf16.msra.mxu0 %v6300_v6  ;;  %6894 = vmatprep.mubr.bf16.mxu0 %v19860_v61 }
 0xe56   :  { %12545 = vmatprep.subr.msk.bf16.mxu0 %vm19590_vm13, %v6294_v52  ;;  %6619 = vmatpush1.bf16.msra.mxu1 %v14591_v3 }
 0xe57   :  { %6620 = vmatprep.subr.bf16.mxu1 %v14596_v23 }
 0xe5a   :  { %6621 = vmatpush1.bf16.msra.mxu1 %v14594_v29 }
 0xe5b   :  { %6622 = vmatprep.subr.bf16.mxu1 %v14599_v48 }
 0xe5c   :  { %12512 = vmatmul.mubr.msk.bf16.vlgmr.msra.gmra.mrb[88].mxu0 %vm6295_vm3, %v20034_v21 }
 0xe5d   :  { %7144 = vmatpush1.bf16.msra.mxu0 %v6300_v6  ;;  %7175 = vmatprep.mubr.bf16.mxu0 %v19860_v61 }
 0xe5e   :  { %12579 = vmatprep.subr.msk.bf16.mxu0 %vm19590_vm13, %v17731_v36  ;;  %6623 = vmatpush1.bf16.msra.mxu1 %v14597_v42 }
 0xe5f   :  { %6624 = vmatprep.subr.bf16.mxu1 %v14602_v33 }
 0xe62   :  { %6625 = vmatpush1.bf16.msra.mxu1 %v14600_v46 }
 0xe63   :  { %6626 = vmatprep.subr.bf16.mxu1 %v14605_v43 }
 0xe64   :  { %12546 = vmatmul.mubr.msk.bf16.vlgmr.msra.gmra.mrb[92].mxu0 %vm6295_vm3, %v20035_v56 }
 0xe65   :  { %7431 = vmatpush1.bf16.msra.mxu0 %v17741_v9  ;;  %7462 = vmatprep.mubr.bf16.mxu0 %v19860_v61 }
 0xe66   :  { %12581 = vmatprep.subr.msk.bf16.mxu0 %vm19590_vm13, %v17731_v36  ;;  %6627 = vmatpush1.bf16.msra.mxu1 %v14603_v27 }
 0xe67   :  { %6628 = vmatprep.subr.bf16.mxu1 %v14608_v57 }
 0xe6a   :  { %6629 = vmatpush1.bf16.msra.mxu1 %v14606_v16 }
 0xe6b   :  { %6630 = vmatprep.subr.bf16.mxu1 %v14611_v7 }
 0xe6c   :  { %12580 = vmatmul.mubr.msk.bf16.vlgmr.msra.gmra.mrb[96].mxu0 %vm6295_vm3, %v20033_v47 }
 0xe6d   :  { %7474 = vmatpush1.bf16.msra.mxu0 %v17741_v9  ;;  %7505 = vmatprep.mubr.bf16.mxu0 %v19860_v61 }
 0xe6e   :  { %6631 = vmatpush1.bf16.msra.mxu1 %v14609_v44  ;;  %7516 = vmatprep.subr.bf16.mxu0 %v14593_v55 }
 0xe6f   :  { %6632 = vmatprep.subr.bf16.mxu1 %v14614_v28 }
 0xe72   :  { %6633 = vmatpush1.bf16.msra.mxu1 %v14612_v37 }
 0xe73   :  { %6634 = vmatprep.subr.bf16.mxu1 %v14617_v31 }
 0xe74   :  { %12582 = vmatmul.mubr.msk.bf16.vlgmr.msra.gmra.mrb[100].mxu0 %vm6295_vm3, %v20032_v58 }
 0xe75   :  { %7517 = vmatpush1.bf16.msra.mxu0 %v14591_v3  ;;  %v17757_v3 = vld [vmem:[#allocation9 + $0x14] ss:$8 sps:$4 sm:$0xff]  }
 0xe76   :  { %6635 = vmatpush1.bf16.msra.mxu1 %v14615_v0  ;;  %7518 = vmatprep.subr.bf16.mxu0 %v14596_v23 }
 0xe77   :  { %6636 = vmatprep.subr.bf16.mxu1 %v14620_v17 }
 0xe79   :  { %7519 = vmatpush1.bf16.msra.mxu0 %v14594_v29  ;;  %v14647_v29 = vld [vmem:[#allocation9 + $0x24] ss:$8 sps:$4 sm:$0xff]  }
 0xe7a   :  { %6637 = vmatpush1.bf16.msra.mxu1 %v14618_v22  ;;  %7520 = vmatprep.subr.bf16.mxu0 %v14599_v48 }
 0xe7b   :  { %6638 = vmatprep.subr.bf16.mxu1 %v14623_v19 }
 0xe7d   :  { %7521 = vmatpush1.bf16.msra.mxu0 %v14597_v42  ;;  %v14645_v42 = vld [vmem:[#allocation9 + $0x20] ss:$8 sps:$4 sm:$0xff]  }
 0xe7e   :  { %6639 = vmatpush1.bf16.msra.mxu1 %v14621_v15  ;;  %7522 = vmatprep.subr.bf16.mxu0 %v14602_v33 }
 0xe7f   :  { %6640 = vmatprep.subr.bf16.mxu1 %v14626_v35 }
 0xe81   :  { %7523 = vmatpush1.bf16.msra.mxu0 %v14600_v46  ;;  %v14648_v46 = vld [vmem:[#allocation9 + $0x30] ss:$8 sps:$4 sm:$0xff]  }
 0xe82   :  { %6641 = vmatpush1.bf16.msra.mxu1 %v14624_v18  ;;  %7524 = vmatprep.subr.bf16.mxu0 %v14605_v43  ;;  %v14653_v43 = vld [vmem:[#allocation9 + $0x44] ss:$8 sps:$4 sm:$0xff]  }
 0xe83   :  { %6642 = vmatprep.subr.bf16.mxu1 %v14629_v40 }
 0xe85   :  { %7525 = vmatpush1.bf16.msra.mxu0 %v14603_v27 }
 0xe86   :  { %6643 = vmatpush1.bf16.msra.mxu1 %v14627_v2  ;;  %7526 = vmatprep.subr.bf16.mxu0 %v14608_v57 }
 0xe87   :  { %6644 = vmatprep.subr.bf16.mxu1 %v14632_v62 }
 0xe89   :  { %7527 = vmatpush1.bf16.msra.mxu0 %v14606_v16  ;;  %v14651_v16 = vld [vmem:[#allocation9 + $0x40] ss:$8 sps:$4 sm:$0xff]  }
 0xe8a   :  { %6645 = vmatpush1.bf16.msra.mxu1 %v14630_v10  ;;  %7528 = vmatprep.subr.bf16.mxu0 %v14611_v7 }
 0xe8b   :  { %6646 = vmatprep.subr.bf16.mxu1 %v14635_v32 }
 0xe8d   :  { %7529 = vmatpush1.bf16.msra.mxu0 %v14609_v44  ;;  %v14656_v44 = vld [vmem:[#allocation9 + $0x54] ss:$8 sps:$4 sm:$0xff]  }
 0xe8e   :  { %6647 = vmatpush1.bf16.msra.mxu1 %v14633_v49  ;;  %7530 = vmatprep.subr.bf16.mxu0 %v14614_v28  ;;  %v14654_v28 = vld [vmem:[#allocation9 + $0x50] ss:$8 sps:$4 sm:$0xff]  }
 0xe8f   :  { %6648 = vmatprep.subr.bf16.mxu1 %v14638_v1 }
 0xe91   :  { %7531 = vmatpush1.bf16.msra.mxu0 %v14612_v37  ;;  %v14659_v37 = vld [vmem:[#allocation9 + $0x64] ss:$8 sps:$4 sm:$0xff]  }
 0xe92   :  { %7532 = vmatprep.subr.bf16.mxu0 %v14617_v31  ;;  %6649 = vmatpush1.bf16.msra.mxu1 %v14636_v13 }
 0xe93   :  { %6819 = vmatprep.subr.bf16.mxu1 %v14641_v30 }
 0xe95   :  { %7533 = vmatpush1.bf16.msra.mxu0 %v14615_v0 }
 0xe96   :  { %7534 = vmatprep.subr.bf16.mxu0 %v14620_v17 }
 0xe99   :  { %7535 = vmatpush1.bf16.msra.mxu0 %v14618_v22  ;;  %v14657_v22 = vld [vmem:[#allocation9 + $0x60] ss:$8 sps:$4 sm:$0xff]  }
 0xe9a   :  { %7536 = vmatprep.subr.bf16.mxu0 %v14623_v19 }
 0xe9d   :  { %7537 = vmatpush1.bf16.msra.mxu0 %v14621_v15  ;;  %v14662_v15 = vld [vmem:[#allocation9 + $0x74] ss:$8 sps:$4 sm:$0xff]  }
 0xe9e   :  { %7538 = vmatprep.subr.bf16.mxu0 %v14626_v35  ;;  %v14660_v35 = vld [vmem:[#allocation9 + $0x70] ss:$8 sps:$4 sm:$0xff]  }
 0xea1   :  { %7539 = vmatpush1.bf16.msra.mxu0 %v14624_v18  ;;  %v14665_v18 = vld [vmem:[#allocation9 + $0x84] ss:$8 sps:$4 sm:$0xff]  }
 0xea2   :  { %7540 = vmatprep.subr.bf16.mxu0 %v14629_v40 }
 0xea5   :  { %7541 = vmatpush1.bf16.msra.mxu0 %v14627_v2 }
 0xea6   :  { %7542 = vmatprep.subr.bf16.mxu0 %v14632_v62 }
 0xea9   :  { %7543 = vmatpush1.bf16.msra.mxu0 %v14630_v10 }
 0xeaa   :  { %7544 = vmatprep.subr.bf16.mxu0 %v14635_v32  ;;  %v14663_v32 = vld [vmem:[#allocation9 + $0x80] ss:$8 sps:$4 sm:$0xff]  }
 0xead   :  { %7545 = vmatpush1.bf16.msra.mxu0 %v14633_v49 }
 0xeae   :  { %7546 = vmatprep.subr.bf16.mxu0 %v14638_v1  ;;  %v14668_v1 = vld [vmem:[#allocation9 + $0x94] ss:$8 sps:$4 sm:$0xff]  }
 0xeb1   :  { %7547 = vmatpush1.bf16.msra.mxu0 %v14636_v13 }
 0xeb2   :  { %7557 = vmatprep.subr.bf16.mxu0 %v14641_v30 }
 0xf27   :  { %v6416_v63 = vpop.f32.mrb[84].mxu0  ;;  %v17753_v8 = vpop.f32.mrb[60].mxu1 }
 0xf28   :  { %v6418_v11 = vpop.f32.mrb[85].mxu0  ;;  %v6341_v34 = vpop.f32.mrb[61].mxu1  ;;  %v6423_v55 = vpack.c.bf16 %v6416_v63, %v6416_v63  ;;  %v14666_v63 = vld [vmem:[#allocation9 + $0x90] ss:$8 sps:$4 sm:$0xff]  }
 0xf29   :  { %v6424_v41 = vpack.c.bf16 %v6418_v11, %v6418_v11  ;;  %v6420_v54 = vpop.f32.mrb[86].mxu0  ;;  %v6347_v50 = vpack.c.bf16 %v6341_v34, %v6341_v34  ;;  %v6343_v52 = vpop.f32.mrb[62].mxu1  ;;  %v14671_v11 = vld [vmem:[#allocation9 + $0xa4] ss:$8 sps:$4 sm:$0xff]   ;;  %v14669_v34 = vld [vmem:[#allocation9 + $0xa0] ss:$8 sps:$4 sm:$0xff]  }
 0xf2a   :  { %v6421_v6 = vpop.f32.mrb[87].mxu0  ;;  %v6344_v23 = vpop.f32.mrb[63].mxu1  ;;  %v14672_v54 = vld [vmem:[#allocation9 + $0xb0] ss:$8 sps:$4 sm:$0xff]   ;;  %v14680_v52 = vld [vmem:[#allocation9 + $0xd4] ss:$8 sps:$4 sm:$0xff]  }
 0xf2b   :  { %6650 = vmatprep.mubr.bf16.mxu1 %v6424_v41  ;;  %v14674_v41 = vld [vmem:[#allocation9 + $0xb4] ss:$8 sps:$4 sm:$0xff]   ;;  %v14683_v6 = vld [vmem:[#allocation9 + $0xe4] ss:$8 sps:$4 sm:$0xff]  }
 0xf2c   :  { %6651 = vmatmul.mubr.bf16.vlgmr.msra.gmra.mrb[64].mxu1 %v6423_v55  ;;  %v14678_v55 = vld [vmem:[#allocation9 + $0xd0] ss:$8 sps:$4 sm:$0xff]   ;;  %v14686_v23 = vld [vmem:[#allocation9 + $0xf4] ss:$8 sps:$4 sm:$0xff]  }
 0xf2d   :  { %6820 = vmatpush1.bf16.msra.mxu1 %v17755_v4  ;;  %6851 = vmatprep.mubr.bf16.mxu1 %v6347_v50  ;;  %v14677_v50 = vld [vmem:[#allocation9 + $0xc4] ss:$8 sps:$4 sm:$0xff]  }
 0xf2e   :  { %6821 = vmatprep.subr.bf16.mxu1 %v17757_v3 }
 0xf2f   :  { %v17761_v48 = vpop.f32.mrb[88].mxu0 }
 0xf30   :  { %v17763_v25 = vpop.f32.mrb[89].mxu0 }
 0xf31   :  { %6822 = vmatpush1.bf16.msra.mxu1 %v14642_v45  ;;  %v6900_v26 = vpop.f32.mrb[90].mxu0 }
 0xf32   :  { %6823 = vmatprep.subr.bf16.mxu1 %v14647_v29  ;;  %v6901_v33 = vpop.f32.mrb[91].mxu0  ;;  %v6346_v26 = vpack.c.bf16 %v17753_v8, %v17753_v8  ;;  %v17788_v8 = vld [vmem:[#allocation9 + $0x224] ss:$8 sps:$4 sm:$0xff]  }
 0xf33   :  { %v17780_v33 = vld [vmem:[#allocation9 + $0x214] ss:$8 sps:$4 sm:$0xff]  }
 0xf35   :  { %6824 = vmatpush1.bf16.msra.mxu1 %v14645_v42 }
 0xf36   :  { %6825 = vmatprep.subr.bf16.mxu1 %v14650_v12 }
 0xf37   :  { %v17765_v24 = vpop.f32.mrb[92].mxu0 }
 0xf38   :  { %v17767_v27 = vpop.f32.mrb[93].mxu0 }
 0xf39   :  { %6826 = vmatpush1.bf16.msra.mxu1 %v14648_v46  ;;  %v7181_v57 = vpop.f32.mrb[94].mxu0 }
 0xf3a   :  { %6827 = vmatprep.subr.bf16.mxu1 %v14653_v43  ;;  %v7182_v7 = vpop.f32.mrb[95].mxu0  ;;  %v17797_v57 = vld [vmem:[#allocation9 + $0x230] ss:$8 sps:$4 sm:$0xff]  }
 0xf3b   :  { %v17803_v7 = vld [vmem:[#allocation9 + $0x240] ss:$8 sps:$4 sm:$0xff]  }
 0xf3d   :  { %6828 = vmatpush1.bf16.msra.mxu1 %v14651_v16 }
 0xf3e   :  { %6829 = vmatprep.subr.bf16.mxu1 %v14656_v44 }
 0xf3f   :  { %v17769_v31 = vpop.f32.mrb[96].mxu0 }
 0xf40   :  { %v7466_v0 = vpop.f32.mrb[97].mxu0 }
 0xf41   :  { %6830 = vmatpush1.bf16.msra.mxu1 %v14654_v28  ;;  %v7468_v17 = vpop.f32.mrb[98].mxu0  ;;  %v7472_v30 = vpack.c.bf16 %v7466_v0, %v7466_v0  ;;  %v17815_v0 = vld [vmem:[#allocation9 + $0x260] ss:$8 sps:$4 sm:$0xff]  }
 0xf42   :  { %6831 = vmatprep.subr.bf16.mxu1 %v14659_v37  ;;  %v7469_v19 = vpop.f32.mrb[99].mxu0  ;;  %v17818_v17 = vld [vmem:[#allocation9 + $0x274] ss:$8 sps:$4 sm:$0xff]  }
 0xf43   :  { %v17824_v19 = vld [vmem:[#allocation9 + $0x284] ss:$8 sps:$4 sm:$0xff]  }
 0xf45   :  { %6832 = vmatpush1.bf16.msra.mxu1 %v14657_v22 }
 0xf46   :  { %6833 = vmatprep.subr.bf16.mxu1 %v14662_v15 }
 0xf47   :  { %v7507_v40 = vpop.f32.mrb[100].mxu0 }
 0xf48   :  { %v7509_v2 = vpop.f32.mrb[101].mxu0  ;;  %v7514_v49 = vpack.c.bf16 %v7507_v40, %v7507_v40  ;;  %v17837_v40 = vld [vmem:[#allocation9 + $0x290] ss:$8 sps:$4 sm:$0xff]  }
 0xf49   :  { %6834 = vmatpush1.bf16.msra.mxu1 %v14660_v35  ;;  %v7515_v62 = vpack.c.bf16 %v7509_v2, %v7509_v2  ;;  %v7511_v10 = vpop.f32.mrb[102].mxu0  ;;  %v17841_v2 = vld [vmem:[#allocation9 + $0x2a4] ss:$8 sps:$4 sm:$0xff]  }
 0xf4a   :  { %6835 = vmatprep.subr.bf16.mxu1 %v14665_v18  ;;  %v7512_v13 = vpop.f32.mrb[103].mxu0  ;;  %v17854_v10 = vld [vmem:[#allocation9 + $0x2b0] ss:$8 sps:$4 sm:$0xff]  }
 0xf4b   :  { %7548 = vmatprep.mubr.bf16.mxu0 %v7515_v62  ;;  %v17849_v62 = vld [vmem:[#allocation9 + $0x2b4] ss:$8 sps:$4 sm:$0xff]  }
 0xf4c   :  { %7549 = vmatmul.mubr.bf16.vlgmr.msra.gmra.mrb[104].mxu0 %v7514_v49  ;;  %v17862_v49 = vld [vmem:[#allocation9 + $0x2c0] ss:$8 sps:$4 sm:$0xff]   ;;  %v17866_v13 = vld [vmem:[#allocation9 + $0x2d4] ss:$8 sps:$4 sm:$0xff]  }
 0xf4d   :  { %6836 = vmatpush1.bf16.msra.mxu1 %v14663_v32  ;;  %7558 = vmatpush1.bf16.msra.mxu0 %v17755_v4  ;;  %v14675_v4 = vld [vmem:[#allocation9 + $0xc0] ss:$8 sps:$4 sm:$0xff]  }
 0xf4e   :  { %7589 = vmatprep.mubr.bf16.mxu0 %v7472_v30  ;;  %6837 = vmatprep.subr.bf16.mxu1 %v14668_v1  ;;  %v17874_v30 = vld [vmem:[#allocation9 + $0x2e4] ss:$8 sps:$4 sm:$0xff]  }
 0xf4f   :  { %7559 = vmatprep.subr.bf16.mxu0 %v17757_v3  ;;  %v14681_v3 = vld [vmem:[#allocation9 + $0xe0] ss:$8 sps:$4 sm:$0xff]  }
 0xf51   :  { %6838 = vmatpush1.bf16.msra.mxu1 %v14666_v63  ;;  %7560 = vmatpush1.bf16.msra.mxu0 %v14642_v45  ;;  %v14684_v45 = vld [vmem:[#allocation9 + $0xf0] ss:$8 sps:$4 sm:$0xff]  }
 0xf52   :  { %6839 = vmatprep.subr.bf16.mxu1 %v14671_v11  ;;  %7561 = vmatprep.subr.bf16.mxu0 %v14647_v29  ;;  %v17773_v29 = vld [vmem:[#allocation9 + $0x204] ss:$8 sps:$4 sm:$0xff]  }
 0xf55   :  { %6840 = vmatpush1.bf16.msra.mxu1 %v14669_v34  ;;  %7562 = vmatpush1.bf16.msra.mxu0 %v14645_v42  ;;  %v17777_v42 = vld [vmem:[#allocation9 + $0x200] ss:$8 sps:$4 sm:$0xff]  }
 0xf56   :  { %6841 = vmatprep.subr.bf16.mxu1 %v14674_v41  ;;  %7563 = vmatprep.subr.bf16.mxu0 %v14650_v12  ;;  %v6904_v12 = vpack.c.bf16 %v17763_v25, %v17763_v25  ;;  %v17794_v25 = vld [vmem:[#allocation9 + $0x234] ss:$8 sps:$4 sm:$0xff]  }
 0xf59   :  { %6842 = vmatpush1.bf16.msra.mxu1 %v14672_v54  ;;  %7564 = vmatpush1.bf16.msra.mxu0 %v14648_v46  ;;  %v17785_v46 = vld [vmem:[#allocation9 + $0x210] ss:$8 sps:$4 sm:$0xff]  }
 0xf5a   :  { %6843 = vmatprep.subr.bf16.mxu1 %v14677_v50  ;;  %7565 = vmatprep.subr.bf16.mxu0 %v14653_v43  ;;  %v17791_v43 = vld [vmem:[#allocation9 + $0x220] ss:$8 sps:$4 sm:$0xff]  }
 0xf5d   :  { %6844 = vmatpush1.bf16.msra.mxu1 %v14675_v4  ;;  %7566 = vmatpush1.bf16.msra.mxu0 %v14651_v16  ;;  %v17800_v16 = vld [vmem:[#allocation9 + $0x244] ss:$8 sps:$4 sm:$0xff]  }
 0xf5e   :  { %6845 = vmatprep.subr.bf16.mxu1 %v14680_v52  ;;  %7567 = vmatprep.subr.bf16.mxu0 %v14656_v44  ;;  %v17806_v44 = vld [vmem:[#allocation9 + $0x254] ss:$8 sps:$4 sm:$0xff]  }
 0xf61   :  { %6846 = vmatpush1.bf16.msra.mxu1 %v14678_v55  ;;  %7568 = vmatpush1.bf16.msra.mxu0 %v14654_v28  ;;  %v17809_v28 = vld [vmem:[#allocation9 + $0x250] ss:$8 sps:$4 sm:$0xff]  }
 0xf62   :  { %6847 = vmatprep.subr.bf16.mxu1 %v14683_v6  ;;  %7569 = vmatprep.subr.bf16.mxu0 %v14659_v37  ;;  %v17812_v37 = vld [vmem:[#allocation9 + $0x264] ss:$8 sps:$4 sm:$0xff]  }
 0xf65   :  { %6848 = vmatpush1.bf16.msra.mxu1 %v14681_v3  ;;  %7570 = vmatpush1.bf16.msra.mxu0 %v14657_v22  ;;  %v17821_v22 = vld [vmem:[#allocation9 + $0x270] ss:$8 sps:$4 sm:$0xff]  }
 0xf66   :  { %6849 = vmatprep.subr.bf16.mxu1 %v14686_v23  ;;  %7571 = vmatprep.subr.bf16.mxu0 %v14662_v15  ;;  %v17827_v15 = vld [vmem:[#allocation9 + $0x280] ss:$8 sps:$4 sm:$0xff]  }
 0xf69   :  { %6850 = vmatpush1.bf16.msra.mxu1 %v14684_v45  ;;  %7572 = vmatpush1.bf16.msra.mxu0 %v14660_v35  ;;  %v17830_v35 = vld [vmem:[#allocation9 + $0x294] ss:$8 sps:$4 sm:$0xff]  }
 0xf6a   :  { %7098 = vmatprep.subr.bf16.mxu1 %v17773_v29  ;;  %7573 = vmatprep.subr.bf16.mxu0 %v14665_v18  ;;  %v7471_v18 = vpack.c.bf16 %v17769_v31, %v17769_v31  ;;  %v17846_v31 = vld [vmem:[#allocation9 + $0x2a0] ss:$8 sps:$4 sm:$0xff]  }
 0xf6c   :  { %6852 = vmatmul.mubr.bf16.vlgmr.msra.gmra.mrb[64].mxu1 %v6346_v26  ;;  %v17938_v26 = vld [vmem:[#allocation9 + $0x350] ss:$8 sps:$4 sm:$0xff]  }
 0xf6d   :  { %7099 = vmatpush1.bf16.msra.mxu1 %v17777_v42  ;;  %7130 = vmatprep.mubr.bf16.mxu1 %v6904_v12  ;;  %v17950_v12 = vld [vmem:[#allocation9 + $0x374] ss:$8 sps:$4 sm:$0xff]  }
 0xf6e   :  { %7574 = vmatpush1.bf16.msra.mxu0 %v14663_v32  ;;  %7100 = vmatprep.subr.bf16.mxu1 %v17780_v33  ;;  %v17858_v32 = vld [vmem:[#allocation9 + $0x2c4] ss:$8 sps:$4 sm:$0xff]  }
 0xf6f   :  { %7575 = vmatprep.subr.bf16.mxu0 %v14668_v1  ;;  %v17870_v1 = vld [vmem:[#allocation9 + $0x2d0] ss:$8 sps:$4 sm:$0xff]  }
 0xf71   :  { %7101 = vmatpush1.bf16.msra.mxu1 %v17785_v46 }
 0xf72   :  { %7576 = vmatpush1.bf16.msra.mxu0 %v14666_v63  ;;  %7102 = vmatprep.subr.bf16.mxu1 %v17788_v8  ;;  %v17878_v63 = vld [vmem:[#allocation9 + $0x2e0] ss:$8 sps:$4 sm:$0xff]  }
 0xf73   :  { %7577 = vmatprep.subr.bf16.mxu0 %v14671_v11  ;;  %v17882_v11 = vld [vmem:[#allocation9 + $0x2f4] ss:$8 sps:$4 sm:$0xff]  }
 0xf75   :  { %7103 = vmatpush1.bf16.msra.mxu1 %v17791_v43 }
 0xf76   :  { %7578 = vmatpush1.bf16.msra.mxu0 %v14669_v34  ;;  %7104 = vmatprep.subr.bf16.mxu1 %v17794_v25  ;;  %v17886_v34 = vld [vmem:[#allocation9 + $0x2f0] ss:$8 sps:$4 sm:$0xff]  }
 0xf77   :  { %7579 = vmatprep.subr.bf16.mxu0 %v14674_v41  ;;  %v17890_v41 = vld [vmem:[#allocation9 + $0x304] ss:$8 sps:$4 sm:$0xff]  }
 0xf79   :  { %7105 = vmatpush1.bf16.msra.mxu1 %v17797_v57 }
 0xf7a   :  { %7580 = vmatpush1.bf16.msra.mxu0 %v14672_v54  ;;  %7106 = vmatprep.subr.bf16.mxu1 %v17800_v16  ;;  %v17894_v54 = vld [vmem:[#allocation9 + $0x300] ss:$8 sps:$4 sm:$0xff]  }
 0xf7b   :  { %7581 = vmatprep.subr.bf16.mxu0 %v14677_v50  ;;  %v6903_v50 = vpack.c.bf16 %v17761_v48, %v17761_v48  ;;  %v17910_v48 = vld [vmem:[#allocation9 + $0x324] ss:$8 sps:$4 sm:$0xff]  }
 0xf7d   :  { %7107 = vmatpush1.bf16.msra.mxu1 %v17803_v7 }
 0xf7e   :  { %7582 = vmatpush1.bf16.msra.mxu0 %v14675_v4  ;;  %7108 = vmatprep.subr.bf16.mxu1 %v17806_v44  ;;  %v17900_v4 = vld [vmem:[#allocation9 + $0x314] ss:$8 sps:$4 sm:$0xff]  }
 0xf7f   :  { %7583 = vmatprep.subr.bf16.mxu0 %v14680_v52  ;;  %v7185_v52 = vpack.c.bf16 %v17767_v27, %v17767_v27  ;;  %v17918_v27 = vld [vmem:[#allocation9 + $0x334] ss:$8 sps:$4 sm:$0xff]  }
 0xf81   :  { %7109 = vmatpush1.bf16.msra.mxu1 %v17809_v28 }
 0xf82   :  { %7584 = vmatpush1.bf16.msra.mxu0 %v14678_v55  ;;  %7110 = vmatprep.subr.bf16.mxu1 %v17812_v37  ;;  %v17906_v55 = vld [vmem:[#allocation9 + $0x310] ss:$8 sps:$4 sm:$0xff]  }
 0xf83   :  { %7585 = vmatprep.subr.bf16.mxu0 %v14683_v6  ;;  %v17914_v6 = vld [vmem:[#allocation9 + $0x320] ss:$8 sps:$4 sm:$0xff]  }
 0xf85   :  { %7111 = vmatpush1.bf16.msra.mxu1 %v17815_v0 }
 0xf86   :  { %7586 = vmatpush1.bf16.msra.mxu0 %v14681_v3  ;;  %7112 = vmatprep.subr.bf16.mxu1 %v17818_v17  ;;  %v17922_v3 = vld [vmem:[#allocation9 + $0x330] ss:$8 sps:$4 sm:$0xff]  }
 0xf87   :  { %7587 = vmatprep.subr.bf16.mxu0 %v14686_v23  ;;  %v17926_v23 = vld [vmem:[#allocation9 + $0x344] ss:$8 sps:$4 sm:$0xff]  }
 0xf89   :  { %7113 = vmatpush1.bf16.msra.mxu1 %v17821_v22 }
 0xf8a   :  { %7588 = vmatpush1.bf16.msra.mxu0 %v14684_v45  ;;  %7114 = vmatprep.subr.bf16.mxu1 %v17824_v19  ;;  %v17930_v45 = vld [vmem:[#allocation9 + $0x340] ss:$8 sps:$4 sm:$0xff]  }
 0xf8b   :  { %12583 = vmatprep.subr.msk.bf16.mxu0 %vm19590_vm13, %v17731_v36 }
 0xf8d   :  { %7590 = vmatmul.mubr.bf16.vlgmr.msra.gmra.mrb[104].mxu0 %v7471_v18  ;;  %7115 = vmatpush1.bf16.msra.mxu1 %v17827_v15  ;;  %v14780_v18 = vld [vmem:[#allocation9 + $0x3f0] ss:$8 sps:$4 sm:$0xff]  }
 0xf8e   :  { %7599 = vmatpush1.bf16.msra.mxu0 %v17741_v9  ;;  %7116 = vmatprep.subr.bf16.mxu1 %v17830_v35 }
 0xf8f   :  { %7630 = vmatprep.mubr.bf16.mxu0 %v19860_v61  ;;  %7641 = vmatprep.subr.bf16.mxu0 %v17773_v29  ;;  %v17934_v29 = vld [vmem:[#allocation9 + $0x354] ss:$8 sps:$4 sm:$0xff]  }
 0xf91   :  { %7117 = vmatpush1.bf16.msra.mxu1 %v17837_v40 }
 0xf92   :  { %7118 = vmatprep.subr.bf16.mxu1 %v17841_v2 }
 0xf95   :  { %12584 = vmatmul.mubr.msk.bf16.vlgmr.msra.gmra.mrb[108].mxu0 %vm6295_vm3, %v20034_v21  ;;  %7119 = vmatpush1.bf16.msra.mxu1 %v17846_v31 }
 0xf96   :  { %7642 = vmatpush1.bf16.msra.mxu0 %v17777_v42  ;;  %7120 = vmatprep.subr.bf16.mxu1 %v17849_v62  ;;  %v17942_v42 = vld [vmem:[#allocation9 + $0x364] ss:$8 sps:$4 sm:$0xff]  }
 0xf97   :  { %7643 = vmatprep.subr.bf16.mxu0 %v17780_v33  ;;  %v17946_v33 = vld [vmem:[#allocation9 + $0x360] ss:$8 sps:$4 sm:$0xff]  }
 0xf99   :  { %7121 = vmatpush1.bf16.msra.mxu1 %v17854_v10 }
 0xf9a   :  { %7644 = vmatpush1.bf16.msra.mxu0 %v17785_v46  ;;  %7122 = vmatprep.subr.bf16.mxu1 %v17858_v32  ;;  %v17954_v46 = vld [vmem:[#allocation9 + $0x370] ss:$8 sps:$4 sm:$0xff]  }
 0xf9b   :  { %7645 = vmatprep.subr.bf16.mxu0 %v17788_v8  ;;  %v17958_v8 = vld [vmem:[#allocation9 + $0x384] ss:$8 sps:$4 sm:$0xff]  }
 0xf9d   :  { %7123 = vmatpush1.bf16.msra.mxu1 %v17862_v49 }
 0xf9e   :  { %7646 = vmatpush1.bf16.msra.mxu0 %v17791_v43  ;;  %7124 = vmatprep.subr.bf16.mxu1 %v17866_v13  ;;  %v17962_v43 = vld [vmem:[#allocation9 + $0x380] ss:$8 sps:$4 sm:$0xff]  }
 0xf9f   :  { %7647 = vmatprep.subr.bf16.mxu0 %v17794_v25  ;;  %v17966_v25 = vld [vmem:[#allocation9 + $0x394] ss:$8 sps:$4 sm:$0xff]  }
 0xfa1   :  { %7125 = vmatpush1.bf16.msra.mxu1 %v17870_v1 }
 0xfa2   :  { %7648 = vmatpush1.bf16.msra.mxu0 %v17797_v57  ;;  %7126 = vmatprep.subr.bf16.mxu1 %v17874_v30  ;;  %v14762_v57 = vld [vmem:[#allocation9 + $0x390] ss:$8 sps:$4 sm:$0xff]  }
 0xfa3   :  { %7649 = vmatprep.subr.bf16.mxu0 %v17800_v16  ;;  %v14767_v16 = vld [vmem:[#allocation9 + $0x3a4] ss:$8 sps:$4 sm:$0xff]  }
 0xfa5   :  { %7127 = vmatpush1.bf16.msra.mxu1 %v17878_v63 }
 0xfa6   :  { %7650 = vmatpush1.bf16.msra.mxu0 %v17803_v7  ;;  %7128 = vmatprep.subr.bf16.mxu1 %v17882_v11  ;;  %v14765_v7 = vld [vmem:[#allocation9 + $0x3a0] ss:$8 sps:$4 sm:$0xff]  }
 0xfa7   :  { %7651 = vmatprep.subr.bf16.mxu0 %v17806_v44  ;;  %v14770_v44 = vld [vmem:[#allocation9 + $0x3b4] ss:$8 sps:$4 sm:$0xff]  }
 0xfa9   :  { %7129 = vmatpush1.bf16.msra.mxu1 %v17886_v34 }
 0xfaa   :  { %7652 = vmatpush1.bf16.msra.mxu0 %v17809_v28  ;;  %7379 = vmatprep.subr.bf16.mxu1 %v17890_v41  ;;  %v14768_v28 = vld [vmem:[#allocation9 + $0x3b0] ss:$8 sps:$4 sm:$0xff]  }
 0xfab   :  { %7653 = vmatprep.subr.bf16.mxu0 %v17812_v37  ;;  %v14773_v37 = vld [vmem:[#allocation9 + $0x3c4] ss:$8 sps:$4 sm:$0xff]  }
 0xfac   :  { %7131 = vmatmul.mubr.bf16.vlgmr.msra.gmra.mrb[64].mxu1 %v6903_v50 }
 0xfad   :  { %7380 = vmatpush1.bf16.msra.mxu1 %v17894_v54  ;;  %7411 = vmatprep.mubr.bf16.mxu1 %v7185_v52 }
 0xfae   :  { %7654 = vmatpush1.bf16.msra.mxu0 %v17815_v0  ;;  %7381 = vmatprep.subr.bf16.mxu1 %v17900_v4  ;;  %v14771_v0 = vld [vmem:[#allocation9 + $0x3c0] ss:$8 sps:$4 sm:$0xff]  }
 0xfaf   :  { %7655 = vmatprep.subr.bf16.mxu0 %v17818_v17  ;;  %v14776_v17 = vld [vmem:[#allocation9 + $0x3d4] ss:$8 sps:$4 sm:$0xff]  }
 0xfb1   :  { %7382 = vmatpush1.bf16.msra.mxu1 %v17906_v55 }
 0xfb2   :  { %7656 = vmatpush1.bf16.msra.mxu0 %v17821_v22  ;;  %7383 = vmatprep.subr.bf16.mxu1 %v17910_v48  ;;  %v14774_v22 = vld [vmem:[#allocation9 + $0x3d0] ss:$8 sps:$4 sm:$0xff]  }
 0xfb3   :  { %7657 = vmatprep.subr.bf16.mxu0 %v17824_v19  ;;  %v14779_v19 = vld [vmem:[#allocation9 + $0x3e4] ss:$8 sps:$4 sm:$0xff]  }
 0xfb5   :  { %7384 = vmatpush1.bf16.msra.mxu1 %v17914_v6 }
 0xfb6   :  { %7658 = vmatpush1.bf16.msra.mxu0 %v17827_v15  ;;  %7385 = vmatprep.subr.bf16.mxu1 %v17918_v27  ;;  %v14777_v15 = vld [vmem:[#allocation9 + $0x3e0] ss:$8 sps:$4 sm:$0xff]  }
 0xfb7   :  { %7659 = vmatprep.subr.bf16.mxu0 %v17830_v35  ;;  %v14782_v35 = vld [vmem:[#allocation9 + $0x3f4] ss:$8 sps:$4 sm:$0xff]  }
 0xfb9   :  { %7386 = vmatpush1.bf16.msra.mxu1 %v17922_v3 }
 0xfba   :  { %7660 = vmatpush1.bf16.msra.mxu0 %v17837_v40  ;;  %7387 = vmatprep.subr.bf16.mxu1 %v17926_v23 }
 0xfbb   :  { %7661 = vmatprep.subr.bf16.mxu0 %v17841_v2 }
 0xfbd   :  { %7388 = vmatpush1.bf16.msra.mxu1 %v17930_v45 }
 0xfbe   :  { %7662 = vmatpush1.bf16.msra.mxu0 %v17846_v31  ;;  %7389 = vmatprep.subr.bf16.mxu1 %v17934_v29 }
 0xfbf   :  { %7663 = vmatprep.subr.bf16.mxu0 %v17849_v62 }
 0xfc1   :  { %7390 = vmatpush1.bf16.msra.mxu1 %v17938_v26 }
 0xfc2   :  { %7664 = vmatpush1.bf16.msra.mxu0 %v17854_v10  ;;  %7391 = vmatprep.subr.bf16.mxu1 %v17942_v42 }
 0xfc3   :  { %7665 = vmatprep.subr.bf16.mxu0 %v17858_v32 }
 0xfc5   :  { %7392 = vmatpush1.bf16.msra.mxu1 %v17946_v33 }
 0xfc6   :  { %7666 = vmatpush1.bf16.msra.mxu0 %v17862_v49  ;;  %7393 = vmatprep.subr.bf16.mxu1 %v17950_v12 }
 0xfc7   :  { %7667 = vmatprep.subr.bf16.mxu0 %v17866_v13 }
 0xfc9   :  { %7394 = vmatpush1.bf16.msra.mxu1 %v17954_v46 }
 0xfca   :  { %7668 = vmatpush1.bf16.msra.mxu0 %v17870_v1  ;;  %7395 = vmatprep.subr.bf16.mxu1 %v17958_v8  ;;  %v20038_v1 = vld [vmem:[#allocation30_spill] sm:$0xff] }
 0xfcb   :  { %7669 = vmatprep.subr.bf16.mxu0 %v17874_v30  ;;  %v7954_v30 = vand.u32 63, %v20038_v1 }
 0xfcd   :  { %7396 = vmatpush1.bf16.msra.mxu1 %v17962_v43  ;;  %vm18014_vm4 = vcmp.eq.s32.totalorder %v7954_v30, %v20013_v51 }
 0xfce   :  { %7670 = vmatpush1.bf16.msra.mxu0 %v17878_v63  ;;  %7397 = vmatprep.subr.bf16.mxu1 %v17966_v25  ;;  %v20039_v63 = vld [vmem:[#allocation31_spill] sm:$0xff] }
 0xfcf   :  { %7671 = vmatprep.subr.bf16.mxu0 %v17882_v11  ;;  %v7961_v11 = vand.u32 63, %v20039_v63 }
 0xfd1   :  { %7398 = vmatpush1.bf16.msra.mxu1 %v14762_v57  ;;  %vm18019_vm14 = vcmp.eq.s32.totalorder %v7961_v11, %v20013_v51 }
 0xfd2   :  { %7672 = vmatpush1.bf16.msra.mxu0 %v17886_v34  ;;  %7399 = vmatprep.subr.bf16.mxu1 %v14767_v16  ;;  %v7842_v34 = vand.u32 63, %v20014_v5  ;;  %vm19591_vm10 = vmpackc.low %vm18019_vm14, %vm18014_vm4 }
 0xfd3   :  { %12585 = vmatprep.subr.msk.bf16.mxu0 %vm19590_vm13, %v17731_v36  ;;  %v7184_v36 = vpack.c.bf16 %v17765_v24, %v17765_v24 }
 0xfd4   :  { %vm18024_vm15 = vcmp.eq.s32.totalorder %v7842_v34, %v20013_v51  ;;  %v20082_v34 = vld [vmem:[#allocation42_spill] sm:$0xff] }
 0xfd5   :  { %7400 = vmatpush1.bf16.msra.mxu1 %v14765_v7 }
 0xfd6   :  { %7401 = vmatprep.subr.bf16.mxu1 %v14770_v44 }
 0xfd9   :  { %7402 = vmatpush1.bf16.msra.mxu1 %v14768_v28 }
 0xfda   :  { %7403 = vmatprep.subr.bf16.mxu1 %v14773_v37 }
 0xfdd   :  { %7404 = vmatpush1.bf16.msra.mxu1 %v14771_v0 }
 0xfde   :  { %7405 = vmatprep.subr.bf16.mxu1 %v14776_v17 }
 0xfe1   :  { %7406 = vmatpush1.bf16.msra.mxu1 %v14774_v22 }
 0xfe2   :  { %7407 = vmatprep.subr.bf16.mxu1 %v14779_v19 }
 0xfe5   :  { %7408 = vmatpush1.bf16.msra.mxu1 %v14777_v15 }
 0xfe6   :  { %7409 = vmatprep.subr.bf16.mxu1 %v14782_v35 }
 0xfe9   :  { %7410 = vmatpush1.bf16.msra.mxu1 %v14780_v18 }
 0xfea   :  { %13778 = vmatprep.subr.msk.bf16.mxu1 %vm19591_vm10, %v19789_v14 }
 0xfec   :  { %7412 = vmatmul.mubr.bf16.vlgmr.msra.gmra.mrb[64].mxu1 %v7184_v36 }
0x1068   :  { %v7632_v40 = vpop.f32.mrb[108].mxu0 }
0x1069   :  { %v7634_v2 = vpop.f32.mrb[109].mxu0  ;;  %v7639_v10 = vpack.c.bf16 %v7632_v40, %v7632_v40  ;;  %v20074_v40 = vmov 0 }
0x106a   :  { %v7640_v31 = vpack.c.bf16 %v7634_v2, %v7634_v2  ;;  %v7636_v62 = vpop.f32.mrb[110].mxu0  ;;  %v20076_v2 = vmov 0 }
0x106b   :  { %v7637_v32 = vpop.f32.mrb[111].mxu0  ;;  %v20080_v62 = vmov 0 }
0x106c   :  { %7673 = vmatprep.mubr.bf16.mxu0 %v7640_v31  ;;  %v20078_v31 = vmov 0 }
0x106d   :  { %7674 = vmatmul.mubr.bf16.vlgmr.msra.gmra.mrb[104].mxu0 %v7639_v10 }
0x106e   :  { %7685 = vmatpush1.bf16.msra.mxu0 %v17741_v9  ;;  %7716 = vmatprep.mubr.bf16.mxu0 %v19860_v61 }
0x106f   :  { %7727 = vmatprep.subr.bf16.mxu0 %v17890_v41  ;;  %v7849_v41 = vand.u32 63, %v20015_v53 }
0x1071   :  { %vm18029_vm8 = vcmp.eq.s32.totalorder %v7849_v41, %v20013_v51  ;;  %v8010_v41 = vand.u32 63, %v20082_v34 }
0x1072   :  { %vm19589_vm6 = vmpackc.low %vm18029_vm8, %vm18024_vm15 }
0x1073   :  { %13780 = vmatpush3.bf16.msk.msra.mxu1 %vm19589_vm6, %v19789_v14 }
0x1075   :  { %12586 = vmatmul.mubr.msk.bf16.vlgmr.msra.gmra.mrb[112].mxu0 %vm6295_vm3, %v20035_v56 }
0x1076   :  { %7728 = vmatpush1.bf16.msra.mxu0 %v17894_v54  ;;  %v20040_v54 = vld [vmem:[#allocation32_spill] sm:$0xff] }
0x1077   :  { %7729 = vmatprep.subr.bf16.mxu0 %v17900_v4  ;;  %v7968_v50 = vand.u32 63, %v20040_v54  ;;  %v20041_v4 = vld [vmem:[#allocation33_spill] sm:$0xff] }
0x1078   :  { %v7975_v52 = vand.u32 63, %v20041_v4 }
0x1079   :  { %vm18038_vm7 = vcmp.eq.s32.totalorder %v7968_v50, %v20013_v51  ;;  %v20083_v50 = vld [vmem:[#allocation43_spill] sm:$0xff] }
0x107a   :  { %7730 = vmatpush1.bf16.msra.mxu0 %v17906_v55  ;;  %v7856_v55 = vand.u32 63, %v20016_v38  ;;  %vm18043_vm5 = vcmp.eq.s32.totalorder %v7975_v52, %v20013_v51  ;;  %v8017_v52 = vand.u32 63, %v20083_v50  ;;  %v20121_v50 = vld [vmem:[#allocation57_spill] sm:$0xff] }
0x107b   :  { %7731 = vmatprep.subr.bf16.mxu0 %v17910_v48  ;;  %v7863_v48 = vand.u32 63, %v20017_v20  ;;  %vm19588_vm1 = vmpackc.low %vm18043_vm5, %vm18038_vm7  ;;  %v7947_v34 = vand.u32 63, %v20121_v50  ;;  %v20126_v50 = vmov 0 }
0x107c   :  { %vm18048_vm9 = vcmp.eq.s32.totalorder %v7856_v55, %v20013_v51  ;;  %13782 = vmatprep.subr.msk.bf16.mxu1 %vm19588_vm1, %v19789_v14  ;;  %v20084_v55 = vld [vmem:[#allocation44_spill] sm:$0xff] }
0x107d   :  { %vm18053_vm2 = vcmp.eq.s32.totalorder %v7863_v48, %v20013_v51  ;;  %v7898_v48 = vand.u32 63, %v20084_v55 }
0x107e   :  { %7732 = vmatpush1.bf16.msra.mxu0 %v17914_v6  ;;  %vm19595_vm0 = vmpackc.low %vm18053_vm2, %vm18048_vm9 }
0x107f   :  { %7733 = vmatprep.subr.bf16.mxu0 %v17918_v27  ;;  %13784 = vmatpush3.bf16.msk.msra.mxu1 %vm19595_vm0, %v19789_v14 }
0x1082   :  { %7734 = vmatpush1.bf16.msra.mxu0 %v17922_v3 }
0x1083   :  { %7735 = vmatprep.subr.bf16.mxu0 %v17926_v23  ;;  %v20182_v23 = vld [vmem:[#allocation20_spill] sm:$0xff] }
0x1086   :  { %7736 = vmatpush1.bf16.msra.mxu0 %v17930_v45  ;;  %v20050_v45 = vmov 0 }
0x1087   :  { %7737 = vmatprep.subr.bf16.mxu0 %v17934_v29  ;;  %v20051_v45 = vsel %vm18038_vm7, 4294967295, %v20050_v45  ;;  %v20052_v29 = vmov 0 }
0x1088   :  { %v20053_v29 = vsel %vm18043_vm5, 4294967295, %v20052_v29 }
0x108a   :  { %7738 = vmatpush1.bf16.msra.mxu0 %v17938_v26  ;;  %v20054_v26 = vmov 0 }
0x108b   :  { %7739 = vmatprep.subr.bf16.mxu0 %v17942_v42  ;;  %v20055_v26 = vsel %vm18048_vm9, 4294967295, %v20054_v26  ;;  %v20186_v42 = vld [vmem:[#allocation40_spill] sm:$0xff] }
0x108e   :  { %7740 = vmatpush1.bf16.msra.mxu0 %v17946_v33  ;;  %v20058_v33 = vld [vmem:[#allocation34_spill] sm:$0xff] }
0x108f   :  { %7741 = vmatprep.subr.bf16.mxu0 %v17950_v12  ;;  %v7982_v12 = vand.u32 63, %v20058_v33 }
0x1091   :  { %vm18094_vm3 = vcmp.eq.s32.totalorder %v7982_v12, %v20013_v51  ;;  %v20085_v12 = vld [vmem:[#allocation45_spill] sm:$0xff] }
0x1092   :  { %7742 = vmatpush1.bf16.msra.mxu0 %v17954_v46  ;;  %v20059_v46 = vld [vmem:[#allocation35_spill] sm:$0xff] }
0x1093   :  { %7743 = vmatprep.subr.bf16.mxu0 %v17958_v8  ;;  %v7989_v8 = vand.u32 63, %v20059_v46 }
0x1095   :  { %vm18099_vm12 = vcmp.eq.s32.totalorder %v7989_v8, %v20013_v51  ;;  %v7905_v8 = vand.u32 63, %v20085_v12  ;;  %v20110_v12 = vmov 0 }
0x1096   :  { %7744 = vmatpush1.bf16.msra.mxu0 %v17962_v43  ;;  %v20060_v43 = vld [vmem:[#allocation36_spill] sm:$0xff]  ;;  %vm19596_vm11 = vmpackc.low %vm18099_vm12, %vm18094_vm3 }
0x1097   :  { %7745 = vmatprep.subr.bf16.mxu0 %v17966_v25  ;;  %v7870_v25 = vand.u32 63, %v20060_v43  ;;  %13786 = vmatprep.subr.msk.bf16.mxu1 %vm19596_vm11, %v19789_v14 }
0x1099   :  { %vm18108_vm1 = vcmp.eq.s32.totalorder %v7870_v25, %v20013_v51  ;;  %v20086_v25 = vmov 0 }
0x109a   :  { %7746 = vmatpush1.bf16.msra.mxu0 %v14762_v57  ;;  %v20061_v57 = vld [vmem:[#allocation37_spill] sm:$0xff] }
0x109b   :  { %7747 = vmatprep.subr.bf16.mxu0 %v14767_v16  ;;  %v7877_v16 = vand.u32 63, %v20061_v57 }
0x109d   :  { %vm18113_vm6 = vcmp.eq.s32.totalorder %v7877_v16, %v20013_v51  ;;  %v20088_v16 = vmov 0 }
0x109e   :  { %7748 = vmatpush1.bf16.msra.mxu0 %v14765_v7  ;;  %v20062_v7 = vld [vmem:[#allocation38_spill] sm:$0xff]  ;;  %vm19599_vm7 = vmpackc.low %vm18113_vm6, %vm18108_vm1 }
0x109f   :  { %7749 = vmatprep.subr.bf16.mxu0 %v14770_v44  ;;  %v7996_v44 = vand.u32 63, %v20062_v7  ;;  %13788 = vmatpush3.bf16.msk.msra.mxu1 %vm19599_vm7, %v19789_v14 }
0x10a1   :  { %vm18120_vm13 = vcmp.eq.s32.totalorder %v7996_v44, %v20013_v51  ;;  %v20090_v44 = vmov 0 }
0x10a2   :  { %7750 = vmatpush1.bf16.msra.mxu0 %v14768_v28  ;;  %v20063_v28 = vld [vmem:[#allocation39_spill] sm:$0xff]  ;;  %v20075_v40 = vsel %vm18120_vm13, 4294967295, %v20074_v40 }
0x10a3   :  { %7751 = vmatprep.subr.bf16.mxu0 %v14773_v37  ;;  %v8003_v37 = vand.u32 63, %v20063_v28 }
0x10a5   :  { %vm18125_vm10 = vcmp.eq.s32.totalorder %v8003_v37, %v20013_v51  ;;  %v20092_v37 = vmov 0 }
0x10a6   :  { %7752 = vmatpush1.bf16.msra.mxu0 %v14771_v0  ;;  %v20077_v2 = vsel %vm18125_vm10, 4294967295, %v20076_v2  ;;  %vm19598_vm5 = vmpackc.low %vm18125_vm10, %vm18120_vm13 }
0x10a7   :  { %7753 = vmatprep.subr.bf16.mxu0 %v14776_v17  ;;  %13790 = vmatprep.subr.msk.bf16.mxu1 %vm19598_vm5, %v19789_v14  ;;  %vm18192_vm5 = vcmp.eq.s32.totalorder %v8017_v52, %v20013_v51  ;;  %v20100_v52 = vmov 0 }
0x10a8   :  { %v20089_v16 = vsel %vm18192_vm5, 4294967295, %v20088_v16 }
0x10aa   :  { %7754 = vmatpush1.bf16.msra.mxu0 %v14774_v22 }
0x10ab   :  { %7755 = vmatprep.subr.bf16.mxu0 %v14779_v19 }
0x10ae   :  { %7756 = vmatpush1.bf16.msra.mxu0 %v14777_v15  ;;  %v20072_v15 = vld [vmem:[#allocation40_spill] sm:$0xff] }
0x10af   :  { %7757 = vmatprep.subr.bf16.mxu0 %v14782_v35  ;;  %v7884_v35 = vand.u32 63, %v20072_v15 }
0x10b1   :  { %vm18150_vm9 = vcmp.eq.s32.totalorder %v7884_v35, %v20013_v51  ;;  %v20094_v35 = vld [vmem:[#allocation46_spill] sm:$0xff] }
0x10b2   :  { %7758 = vmatpush1.bf16.msra.mxu0 %v14780_v18  ;;  %v20073_v18 = vld [vmem:[#allocation41_spill] sm:$0xff]  ;;  %v20079_v31 = vsel %vm18150_vm9, 4294967295, %v20078_v31 }
0x10b3   :  { %v7891_v36 = vand.u32 63, %v20073_v18 }
0x10b5   :  { %vm18155_vm0 = vcmp.eq.s32.totalorder %v7891_v36, %v20013_v51  ;;  %v8024_v36 = vand.u32 63, %v20094_v35 }
0x10b6   :  { %v20081_v62 = vsel %vm18155_vm0, 4294967295, %v20080_v62  ;;  %vm19597_vm11 = vmpackc.low %vm18155_vm0, %vm18150_vm9  ;;  %vm18201_vm9 = vcmp.eq.s32.totalorder %v7898_v48, %v20013_v51  ;;  %vm18206_vm0 = vcmp.eq.s32.totalorder %v7905_v8, %v20013_v51  ;;  %v20102_v48 = vmov 0 }
0x10b7   :  { %13792 = vmatpush3.bf16.msk.msra.mxu1 %vm19597_vm11, %v19789_v14  ;;  %vm18187_vm11 = vcmp.eq.s32.totalorder %v8010_v41, %v20013_v51  ;;  %v20091_v44 = vsel %vm18201_vm9, 4294967295, %v20090_v44  ;;  %v20093_v37 = vsel %vm18206_vm0, 4294967295, %v20092_v37  ;;  %vm19606_vm13 = vmpackc.low %vm18206_vm0, %vm18201_vm9  ;;  %v20098_v41 = vmov 0 }
0x10b8   :  { %v20087_v25 = vsel %vm18187_vm11, 4294967295, %v20086_v25  ;;  %vm19603_vm7 = vmpackc.low %vm18192_vm5, %vm18187_vm11  ;;  %v20104_v8 = vmov 0 }
0x10b9   :  { %13794 = vmatprep.subr.msk.bf16.mxu1 %vm19603_vm7, %v19789_v14  ;;  %vm18231_vm7 = vcmp.eq.s32.totalorder %v8024_v36, %v20013_v51  ;;  %v20106_v36 = vld [vmem:[#allocation50_spill] sm:$0xff] }
0x10ba   :  { %v20099_v41 = vsel %vm18231_vm7, 4294967295, %v20098_v41 }
0x10bb   :  { %13796 = vmatpush3.bf16.msk.msra.mxu1 %vm19606_vm13, %v19789_v14 }
0x10bf   :  { %v18001_v9 = vpop.f32.mrb[64].mxu1 }
0x10c0   :  { %20036 = vst [vmem:[#allocation22_spill] sm:$0xff] %v18001_v9  ;;  %v18003_v24 = vpop.f32.mrb[65].mxu1 }
0x10c1   :  { %20037 = vst [vmem:[#allocation23_spill] sm:$0xff] %v18003_v24  ;;  %v7417_v49 = vpop.f32.mrb[66].mxu1 }
0x10c2   :  { %v7418_v13 = vpop.f32.mrb[67].mxu1 }
0x1148   :  { %v7718_v10 = vpop.f32.mrb[112].mxu0 }
0x1149   :  { %v7720_v32 = vpop.f32.mrb[113].mxu0  ;;  %v7725_v30 = vpack.c.bf16 %v7718_v10, %v7718_v10  ;;  %v20095_v10 = vld [vmem:[#allocation47_spill] sm:$0xff] }
0x114a   :  { %v7726_v49 = vpack.c.bf16 %v7720_v32, %v7720_v32  ;;  %v7722_v13 = vpop.f32.mrb[114].mxu0  ;;  %v8031_v32 = vand.u32 63, %v20095_v10  ;;  %v20109_v10 = vld [vmem:[#allocation53_spill] sm:$0xff] }
0x114b   :  { %v7723_v11 = vpop.f32.mrb[115].mxu0  ;;  %v7933_v35 = vand.u32 63, %v20109_v10  ;;  %v20118_v10 = vld [vmem:[#allocation54_spill] sm:$0xff] }
0x114c   :  { %7759 = vmatprep.mubr.bf16.mxu0 %v7726_v49  ;;  %v20096_v49 = vld [vmem:[#allocation48_spill] sm:$0xff]  ;;  %vm18236_vm11 = vcmp.eq.s32.totalorder %v8031_v32, %v20013_v51  ;;  %v8038_v32 = vand.u32 63, %v20106_v36  ;;  %v20112_v36 = vmov 0 }
0x114d   :  { %7760 = vmatmul.mubr.bf16.vlgmr.msra.gmra.mrb[104].mxu0 %v7725_v30  ;;  %v7912_v13 = vand.u32 63, %v20096_v49  ;;  %v20097_v30 = vld [vmem:[#allocation49_spill] sm:$0xff]  ;;  %v20101_v52 = vsel %vm18236_vm11, 4294967295, %v20100_v52  ;;  %vm19609_vm9 = vmpackc.low %vm18236_vm11, %vm18231_vm7 }
0x114e   :  { %8612 = vmatprep.mubr.f32.mxu0 %v20025_v39  ;;  %v7919_v11 = vand.u32 63, %v20097_v30  ;;  %13798 = vmatprep.subr.msk.bf16.mxu1 %vm19609_vm9, %v19789_v14  ;;  %vm18275_vm9 = vcmp.eq.s32.totalorder %v8038_v32, %v20013_v51  ;;  %v20116_v32 = vmov 0 }
0x114f   :  { %vm18245_vm13 = vcmp.eq.s32.totalorder %v7912_v13, %v20013_v51  ;;  %v20107_v13 = vld [vmem:[#allocation51_spill] sm:$0xff]  ;;  %v20111_v12 = vsel %vm18275_vm9, 4294967295, %v20110_v12 }
0x1150   :  { %v20103_v48 = vsel %vm18245_vm13, 4294967295, %v20102_v48  ;;  %vm18250_vm0 = vcmp.eq.s32.totalorder %v7919_v11, %v20013_v51  ;;  %v8045_v30 = vand.u32 63, %v20107_v13  ;;  %v20108_v11 = vld [vmem:[#allocation52_spill] sm:$0xff]  ;;  %v20119_v13 = vld [vmem:[#allocation55_spill] sm:$0xff] }
0x1151   :  { %v20105_v8 = vsel %vm18250_vm0, 4294967295, %v20104_v8  ;;  %vm19612_vm5 = vmpackc.low %vm18250_vm0, %vm18245_vm13  ;;  %v7926_v49 = vand.u32 63, %v20108_v11  ;;  %v20114_v11 = vmov 0  ;;  %vm18294_vm0 = vcmp.eq.s32.totalorder %v7933_v35, %v20013_v51  ;;  %v20120_v35 = vld [vmem:[#allocation56_spill] sm:$0xff] }
0x1152   :  { %13800 = vmatpush3.bf16.msk.msra.mxu1 %vm19612_vm5, %v19789_v14  ;;  %vm18280_vm7 = vcmp.eq.s32.totalorder %v8045_v30, %v20013_v51  ;;  %v20117_v32 = vsel %vm18294_vm0, 4294967295, %v20116_v32  ;;  %v8052_v30 = vand.u32 63, %v20118_v10  ;;  %v8059_v55 = vand.u32 63, %v20119_v13 }
0x1153   :  { %v20113_v36 = vsel %vm18280_vm7, 4294967295, %v20112_v36  ;;  %vm19616_vm13 = vmpackc.low %vm18280_vm7, %vm18275_vm9  ;;  %vm18289_vm5 = vcmp.eq.s32.totalorder %v7926_v49, %v20013_v51  ;;  %v7940_v49 = vand.u32 63, %v20120_v35  ;;  %v20122_v13 = vmov 0 }
0x1154   :  { %v20115_v11 = vsel %vm18289_vm5, 4294967295, %v20114_v11  ;;  %13802 = vmatprep.subr.msk.bf16.mxu1 %vm19616_vm13, %v19789_v14  ;;  %vm19619_vm11 = vmpackc.low %vm18294_vm0, %vm18289_vm5  ;;  %vm18319_vm10 = vcmp.eq.s32.totalorder %v8052_v30, %v20013_v51  ;;  %vm18324_vm13 = vcmp.eq.s32.totalorder %v8059_v55, %v20013_v51  ;;  %v7787_v55 = vmul.f32 %v18003_v24, %v18003_v24  ;;  %v20192_v30 = vld [vmem:[#allocation22_spill] sm:$0xff] }
0x1155   :  { %v20123_v13 = vsel %vm18319_vm10, 4294967295, %v20122_v13  ;;  %vm19622_vm9 = vmpackc.low %vm18324_vm13, %vm18319_vm10  ;;  %vm18333_vm7 = vcmp.eq.s32.totalorder %v7940_v49, %v20013_v51  ;;  %v20189_v10 = vmov 0  }
0x1156   :  { %13804 = vmatpush3.bf16.msk.msra.mxu1 %vm19619_vm11, %v19789_v14  ;;  %v20127_v50 = vsel %vm18333_vm7, 4294967295, %v20126_v50  ;;  %vm18338_vm11 = vcmp.eq.s32.totalorder %v7947_v34, %v20013_v51  ;;  %vm20130_vm0 = vmpackc.low %vm18019_vm14, %vm18014_vm4  ;;  %v7786_v34 = vmul.f32 %v18001_v9, %v18001_v9 }
0x1157   :  { %13806 = vmatprep.subr.msk.bf16.mxu1 %vm19622_vm9, %v19789_v14  ;;  %vm19624_vm5 = vmpackc.low %vm18338_vm11, %vm18333_vm7  ;;  %vm20131_vm9 = vcmask 1043456  }
0x1158   :  { %v7770_v49 = vsel %vm20131_vm9, %v18001_v9, 0.0  ;;  %vm20132_vm10 = vmmov %vm20131_vm9 }
0x1159   :  { %v7777_v35 = vsel %vm20132_vm10, %v18003_v24, 0.0  ;;  %v7771_v7 = vrot.slane %v7770_v49, 4 }
0x115a   :  { %13808 = vmatpush3.bf16.msk.msra.mxu1 %vm19624_vm5, %v19789_v14  ;;  %vm20133_vm5 = vmmov %vm20131_vm9  ;;  %v7778_v6 = vrot.slane %v7777_v35, 4  ;;  %vm20142_vm9 = vnez %v20053_v29  ;;  %v20184_v29 = vld [vmem:[#allocation36_spill] sm:$0xff] }
0x115b   :  { %13810 = vmatprep.subr.msk.bf16.mxu1 %vm20130_vm0, %v19789_v14  ;;  %v7788_v28 = vsel %vm20133_vm5, %v7786_v34, 0.0  ;;  %vm20134_vm7 = vmmov %vm20133_vm5  ;;  %v7772_v4 = vadd.f32 %v7771_v7, %v7770_v49  ;;  %vm20143_vm0 = vnez %v20051_v45  ;;  %v20183_v45 = vld [vmem:[#allocation21_spill] sm:$0xff] }
0x115c   :  { %v7795_v27 = vsel %vm20134_vm7, %v7787_v55, 0.0  ;;  %v7789_v46 = vrot.slane %v7788_v28, 4  ;;  %v7779_v54 = vadd.f32 %v7778_v6, %v7777_v35  ;;  %vm20136_vm4 = vmmov %vm20133_vm5 }
0x115d   :  { %v7796_v33 = vrot.slane %v7795_v27, 4  ;;  %v7773_v56 = vrot.slane %v7772_v4, 2  ;;  %vm20138_vm14 = vmmov %vm20136_vm4 }
0x115e   :  { %v7790_v63 = vadd.f32 %v7789_v46, %v7788_v28  ;;  %v7780_v21 = vrot.slane %v7779_v54, 2  ;;  %vm20139_vm10 = vmmov %vm20136_vm4 }
0x115f   :  { %v7797_v1 = vadd.f32 %v7796_v33, %v7795_v27  ;;  %v7774_v6 = vadd.f32 %v7773_v56, %v7772_v4  ;;  %vm20140_vm7 = vmmov %vm20136_vm4 }
0x1160   :  { %v7791_v55 = vrot.slane %v7790_v63, 2  ;;  %v7781_v18 = vadd.f32 %v7780_v21, %v7779_v54  ;;  %vm20141_vm5 = vmpackc.low %vm18029_vm8, %vm18024_vm15 }
0x1161   :  { %v7798_v28 = vrot.slane %v7797_v1, 2  ;;  %vm20147_vm15 = vmpackc.low %vm18099_vm12, %vm18094_vm3  ;;  %vm20153_vm3 = vnez %v20079_v31 }
0x1162   :  { %v7792_v43 = vadd.f32 %v7791_v55, %v7790_v63  ;;  %vm20148_vm8 = vmpackc.low %vm18113_vm6, %vm18108_vm1  ;;  %vm20156_vm6 = vnez %v20087_v25  ;;  %v12683_v25 = vld [vmem:[%s19408_s7 + $0x4] sm:$0x3] }
0x1164   :  { %v7793_v56 = vrot.slane %v7792_v43, 1 }
0x1220   :  { %v18374_v58 = vpop.f32.mrb[104].mxu0 }
0x1221   :  { %20135 = vst [vmem:[#allocation24_spill] sm:$0xff] %v18374_v58  ;;  %v7804_v47 = vsel %vm20136_vm4, %v18374_v58, 0.0  ;;  %v7820_v34 = vmul.f32 %v18374_v58, %v18374_v58  ;;  %v18380_v24 = vpop.f32.mrb[105].mxu0  ;;  %vm20144_vm4 = vmpackc.low %vm20142_vm9, %vm20143_vm0  ;;  %vm20152_vm9 = vnez %v20081_v62  ;;  %vm20155_vm0 = vnez %v20089_v16 }
0x1222   :  { %20137 = vst [vmem:[#allocation25_spill] sm:$0xff] %v18380_v24  ;;  %v7805_v9 = vrot.slane %v7804_v47, 4  ;;  %v7811_v7 = vsel %vm20138_vm14, %v18380_v24, 0.0  ;;  %v7821_v33 = vmul.f32 %v18380_v24, %v18380_v24  ;;  %v7765_v46 = vpop.f32.mrb[106].mxu0  ;;  %v7799_v24 = vadd.f32 %v7798_v28, %v7797_v1  ;;  %vm20154_vm12 = vmpackc.low %vm20152_vm9, %vm20153_vm3 }
0x1223   :  { %v7822_v35 = vsel %vm20139_vm10, %v7820_v34, 0.0  ;;  %v7812_v49 = vrot.slane %v7811_v7, 4  ;;  %v7766_v27 = vpop.f32.mrb[107].mxu0  ;;  %v7775_v46 = vrot.slane %v7774_v6, 1  ;;  %v7794_v1 = vadd.f32 %v7793_v56, %v7792_v43  ;;  %vm20157_vm1 = vmpackc.low %vm20155_vm0, %vm20156_vm6  ;;  %v20187_v43 = vld [vmem:[#allocation41_spill] sm:$0xff] }
0x1224   :  { %v7806_v60 = vadd.f32 %v7805_v9, %v7804_v47  ;;  %v7823_v61 = vrot.slane %v7822_v35, 4  ;;  %v7829_v58 = vsel %vm20140_vm7, %v7821_v33, 0.0  ;;  %v7782_v27 = vrot.slane %v7781_v18, 1 }
0x1225   :  { %v7813_v15 = vadd.f32 %v7812_v49, %v7811_v7  ;;  %v7830_v57 = vrot.slane %v7829_v58, 4  ;;  %v7800_v33 = vrot.slane %v7799_v24, 1  ;;  %v7776_v54 = vadd.f32 %v7775_v46, %v7774_v6 }
0x1226   :  { %v7807_v20 = vrot.slane %v7806_v60, 2  ;;  %v7824_v38 = vadd.f32 %v7823_v61, %v7822_v35  ;;  %v7783_v55 = vadd.f32 %v7782_v27, %v7781_v18  ;;  %vm20145_vm14 = vnez %v20055_v26  ;;  %v20185_v26 = vld [vmem:[#allocation37_spill] sm:$0xff] }
0x1227   :  { %v7814_v51 = vrot.slane %v7813_v15, 2  ;;  %v7831_v53 = vadd.f32 %v7830_v57, %v7829_v58  ;;  %vm20146_vm10 = vmpackc.low %vm18053_vm2, %vm20145_vm14  ;;  %vm20149_vm7 = vnez %v20077_v2  ;;  %vm20150_vm2 = vnez %v20075_v40 }
0x1228   :  { %v7808_v5 = vadd.f32 %v7807_v20, %v7806_v60  ;;  %v7825_v59 = vrot.slane %v7824_v38, 2  ;;  %v7801_v60 = vadd.f32 %v7800_v33, %v7799_v24  ;;  %vm20159_vm14 = vnez %v20091_v44  ;;  %v20181_v24 = vld [vmem:[#allocation18_spill] sm:$0xff]  ;;  %v20193_v6 = vld [vmem:[#allocation24_spill] sm:$0xff] }
0x1229   :  { %v7815_v34 = vadd.f32 %v7814_v51, %v7813_v15  ;;  %v7832_v39 = vrot.slane %v7831_v53, 2  ;;  %vm20167_vm3 = vnez %v20113_v36  ;;  %vm20170_vm6 = vnez %v20117_v32  ;;  %v20191_v36 = vld [vmem:[#allocation58_spill] sm:$0xff]  ;;  %v20195_v56 = vld [vmem:[#allocation25_spill] sm:$0xff] }
0x122a   :  { %v7809_v47 = vrot.slane %v7808_v5, 1  ;;  %v7826_v9 = vadd.f32 %v7825_v59, %v7824_v38  ;;  %v20177_v59 = vmov 0.0   ;;  %v20179_v38 = vld [vmem:[#allocation17_spill] sm:$0xff]  ;;  %v8477_v3 = vand.u32 63, %v20181_v24 }
0x122b   :  { %v7816_v4 = vrot.slane %v7815_v34, 1  ;;  %v7833_v21 = vadd.f32 %v7832_v39, %v7831_v53  ;;  %v20180_v39 = vld [vmem:[#allocation19_spill] sm:$0xff] }
0x122c   :  { %v7810_v7 = vadd.f32 %v7809_v47, %v7808_v5  ;;  %v7827_v63 = vrot.slane %v7826_v9, 1  ;;  %v20178_v5 = vld [vmem:[#allocation59_spill] sm:$0xff] }
0x122d   :  { %v7817_v61 = vadd.f32 %v7816_v4, %v7815_v34  ;;  %v7834_v35 = vrot.slane %v7833_v21, 1  ;;  %v8484_v53 = vand.u32 63, %v20178_v5  ;;  %v20194_v34 = vld [vmem:[#allocation23_spill] sm:$0xff] }
0x122e   :  { %v7818_v58 = vadd.f32 %v7810_v7, %v7776_v54  ;;  %v7828_v57 = vadd.f32 %v7827_v63, %v7826_v9 }
0x122f   :  { %v7819_v20 = vadd.f32 %v7817_v61, %v7783_v55  ;;  %v7835_v51 = vadd.f32 %v7834_v35, %v7833_v21 }
0x1230   :  { %v7836_v15 = vadd.f32 %v7828_v57, %v7794_v1 }
0x1231   :  { %8382 = vmatprep.mubr.f32.mxu1 %v7819_v20  ;;  %v7837_v28 = vadd.f32 %v7835_v51, %v7801_v60 }
0x1232   :  { %8383 = vmatmul.mubr.f32.vlgmr.msra.gmra.mrb[68].mxu1 %v7818_v58 }
0x1233   :  { %13812 = vmatpush3.bf16.msk.msra.mxu1 %vm20141_vm5, %v19789_v14  ;;  %8452 = vmatprep.mubr.f32.mxu1 %v7837_v28  ;;  %vm20151_vm5 = vmpackc.low %vm20149_vm7, %vm20150_vm2  ;;  %vm20164_vm2 = vnez %v20105_v8 }
0x1234   :  { %13814 = vmatprep.subr.msk.bf16.mxu1 %vm20144_vm4, %v19789_v14  ;;  %vm20158_vm4 = vnez %v20093_v37 }
0x1237   :  { %13816 = vmatpush3.bf16.msk.msra.mxu1 %vm20146_vm10, %v19789_v14  ;;  %vm20160_vm10 = vmpackc.low %vm20158_vm4, %vm20159_vm14  ;;  %vm20173_vm14 = vnez %v20123_v13 }
0x1238   :  { %13818 = vmatprep.subr.msk.bf16.mxu1 %vm20147_vm15, %v19789_v14  ;;  %vm20161_vm15 = vnez %v20101_v52 }
0x123b   :  { %13820 = vmatpush3.bf16.msk.msra.mxu1 %vm20148_vm8, %v19789_v14  ;;  %vm20162_vm8 = vnez %v20099_v41 }
0x123c   :  { %13822 = vmatprep.subr.msk.bf16.mxu1 %vm20151_vm5, %v19789_v14  ;;  %vm20163_vm7 = vmpackc.low %vm20161_vm15, %vm20162_vm8  ;;  %vm20165_vm5 = vnez %v20103_v48  ;;  %vm20175_vm15 = vnez %v20127_v50 }
0x123d   :  { %vm20166_vm9 = vmpackc.low %vm20164_vm2, %vm20165_vm5  ;;  %vm8500_vm2 = vcmp.eq.s32.totalorder %v8484_v53, %v20180_v39 }
0x123e   :  { %vm20176_vm8 = vmpackc.low %vm18338_vm11, %vm20175_vm15  ;;  %vm8497_vm11 = vcmp.eq.s32.totalorder %v8477_v3, %v20179_v38 }
0x123f   :  { %13824 = vmatpush3.bf16.msk.msra.mxu1 %vm20154_vm12, %v19789_v14  ;;  %vm20168_vm12 = vnez %v20111_v12 }
0x1240   :  { %13826 = vmatprep.subr.msk.bf16.mxu1 %vm20157_vm1, %v19789_v14  ;;  %vm20169_vm0 = vmpackc.low %vm20167_vm3, %vm20168_vm12  ;;  %vm20171_vm1 = vnez %v20115_v11  ;;  %vm8499_vm3 = vcmp.eq.s32.totalorder %v8477_v3, %v20180_v39 }
0x1241   :  { %vm20172_vm4 = vmpackc.low %vm20170_vm6, %vm20171_vm1  ;;  %vm8503_vm6 = vcmp.eq.s32.totalorder %v8477_v3, %v20183_v45 }
0x1242   :  { %vm13843_vm1 = vmpackc.low %vm8499_vm3, %vm8497_vm11  ;;  %vm8509_vm11 = vcmp.eq.s32.totalorder %v8477_v3, %v20186_v42  ;;  %vm8511_vm3 = vcmp.eq.s32.totalorder %v8477_v3, %v20187_v43 }
0x1243   :  { %13828 = vmatpush3.bf16.msk.msra.mxu1 %vm20160_vm10, %v19789_v14  ;;  %vm20174_vm10 = vmpackc.low %vm18324_vm13, %vm20173_vm14  ;;  %vm8502_vm13 = vcmp.eq.s32.totalorder %v8484_v53, %v20182_v23  ;;  %vm8508_vm14 = vcmp.eq.s32.totalorder %v8484_v53, %v20185_v26 }
0x1244   :  { %13830 = vmatprep.subr.msk.bf16.mxu1 %vm20163_vm7, %v19789_v14  ;;  %vm8498_vm7 = vcmp.eq.s32.totalorder %v8484_v53, %v20179_v38 }
0x1245   :  { %vm13841_vm5 = vmpackc.low %vm8500_vm2, %vm8498_vm7  ;;  %vm8507_vm7 = vcmp.eq.s32.totalorder %v8477_v3, %v20185_v26  ;;  %vm8510_vm2 = vcmp.eq.s32.totalorder %v8484_v53, %v20186_v42 }
0x1246   :  { %13842 = vmatprep.subr.msk.bf16.mxu0 %vm13841_vm5, %v19789_v14 }
0x1247   :  { %13832 = vmatpush3.bf16.msk.msra.mxu1 %vm20166_vm9, %v19789_v14  ;;  %vm8504_vm9 = vcmp.eq.s32.totalorder %v8484_v53, %v20183_v45  ;;  %13844 = vmatpush1.bf16.msk.msra.mxu0 %vm13843_vm1, %v19789_v14 }
0x1248   :  { %13834 = vmatprep.subr.msk.bf16.mxu1 %vm20169_vm0, %v19789_v14  ;;  %vm13845_vm12 = vmpackc.low %vm8504_vm9, %vm8502_vm13  ;;  %vm8501_vm0 = vcmp.eq.s32.totalorder %v8477_v3, %v20182_v23  ;;  %vm8512_vm13 = vcmp.eq.s32.totalorder %v8484_v53, %v20187_v43 }
0x1249   :  { %13846 = vmatprep.subr.msk.bf16.mxu0 %vm13845_vm12, %v19789_v14  ;;  %vm13853_vm9 = vmpackc.low %vm8512_vm13, %vm8510_vm2 }
0x124b   :  { %13836 = vmatpush3.bf16.msk.msra.mxu1 %vm20172_vm4, %v19789_v14  ;;  %vm8506_vm4 = vcmp.eq.s32.totalorder %v8484_v53, %v20184_v29  ;;  %v14785_v53 = vld [vmem:[#allocation10 + $0x104] ss:$8 sps:$4 sm:$0xff]  }
0x124c   :  { %13838 = vmatprep.subr.msk.bf16.mxu1 %vm20174_vm10, %v19789_v14  ;;  %vm13847_vm10 = vmpackc.low %vm8503_vm6, %vm8501_vm0  ;;  %vm20188_vm0 = vcmask 523264  }
0x124d   :  { %vm13849_vm15 = vmpackc.low %vm8508_vm14, %vm8506_vm4  ;;  %13848 = vmatpush1.bf16.msk.msra.mxu0 %vm13847_vm10, %v19789_v14  ;;  %vm19645_vm14 = vcmask 1041408  }
0x124e   :  { %13850 = vmatprep.subr.msk.bf16.mxu0 %vm13849_vm15, %v19789_v14  ;;  %vm20190_vm6 = vmmov %vm20188_vm0 }
0x124f   :  { %13840 = vmatpush3.bf16.msk.msra.mxu1 %vm20176_vm8, %v19789_v14  ;;  %vm8505_vm8 = vcmp.eq.s32.totalorder %v8477_v3, %v20184_v29 }
0x1250   :  { %13858 = vmatprep.subr.msk.bf16.mxu1 %vm13841_vm5, %v19789_v14  ;;  %vm13851_vm5 = vmpackc.low %vm8507_vm7, %vm8505_vm8 }
0x1251   :  { %13852 = vmatpush1.bf16.msk.msra.mxu0 %vm13851_vm5, %v19789_v14 }
0x1252   :  { %8453 = vmatmul.mubr.f32.vlgmr.msra.gmra.mrb[70].mxu1 %v7836_v15  ;;  %13854 = vmatprep.subr.msk.bf16.mxu0 %vm13853_vm9, %v19789_v14 }
0x1253   :  { %8687 = vmatprep.mubr.f32.mxu1 %v20177_v59  ;;  %13860 = vmatpush1.bf16.msk.msra.mxu1 %vm13843_vm1, %v19789_v14 }
0x1254   :  { %13862 = vmatprep.subr.msk.bf16.mxu1 %vm13845_vm12, %v19789_v14  ;;  %vm13855_vm12 = vmpackc.low %vm8511_vm3, %vm8509_vm11 }
0x1255   :  { %13856 = vmatpush1.bf16.msk.msra.mxu0 %vm13855_vm12, %v19789_v14 }
0x1257   :  { %13864 = vmatpush1.bf16.msk.msra.mxu1 %vm13847_vm10, %v19789_v14 }
0x1258   :  { %13866 = vmatprep.subr.msk.bf16.mxu1 %vm13849_vm15, %v19789_v14  ;;  %vm8732_vm15 = vcmask 31744  }
0x125b   :  { %13868 = vmatpush1.bf16.msk.msra.mxu1 %vm13851_vm5, %v19789_v14 }
0x125c   :  { %13870 = vmatprep.subr.msk.bf16.mxu1 %vm13853_vm9, %v19789_v14 }
0x125f   :  { %13872 = vmatpush1.bf16.msk.msra.mxu1 %vm13855_vm12, %v19789_v14 }
0x1305   :  { %v13333_v0 = vpop.f32.mrb[68].mxu1 }
0x1306   :  { %v13334_v17 = vpop.f32.mrb[69].mxu1 }
0x1307   :  { %v13335_v22 = vadd.f32 %v13334_v17, %v13333_v0  ;;  %v20196_v0 = vld [vmem:[#allocation28_spill] sm:$0xff] }
0x1308   :  { %v20197_v17 = vld [vmem:[#allocation60_spill] sm:$0xff] }
0x1309   :  { %v8459_v19 = vmul.f32 0.03125, %v13335_v22 }
0x130b   :  { %v8461_v31 = vmul.f32 %v8459_v19, %v8459_v19 }
0x1325   :  { %v13368_v18 = vpop.f32.mrb[70].mxu1 }
0x1326   :  { %v13369_v40 = vpop.f32.mrb[71].mxu1 }
0x1327   :  { %v13370_v2 = vadd.f32 %v13369_v40, %v13368_v18  ;;  %v14783_v18 = vld [vmem:[#allocation10 + $0x100] ss:$8 sps:$4 sm:$0xff]   ;;  %v14788_v40 = vld [vmem:[#allocation10 + $0x114] ss:$8 sps:$4 sm:$0xff]  }
0x1329   :  { %v8460_v62 = vmul.f32 0.03125, %v13370_v2  ;;  %v20198_v2 = vld [vmem:[#allocation26_spill] sm:$0xff] }
0x132b   :  { %v8462_v50 = vsub.f32 %v8460_v62, %v8461_v31  ;;  %v20199_v31 = vld [vmem:[#allocation62_spill] sm:$0xff] }
0x132d   :  { %v8465_v12 = vadd.f32 1e-05, %v8462_v50  ;;  %v14786_v50 = vld [vmem:[#allocation10 + $0x110] ss:$8 sps:$4 sm:$0xff]  }
0x132f   :  { %15011 = vrsqrt.f32 %v8465_v12  ;;  %v14791_v12 = vld [vmem:[#allocation10 + $0x124] ss:$8 sps:$4 sm:$0xff]  }
0x1339   :  { %v15012_v16 = vpop.eup %15011 }
0x133a   :  { %v8467_v44 = vmul.f32 %v15012_v16, %v12683_v25  ;;  %v14794_v16 = vld [vmem:[#allocation10 + $0x134] ss:$8 sps:$4 sm:$0xff]  }
0x133c   :  { %v8468_v37 = vmul.f32 %v8467_v44, %v8459_v19  ;;  %12716 = vmatmul.mubr.msk.f32.vlgmr.msra.gmra.mrb[116].mxu0 %vm20188_vm0, %v8467_v44  ;;  %v14792_v44 = vld [vmem:[#allocation10 + $0x130] ss:$8 sps:$4 sm:$0xff]  }
0x133d   :  { %8774 = vmatprep.mubr.bf16.mxu0 %v20189_v10 }
0x133e   :  { %v8470_v41 = vrot.slane %v8468_v37, 7  ;;  %v14797_v37 = vld [vmem:[#allocation10 + $0x144] ss:$8 sps:$4 sm:$0xff]  }
0x1340   :  { %v8472_v52 = vsub.f32 %v12683_v25, %v8470_v41  ;;  %v14789_v25 = vld [vmem:[#allocation10 + $0x120] ss:$8 sps:$4 sm:$0xff]  }
0x1341   :  { %v14795_v41 = vld [vmem:[#allocation10 + $0x140] ss:$8 sps:$4 sm:$0xff]  }
0x1342   :  { %v8620_v48 = vrot.slane %v8472_v52, 1  ;;  %v14800_v52 = vld [vmem:[#allocation10 + $0x154] ss:$8 sps:$4 sm:$0xff]  }
0x1344   :  { %12733 = vmatmul.mubr.msk.f32.vlgmr.msra.gmra.mrb[72].mxu1 %vm20190_vm6, %v8620_v48  ;;  %v14798_v48 = vld [vmem:[#allocation10 + $0x150] ss:$8 sps:$4 sm:$0xff]  }
0x1345   :  { %9331 = vmatprep.mubr.bf16.mxu1 %v20189_v10 }
0x140f   :  { %v8614_v8 = vpop.f32.mrb[116].mxu0 }
0x1410   :  { %v8697_v13 = vrot.slane %v8614_v8, %v20191_v36  ;;  %v8616_v11 = vpop.f32.mrb[117].mxu0  ;;  %v14803_v8 = vld [vmem:[#allocation10 + $0x164] ss:$8 sps:$4 sm:$0xff]  }
0x1411   :  { %v8701_v32 = vrot.slane %v8616_v11, %v20191_v36  ;;  %v14806_v11 = vld [vmem:[#allocation10 + $0x174] ss:$8 sps:$4 sm:$0xff]  }
0x1412   :  { %v8702_v49 = vmul.f32 %v8697_v13, %v20192_v30  ;;  %v8714_v46 = vmul.f32 %v8697_v13, %v20193_v6  ;;  %v14801_v13 = vld [vmem:[#allocation10 + $0x160] ss:$8 sps:$4 sm:$0xff]   ;;  %v14809_v30 = vld [vmem:[#allocation10 + $0x184] ss:$8 sps:$4 sm:$0xff]   ;;  %v14812_v6 = vld [vmem:[#allocation10 + $0x194] ss:$8 sps:$4 sm:$0xff]  }
0x1413   :  { %v8703_v27 = vmul.f32 %v8701_v32, %v20194_v34  ;;  %v8715_v47 = vmul.f32 %v8701_v32, %v20195_v56  ;;  %v14804_v32 = vld [vmem:[#allocation10 + $0x170] ss:$8 sps:$4 sm:$0xff]   ;;  %v14815_v34 = vld [vmem:[#allocation10 + $0x1a4] ss:$8 sps:$4 sm:$0xff]   ;;  %v14818_v56 = vld [vmem:[#allocation10 + $0x1b4] ss:$8 sps:$4 sm:$0xff]  }
0x1417   :  { %v8689_v9 = vpop.f32.mrb[72].mxu1 }
0x1418   :  { %v8707_v4 = vrot.slane %v8689_v9, %v20191_v36  ;;  %v8691_v33 = vpop.f32.mrb[73].mxu1  ;;  %v14821_v9 = vld [vmem:[#allocation10 + $0x1c4] ss:$8 sps:$4 sm:$0xff]  }
0x1419   :  { %v8711_v21 = vrot.slane %v8691_v33, %v20191_v36  ;;  %v14824_v33 = vld [vmem:[#allocation10 + $0x1d4] ss:$8 sps:$4 sm:$0xff]  }
0x141a   :  { %v8712_v54 = vadd.f32 %v8707_v4, %v8702_v49  ;;  %v8716_v7 = vadd.f32 %v8714_v46, %v8707_v4  ;;  %v14807_v49 = vld [vmem:[#allocation10 + $0x180] ss:$8 sps:$4 sm:$0xff]   ;;  %v14810_v46 = vld [vmem:[#allocation10 + $0x190] ss:$8 sps:$4 sm:$0xff]  }
0x141b   :  { %v8713_v63 = vadd.f32 %v8711_v21, %v8703_v27  ;;  %v8717_v55 = vadd.f32 %v8715_v47, %v8711_v21  ;;  %v14813_v27 = vld [vmem:[#allocation10 + $0x1a0] ss:$8 sps:$4 sm:$0xff]   ;;  %v14816_v47 = vld [vmem:[#allocation10 + $0x1b0] ss:$8 sps:$4 sm:$0xff]  }
0x141c   :  { %vm8718_vm1 = vcmp.ge.f32.partialorder %v8712_v54, 0.0  ;;  %v8720_v61 = vmul.f32 0.2, %v8712_v54  ;;  %v8726_v15 = vmul.f32 0.2, %v8716_v7  ;;  %vm8724_vm8 = vcmp.ge.f32.partialorder %v8716_v7, 0.0 }
0x141d   :  { %vm8719_vm4 = vcmp.ge.f32.partialorder %v8713_v63, 0.0  ;;  %v8721_v35 = vmul.f32 0.2, %v8713_v63  ;;  %v8727_v57 = vmul.f32 0.2, %v8717_v55  ;;  %vm8725_vm10 = vcmp.ge.f32.partialorder %v8717_v55, 0.0 }
0x141e   :  { %v8722_v58 = vsel %vm8718_vm1, %v8712_v54, %v8720_v61  ;;  %v8728_v22 = vsel %vm8724_vm8, %v8716_v7, %v8726_v15  ;;  %v14819_v4 = vld [vmem:[#allocation10 + $0x1c0] ss:$8 sps:$4 sm:$0xff]   ;;  %v14822_v21 = vld [vmem:[#allocation10 + $0x1d0] ss:$8 sps:$4 sm:$0xff]   ;;  %v14827_v7 = vld [vmem:[#allocation10 + $0x1e4] ss:$8 sps:$4 sm:$0xff]  }
0x141f   :  { %v8723_v1 = vsel %vm8719_vm4, %v8713_v63, %v8721_v35  ;;  %v8730_v20 = vpack.c.bf16 %v8722_v58, %v8722_v58  ;;  %v8729_v28 = vsel %vm8725_vm10, %v8717_v55, %v8727_v57  ;;  %v9859_v19 = vpack.c.bf16 %v8728_v22, %v8728_v22  ;;  %v14825_v54 = vld [vmem:[#allocation10 + $0x1e0] ss:$8 sps:$4 sm:$0xff]   ;;  %v14828_v63 = vld [vmem:[#allocation10 + $0x1f0] ss:$8 sps:$4 sm:$0xff]   ;;  %v14830_v55 = vld [vmem:[#allocation10 + $0x1f4] ss:$8 sps:$4 sm:$0xff]  }
0x1420   :  { %v8731_v60 = vpack.c.bf16 %v8723_v1, %v8723_v1  ;;  %v18533_v3 = vpack.c.bf16 %v8729_v28, %v8729_v28  ;;  %v14833_v61 = vld [vmem:[#allocation10 + $0x4] ss:$8 sps:$4 sm:$0xff]  }
0x1421   :  { %v8737_v51 = vsel %vm19645_vm14, %v8730_v20, 0  ;;  %v18548_v62 = vsel %vm19645_vm14, %v9859_v19, 0 }
0x1422   :  { %12734 = vmatprep.subr.msk.bf16.mxu0 %vm19645_vm14, %v8731_v60  ;;  %12802 = vmatprep.subr.msk.bf16.mxu1 %vm19645_vm14, %v8731_v60 }
0x1423   :  { %8743 = vmatpush1.bf16.msra.mxu0 %v8737_v51  ;;  %9300 = vmatpush1.bf16.msra.mxu1 %v8737_v51 }
0x1424   :  { %12736 = vmatprep.subr.msk.bf16.mxu0 %vm19645_vm14, %v8731_v60  ;;  %12836 = vmatprep.subr.msk.bf16.mxu1 %vm19645_vm14, %v8731_v60 }
0x1426   :  { %12735 = vmatmul.mubr.msk.bf16.vlgmr.msra.gmra.mrb[120].mxu0 %vm8732_vm15, %v20196_v0  ;;  %12803 = vmatmul.mubr.msk.bf16.vlgmr.msra.gmra.mrb[76].mxu1 %vm8732_vm15, %v20197_v17 }
0x1427   :  { %8820 = vmatpush1.bf16.msra.mxu0 %v8737_v51  ;;  %9581 = vmatpush1.bf16.msra.mxu1 %v8737_v51 }
0x1428   :  { %12870 = vmatprep.subr.msk.bf16.mxu1 %vm19645_vm14, %v18533_v3  ;;  %8851 = vmatprep.mubr.bf16.mxu0 %v20189_v10 }
0x1429   :  { %9612 = vmatprep.mubr.bf16.mxu1 %v20189_v10  ;;  %9055 = vmatprep.subr.bf16.mxu0 %v14785_v53 }
0x142e   :  { %12737 = vmatmul.mubr.msk.bf16.vlgmr.msra.gmra.mrb[124].mxu0 %vm8732_vm15, %v20198_v2  ;;  %12837 = vmatmul.mubr.msk.bf16.vlgmr.msra.gmra.mrb[80].mxu1 %vm8732_vm15, %v20199_v31 }
0x142f   :  { %9868 = vmatpush1.bf16.msra.mxu1 %v18548_v62  ;;  %9899 = vmatprep.mubr.bf16.mxu1 %v20189_v10 }
0x1430   :  { %12872 = vmatprep.subr.msk.bf16.mxu1 %vm19645_vm14, %v18533_v3  ;;  %9056 = vmatpush1.bf16.msra.mxu0 %v14783_v18 }
0x1431   :  { %9057 = vmatprep.subr.bf16.mxu0 %v14788_v40 }
0x1434   :  { %9058 = vmatpush1.bf16.msra.mxu0 %v14786_v50 }
0x1435   :  { %9059 = vmatprep.subr.bf16.mxu0 %v14791_v12 }
0x1436   :  { %12871 = vmatmul.mubr.msk.bf16.vlgmr.msra.gmra.mrb[84].mxu1 %vm8732_vm15, %v20196_v0 }
0x1437   :  { %9911 = vmatpush1.bf16.msra.mxu1 %v18548_v62  ;;  %9942 = vmatprep.mubr.bf16.mxu1 %v20189_v10 }
0x1438   :  { %9060 = vmatpush1.bf16.msra.mxu0 %v14789_v25  ;;  %9953 = vmatprep.subr.bf16.mxu1 %v14785_v53 }
0x1439   :  { %9061 = vmatprep.subr.bf16.mxu0 %v14794_v16 }
0x143c   :  { %9062 = vmatpush1.bf16.msra.mxu0 %v14792_v44 }
0x143d   :  { %9063 = vmatprep.subr.bf16.mxu0 %v14797_v37 }
0x143e   :  { %12873 = vmatmul.mubr.msk.bf16.vlgmr.msra.gmra.mrb[88].mxu1 %vm8732_vm15, %v20198_v2 }
0x143f   :  { %9954 = vmatpush1.bf16.msra.mxu1 %v14783_v18 }
0x1440   :  { %9064 = vmatpush1.bf16.msra.mxu0 %v14795_v41  ;;  %9955 = vmatprep.subr.bf16.mxu1 %v14788_v40 }
0x1441   :  { %9065 = vmatprep.subr.bf16.mxu0 %v14800_v52 }
0x1443   :  { %9956 = vmatpush1.bf16.msra.mxu1 %v14786_v50  ;;  %v14831_v50 = vld [vmem:[#allocation10] ss:$8 sps:$4 sm:$0xff]  }
0x1444   :  { %9066 = vmatpush1.bf16.msra.mxu0 %v14798_v48  ;;  %9957 = vmatprep.subr.bf16.mxu1 %v14791_v12 }
0x1445   :  { %9067 = vmatprep.subr.bf16.mxu0 %v14803_v8 }
0x1447   :  { %9958 = vmatpush1.bf16.msra.mxu1 %v14789_v25 }
0x1448   :  { %9068 = vmatpush1.bf16.msra.mxu0 %v14801_v13  ;;  %9959 = vmatprep.subr.bf16.mxu1 %v14794_v16  ;;  %v14836_v16 = vld [vmem:[#allocation10 + $0x14] ss:$8 sps:$4 sm:$0xff]  }
0x1449   :  { %9069 = vmatprep.subr.bf16.mxu0 %v14806_v11 }
0x144b   :  { %9960 = vmatpush1.bf16.msra.mxu1 %v14792_v44 }
0x144c   :  { %9070 = vmatpush1.bf16.msra.mxu0 %v14804_v32  ;;  %9961 = vmatprep.subr.bf16.mxu1 %v14797_v37  ;;  %v14834_v37 = vld [vmem:[#allocation10 + $0x10] ss:$8 sps:$4 sm:$0xff]  }
0x144d   :  { %9071 = vmatprep.subr.bf16.mxu0 %v14809_v30 }
0x144f   :  { %9962 = vmatpush1.bf16.msra.mxu1 %v14795_v41  ;;  %v14839_v41 = vld [vmem:[#allocation10 + $0x24] ss:$8 sps:$4 sm:$0xff]  }
0x1450   :  { %9072 = vmatpush1.bf16.msra.mxu0 %v14807_v49  ;;  %9963 = vmatprep.subr.bf16.mxu1 %v14800_v52 }
0x1451   :  { %9073 = vmatprep.subr.bf16.mxu0 %v14812_v6 }
0x1453   :  { %9964 = vmatpush1.bf16.msra.mxu1 %v14798_v48 }
0x1454   :  { %9074 = vmatpush1.bf16.msra.mxu0 %v14810_v46  ;;  %9965 = vmatprep.subr.bf16.mxu1 %v14803_v8 }
0x1455   :  { %9075 = vmatprep.subr.bf16.mxu0 %v14815_v34 }
0x1457   :  { %9966 = vmatpush1.bf16.msra.mxu1 %v14801_v13  ;;  %v14837_v13 = vld [vmem:[#allocation10 + $0x20] ss:$8 sps:$4 sm:$0xff]  }
0x1458   :  { %9076 = vmatpush1.bf16.msra.mxu0 %v14813_v27  ;;  %9967 = vmatprep.subr.bf16.mxu1 %v14806_v11 }
0x1459   :  { %9077 = vmatprep.subr.bf16.mxu0 %v14818_v56 }
0x145b   :  { %9968 = vmatpush1.bf16.msra.mxu1 %v14804_v32  ;;  %v14842_v32 = vld [vmem:[#allocation10 + $0x34] ss:$8 sps:$4 sm:$0xff]  }
0x145c   :  { %9078 = vmatpush1.bf16.msra.mxu0 %v14816_v47  ;;  %9969 = vmatprep.subr.bf16.mxu1 %v14809_v30  ;;  %v14840_v30 = vld [vmem:[#allocation10 + $0x30] ss:$8 sps:$4 sm:$0xff]  }
0x145d   :  { %9079 = vmatprep.subr.bf16.mxu0 %v14821_v9 }
0x145f   :  { %9970 = vmatpush1.bf16.msra.mxu1 %v14807_v49  ;;  %v14845_v49 = vld [vmem:[#allocation10 + $0x44] ss:$8 sps:$4 sm:$0xff]  }
0x1460   :  { %9080 = vmatpush1.bf16.msra.mxu0 %v14819_v4  ;;  %9971 = vmatprep.subr.bf16.mxu1 %v14812_v6 }
0x1461   :  { %9081 = vmatprep.subr.bf16.mxu0 %v14824_v33 }
0x1463   :  { %9972 = vmatpush1.bf16.msra.mxu1 %v14810_v46 }
0x1464   :  { %9082 = vmatpush1.bf16.msra.mxu0 %v14822_v21  ;;  %9973 = vmatprep.subr.bf16.mxu1 %v14815_v34 }
0x1465   :  { %9083 = vmatprep.subr.bf16.mxu0 %v14827_v7 }
0x1467   :  { %9974 = vmatpush1.bf16.msra.mxu1 %v14813_v27 }
0x1468   :  { %9975 = vmatprep.subr.bf16.mxu1 %v14818_v56  ;;  %9084 = vmatpush1.bf16.msra.mxu0 %v14825_v54  ;;  %v14843_v56 = vld [vmem:[#allocation10 + $0x40] ss:$8 sps:$4 sm:$0xff]  }
0x1469   :  { %9085 = vmatprep.subr.bf16.mxu0 %v14830_v55 }
0x146b   :  { %9976 = vmatpush1.bf16.msra.mxu1 %v14816_v47 }
0x146c   :  { %9977 = vmatprep.subr.bf16.mxu1 %v14821_v9  ;;  %9086 = vmatpush1.bf16.msra.mxu0 %v14828_v63 }
0x146d   :  { %9256 = vmatprep.subr.bf16.mxu0 %v14833_v61 }
0x146f   :  { %9978 = vmatpush1.bf16.msra.mxu1 %v14819_v4  ;;  %v14848_v4 = vld [vmem:[#allocation10 + $0x54] ss:$8 sps:$4 sm:$0xff]  }
0x1470   :  { %9979 = vmatprep.subr.bf16.mxu1 %v14824_v33 }
0x1473   :  { %9980 = vmatpush1.bf16.msra.mxu1 %v14822_v21  ;;  %v14846_v21 = vld [vmem:[#allocation10 + $0x50] ss:$8 sps:$4 sm:$0xff]  }
0x1474   :  { %9981 = vmatprep.subr.bf16.mxu1 %v14827_v7  ;;  %v14849_v7 = vld [vmem:[#allocation10 + $0x60] ss:$8 sps:$4 sm:$0xff]  }
0x1477   :  { %9982 = vmatpush1.bf16.msra.mxu1 %v14825_v54  ;;  %v14851_v54 = vld [vmem:[#allocation10 + $0x64] ss:$8 sps:$4 sm:$0xff]  }
0x1478   :  { %9983 = vmatprep.subr.bf16.mxu1 %v14830_v55  ;;  %v14852_v55 = vld [vmem:[#allocation10 + $0x70] ss:$8 sps:$4 sm:$0xff]  }
0x147b   :  { %9984 = vmatpush1.bf16.msra.mxu1 %v14828_v63  ;;  %v14854_v63 = vld [vmem:[#allocation10 + $0x74] ss:$8 sps:$4 sm:$0xff]  }
0x147c   :  { %9994 = vmatprep.subr.bf16.mxu1 %v14833_v61  ;;  %v14857_v61 = vld [vmem:[#allocation10 + $0x84] ss:$8 sps:$4 sm:$0xff]  }
0x14f9   :  { %v18560_v35 = vpop.f32.mrb[76].mxu1  ;;  %v18562_v58 = vpop.f32.mrb[120].mxu0 }
0x14fa   :  { %v18564_v1 = vpop.f32.mrb[77].mxu1  ;;  %v8778_v57 = vpop.f32.mrb[121].mxu0 }
0x14fb   :  { %v9337_v20 = vpop.f32.mrb[78].mxu1  ;;  %v8780_v60 = vpop.f32.mrb[122].mxu0  ;;  %v8784_v18 = vpack.c.bf16 %v8778_v57, %v8778_v57  ;;  %v14855_v57 = vld [vmem:[#allocation10 + $0x80] ss:$8 sps:$4 sm:$0xff]  }
0x14fc   :  { %v9338_v51 = vpop.f32.mrb[79].mxu1  ;;  %v8781_v15 = vpop.f32.mrb[123].mxu0  ;;  %v14860_v20 = vld [vmem:[#allocation10 + $0x94] ss:$8 sps:$4 sm:$0xff]   ;;  %v14858_v60 = vld [vmem:[#allocation10 + $0x90] ss:$8 sps:$4 sm:$0xff]  }
0x14fd   :  { %v14863_v51 = vld [vmem:[#allocation10 + $0xa4] ss:$8 sps:$4 sm:$0xff]   ;;  %v14861_v15 = vld [vmem:[#allocation10 + $0xa0] ss:$8 sps:$4 sm:$0xff]  }
0x1501   :  { %v8853_v28 = vpop.f32.mrb[124].mxu0  ;;  %v18566_v53 = vpop.f32.mrb[80].mxu1 }
0x1502   :  { %v8860_v0 = vpack.c.bf16 %v8853_v28, %v8853_v28  ;;  %v8855_v22 = vpop.f32.mrb[125].mxu0  ;;  %v18568_v19 = vpop.f32.mrb[81].mxu1  ;;  %v14866_v28 = vld [vmem:[#allocation10 + $0xb4] ss:$8 sps:$4 sm:$0xff]  }
0x1503   :  { %v8861_v40 = vpack.c.bf16 %v8855_v22, %v8855_v22  ;;  %v9618_v2 = vpop.f32.mrb[82].mxu1  ;;  %v8857_v12 = vpop.f32.mrb[126].mxu0  ;;  %v14869_v22 = vld [vmem:[#allocation10 + $0xc4] ss:$8 sps:$4 sm:$0xff]  }
0x1504   :  { %v9619_v25 = vpop.f32.mrb[83].mxu1  ;;  %v8858_v44 = vpop.f32.mrb[127].mxu0  ;;  %v14870_v2 = vld [vmem:[#allocation10 + $0xd0] ss:$8 sps:$4 sm:$0xff]   ;;  %v14873_v12 = vld [vmem:[#allocation10 + $0xe0] ss:$8 sps:$4 sm:$0xff]  }
0x1505   :  { %9087 = vmatprep.mubr.bf16.mxu0 %v8861_v40  ;;  %v14872_v40 = vld [vmem:[#allocation10 + $0xd4] ss:$8 sps:$4 sm:$0xff]   ;;  %v14881_v44 = vld [vmem:[#allocation10 + $0x204] ss:$8 sps:$4 sm:$0xff]  }
0x1506   :  { %9088 = vmatmul.mubr.bf16.vlgmr.msra.gmra.mrb[128].mxu0 %v8860_v0  ;;  %v14864_v0 = vld [vmem:[#allocation10 + $0xb0] ss:$8 sps:$4 sm:$0xff]   ;;  %v14878_v25 = vld [vmem:[#allocation10 + $0xf4] ss:$8 sps:$4 sm:$0xff]  }
0x1507   :  { %9257 = vmatpush1.bf16.msra.mxu0 %v14831_v50  ;;  %9288 = vmatprep.mubr.bf16.mxu0 %v8784_v18  ;;  %v14867_v18 = vld [vmem:[#allocation10 + $0xc0] ss:$8 sps:$4 sm:$0xff]  }
0x1508   :  { %9258 = vmatprep.subr.bf16.mxu0 %v14836_v16 }
0x1509   :  { %v18570_v52 = vpop.f32.mrb[84].mxu1 }
0x150a   :  { %v9903_v48 = vpop.f32.mrb[85].mxu1 }
0x150b   :  { %9259 = vmatpush1.bf16.msra.mxu0 %v14834_v37  ;;  %v9905_v8 = vpop.f32.mrb[86].mxu1  ;;  %v9909_v33 = vpack.c.bf16 %v9903_v48, %v9903_v48  ;;  %v14884_v48 = vld [vmem:[#allocation10 + $0x214] ss:$8 sps:$4 sm:$0xff]  }
0x150c   :  { %9260 = vmatprep.subr.bf16.mxu0 %v14839_v41  ;;  %v9906_v11 = vpop.f32.mrb[87].mxu1  ;;  %v9341_v8 = vpack.c.bf16 %v18564_v1, %v18564_v1  ;;  %v14891_v1 = vld [vmem:[#allocation10 + $0x240] ss:$8 sps:$4 sm:$0xff]  }
0x150d   :  { %v14887_v11 = vld [vmem:[#allocation10 + $0x224] ss:$8 sps:$4 sm:$0xff]  }
0x150f   :  { %9261 = vmatpush1.bf16.msra.mxu0 %v14837_v13 }
0x1510   :  { %9262 = vmatprep.subr.bf16.mxu0 %v14842_v32 }
0x1511   :  { %v9944_v6 = vpop.f32.mrb[88].mxu1 }
0x1512   :  { %v9946_v46 = vpop.f32.mrb[89].mxu1  ;;  %v9951_v47 = vpack.c.bf16 %v9944_v6, %v9944_v6  ;;  %v14896_v6 = vld [vmem:[#allocation10 + $0x254] ss:$8 sps:$4 sm:$0xff]  }
0x1513   :  { %9263 = vmatpush1.bf16.msra.mxu0 %v14840_v30  ;;  %v9952_v34 = vpack.c.bf16 %v9946_v46, %v9946_v46  ;;  %v9948_v27 = vpop.f32.mrb[90].mxu1  ;;  %v9908_v46 = vpack.c.bf16 %v18570_v52, %v18570_v52  ;;  %v14900_v52 = vld [vmem:[#allocation10 + $0x270] ss:$8 sps:$4 sm:$0xff]  }
0x1514   :  { %9264 = vmatprep.subr.bf16.mxu0 %v14845_v49  ;;  %v9949_v9 = vpop.f32.mrb[91].mxu1  ;;  %v14899_v27 = vld [vmem:[#allocation10 + $0x264] ss:$8 sps:$4 sm:$0xff]  }
0x1515   :  { %9985 = vmatprep.mubr.bf16.mxu1 %v9952_v34  ;;  %v14894_v34 = vld [vmem:[#allocation10 + $0x250] ss:$8 sps:$4 sm:$0xff]   ;;  %v14905_v9 = vld [vmem:[#allocation10 + $0x284] ss:$8 sps:$4 sm:$0xff]  }
0x1516   :  { %9986 = vmatmul.mubr.bf16.vlgmr.msra.gmra.mrb[92].mxu1 %v9951_v47  ;;  %v14902_v47 = vld [vmem:[#allocation10 + $0x274] ss:$8 sps:$4 sm:$0xff]  }
0x1517   :  { %9265 = vmatpush1.bf16.msra.mxu0 %v14843_v56  ;;  %9995 = vmatpush1.bf16.msra.mxu1 %v14831_v50  ;;  %v14875_v50 = vld [vmem:[#allocation10 + $0xe4] ss:$8 sps:$4 sm:$0xff]  }
0x1518   :  { %10026 = vmatprep.mubr.bf16.mxu1 %v9909_v33  ;;  %9266 = vmatprep.subr.bf16.mxu0 %v14848_v4  ;;  %v14908_v33 = vld [vmem:[#allocation10 + $0x294] ss:$8 sps:$4 sm:$0xff]  }
0x1519   :  { %9996 = vmatprep.subr.bf16.mxu1 %v14836_v16  ;;  %v14876_v16 = vld [vmem:[#allocation10 + $0xf0] ss:$8 sps:$4 sm:$0xff]  }
0x151b   :  { %9267 = vmatpush1.bf16.msra.mxu0 %v14846_v21  ;;  %9997 = vmatpush1.bf16.msra.mxu1 %v14834_v37  ;;  %v8783_v37 = vpack.c.bf16 %v18562_v58, %v18562_v58  ;;  %v14890_v58 = vld [vmem:[#allocation10 + $0x234] ss:$8 sps:$4 sm:$0xff]  }
0x151c   :  { %9268 = vmatprep.subr.bf16.mxu0 %v14851_v54  ;;  %9998 = vmatprep.subr.bf16.mxu1 %v14839_v41  ;;  %v14879_v41 = vld [vmem:[#allocation10 + $0x200] ss:$8 sps:$4 sm:$0xff]  }
0x151f   :  { %9269 = vmatpush1.bf16.msra.mxu0 %v14849_v7  ;;  %9999 = vmatpush1.bf16.msra.mxu1 %v14837_v13  ;;  %v14882_v13 = vld [vmem:[#allocation10 + $0x210] ss:$8 sps:$4 sm:$0xff]  }
0x1520   :  { %9270 = vmatprep.subr.bf16.mxu0 %v14854_v63  ;;  %10000 = vmatprep.subr.bf16.mxu1 %v14842_v32  ;;  %v14885_v32 = vld [vmem:[#allocation10 + $0x220] ss:$8 sps:$4 sm:$0xff]  }
0x1523   :  { %9271 = vmatpush1.bf16.msra.mxu0 %v14852_v55  ;;  %10001 = vmatpush1.bf16.msra.mxu1 %v14840_v30  ;;  %v14888_v30 = vld [vmem:[#allocation10 + $0x230] ss:$8 sps:$4 sm:$0xff]  }
0x1524   :  { %9272 = vmatprep.subr.bf16.mxu0 %v14857_v61  ;;  %10002 = vmatprep.subr.bf16.mxu1 %v14845_v49  ;;  %v14893_v49 = vld [vmem:[#allocation10 + $0x244] ss:$8 sps:$4 sm:$0xff]  }
0x1527   :  { %9273 = vmatpush1.bf16.msra.mxu0 %v14855_v57  ;;  %10003 = vmatpush1.bf16.msra.mxu1 %v14843_v56  ;;  %v14897_v56 = vld [vmem:[#allocation10 + $0x260] ss:$8 sps:$4 sm:$0xff]  }
0x1528   :  { %9274 = vmatprep.subr.bf16.mxu0 %v14860_v20  ;;  %10004 = vmatprep.subr.bf16.mxu1 %v14848_v4  ;;  %v14903_v4 = vld [vmem:[#allocation10 + $0x280] ss:$8 sps:$4 sm:$0xff]  }
0x152b   :  { %9275 = vmatpush1.bf16.msra.mxu0 %v14858_v60  ;;  %10005 = vmatpush1.bf16.msra.mxu1 %v14846_v21  ;;  %v14906_v21 = vld [vmem:[#allocation10 + $0x290] ss:$8 sps:$4 sm:$0xff]  }
0x152c   :  { %9276 = vmatprep.subr.bf16.mxu0 %v14863_v51  ;;  %10006 = vmatprep.subr.bf16.mxu1 %v14851_v54  ;;  %v14911_v54 = vld [vmem:[#allocation10 + $0x2a4] ss:$8 sps:$4 sm:$0xff]  }
0x152f   :  { %9277 = vmatpush1.bf16.msra.mxu0 %v14861_v15  ;;  %10007 = vmatpush1.bf16.msra.mxu1 %v14849_v7  ;;  %v14914_v7 = vld [vmem:[#allocation10 + $0x2b4] ss:$8 sps:$4 sm:$0xff]  }
0x1530   :  { %9278 = vmatprep.subr.bf16.mxu0 %v14866_v28  ;;  %10008 = vmatprep.subr.bf16.mxu1 %v14854_v63  ;;  %v14912_v63 = vld [vmem:[#allocation10 + $0x2b0] ss:$8 sps:$4 sm:$0xff]  }
0x1533   :  { %9279 = vmatpush1.bf16.msra.mxu0 %v14864_v0  ;;  %10009 = vmatpush1.bf16.msra.mxu1 %v14852_v55  ;;  %v14917_v55 = vld [vmem:[#allocation10 + $0x2c4] ss:$8 sps:$4 sm:$0xff]  }
0x1534   :  { %9280 = vmatprep.subr.bf16.mxu0 %v14869_v22  ;;  %10010 = vmatprep.subr.bf16.mxu1 %v14857_v61  ;;  %v14915_v61 = vld [vmem:[#allocation10 + $0x2c0] ss:$8 sps:$4 sm:$0xff]  }
0x1537   :  { %9281 = vmatpush1.bf16.msra.mxu0 %v14867_v18  ;;  %10011 = vmatpush1.bf16.msra.mxu1 %v14855_v57  ;;  %v14920_v57 = vld [vmem:[#allocation10 + $0x2d4] ss:$8 sps:$4 sm:$0xff]  }
0x1538   :  { %9282 = vmatprep.subr.bf16.mxu0 %v14872_v40  ;;  %10012 = vmatprep.subr.bf16.mxu1 %v14860_v20  ;;  %v14918_v20 = vld [vmem:[#allocation10 + $0x2d0] ss:$8 sps:$4 sm:$0xff]  }
0x153b   :  { %9283 = vmatpush1.bf16.msra.mxu0 %v14870_v2  ;;  %10013 = vmatpush1.bf16.msra.mxu1 %v14858_v60  ;;  %v14923_v60 = vld [vmem:[#allocation10 + $0x2e4] ss:$8 sps:$4 sm:$0xff]  }
0x153c   :  { %9284 = vmatprep.subr.bf16.mxu0 %v14875_v50  ;;  %10014 = vmatprep.subr.bf16.mxu1 %v14863_v51  ;;  %v14921_v51 = vld [vmem:[#allocation10 + $0x2e0] ss:$8 sps:$4 sm:$0xff]  }
0x153f   :  { %9285 = vmatpush1.bf16.msra.mxu0 %v14873_v12  ;;  %10015 = vmatpush1.bf16.msra.mxu1 %v14861_v15  ;;  %v14926_v15 = vld [vmem:[#allocation10 + $0x2f4] ss:$8 sps:$4 sm:$0xff]  }
0x1540   :  { %9286 = vmatprep.subr.bf16.mxu0 %v14878_v25  ;;  %10016 = vmatprep.subr.bf16.mxu1 %v14866_v28  ;;  %v14924_v28 = vld [vmem:[#allocation10 + $0x2f0] ss:$8 sps:$4 sm:$0xff]  }
0x1543   :  { %9287 = vmatpush1.bf16.msra.mxu0 %v14876_v16  ;;  %10017 = vmatpush1.bf16.msra.mxu1 %v14864_v0  ;;  %v18584_v0 = vld [vmem:[#allocation10 + $0x304] ss:$8 sps:$4 sm:$0xff]  }
0x1544   :  { %9535 = vmatprep.subr.bf16.mxu0 %v14881_v44  ;;  %10018 = vmatprep.subr.bf16.mxu1 %v14869_v22  ;;  %v18586_v22 = vld [vmem:[#allocation10 + $0x300] ss:$8 sps:$4 sm:$0xff]  }
0x1546   :  { %9289 = vmatmul.mubr.bf16.vlgmr.msra.gmra.mrb[128].mxu0 %v8783_v37  ;;  %v18617_v37 = vld [vmem:[#allocation10 + $0x354] ss:$8 sps:$4 sm:$0xff]  }
0x1547   :  { %9536 = vmatpush1.bf16.msra.mxu0 %v14879_v41  ;;  %9567 = vmatprep.mubr.bf16.mxu0 %v9341_v8  ;;  %v18626_v8 = vld [vmem:[#allocation10 + $0x360] ss:$8 sps:$4 sm:$0xff]  }
0x1548   :  { %10019 = vmatpush1.bf16.msra.mxu1 %v14867_v18  ;;  %9537 = vmatprep.subr.bf16.mxu0 %v14884_v48  ;;  %v9340_v18 = vpack.c.bf16 %v18560_v35, %v18560_v35  ;;  %v18602_v35 = vld [vmem:[#allocation10 + $0x320] ss:$8 sps:$4 sm:$0xff]  }
0x1549   :  { %10020 = vmatprep.subr.bf16.mxu1 %v14872_v40  ;;  %v18591_v40 = vld [vmem:[#allocation10 + $0x314] ss:$8 sps:$4 sm:$0xff]  }
0x154b   :  { %9538 = vmatpush1.bf16.msra.mxu0 %v14882_v13 }
0x154c   :  { %10021 = vmatpush1.bf16.msra.mxu1 %v14870_v2  ;;  %9539 = vmatprep.subr.bf16.mxu0 %v14887_v11  ;;  %v9622_v2 = vpack.c.bf16 %v18568_v19, %v18568_v19  ;;  %v18605_v19 = vld [vmem:[#allocation10 + $0x334] ss:$8 sps:$4 sm:$0xff]  }
0x154d   :  { %10022 = vmatprep.subr.bf16.mxu1 %v14875_v50  ;;  %v18596_v50 = vld [vmem:[#allocation10 + $0x310] ss:$8 sps:$4 sm:$0xff]  }
0x154f   :  { %9540 = vmatpush1.bf16.msra.mxu0 %v14885_v32 }
0x1550   :  { %10023 = vmatpush1.bf16.msra.mxu1 %v14873_v12  ;;  %9541 = vmatprep.subr.bf16.mxu0 %v14890_v58  ;;  %v18599_v12 = vld [vmem:[#allocation10 + $0x324] ss:$8 sps:$4 sm:$0xff]  }
0x1551   :  { %10024 = vmatprep.subr.bf16.mxu1 %v14878_v25  ;;  %v18608_v25 = vld [vmem:[#allocation10 + $0x330] ss:$8 sps:$4 sm:$0xff]  }
0x1553   :  { %9542 = vmatpush1.bf16.msra.mxu0 %v14888_v30 }
0x1554   :  { %10025 = vmatpush1.bf16.msra.mxu1 %v14876_v16  ;;  %9543 = vmatprep.subr.bf16.mxu0 %v14893_v49  ;;  %v18611_v16 = vld [vmem:[#allocation10 + $0x344] ss:$8 sps:$4 sm:$0xff]  }
0x1555   :  { %12874 = vmatprep.subr.msk.bf16.mxu1 %vm19645_vm14, %v18533_v3 }
0x1557   :  { %10027 = vmatmul.mubr.bf16.vlgmr.msra.gmra.mrb[92].mxu1 %v9908_v46  ;;  %9544 = vmatpush1.bf16.msra.mxu0 %v14891_v1  ;;  %v14962_v46 = vld [vmem:[#allocation10 + $0x3b4] ss:$8 sps:$4 sm:$0xff]  }
0x1558   :  { %10036 = vmatpush1.bf16.msra.mxu1 %v18548_v62  ;;  %9545 = vmatprep.subr.bf16.mxu0 %v14896_v6 }
0x1559   :  { %10067 = vmatprep.mubr.bf16.mxu1 %v20189_v10  ;;  %10078 = vmatprep.subr.bf16.mxu1 %v14881_v44  ;;  %v18614_v44 = vld [vmem:[#allocation10 + $0x340] ss:$8 sps:$4 sm:$0xff]  }
0x155b   :  { %9546 = vmatpush1.bf16.msra.mxu0 %v14894_v34 }
0x155c   :  { %9547 = vmatprep.subr.bf16.mxu0 %v14899_v27 }
0x155f   :  { %12875 = vmatmul.mubr.msk.bf16.vlgmr.msra.gmra.mrb[96].mxu1 %vm8732_vm15, %v20197_v17  ;;  %9548 = vmatpush1.bf16.msra.mxu0 %v14897_v56  ;;  %v14909_v17 = vld [vmem:[#allocation10 + $0x2a0] ss:$8 sps:$4 sm:$0xff]  }
0x1560   :  { %10079 = vmatpush1.bf16.msra.mxu1 %v14879_v41  ;;  %9549 = vmatprep.subr.bf16.mxu0 %v14902_v47  ;;  %v18620_v41 = vld [vmem:[#allocation10 + $0x350] ss:$8 sps:$4 sm:$0xff]  }
0x1561   :  { %10080 = vmatprep.subr.bf16.mxu1 %v14884_v48  ;;  %v18623_v48 = vld [vmem:[#allocation10 + $0x364] ss:$8 sps:$4 sm:$0xff]  }
0x1563   :  { %9550 = vmatpush1.bf16.msra.mxu0 %v14900_v52 }
0x1564   :  { %10081 = vmatpush1.bf16.msra.mxu1 %v14882_v13  ;;  %9551 = vmatprep.subr.bf16.mxu0 %v14905_v9  ;;  %v18629_v13 = vld [vmem:[#allocation10 + $0x374] ss:$8 sps:$4 sm:$0xff]  }
0x1565   :  { %10082 = vmatprep.subr.bf16.mxu1 %v14887_v11  ;;  %v14948_v11 = vld [vmem:[#allocation10 + $0x370] ss:$8 sps:$4 sm:$0xff]  }
0x1567   :  { %9552 = vmatpush1.bf16.msra.mxu0 %v14903_v4 }
0x1568   :  { %10083 = vmatpush1.bf16.msra.mxu1 %v14885_v32  ;;  %9553 = vmatprep.subr.bf16.mxu0 %v14908_v33  ;;  %v14953_v32 = vld [vmem:[#allocation10 + $0x384] ss:$8 sps:$4 sm:$0xff]  }
0x1569   :  { %10084 = vmatprep.subr.bf16.mxu1 %v14890_v58  ;;  %v14951_v58 = vld [vmem:[#allocation10 + $0x380] ss:$8 sps:$4 sm:$0xff]  }
0x156b   :  { %9554 = vmatpush1.bf16.msra.mxu0 %v14906_v21 }
0x156c   :  { %10085 = vmatpush1.bf16.msra.mxu1 %v14888_v30  ;;  %9555 = vmatprep.subr.bf16.mxu0 %v14911_v54  ;;  %v14956_v30 = vld [vmem:[#allocation10 + $0x394] ss:$8 sps:$4 sm:$0xff]  }
0x156d   :  { %10086 = vmatprep.subr.bf16.mxu1 %v14893_v49  ;;  %v14954_v49 = vld [vmem:[#allocation10 + $0x390] ss:$8 sps:$4 sm:$0xff]  }
0x156f   :  { %9556 = vmatpush1.bf16.msra.mxu0 %v14909_v17 }
0x1570   :  { %10087 = vmatpush1.bf16.msra.mxu1 %v14891_v1  ;;  %9557 = vmatprep.subr.bf16.mxu0 %v14914_v7  ;;  %v14959_v1 = vld [vmem:[#allocation10 + $0x3a4] ss:$8 sps:$4 sm:$0xff]  }
0x1571   :  { %10088 = vmatprep.subr.bf16.mxu1 %v14896_v6  ;;  %v14957_v6 = vld [vmem:[#allocation10 + $0x3a0] ss:$8 sps:$4 sm:$0xff]  }
0x1573   :  { %9558 = vmatpush1.bf16.msra.mxu0 %v14912_v63 }
0x1574   :  { %10089 = vmatpush1.bf16.msra.mxu1 %v14894_v34  ;;  %9559 = vmatprep.subr.bf16.mxu0 %v14917_v55  ;;  %v14965_v34 = vld [vmem:[#allocation10 + $0x3c4] ss:$8 sps:$4 sm:$0xff]  }
0x1575   :  { %10090 = vmatprep.subr.bf16.mxu1 %v14899_v27  ;;  %v14963_v27 = vld [vmem:[#allocation10 + $0x3c0] ss:$8 sps:$4 sm:$0xff]  }
0x1577   :  { %9560 = vmatpush1.bf16.msra.mxu0 %v14915_v61 }
0x1578   :  { %10091 = vmatpush1.bf16.msra.mxu1 %v14897_v56  ;;  %9561 = vmatprep.subr.bf16.mxu0 %v14920_v57  ;;  %v14968_v56 = vld [vmem:[#allocation10 + $0x3d4] ss:$8 sps:$4 sm:$0xff]  }
0x1579   :  { %10092 = vmatprep.subr.bf16.mxu1 %v14902_v47  ;;  %v14966_v47 = vld [vmem:[#allocation10 + $0x3d0] ss:$8 sps:$4 sm:$0xff]  }
0x157b   :  { %9562 = vmatpush1.bf16.msra.mxu0 %v14918_v20 }
0x157c   :  { %10093 = vmatpush1.bf16.msra.mxu1 %v14900_v52  ;;  %9563 = vmatprep.subr.bf16.mxu0 %v14923_v60  ;;  %v14971_v52 = vld [vmem:[#allocation10 + $0x3e4] ss:$8 sps:$4 sm:$0xff]  }
0x157d   :  { %10094 = vmatprep.subr.bf16.mxu1 %v14905_v9  ;;  %v14969_v9 = vld [vmem:[#allocation10 + $0x3e0] ss:$8 sps:$4 sm:$0xff]  }
0x157f   :  { %9564 = vmatpush1.bf16.msra.mxu0 %v14921_v51 }
0x1580   :  { %10095 = vmatpush1.bf16.msra.mxu1 %v14903_v4  ;;  %9565 = vmatprep.subr.bf16.mxu0 %v14926_v15  ;;  %v14974_v4 = vld [vmem:[#allocation10 + $0x3f4] ss:$8 sps:$4 sm:$0xff]  }
0x1581   :  { %10096 = vmatprep.subr.bf16.mxu1 %v14908_v33  ;;  %v14972_v33 = vld [vmem:[#allocation10 + $0x3f0] ss:$8 sps:$4 sm:$0xff]  }
0x1583   :  { %9566 = vmatpush1.bf16.msra.mxu0 %v14924_v28 }
0x1584   :  { %10097 = vmatpush1.bf16.msra.mxu1 %v14906_v21  ;;  %9816 = vmatprep.subr.bf16.mxu0 %v18584_v0  ;;  %v9621_v21 = vpack.c.bf16 %v18566_v53, %v18566_v53  ;;  %v20201_v53 = vld [vmem:[#allocation31_spill] sm:$0xff] }
0x1585   :  { %10098 = vmatprep.subr.bf16.mxu1 %v14911_v54 }
0x1586   :  { %9568 = vmatmul.mubr.bf16.vlgmr.msra.gmra.mrb[128].mxu0 %v9340_v18  ;;  %v10300_v18 = vand.u32 127, %v20183_v45 }
0x1587   :  { %9817 = vmatpush1.bf16.msra.mxu0 %v18586_v22  ;;  %9848 = vmatprep.mubr.bf16.mxu0 %v9622_v2 }
0x1588   :  { %10099 = vmatpush1.bf16.msra.mxu1 %v14909_v17  ;;  %9818 = vmatprep.subr.bf16.mxu0 %v18591_v40  ;;  %vm18728_vm1 = vcmp.eq.s32.totalorder %v10300_v18, %v20181_v24  ;;  %v20252_v18 = vmov 0 }
0x1589   :  { %10100 = vmatprep.subr.bf16.mxu1 %v14914_v7 }
0x158b   :  { %9819 = vmatpush1.bf16.msra.mxu0 %v18596_v50 }
0x158c   :  { %10101 = vmatpush1.bf16.msra.mxu1 %v14912_v63  ;;  %9820 = vmatprep.subr.bf16.mxu0 %v18599_v12 }
0x158d   :  { %10102 = vmatprep.subr.bf16.mxu1 %v14917_v55 }
0x158f   :  { %9821 = vmatpush1.bf16.msra.mxu0 %v18602_v35 }
0x1590   :  { %10103 = vmatpush1.bf16.msra.mxu1 %v14915_v61  ;;  %9822 = vmatprep.subr.bf16.mxu0 %v18605_v19 }
0x1591   :  { %10104 = vmatprep.subr.bf16.mxu1 %v14920_v57  ;;  %v10398_v57 = vand.u32 127, %v20201_v53  ;;  %v20243_v53 = vld [vmem:[#allocation43_spill] sm:$0xff] }
0x1593   :  { %9823 = vmatpush1.bf16.msra.mxu0 %v18608_v25  ;;  %vm18672_vm2 = vcmp.eq.s32.totalorder %v10398_v57, %v20181_v24  ;;  %v10454_v57 = vand.u32 127, %v20243_v53  ;;  %v20274_v53 = vmov 0 }
0x1594   :  { %10105 = vmatpush1.bf16.msra.mxu1 %v14918_v20  ;;  %9824 = vmatprep.subr.bf16.mxu0 %v18611_v16  ;;  %v10279_v20 = vand.u32 127, %v20179_v38 }
0x1595   :  { %10106 = vmatprep.subr.bf16.mxu1 %v14923_v60  ;;  %v10286_v60 = vand.u32 127, %v20180_v39 }
0x1596   :  { %vm18677_vm13 = vcmp.eq.s32.totalorder %v10279_v20, %v20181_v24  ;;  %v20244_v20 = vld [vmem:[#allocation44_spill] sm:$0xff] }
0x1597   :  { %9825 = vmatpush1.bf16.msra.mxu0 %v18614_v44  ;;  %vm18682_vm5 = vcmp.eq.s32.totalorder %v10286_v60, %v20181_v24  ;;  %v10335_v60 = vand.u32 127, %v20244_v20 }
0x1598   :  { %10107 = vmatpush1.bf16.msra.mxu1 %v14921_v51  ;;  %9826 = vmatprep.subr.bf16.mxu0 %v18617_v37  ;;  %v20202_v51 = vld [vmem:[#allocation32_spill] sm:$0xff]  ;;  %vm19644_vm12 = vmpackc.low %vm18682_vm5, %vm18677_vm13 }
0x1599   :  { %10108 = vmatprep.subr.bf16.mxu1 %v14926_v15  ;;  %v10405_v15 = vand.u32 127, %v20202_v51  ;;  %v20245_v51 = vld [vmem:[#allocation45_spill] sm:$0xff] }
0x159b   :  { %9827 = vmatpush1.bf16.msra.mxu0 %v18620_v41  ;;  %vm18693_vm11 = vcmp.eq.s32.totalorder %v10405_v15, %v20181_v24  ;;  %v10342_v15 = vand.u32 127, %v20245_v51 }
0x159c   :  { %10109 = vmatpush1.bf16.msra.mxu1 %v14924_v28  ;;  %9828 = vmatprep.subr.bf16.mxu0 %v18623_v48  ;;  %v20203_v28 = vld [vmem:[#allocation33_spill] sm:$0xff] }
0x159d   :  { %12876 = vmatprep.subr.msk.bf16.mxu1 %vm19645_vm14, %v18533_v3  ;;  %v14960_v3 = vld [vmem:[#allocation10 + $0x3b0] ss:$8 sps:$4 sm:$0xff]  }
0x159f   :  { %9829 = vmatpush1.bf16.msra.mxu0 %v18626_v8 }
0x15a0   :  { %9830 = vmatprep.subr.bf16.mxu0 %v18629_v13 }
0x15a3   :  { %9831 = vmatpush1.bf16.msra.mxu0 %v14948_v11 }
0x15a4   :  { %9832 = vmatprep.subr.bf16.mxu0 %v14953_v32 }
0x15a7   :  { %9833 = vmatpush1.bf16.msra.mxu0 %v14951_v58 }
0x15a8   :  { %9834 = vmatprep.subr.bf16.mxu0 %v14956_v30 }
0x15ab   :  { %9835 = vmatpush1.bf16.msra.mxu0 %v14954_v49 }
0x15ac   :  { %9836 = vmatprep.subr.bf16.mxu0 %v14959_v1 }
0x15af   :  { %9837 = vmatpush1.bf16.msra.mxu0 %v14957_v6 }
0x15b0   :  { %9838 = vmatprep.subr.bf16.mxu0 %v14962_v46 }
0x15b3   :  { %9839 = vmatpush1.bf16.msra.mxu0 %v14960_v3 }
0x15b4   :  { %9840 = vmatprep.subr.bf16.mxu0 %v14965_v34 }
0x15b7   :  { %9841 = vmatpush1.bf16.msra.mxu0 %v14963_v27 }
0x15b8   :  { %9842 = vmatprep.subr.bf16.mxu0 %v14968_v56 }
0x15bb   :  { %9843 = vmatpush1.bf16.msra.mxu0 %v14966_v47 }
0x15bc   :  { %9844 = vmatprep.subr.bf16.mxu0 %v14971_v52 }
0x15bf   :  { %9845 = vmatpush1.bf16.msra.mxu0 %v14969_v9 }
0x15c0   :  { %9846 = vmatprep.subr.bf16.mxu0 %v14974_v4 }
0x15c3   :  { %9847 = vmatpush1.bf16.msra.mxu0 %v14972_v33 }
0x15c6   :  { %9849 = vmatmul.mubr.bf16.vlgmr.msra.gmra.mrb[128].mxu0 %v9621_v21  ;;  %v20240_v21 = vmov 0 }
0x1632   :  { %v10069_v54 = vpop.f32.mrb[96].mxu1 }
0x1633   :  { %v10071_v17 = vpop.f32.mrb[97].mxu1  ;;  %v10076_v55 = vpack.c.bf16 %v10069_v54, %v10069_v54 }
0x1634   :  { %v10077_v7 = vpack.c.bf16 %v10071_v17, %v10071_v17  ;;  %v10073_v63 = vpop.f32.mrb[98].mxu1 }
0x1635   :  { %v10074_v61 = vpop.f32.mrb[99].mxu1 }
0x1636   :  { %10110 = vmatprep.mubr.bf16.mxu1 %v10077_v7 }
0x1637   :  { %10111 = vmatmul.mubr.bf16.vlgmr.msra.gmra.mrb[92].mxu1 %v10076_v55 }
0x1638   :  { %10122 = vmatpush1.bf16.msra.mxu1 %v18548_v62  ;;  %10153 = vmatprep.mubr.bf16.mxu1 %v20189_v10 }
0x1639   :  { %10164 = vmatprep.subr.bf16.mxu1 %v18584_v0  ;;  %v10412_v0 = vand.u32 127, %v20203_v28  ;;  %v20246_v28 = vmov 0 }
0x163b   :  { %vm18698_vm3 = vcmp.eq.s32.totalorder %v10412_v0, %v20181_v24  ;;  %v20248_v0 = vmov 0 }
0x163c   :  { %vm19642_vm6 = vmpackc.low %vm18698_vm3, %vm18693_vm11 }
0x163f   :  { %12877 = vmatmul.mubr.msk.bf16.vlgmr.msra.gmra.mrb[100].mxu1 %vm8732_vm15, %v20199_v31  ;;  %v20200_v31 = vld [vmem:[#allocation30_spill] sm:$0xff] }
0x1640   :  { %10165 = vmatpush1.bf16.msra.mxu1 %v18586_v22  ;;  %v10391_v62 = vand.u32 127, %v20200_v31  ;;  %v10293_v22 = vand.u32 127, %v20182_v23  ;;  %v20242_v31 = vld [vmem:[#allocation42_spill] sm:$0xff] }
0x1641   :  { %10166 = vmatprep.subr.bf16.mxu1 %v18591_v40 }
0x1642   :  { %vm18667_vm7 = vcmp.eq.s32.totalorder %v10391_v62, %v20181_v24  ;;  %vm18713_vm0 = vcmp.eq.s32.totalorder %v10293_v22, %v20181_v24  ;;  %v10447_v62 = vand.u32 127, %v20242_v31  ;;  %v20250_v22 = vmov 0 }
0x1643   :  { %vm19647_vm9 = vmpackc.low %vm18672_vm2, %vm18667_vm7  ;;  %v20270_v31 = vmov 0 }
0x1644   :  { %10167 = vmatpush1.bf16.msra.mxu1 %v18596_v50  ;;  %13874 = vmatprep.subr.msk.bf16.mxu0 %vm19647_vm9, %v19789_v14  ;;  %vm19643_vm4 = vmpackc.low %vm18728_vm1, %vm18713_vm0 }
0x1645   :  { %10168 = vmatprep.subr.bf16.mxu1 %v18599_v12  ;;  %13876 = vmatpush3.bf16.msk.msra.mxu0 %vm19644_vm12, %v19789_v14  ;;  %v20343_v12 = vld [vmem:[#allocation21_spill] sm:$0xff] }
0x1646   :  { %13878 = vmatprep.subr.msk.bf16.mxu0 %vm19642_vm6, %v19789_v14 }
0x1648   :  { %10169 = vmatpush1.bf16.msra.mxu1 %v18602_v35  ;;  %v20344_v35 = vld [vmem:[#allocation36_spill] sm:$0xff] }
0x1649   :  { %10170 = vmatprep.subr.bf16.mxu1 %v18605_v19  ;;  %13880 = vmatpush3.bf16.msk.msra.mxu0 %vm19643_vm4, %v19789_v14 }
0x164c   :  { %10171 = vmatpush1.bf16.msra.mxu1 %v18608_v25  ;;  %v20346_v25 = vld [vmem:[#allocation40_spill] sm:$0xff] }
0x164d   :  { %10172 = vmatprep.subr.bf16.mxu1 %v18611_v16  ;;  %v20347_v16 = vld [vmem:[#allocation41_spill] sm:$0xff] }
0x1650   :  { %10173 = vmatpush1.bf16.msra.mxu1 %v18614_v44 }
0x1651   :  { %10174 = vmatprep.subr.bf16.mxu1 %v18617_v37  ;;  %v20348_v37 = vld [vmem:[#allocation44_spill] sm:$0xff] }
0x1654   :  { %10175 = vmatpush1.bf16.msra.mxu1 %v18620_v41 }
0x1655   :  { %10176 = vmatprep.subr.bf16.mxu1 %v18623_v48  ;;  %v20349_v48 = vld [vmem:[#allocation45_spill] sm:$0xff] }
0x1658   :  { %10177 = vmatpush1.bf16.msra.mxu1 %v18626_v8  ;;  %v20222_v8 = vld [vmem:[#allocation34_spill] sm:$0xff] }
0x1659   :  { %10178 = vmatprep.subr.bf16.mxu1 %v18629_v13  ;;  %v10419_v13 = vand.u32 127, %v20222_v8  ;;  %v20255_v8 = vld [vmem:[#allocation47_spill] sm:$0xff] }
0x165b   :  { %vm18745_vm10 = vcmp.eq.s32.totalorder %v10419_v13, %v20181_v24  ;;  %v10468_v13 = vand.u32 127, %v20255_v8  ;;  %v20280_v8 = vld [vmem:[#allocation56_spill] sm:$0xff] }
0x165c   :  { %10179 = vmatpush1.bf16.msra.mxu1 %v14948_v11  ;;  %v20223_v11 = vld [vmem:[#allocation35_spill] sm:$0xff] }
0x165d   :  { %10180 = vmatprep.subr.bf16.mxu1 %v14953_v32  ;;  %v10426_v32 = vand.u32 127, %v20223_v11  ;;  %v20256_v11 = vld [vmem:[#allocation48_spill] sm:$0xff] }
0x165f   :  { %vm18751_vm15 = vcmp.eq.s32.totalorder %v10426_v32, %v20181_v24  ;;  %v10349_v32 = vand.u32 127, %v20256_v11 }
0x1660   :  { %10181 = vmatpush1.bf16.msra.mxu1 %v14951_v58  ;;  %v20224_v58 = vmov 0  ;;  %vm19646_vm8 = vmpackc.low %vm18751_vm15, %vm18745_vm10 }
0x1661   :  { %10182 = vmatprep.subr.bf16.mxu1 %v14956_v30  ;;  %v20225_v58 = vsel %vm18745_vm10, 4294967295, %v20224_v58  ;;  %v10307_v30 = vand.u32 127, %v20184_v29  ;;  %13882 = vmatprep.subr.msk.bf16.mxu0 %vm19646_vm8, %v19789_v14 }
0x1663   :  { %vm18767_vm6 = vcmp.eq.s32.totalorder %v10307_v30, %v20181_v24  ;;  %v20257_v30 = vld [vmem:[#allocation49_spill] sm:$0xff] }
0x1664   :  { %10183 = vmatpush1.bf16.msra.mxu1 %v14954_v49  ;;  %v20351_v49 = vld [vmem:[#allocation49_spill] sm:$0xff] }
0x1665   :  { %10184 = vmatprep.subr.bf16.mxu1 %v14959_v1  ;;  %v10314_v1 = vand.u32 127, %v20185_v26 }
0x1667   :  { %vm18779_vm4 = vcmp.eq.s32.totalorder %v10314_v1, %v20181_v24  ;;  %v10356_v1 = vand.u32 127, %v20257_v30 }
0x1668   :  { %10185 = vmatpush1.bf16.msra.mxu1 %v14957_v6  ;;  %v20228_v6 = vmov 0  ;;  %vm19650_vm12 = vmpackc.low %vm18779_vm4, %vm18767_vm6 }
0x1669   :  { %10186 = vmatprep.subr.bf16.mxu1 %v14962_v46  ;;  %v20229_v6 = vsel %vm18767_vm6, 4294967295, %v20228_v6  ;;  %v20230_v46 = vld [vmem:[#allocation38_spill] sm:$0xff]  ;;  %13884 = vmatpush3.bf16.msk.msra.mxu0 %vm19650_vm12, %v19789_v14 }
0x166c   :  { %10187 = vmatpush1.bf16.msra.mxu1 %v14960_v3  ;;  %v10433_v3 = vand.u32 127, %v20230_v46  ;;  %v20258_v46 = vmov 0 }
0x166d   :  { %10188 = vmatprep.subr.bf16.mxu1 %v14965_v34  ;;  %v20231_v34 = vmov 0 }
0x166e   :  { %v20232_v34 = vsel %vm18779_vm4, 4294967295, %v20231_v34  ;;  %vm18789_vm14 = vcmp.eq.s32.totalorder %v10433_v3, %v20181_v24  ;;  %v20260_v3 = vmov 0 }
0x1670   :  { %10189 = vmatpush1.bf16.msra.mxu1 %v14963_v27  ;;  %v20233_v27 = vld [vmem:[#allocation39_spill] sm:$0xff] }
0x1671   :  { %10190 = vmatprep.subr.bf16.mxu1 %v14968_v56  ;;  %v10440_v56 = vand.u32 127, %v20233_v27  ;;  %v20262_v27 = vmov 0 }
0x1673   :  { %vm18795_vm8 = vcmp.eq.s32.totalorder %v10440_v56, %v20181_v24  ;;  %v20264_v56 = vmov 0 }
0x1674   :  { %10191 = vmatpush1.bf16.msra.mxu1 %v14966_v47  ;;  %v20234_v47 = vmov 0  ;;  %vm19652_vm9 = vmpackc.low %vm18795_vm8, %vm18789_vm14 }
0x1675   :  { %10192 = vmatprep.subr.bf16.mxu1 %v14971_v52  ;;  %v20235_v47 = vsel %vm18789_vm14, 4294967295, %v20234_v47  ;;  %v10321_v52 = vand.u32 127, %v20186_v42  ;;  %13886 = vmatprep.subr.msk.bf16.mxu0 %vm19652_vm9, %v19789_v14  ;;  %vm18847_vm9 = vcmp.eq.s32.totalorder %v10454_v57, %v20181_v24  ;;  %vm18861_vm14 = vcmp.eq.s32.totalorder %v10342_v15, %v20181_v24 }
0x1676   :  { %v20249_v0 = vsel %vm18847_vm9, 4294967295, %v20248_v0  ;;  %v20253_v18 = vsel %vm18861_vm14, 4294967295, %v20252_v18  ;;  %v20276_v57 = vmov 0 }
0x1677   :  { %vm18811_vm10 = vcmp.eq.s32.totalorder %v10321_v52, %v20181_v24  ;;  %v20266_v52 = vld [vmem:[#allocation50_spill] sm:$0xff] }
0x1678   :  { %10193 = vmatpush1.bf16.msra.mxu1 %v14969_v9  ;;  %v20236_v9 = vmov 0 }
0x1679   :  { %10194 = vmatprep.subr.bf16.mxu1 %v14974_v4  ;;  %v20237_v9 = vsel %vm18795_vm8, 4294967295, %v20236_v9  ;;  %v10328_v4 = vand.u32 127, %v20187_v43 }
0x167b   :  { %vm18822_vm6 = vcmp.eq.s32.totalorder %v10328_v4, %v20181_v24  ;;  %v10475_v4 = vand.u32 127, %v20266_v52  ;;  %v20282_v52 = vmov 0 }
0x167c   :  { %10195 = vmatpush1.bf16.msra.mxu1 %v14972_v33  ;;  %v20238_v33 = vmov 0  ;;  %v20241_v21 = vsel %vm18822_vm6, 4294967295, %v20240_v21  ;;  %vm19651_vm12 = vmpackc.low %vm18822_vm6, %vm18811_vm10  ;;  %vm18856_vm6 = vcmp.eq.s32.totalorder %v10335_v60, %v20181_v24  ;;  %v20278_v60 = vld [vmem:[#allocation54_spill] sm:$0xff] }
0x167d   :  { %v20239_v33 = vsel %vm18811_vm10, 4294967295, %v20238_v33  ;;  %13888 = vmatpush3.bf16.msk.msra.mxu0 %vm19651_vm12, %v19789_v14  ;;  %vm18842_vm12 = vcmp.eq.s32.totalorder %v10447_v62, %v20181_v24  ;;  %v20251_v22 = vsel %vm18856_vm6, 4294967295, %v20250_v22  ;;  %vm19660_vm8 = vmpackc.low %vm18861_vm14, %vm18856_vm6  ;;  %vm18905_vm14 = vcmp.eq.s32.totalorder %v10356_v1, %v20181_v24 }
0x167e   :  { %v20247_v28 = vsel %vm18842_vm12, 4294967295, %v20246_v28  ;;  %vm19657_vm10 = vmpackc.low %vm18847_vm9, %vm18842_vm12  ;;  %vm18891_vm12 = vcmp.eq.s32.totalorder %v10468_v13, %v20181_v24  ;;  %v20265_v56 = vsel %vm18905_vm14, 4294967295, %v20264_v56  ;;  %v20272_v62 = vmov 0 }
0x167f   :  { %13890 = vmatprep.subr.msk.bf16.mxu0 %vm19657_vm10, %v19789_v14  ;;  %v20261_v3 = vsel %vm18891_vm12, 4294967295, %v20260_v3  ;;  %v10489_v15 = vand.u32 127, %v20278_v60  ;;  %v10377_v13 = vand.u32 127, %v20280_v8 }
0x1681   :  { %13892 = vmatpush3.bf16.msk.msra.mxu0 %vm19660_vm8, %v19789_v14  ;;  %vm18900_vm8 = vcmp.eq.s32.totalorder %v10349_v32, %v20181_v24  ;;  %v20281_v32 = vld [vmem:[#allocation57_spill] sm:$0xff]  ;;  %vm18974_vm4 = vcmp.eq.s32.totalorder %v10489_v15, %v20181_v24 }
0x1682   :  { %v20263_v27 = vsel %vm18900_vm8, 4294967295, %v20262_v27  ;;  %vm19666_vm9 = vmpackc.low %vm18905_vm14, %vm18900_vm8  ;;  %v10384_v1 = vand.u32 127, %v20281_v32  ;;  %v20283_v52 = vsel %vm18974_vm4, 4294967295, %v20282_v52 }
0x1699   :  { %v18664_v40 = vpop.f32.mrb[128].mxu0 }
0x169a   :  { %20204 = vst [vmem:[#allocation27_spill] sm:$0xff] %v18664_v40  ;;  %v18686_v19 = vpop.f32.mrb[129].mxu0 }
0x169b   :  { %20213 = vst [vmem:[#allocation61_spill] sm:$0xff] %v18686_v19  ;;  %v9854_v44 = vpop.f32.mrb[130].mxu0 }
0x169c   :  { %v9855_v41 = vpop.f32.mrb[131].mxu0  ;;  %v20254_v44 = vld [vmem:[#allocation46_spill] sm:$0xff] }
0x169d   :  { %v10461_v41 = vand.u32 127, %v20254_v44  ;;  %v20279_v44 = vld [vmem:[#allocation55_spill] sm:$0xff] }
0x169f   :  { %vm18886_vm10 = vcmp.eq.s32.totalorder %v10461_v41, %v20181_v24  ;;  %v10496_v41 = vand.u32 127, %v20279_v44 }
0x16a0   :  { %v20259_v46 = vsel %vm18886_vm10, 4294967295, %v20258_v46  ;;  %vm19663_vm6 = vmpackc.low %vm18891_vm12, %vm18886_vm10 }
0x16a1   :  { %13894 = vmatprep.subr.msk.bf16.mxu0 %vm19663_vm6, %v19789_v14  ;;  %vm18930_vm6 = vcmp.eq.s32.totalorder %v10475_v4, %v20181_v24  ;;  %v20356_v4 = vmov 0  }
0x16a2   :  { %13896 = vmatpush3.bf16.msk.msra.mxu0 %vm19666_vm9, %v19789_v14  ;;  %v20271_v31 = vsel %vm18930_vm6, 4294967295, %v20270_v31 }
0x1712   :  { %v10155_v54 = vpop.f32.mrb[100].mxu1 }
0x1713   :  { %v10157_v17 = vpop.f32.mrb[101].mxu1  ;;  %v10162_v55 = vpack.c.bf16 %v10155_v54, %v10155_v54  ;;  %v20267_v54 = vld [vmem:[#allocation51_spill] sm:$0xff] }
0x1714   :  { %v10163_v7 = vpack.c.bf16 %v10157_v17, %v10157_v17  ;;  %v10159_v63 = vpop.f32.mrb[102].mxu1  ;;  %v10482_v17 = vand.u32 127, %v20267_v54  ;;  %v20286_v54 = vmov 0 }
0x1715   :  { %v10160_v61 = vpop.f32.mrb[103].mxu1 }
0x1716   :  { %10196 = vmatprep.mubr.bf16.mxu1 %v10163_v7  ;;  %v20268_v7 = vld [vmem:[#allocation52_spill] sm:$0xff]  ;;  %vm18935_vm10 = vcmp.eq.s32.totalorder %v10482_v17, %v20181_v24 }
0x1717   :  { %10197 = vmatmul.mubr.bf16.vlgmr.msra.gmra.mrb[92].mxu1 %v10162_v55  ;;  %v10363_v63 = vand.u32 127, %v20268_v7  ;;  %v20269_v55 = vld [vmem:[#allocation53_spill] sm:$0xff]  ;;  %v20273_v62 = vsel %vm18935_vm10, 4294967295, %v20272_v62  ;;  %vm19670_vm8 = vmpackc.low %vm18935_vm10, %vm18930_vm6  ;;  %vm18988_vm10 = vcmp.eq.s32.totalorder %v10377_v13, %v20181_v24 }
0x1718   :  { %11094 = vmatprep.mubr.f32.mxu1 %v20177_v59  ;;  %v10370_v61 = vand.u32 127, %v20269_v55  ;;  %13898 = vmatprep.subr.msk.bf16.mxu0 %vm19670_vm8, %v19789_v14  ;;  %vm18979_vm8 = vcmp.eq.s32.totalorder %v10496_v41, %v20181_v24  ;;  %v20287_v54 = vsel %vm18988_vm10, 4294967295, %v20286_v54 }
0x1719   :  { %vm18944_vm9 = vcmp.eq.s32.totalorder %v10363_v63, %v20181_v24  ;;  %vm19676_vm6 = vmpackc.low %vm18979_vm8, %vm18974_vm4  ;;  %v10223_v63 = vmul.f32 %v18664_v40, %v18664_v40 }
0x171a   :  { %v20275_v53 = vsel %vm18944_vm9, 4294967295, %v20274_v53  ;;  %vm18949_vm14 = vcmp.eq.s32.totalorder %v10370_v61, %v20181_v24  ;;  %v10224_v61 = vmul.f32 %v18686_v19, %v18686_v19 }
0x171b   :  { %v20277_v57 = vsel %vm18949_vm14, 4294967295, %v20276_v57  ;;  %vm19673_vm12 = vmpackc.low %vm18949_vm14, %vm18944_vm9 }
0x171c   :  { %13900 = vmatpush3.bf16.msk.msra.mxu0 %vm19673_vm12, %v19789_v14  ;;  %vm18993_vm12 = vcmp.eq.s32.totalorder %v10384_v1, %v20181_v24  ;;  %vm20290_vm14 = vmpackc.low %vm18672_vm2, %vm18667_vm7 }
0x171d   :  { %13902 = vmatprep.subr.msk.bf16.mxu0 %vm19676_vm6, %v19789_v14  ;;  %vm19678_vm9 = vmpackc.low %vm18993_vm12, %vm18988_vm10  ;;  %vm20291_vm6 = vcmask 1041408  }
0x171e   :  { %v10207_v60 = vsel %vm20291_vm6, %v18664_v40, 0.0  ;;  %vm20292_vm4 = vmmov %vm20291_vm6 }
0x171f   :  { %v10214_v15 = vsel %vm20292_vm4, %v18686_v19, 0.0  ;;  %v10208_v41 = vrot.slane %v10207_v60, 4  ;;  %vm20294_vm10 = vmmov %vm20292_vm4 }
0x1720   :  { %13904 = vmatpush3.bf16.msk.msra.mxu0 %vm19678_vm9, %v19789_v14  ;;  %vm20293_vm9 = vmmov %vm20292_vm4  ;;  %v10232_v50 = vsel %vm20294_vm10, %v10224_v61, 0.0  ;;  %v10215_v2 = vrot.slane %v10214_v15, 4 }
0x1721   :  { %13906 = vmatprep.subr.msk.bf16.mxu0 %vm20290_vm14, %v19789_v14  ;;  %v10225_v44 = vsel %vm20293_vm9, %v10223_v63, 0.0  ;;  %v10233_v1 = vrot.slane %v10232_v50, 4  ;;  %v10209_v36 = vadd.f32 %v10208_v41, %v10207_v60  ;;  %vm20296_vm14 = vmmov %vm20292_vm4 }
0x1722   :  { %v10226_v13 = vrot.slane %v10225_v44, 4  ;;  %v10216_v10 = vadd.f32 %v10215_v2, %v10214_v15  ;;  %vm20298_vm7 = vmmov %vm20292_vm4 }
0x1723   :  { %v10234_v8 = vadd.f32 %v10233_v1, %v10232_v50  ;;  %v10210_v55 = vrot.slane %v10209_v36, 2  ;;  %vm20299_vm2 = vmmov %vm20292_vm4 }
0x1724   :  { %v10227_v32 = vadd.f32 %v10226_v13, %v10225_v44  ;;  %v10217_v30 = vrot.slane %v10216_v10, 2  ;;  %vm20300_vm9 = vmmov %vm20299_vm2 }
0x1725   :  { %v10235_v41 = vrot.slane %v10234_v8, 2  ;;  %v10211_v1 = vadd.f32 %v10210_v55, %v10209_v36  ;;  %vm20301_vm6 = vmpackc.low %vm18682_vm5, %vm18677_vm13  ;;  %vm20304_vm13 = vnez %v20225_v58  ;;  %v20350_v58 = vld [vmem:[#allocation48_spill] sm:$0xff] }
0x1726   :  { %v10228_v61 = vrot.slane %v10227_v32, 2  ;;  %v10218_v43 = vadd.f32 %v10217_v30, %v10216_v10  ;;  %vm20302_vm4 = vmpackc.low %vm18698_vm3, %vm18693_vm11  ;;  %vm20307_vm11 = vnez %v20229_v6  ;;  %v20352_v6 = vld [vmem:[#allocation52_spill] sm:$0xff] }
0x1727   :  { %vm20303_vm10 = vmpackc.low %vm18728_vm1, %vm18713_vm0  ;;  %vm20310_vm0 = vnez %v20235_v47  ;;  %v20354_v47 = vld [vmem:[#allocation56_spill] sm:$0xff] }
0x1728   :  { %v10229_v29 = vadd.f32 %v10228_v61, %v10227_v32  ;;  %vm20305_vm5 = vmpackc.low %vm18751_vm15, %vm20304_vm13  ;;  %vm20313_vm15 = vnez %v20239_v33  ;;  %vm20318_vm13 = vnez %v20253_v18  ;;  %v19236_v33 = vld [vmem:[#allocation12 + $0x40] sm:$0xff]  }
0x172a   :  { %v10230_v36 = vrot.slane %v10229_v29, 1 }
0x17ea   :  { %v19029_v7 = vpop.f32.mrb[92].mxu1 }
0x17eb   :  { %20295 = vst [vmem:[#allocation29_spill] sm:$0xff] %v19029_v7  ;;  %v10241_v40 = vsel %vm20296_vm14, %v19029_v7, 0.0  ;;  %v10257_v63 = vmul.f32 %v19029_v7, %v19029_v7  ;;  %v19035_v19 = vpop.f32.mrb[93].mxu1  ;;  %vm20306_vm14 = vnez %v20232_v34  ;;  %v20353_v34 = vld [vmem:[#allocation53_spill] sm:$0xff] }
0x17ec   :  { %20297 = vst [vmem:[#allocation63_spill] sm:$0xff] %v19035_v19  ;;  %v10242_v11 = vrot.slane %v10241_v40, 4  ;;  %v10248_v60 = vsel %vm20298_vm7, %v19035_v19, 0.0  ;;  %v10258_v15 = vmul.f32 %v19035_v19, %v19035_v19  ;;  %v10202_v44 = vpop.f32.mrb[94].mxu1  ;;  %v10236_v19 = vadd.f32 %v10235_v41, %v10234_v8  ;;  %vm20308_vm3 = vmpackc.low %vm20306_vm14, %vm20307_vm11 }
0x17ed   :  { %v10259_v50 = vsel %vm20299_vm2, %v10257_v63, 0.0  ;;  %v10249_v2 = vrot.slane %v10248_v60, 4  ;;  %v10203_v13 = vpop.f32.mrb[95].mxu1  ;;  %v10212_v44 = vrot.slane %v10211_v1, 1  ;;  %vm20309_vm7 = vnez %v20237_v9  ;;  %v20355_v9 = vld [vmem:[#allocation57_spill] sm:$0xff] }
0x17ee   :  { %v10243_v51 = vadd.f32 %v10242_v11, %v10241_v40  ;;  %v10260_v20 = vrot.slane %v10259_v50, 4  ;;  %v10266_v7 = vsel %vm20300_vm9, %v10258_v15, 0.0  ;;  %v10219_v13 = vrot.slane %v10218_v43, 1  ;;  %vm20311_vm1 = vmpackc.low %vm20309_vm7, %vm20310_vm0 }
0x17ef   :  { %v10250_v42 = vadd.f32 %v10249_v2, %v10248_v60  ;;  %v10267_v26 = vrot.slane %v10266_v7, 4  ;;  %v10237_v15 = vrot.slane %v10236_v19, 1  ;;  %v10213_v30 = vadd.f32 %v10212_v44, %v10211_v1  ;;  %v19243_v2 = vld [vmem:[#allocation12] sm:$0xff]   ;;  %v19245_v44 = vld [vmem:[#allocation12 + $0x48] sm:$0xff]  }
0x17f0   :  { %v10244_v45 = vrot.slane %v10243_v51, 2  ;;  %v10261_v23 = vadd.f32 %v10260_v20, %v10259_v50  ;;  %v10220_v61 = vadd.f32 %v10219_v13, %v10218_v43  ;;  %vm20312_vm2 = vnez %v20241_v21  ;;  %v20342_v43 = vld [vmem:[#allocation20_spill] sm:$0xff]  ;;  %v19251_v13 = vld [vmem:[#allocation12 + $0x50] sm:$0xff]  }
0x17f1   :  { %v10251_v24 = vrot.slane %v10250_v42, 2  ;;  %v10268_v39 = vadd.f32 %v10267_v26, %v10266_v7  ;;  %v10231_v7 = vadd.f32 %v10230_v36, %v10229_v29  ;;  %vm20314_vm9 = vmpackc.low %vm20312_vm2, %vm20313_vm15  ;;  %vm20321_vm11 = vnez %v20261_v3  ;;  %v20341_v29 = vld [vmem:[#allocation18_spill] sm:$0xff]  ;;  %v19254_v36 = vld [vmem:[#allocation12 + $0x10] sm:$0xff]  }
0x17f2   :  { %v10245_v38 = vadd.f32 %v10244_v45, %v10243_v51  ;;  %v10262_v5 = vrot.slane %v10261_v23, 2  ;;  %v10238_v51 = vadd.f32 %v10237_v15, %v10236_v19  ;;  %vm20324_vm0 = vnez %v20265_v56  ;;  %v20345_v19 = vld [vmem:[#allocation37_spill] sm:$0xff] }
0x17f3   :  { %v10252_v63 = vadd.f32 %v10251_v24, %v10250_v42  ;;  %v10269_v59 = vrot.slane %v10268_v39, 2  ;;  %vm20327_vm15 = vnez %v20273_v62  ;;  %v19266_v15 = vld [vmem:[#allocation12 + $0x20] sm:$0xff]  }
0x17f4   :  { %v10246_v40 = vrot.slane %v10245_v38, 1  ;;  %v10263_v11 = vadd.f32 %v10262_v5, %v10261_v23  ;;  %v20338_v5 = vld [vmem:[#allocation59_spill] sm:$0xff] }
0x17f5   :  { %v10253_v55 = vrot.slane %v10252_v63, 1  ;;  %v10270_v10 = vadd.f32 %v10269_v59, %v10268_v39  ;;  %v20337_v59 = vmov 0.0   ;;  %v20339_v39 = vld [vmem:[#allocation17_spill] sm:$0xff]  ;;  %v20340_v23 = vld [vmem:[#allocation19_spill] sm:$0xff] }
0x17f6   :  { %v10247_v60 = vadd.f32 %v10246_v40, %v10245_v38  ;;  %v10264_v32 = vrot.slane %v10263_v11, 1  ;;  %v19135_v38 = vand.u32 127, %v20338_v5  ;;  %v19258_v40 = vld [vmem:[#allocation12 + $0x58] sm:$0xff]   ;;  %v20360_v5 = vld [vmem:[#allocation61_spill] sm:$0xff] }
0x17f7   :  { %v10254_v20 = vadd.f32 %v10253_v55, %v10252_v63  ;;  %v10271_v50 = vrot.slane %v10270_v10, 1  ;;  %v19248_v63 = vld [vmem:[#allocation12 + $0x8] sm:$0xff]   ;;  %v19263_v55 = vld [vmem:[#allocation12 + $0x60] sm:$0xff]  }
0x17f8   :  { %v10255_v26 = vadd.f32 %v10247_v60, %v10213_v30  ;;  %v10265_v8 = vadd.f32 %v10264_v32, %v10263_v11  ;;  %v19260_v11 = vld [vmem:[#allocation12 + $0x18] sm:$0xff]   ;;  %v19272_v30 = vld [vmem:[#allocation12 + $0x28] sm:$0xff]   ;;  %v19276_v60 = vld [vmem:[#allocation12 + $0x70] sm:$0xff]  }
0x17f9   :  { %v10256_v45 = vadd.f32 %v10254_v20, %v10220_v61  ;;  %v10272_v24 = vadd.f32 %v10271_v50, %v10270_v10  ;;  %v19270_v10 = vld [vmem:[#allocation12 + $0x68] sm:$0xff]   ;;  %v19278_v32 = vld [vmem:[#allocation12 + $0x30] sm:$0xff]   ;;  %v19282_v61 = vld [vmem:[#allocation12 + $0x78] sm:$0xff]  }
0x17fa   :  { %v10273_v42 = vadd.f32 %v10265_v8, %v10231_v7  ;;  %v19284_v20 = vld [vmem:[#allocation12 + $0x38] sm:$0xff]  }
0x17fb   :  { %10819 = vmatprep.mubr.f32.mxu0 %v10256_v45  ;;  %v10274_v41 = vadd.f32 %v10272_v24, %v10238_v51  ;;  %v20358_v51 = vld [vmem:[#allocation27_spill] sm:$0xff] }
0x17fc   :  { %10820 = vmatmul.mubr.f32.vlgmr.msra.gmra.mrb[118].mxu0 %v10255_v26  ;;  %v20357_v26 = vld [vmem:[#allocation58_spill] sm:$0xff] }
0x17fd   :  { %13908 = vmatpush3.bf16.msk.msra.mxu0 %vm20301_vm6, %v19789_v14  ;;  %10889 = vmatprep.mubr.f32.mxu0 %v10274_v41  ;;  %vm20315_vm6 = vnez %v20249_v0 }
0x17fe   :  { %13910 = vmatprep.subr.msk.bf16.mxu0 %vm20302_vm4, %v19789_v14  ;;  %vm20316_vm4 = vnez %v20247_v28 }
0x1801   :  { %13912 = vmatpush3.bf16.msk.msra.mxu0 %vm20303_vm10, %v19789_v14  ;;  %vm20317_vm10 = vmpackc.low %vm20315_vm6, %vm20316_vm4  ;;  %vm20330_vm4 = vnez %v20277_v57 }
0x1802   :  { %13914 = vmatprep.subr.msk.bf16.mxu0 %vm20305_vm5, %v19789_v14  ;;  %vm20319_vm5 = vnez %v20251_v22 }
0x1803   :  { %vm20320_vm14 = vmpackc.low %vm20318_vm13, %vm20319_vm5  ;;  %vm20333_vm5 = vnez %v20283_v52 }
0x1805   :  { %13916 = vmatpush3.bf16.msk.msra.mxu0 %vm20308_vm3, %v19789_v14  ;;  %vm20322_vm3 = vnez %v20259_v46 }
0x1806   :  { %13918 = vmatprep.subr.msk.bf16.mxu0 %vm20311_vm1, %v19789_v14  ;;  %vm20323_vm7 = vmpackc.low %vm20321_vm11, %vm20322_vm3  ;;  %vm20325_vm1 = vnez %v20263_v27  ;;  %vm20335_vm11 = vnez %v20287_v54 }
0x1807   :  { %vm20326_vm2 = vmpackc.low %vm20324_vm0, %vm20325_vm1  ;;  %vm10934_vm0 = vcmp.eq.s32.totalorder %v20341_v29, %v20339_v39  ;;  %vm10936_vm1 = vcmp.eq.s32.totalorder %v20341_v29, %v20340_v23 }
0x1808   :  { %vm20336_vm3 = vmpackc.low %vm18993_vm12, %vm20335_vm11 }
0x1809   :  { %13920 = vmatpush3.bf16.msk.msra.mxu0 %vm20314_vm9, %v19789_v14  ;;  %vm20328_vm9 = vnez %v20271_v31 }
0x180a   :  { %13922 = vmatprep.subr.msk.bf16.mxu0 %vm20317_vm10, %v19789_v14  ;;  %vm20329_vm6 = vmpackc.low %vm20327_vm15, %vm20328_vm9  ;;  %vm20331_vm10 = vnez %v20275_v53  ;;  %vm10941_vm15 = vcmp.eq.s32.totalorder %v19135_v38, %v20343_v12  ;;  %vm10938_vm9 = vcmp.eq.s32.totalorder %v20341_v29, %v20342_v43 }
0x180b   :  { %vm20332_vm13 = vmpackc.low %vm20330_vm4, %vm20331_vm10  ;;  %vm10940_vm4 = vcmp.eq.s32.totalorder %v20341_v29, %v20343_v12  ;;  %vm10943_vm10 = vcmp.eq.s32.totalorder %v19135_v38, %v20344_v35 }
0x180d   :  { %13924 = vmatpush3.bf16.msk.msra.mxu0 %vm20320_vm14, %v19789_v14  ;;  %vm20334_vm14 = vmpackc.low %vm18979_vm8, %vm20333_vm5  ;;  %vm10937_vm8 = vcmp.eq.s32.totalorder %v19135_v38, %v20340_v23  ;;  %v20361_v23 = vld [vmem:[#allocation63_spill] sm:$0xff] }
0x180e   :  { %13926 = vmatprep.subr.msk.bf16.mxu0 %vm20323_vm7, %v19789_v14  ;;  %vm10935_vm7 = vcmp.eq.s32.totalorder %v19135_v38, %v20339_v39 }
0x180f   :  { %vm13937_vm12 = vmpackc.low %vm10937_vm8, %vm10935_vm7  ;;  %vm10944_vm7 = vcmp.eq.s32.totalorder %v20341_v29, %v20345_v19 }
0x1810   :  { %13938 = vmatprep.subr.msk.bf16.mxu1 %vm13937_vm12, %v19789_v14 }
0x1811   :  { %13928 = vmatpush3.bf16.msk.msra.mxu0 %vm20326_vm2, %v19789_v14  ;;  %vm10939_vm2 = vcmp.eq.s32.totalorder %v19135_v38, %v20342_v43 }
0x1812   :  { %13930 = vmatprep.subr.msk.bf16.mxu0 %vm20329_vm6, %v19789_v14  ;;  %vm13939_vm6 = vmpackc.low %vm10936_vm1, %vm10934_vm0  ;;  %vm10947_vm1 = vcmp.eq.s32.totalorder %v19135_v38, %v20346_v25 }
0x1813   :  { %13940 = vmatpush1.bf16.msk.msra.mxu1 %vm13939_vm6, %v19789_v14  ;;  %vm13941_vm5 = vmpackc.low %vm10941_vm15, %vm10939_vm2  ;;  %vm10946_vm15 = vcmp.eq.s32.totalorder %v20341_v29, %v20346_v25 }
0x1814   :  { %13942 = vmatprep.subr.msk.bf16.mxu1 %vm13941_vm5, %v19789_v14 }
0x1815   :  { %13932 = vmatpush3.bf16.msk.msra.mxu0 %vm20332_vm13, %v19789_v14  ;;  %vm10945_vm13 = vcmp.eq.s32.totalorder %v19135_v38, %v20345_v19 }
0x1816   :  { %13934 = vmatprep.subr.msk.bf16.mxu0 %vm20334_vm14, %v19789_v14  ;;  %vm13943_vm14 = vmpackc.low %vm10940_vm4, %vm10938_vm9  ;;  %vm10948_vm9 = vcmp.eq.s32.totalorder %v20341_v29, %v20347_v16  ;;  %vm10951_vm4 = vcmp.eq.s32.totalorder %v19135_v38, %v20348_v37 }
0x1817   :  { %vm13945_vm11 = vmpackc.low %vm10945_vm13, %vm10943_vm10  ;;  %13944 = vmatpush1.bf16.msk.msra.mxu1 %vm13943_vm14, %v19789_v14  ;;  %vm10953_vm10 = vcmp.eq.s32.totalorder %v19135_v38, %v20349_v48 }
0x1818   :  { %13946 = vmatprep.subr.msk.bf16.mxu1 %vm13945_vm11, %v19789_v14  ;;  %vm13953_vm13 = vmpackc.low %vm10953_vm10, %vm10951_vm4  ;;  %vm10958_vm4 = vcmp.eq.s32.totalorder %v20341_v29, %v20352_v6  ;;  %vm10960_vm10 = vcmp.eq.s32.totalorder %v20341_v29, %v20353_v34 }
0x1819   :  { %13936 = vmatpush3.bf16.msk.msra.mxu0 %vm20336_vm3, %v19789_v14  ;;  %vm10942_vm3 = vcmp.eq.s32.totalorder %v20341_v29, %v20344_v35 }
0x181a   :  { %13970 = vmatprep.subr.msk.bf16.mxu0 %vm13937_vm12, %v19789_v14  ;;  %vm13947_vm8 = vmpackc.low %vm10944_vm7, %vm10942_vm3  ;;  %vm10949_vm12 = vcmp.eq.s32.totalorder %v19135_v38, %v20347_v16  ;;  %vm10955_vm3 = vcmp.eq.s32.totalorder %v19135_v38, %v20350_v58  ;;  %vm10957_vm7 = vcmp.eq.s32.totalorder %v19135_v38, %v20351_v49 }
0x181b   :  { %13948 = vmatpush1.bf16.msk.msra.mxu1 %vm13947_vm8, %v19789_v14  ;;  %vm13949_vm2 = vmpackc.low %vm10949_vm12, %vm10947_vm1  ;;  %vm10956_vm1 = vcmp.eq.s32.totalorder %v20341_v29, %v20351_v49 }
0x181c   :  { %10890 = vmatmul.mubr.f32.vlgmr.msra.gmra.mrb[132].mxu0 %v10273_v42  ;;  %13950 = vmatprep.subr.msk.bf16.mxu1 %vm13949_vm2, %v19789_v14  ;;  %vm13957_vm12 = vmpackc.low %vm10957_vm7, %vm10955_vm3  ;;  %vm10962_vm3 = vcmp.eq.s32.totalorder %v20341_v29, %v20354_v47  ;;  %vm10964_vm7 = vcmp.eq.s32.totalorder %v20341_v29, %v20355_v9  ;;  %v20359_v42 = vld [vmem:[#allocation29_spill] sm:$0xff] }
0x181d   :  { %11168 = vmatprep.mubr.f32.mxu0 %v20337_v59  ;;  %13972 = vmatpush1.bf16.msk.msra.mxu0 %vm13939_vm6, %v19789_v14  ;;  %vm13951_vm6 = vmpackc.low %vm10948_vm9, %vm10946_vm15  ;;  %vm10961_vm15 = vcmp.eq.s32.totalorder %v19135_v38, %v20353_v34 }
0x181e   :  { %13974 = vmatprep.subr.msk.bf16.mxu0 %vm13941_vm5, %v19789_v14  ;;  %vm10950_vm5 = vcmp.eq.s32.totalorder %v20341_v29, %v20348_v37 }
0x181f   :  { %13952 = vmatpush1.bf16.msk.msra.mxu1 %vm13951_vm6, %v19789_v14 }
0x1820   :  { %13954 = vmatprep.subr.msk.bf16.mxu1 %vm13953_vm13, %v19789_v14 }
0x1821   :  { %13976 = vmatpush1.bf16.msk.msra.mxu0 %vm13943_vm14, %v19789_v14  ;;  %vm10952_vm14 = vcmp.eq.s32.totalorder %v20341_v29, %v20349_v48 }
0x1822   :  { %13978 = vmatprep.subr.msk.bf16.mxu0 %vm13945_vm11, %v19789_v14  ;;  %vm13955_vm11 = vmpackc.low %vm10952_vm14, %vm10950_vm5  ;;  %vm10963_vm5 = vcmp.eq.s32.totalorder %v19135_v38, %v20354_v47 }
0x1823   :  { %13956 = vmatpush1.bf16.msk.msra.mxu1 %vm13955_vm11, %v19789_v14  ;;  %vm13963_vm14 = vmpackc.low %vm10960_vm10, %vm10958_vm4 }
0x1824   :  { %13958 = vmatprep.subr.msk.bf16.mxu1 %vm13957_vm12, %v19789_v14 }
0x1825   :  { %13980 = vmatpush1.bf16.msk.msra.mxu0 %vm13947_vm8, %v19789_v14  ;;  %vm10954_vm8 = vcmp.eq.s32.totalorder %v20341_v29, %v20350_v58 }
0x1826   :  { %13982 = vmatprep.subr.msk.bf16.mxu0 %vm13949_vm2, %v19789_v14  ;;  %vm10959_vm2 = vcmp.eq.s32.totalorder %v19135_v38, %v20352_v6  ;;  %vm13959_vm9 = vmpackc.low %vm10956_vm1, %vm10954_vm8 }
0x1827   :  { %13960 = vmatpush1.bf16.msk.msra.mxu1 %vm13959_vm9, %v19789_v14  ;;  %vm13967_vm8 = vmpackc.low %vm10964_vm7, %vm10962_vm3 }
0x1829   :  { %13984 = vmatpush1.bf16.msk.msra.mxu0 %vm13951_vm6, %v19789_v14  ;;  %vm13961_vm6 = vmpackc.low %vm10961_vm15, %vm10959_vm2  ;;  %vm11226_vm15 = vcmask 1040384  }
0x182a   :  { %13986 = vmatprep.subr.msk.bf16.mxu0 %vm13953_vm13, %v19789_v14  ;;  %vm10965_vm13 = vcmp.eq.s32.totalorder %v19135_v38, %v20355_v9  ;;  %13962 = vmatprep.subr.msk.bf16.mxu1 %vm13961_vm6, %v19789_v14  ;;  %v13071_v9 = vsel %vm10934_vm0, 1.0, %v20337_v59 }
0x182b   :  { %13964 = vmatpush1.bf16.msk.msra.mxu1 %vm13963_vm14, %v19789_v14 }
0x182d   :  { %13988 = vmatpush1.bf16.msk.msra.mxu0 %vm13955_vm11, %v19789_v14  ;;  %vm13965_vm11 = vmpackc.low %vm10965_vm13, %vm10963_vm5 }
0x182e   :  { %13990 = vmatprep.subr.msk.bf16.mxu0 %vm13957_vm12, %v19789_v14  ;;  %13966 = vmatprep.subr.msk.bf16.mxu1 %vm13965_vm11, %v19789_v14 }
0x182f   :  { %13968 = vmatpush1.bf16.msk.msra.mxu1 %vm13967_vm8, %v19789_v14 }
0x1831   :  { %13992 = vmatpush1.bf16.msk.msra.mxu0 %vm13959_vm9, %v19789_v14  ;;  %vm11222_vm9 = vcmask 15360  }
0x1832   :  { %13994 = vmatprep.subr.msk.bf16.mxu0 %vm13961_vm6, %v19789_v14 }
0x1835   :  { %13996 = vmatpush1.bf16.msk.msra.mxu0 %vm13963_vm14, %v19789_v14 }
0x1836   :  { %13998 = vmatprep.subr.msk.bf16.mxu0 %vm13965_vm11, %v19789_v14 }
0x1839   :  { %14000 = vmatpush1.bf16.msk.msra.mxu0 %vm13967_vm8, %v19789_v14  ;;  %v12974_v14 = vld [vmem:[%s19408_s7 + $0x6] sm:$0x3] }
0x183a   :  { %13463 = vmatprep.subr.bf16.mxu0 %v19236_v33 }
0x18cf   :  { %v13403_v21 = vpop.f32.mrb[118].mxu0 }
0x18d0   :  { %v13404_v28 = vpop.f32.mrb[119].mxu0 }
0x18d1   :  { %v13405_v0 = vadd.f32 %v13404_v28, %v13403_v21 }
0x18d3   :  { %v10896_v22 = vmul.f32 0.125, %v13405_v0 }
0x18d5   :  { %v10898_v27 = vmul.f32 %v10896_v22, %v10896_v22 }
0x18ef   :  { %v13438_v18 = vpop.f32.mrb[132].mxu0 }
0x18f0   :  { %v13439_v46 = vpop.f32.mrb[133].mxu0 }
0x18f1   :  { %v13440_v3 = vadd.f32 %v13439_v46, %v13438_v18  ;;  %v11215_v46 = vadd.s32 1, %v20339_v39 }
0x18f3   :  { %v10897_v56 = vmul.f32 0.125, %v13440_v3  ;;  %vm11216_vm0 = vcmp.eq.s32.totalorder %v20341_v29, %v11215_v46  ;;  %v19323_v29 = vld [vmem:[#allocation12 + $0x88] sm:$0xff]  }
0x18f4   :  { %v13072_v39 = vsel %vm11216_vm0, 1.0, %v20337_v59  ;;  %v19329_v59 = vld [vmem:[#allocation12 + $0x90] sm:$0xff]  }
0x18f5   :  { %v10899_v31 = vsub.f32 %v10897_v56, %v10898_v27  ;;  %v19304_v27 = vpack.c.bf16 %v13071_v9, %v13071_v9  ;;  %v19309_v56 = vld [vmem:[#allocation12 + $0xc0] sm:$0xff]  }
0x18f7   :  { %v10902_v62 = vadd.f32 1e-05, %v10899_v31  ;;  %v11219_v31 = vpack.c.bf16 %v13072_v39, %v13072_v39 }
0x18f9   :  { %15013 = vrsqrt.f32 %v10902_v62  ;;  %v19317_v62 = vld [vmem:[#allocation12 + $0x80] sm:$0xff]  }
0x1903   :  { %v15014_v53 = vpop.eup %15013 }
0x1904   :  { %v10904_v57 = vmul.f32 %v15014_v53, %v12974_v14  ;;  %v19326_v53 = vld [vmem:[#allocation12 + $0xd0] sm:$0xff]  }
0x1906   :  { %v10905_v52 = vmul.f32 %v10904_v57, %v10896_v22  ;;  %11095 = vmatmul.mubr.f32.vlgmr.msra.gmra.mrb[74].mxu1 %v10904_v57  ;;  %v19332_v57 = vld [vmem:[#allocation12 + $0xd8] sm:$0xff]  }
0x1907   :  { %11265 = vmatprep.mubr.bf16.mxu1 %v20356_v4 }
0x1908   :  { %v10907_v54 = vrot.slane %v10905_v52, 7  ;;  %v19335_v52 = vld [vmem:[#allocation12 + $0x98] sm:$0xff]  }
0x190a   :  { %v10909_v17 = vsub.f32 %v12974_v14, %v10907_v54  ;;  %v19319_v14 = vld [vmem:[#allocation12 + $0xc8] sm:$0xff]   ;;  %v19338_v54 = vld [vmem:[#allocation12 + $0xe0] sm:$0xff]  }
0x190c   :  { %v11102_v1 = vrot.slane %v10909_v17, 1  ;;  %v19341_v17 = vld [vmem:[#allocation12 + $0xa0] sm:$0xff]  }
0x190e   :  { %11169 = vmatmul.mubr.f32.vlgmr.msra.gmra.mrb[134].mxu0 %v11102_v1  ;;  %v19344_v1 = vld [vmem:[#allocation12 + $0xe8] sm:$0xff]  }
0x190f   :  { %13464 = vmatpush3.bf16.msra.mxu0 %v19243_v2 }
0x1910   :  { %13465 = vmatprep.subr.bf16.mxu0 %v19245_v44 }
0x1913   :  { %13466 = vmatpush3.bf16.msra.mxu0 %v19248_v63 }
0x1914   :  { %13467 = vmatprep.subr.bf16.mxu0 %v19251_v13 }
0x1917   :  { %13468 = vmatpush3.bf16.msra.mxu0 %v19254_v36 }
0x1918   :  { %13469 = vmatprep.subr.bf16.mxu0 %v19258_v40 }
0x191b   :  { %13470 = vmatpush3.bf16.msra.mxu0 %v19260_v11 }
0x191c   :  { %13471 = vmatprep.subr.bf16.mxu0 %v19263_v55 }
0x191f   :  { %13472 = vmatpush3.bf16.msra.mxu0 %v19266_v15 }
0x1920   :  { %13473 = vmatprep.subr.bf16.mxu0 %v19270_v10 }
0x1923   :  { %13474 = vmatpush3.bf16.msra.mxu0 %v19272_v30 }
0x1924   :  { %13475 = vmatprep.subr.bf16.mxu0 %v19276_v60 }
0x1927   :  { %13476 = vmatpush3.bf16.msra.mxu0 %v19278_v32 }
0x1928   :  { %13477 = vmatprep.subr.bf16.mxu0 %v19282_v61 }
0x192b   :  { %13478 = vmatpush3.bf16.msra.mxu0 %v19284_v20 }
0x19d9   :  { %v11096_v50 = vpop.f32.mrb[74].mxu1 }
0x19da   :  { %v11178_v7 = vrot.slane %v11096_v50, %v20357_v26  ;;  %v11098_v8 = vpop.f32.mrb[75].mxu1  ;;  %v19347_v50 = vld [vmem:[#allocation12 + $0xa8] sm:$0xff]  }
0x19db   :  { %v11182_v45 = vrot.slane %v11098_v8, %v20357_v26  ;;  %v15005_v8 = vld [vmem:[#allocation12 + $0xf8] sm:$0xff]  }
0x19dc   :  { %v11183_v24 = vmul.f32 %v11178_v7, %v20358_v51  ;;  %v11195_v41 = vmul.f32 %v11178_v7, %v20359_v42  ;;  %v19353_v7 = vld [vmem:[#allocation12 + $0xb0] sm:$0xff]  }
0x19dd   :  { %v11184_v38 = vmul.f32 %v11182_v45, %v20360_v5  ;;  %v11196_v43 = vmul.f32 %v11182_v45, %v20361_v23  ;;  %v15006_v45 = vld [vmem:[#allocation12 + $0xb8] sm:$0xff]  }
0x19e1   :  { %v11170_v12 = vpop.f32.mrb[134].mxu0 }
0x19e2   :  { %v11188_v35 = vrot.slane %v11170_v12, %v20357_v26  ;;  %v11172_v19 = vpop.f32.mrb[135].mxu0 }
0x19e3   :  { %v11192_v25 = vrot.slane %v11172_v19, %v20357_v26  ;;  %v19350_v26 = vld [vmem:[#allocation12 + $0xf0] sm:$0xff]  }
0x19e4   :  { %v11193_v16 = vadd.f32 %v11188_v35, %v11183_v24  ;;  %v19296_v37 = vadd.f32 %v11195_v41, %v11188_v35 }
0x19e5   :  { %v11194_v48 = vadd.f32 %v11192_v25, %v11184_v38  ;;  %v11198_v58 = vadd.f32 %v11196_v43, %v11192_v25 }
0x19e6   :  { %vm11199_vm1 = vcmp.ge.f32.partialorder %v11193_v16, 0.0  ;;  %v11201_v49 = vmul.f32 0.2, %v11193_v16  ;;  %v11207_v51 = vmul.f32 0.2, %v19296_v37  ;;  %vm11205_vm6 = vcmp.ge.f32.partialorder %v19296_v37, 0.0 }
0x19e7   :  { %vm11200_vm12 = vcmp.ge.f32.partialorder %v11194_v48, 0.0  ;;  %v11202_v6 = vmul.f32 0.2, %v11194_v48  ;;  %vm11206_vm2 = vcmp.ge.f32.partialorder %v11198_v58, 0.0  ;;  %v11208_v34 = vmul.f32 0.2, %v11198_v58 }
0x19e8   :  { %v11203_v47 = vsel %vm11199_vm1, %v11193_v16, %v11201_v49  ;;  %v11209_v24 = vsel %vm11205_vm6, %v19296_v37, %v11207_v51 }
0x19e9   :  { %v11204_v21 = vsel %vm11200_vm12, %v11194_v48, %v11202_v6  ;;  %v11210_v28 = vsel %vm11206_vm2, %v11198_v58, %v11208_v34  ;;  %v11220_v0 = vpack.c.bf16 %v11203_v47, %v11203_v47  ;;  %v11659_v5 = vpack.c.bf16 %v11209_v24, %v11209_v24 }
0x19ea   :  { %v11221_v22 = vpack.c.bf16 %v11204_v21, %v11204_v21  ;;  %v11660_v18 = vpack.c.bf16 %v11210_v28, %v11210_v28 }
0x19eb   :  { %v11228_v3 = vsel %vm11226_vm15, %v11220_v0, 0  ;;  %v11662_v35 = vsel %vm11226_vm15, %v11659_v5, 0 }
0x19ec   :  { %13073 = vmatprep.subr.msk.bf16.mxu1 %vm11226_vm15, %v11221_v22  ;;  %13111 = vmatprep.subr.msk.bf16.mxu0 %vm11226_vm15, %v11660_v18 }
0x19ed   :  { %11234 = vmatpush1.bf16.msra.mxu1 %v11228_v3 }
0x19ee   :  { %13075 = vmatprep.subr.msk.bf16.mxu1 %vm11226_vm15, %v11221_v22 }
0x19f0   :  { %13074 = vmatmul.mubr.msk.bf16.vlgmr.msra.gmra.mrb[104].mxu1 %vm11222_vm9, %v19304_v27 }
0x19f1   :  { %11312 = vmatpush1.bf16.msra.mxu1 %v11228_v3  ;;  %11343 = vmatprep.mubr.bf16.mxu1 %v20356_v4 }
0x19f2   :  { %13441 = vmatprep.subr.bf16.mxu1 %v19309_v56 }
0x19f8   :  { %13076 = vmatmul.mubr.msk.bf16.vlgmr.msra.gmra.mrb[108].mxu1 %vm11222_vm9, %v11219_v31 }
0x19f9   :  { %13442 = vmatpush3.bf16.msra.mxu1 %v19317_v62 }
0x19fa   :  { %13443 = vmatprep.subr.bf16.mxu1 %v19319_v14 }
0x19fd   :  { %13444 = vmatpush3.bf16.msra.mxu1 %v19323_v29 }
0x19fe   :  { %13445 = vmatprep.subr.bf16.mxu1 %v19326_v53 }
0x1a01   :  { %13446 = vmatpush3.bf16.msra.mxu1 %v19329_v59 }
0x1a02   :  { %13447 = vmatprep.subr.bf16.mxu1 %v19332_v57 }
0x1a05   :  { %13448 = vmatpush3.bf16.msra.mxu1 %v19335_v52 }
0x1a06   :  { %13449 = vmatprep.subr.bf16.mxu1 %v19338_v54 }
0x1a09   :  { %13450 = vmatpush3.bf16.msra.mxu1 %v19341_v17 }
0x1a0a   :  { %13451 = vmatprep.subr.bf16.mxu1 %v19344_v1 }
0x1a0d   :  { %13452 = vmatpush3.bf16.msra.mxu1 %v19347_v50 }
0x1a0e   :  { %13453 = vmatprep.subr.bf16.mxu1 %v19350_v26 }
0x1a11   :  { %13454 = vmatpush3.bf16.msra.mxu1 %v19353_v7 }
0x1a12   :  { %13455 = vmatprep.subr.bf16.mxu1 %v15005_v8 }
0x1a15   :  { %13456 = vmatpush3.bf16.msra.mxu1 %v15006_v45 }
0x1a16   :  { %13109 = vmatprep.subr.msk.bf16.mxu1 %vm11226_vm15, %v11660_v18 }
0x1ac3   :  { %v11267_v42 = vpop.f32.mrb[104].mxu1 }
0x1ac4   :  { %v11269_v41 = vpop.f32.mrb[105].mxu1  ;;  %v11274_v43 = vpack.c.bf16 %v11267_v42, %v11267_v42 }
0x1ac5   :  { %v11275_v38 = vpack.c.bf16 %v11269_v41, %v11269_v41  ;;  %v11271_v23 = vpop.f32.mrb[106].mxu1 }
0x1ac6   :  { %v11272_v12 = vpop.f32.mrb[107].mxu1 }
0x1ac7   :  { %11651 = vmatprep.mubr.bf16.mxu0 %v11275_v38 }
0x1ac8   :  { %11652 = vmatmul.mubr.bf16.vlgmr.msra.gmra.mrb[136].mxu0 %v11274_v43 }
0x1ac9   :  { %11711 = vmatpush1.bf16.msra.mxu0 %v11662_v35  ;;  %11742 = vmatprep.mubr.bf16.mxu0 %v20356_v4 }
0x1aca   :  { %13507 = vmatprep.subr.bf16.mxu0 %v19236_v33 }
0x1acb   :  { %v11345_v19 = vpop.f32.mrb[108].mxu1 }
0x1acc   :  { %v11347_v25 = vpop.f32.mrb[109].mxu1  ;;  %v11352_v48 = vpack.c.bf16 %v11345_v19, %v11345_v19 }
0x1acd   :  { %v11353_v16 = vpack.c.bf16 %v11347_v25, %v11347_v25  ;;  %v11349_v37 = vpop.f32.mrb[110].mxu1 }
0x1ace   :  { %v11350_v58 = vpop.f32.mrb[111].mxu1 }
0x1acf   :  { %11515 = vmatprep.mubr.bf16.mxu1 %v11353_v16 }
0x1ad0   :  { %11516 = vmatmul.mubr.bf16.vlgmr.msra.gmra.mrb[112].mxu1 %v11352_v48  ;;  %13112 = vmatmul.mubr.msk.bf16.vlgmr.msra.gmra.mrb[140].mxu0 %vm11222_vm9, %v11219_v31 }
0x1ad1   :  { %11668 = vmatpush1.bf16.msra.mxu1 %v11662_v35  ;;  %11699 = vmatprep.mubr.bf16.mxu1 %v20356_v4 }
0x1ad2   :  { %13485 = vmatprep.subr.bf16.mxu1 %v19309_v56  ;;  %13508 = vmatpush3.bf16.msra.mxu0 %v19243_v2 }
0x1ad3   :  { %13509 = vmatprep.subr.bf16.mxu0 %v19245_v44 }
0x1ad6   :  { %13510 = vmatpush3.bf16.msra.mxu0 %v19248_v63 }
0x1ad7   :  { %13511 = vmatprep.subr.bf16.mxu0 %v19251_v13 }
0x1ad8   :  { %13110 = vmatmul.mubr.msk.bf16.vlgmr.msra.gmra.mrb[116].mxu1 %vm11222_vm9, %v19304_v27 }
0x1ad9   :  { %13486 = vmatpush3.bf16.msra.mxu1 %v19317_v62 }
0x1ada   :  { %13487 = vmatprep.subr.bf16.mxu1 %v19319_v14  ;;  %13512 = vmatpush3.bf16.msra.mxu0 %v19254_v36 }
0x1adb   :  { %13513 = vmatprep.subr.bf16.mxu0 %v19258_v40 }
0x1add   :  { %13488 = vmatpush3.bf16.msra.mxu1 %v19323_v29 }
0x1ade   :  { %13489 = vmatprep.subr.bf16.mxu1 %v19326_v53  ;;  %13514 = vmatpush3.bf16.msra.mxu0 %v19260_v11 }
0x1adf   :  { %13515 = vmatprep.subr.bf16.mxu0 %v19263_v55 }
0x1ae1   :  { %13490 = vmatpush3.bf16.msra.mxu1 %v19329_v59 }
0x1ae2   :  { %13491 = vmatprep.subr.bf16.mxu1 %v19332_v57  ;;  %13516 = vmatpush3.bf16.msra.mxu0 %v19266_v15 }
0x1ae3   :  { %13517 = vmatprep.subr.bf16.mxu0 %v19270_v10 }
0x1ae5   :  { %13492 = vmatpush3.bf16.msra.mxu1 %v19335_v52 }
0x1ae6   :  { %13493 = vmatprep.subr.bf16.mxu1 %v19338_v54  ;;  %13518 = vmatpush3.bf16.msra.mxu0 %v19272_v30 }
0x1ae7   :  { %13519 = vmatprep.subr.bf16.mxu0 %v19276_v60 }
0x1ae9   :  { %13494 = vmatpush3.bf16.msra.mxu1 %v19341_v17 }
0x1aea   :  { %13495 = vmatprep.subr.bf16.mxu1 %v19344_v1  ;;  %13520 = vmatpush3.bf16.msra.mxu0 %v19278_v32 }
0x1aeb   :  { %13521 = vmatprep.subr.bf16.mxu0 %v19282_v61 }
0x1aed   :  { %13496 = vmatpush3.bf16.msra.mxu1 %v19347_v50 }
0x1aee   :  { %13497 = vmatprep.subr.bf16.mxu1 %v19350_v26  ;;  %13522 = vmatpush3.bf16.msra.mxu0 %v19284_v20 }
0x1af1   :  { %13498 = vmatpush3.bf16.msra.mxu1 %v19353_v7 }
0x1af2   :  { %13499 = vmatprep.subr.bf16.mxu1 %v15005_v8 }
0x1af5   :  { %13500 = vmatpush3.bf16.msra.mxu1 %v15006_v45 }
0x1b9b   :  { %v13479_v33 = vpop.f32.mrb[136].mxu0 }
0x1b9c   :  { %v13480_v4 = vpop.f32.mrb[137].mxu0 }
0x1b9d   :  { %v13481_v2 = vadd.f32 %v13480_v4, %v13479_v33  ;;  %v13482_v44 = vpop.f32.mrb[138].mxu0 }
0x1b9e   :  { %v13483_v63 = vpop.f32.mrb[139].mxu0 }
0x1ba3   :  { %v13457_v13 = vpop.f32.mrb[112].mxu1  ;;  %v11744_v36 = vpop.f32.mrb[140].mxu0 }
0x1ba4   :  { %v13458_v40 = vpop.f32.mrb[113].mxu1  ;;  %v11751_v11 = vpack.c.bf16 %v11744_v36, %v11744_v36  ;;  %v11746_v55 = vpop.f32.mrb[141].mxu0 }
0x1ba5   :  { %v13459_v15 = vadd.f32 %v13458_v40, %v13457_v13  ;;  %v13460_v10 = vpop.f32.mrb[114].mxu1  ;;  %v11752_v30 = vpack.c.bf16 %v11746_v55, %v11746_v55  ;;  %v11748_v60 = vpop.f32.mrb[142].mxu0 }
0x1ba6   :  { %v13461_v32 = vpop.f32.mrb[115].mxu1  ;;  %v11749_v61 = vpop.f32.mrb[143].mxu0 }
0x1ba7   :  { %v11654_v20 = vadd.f32 %v13481_v2, %v13459_v15  ;;  %11785 = vmatprep.mubr.bf16.mxu1 %v11752_v30 }
0x1ba8   :  { %11786 = vmatmul.mubr.bf16.vlgmr.msra.gmra.mrb[120].mxu1 %v11751_v11 }
0x1ba9   :  { %v11833_v56 = vmul.f32 0.5, %v11654_v20 }
0x1bab   :  { %v11701_v49 = vpop.f32.mrb[116].mxu1  ;;  %15015 = vtanh.f32 %v11833_v56 }
0x1bac   :  { %v11703_v6 = vpop.f32.mrb[117].mxu1  ;;  %v11708_v9 = vpack.c.bf16 %v11701_v49, %v11701_v49 }
0x1bad   :  { %v11709_v34 = vpack.c.bf16 %v11703_v6, %v11703_v6  ;;  %v11705_v47 = vpop.f32.mrb[118].mxu1 }
0x1bae   :  { %v11706_v21 = vpop.f32.mrb[119].mxu1 }
0x1baf   :  { %11825 = vmatprep.mubr.bf16.mxu0 %v11709_v34 }
0x1bb0   :  { %11826 = vmatmul.mubr.bf16.vlgmr.msra.gmra.mrb[144].mxu0 %v11708_v9 }
0x1bb5   :  { %v15016_v53 = vpop.eup %15015 }
0x1bb6   :  { %v11835_v57 = vadd.f32 1.0, %v15016_v53 }
0x1bb8   :  { %v11836_v17 = vmul.f32 0.5, %v11835_v57 }
0x1c7b   :  { %v13501_v28 = vpop.f32.mrb[120].mxu1 }
0x1c7c   :  { %v13502_v0 = vpop.f32.mrb[121].mxu1 }
0x1c7d   :  { %v13503_v22 = vadd.f32 %v13502_v0, %v13501_v28  ;;  %v13504_v18 = vpop.f32.mrb[122].mxu1 }
0x1c7e   :  { %v13505_v46 = vpop.f32.mrb[123].mxu1 }
0x1c83   :  { %v13523_v3 = vpop.f32.mrb[144].mxu0 }
0x1c84   :  { %v13524_v27 = vpop.f32.mrb[145].mxu0 }
0x1c85   :  { %v13525_v39 = vadd.f32 %v13524_v27, %v13523_v3  ;;  %v13526_v31 = vpop.f32.mrb[146].mxu0 }
0x1c86   :  { %v13527_v62 = vpop.f32.mrb[147].mxu0 }
0x1c87   :  { %v11828_v14 = vadd.f32 %v13525_v39, %v13503_v22 }
0x1c89   :  { %v11837_v29 = vmul.f32 0.5, %v11828_v14 }
0x1c8b   :  { %15017 = vtanh.f32 %v11837_v29 }
0x1c95   :  { %v15018_v59 = vpop.eup %15017 }
0x1c96   :  { %v11839_v52 = vadd.f32 1.0, %v15018_v59 }
0x1c98   :  { %v11840_v54 = vmul.f32 0.5, %v11839_v52 }
0x1c9a   :  { %v11842_v1 = vrot.slane %v11840_v54, 7 }
0x1c9c   :  { %v11844_v50 = vsel %vm11226_vm15, %v11836_v17, %v11842_v1 }
0x1c9d   :  { %11845 = vst [vmem:[%s19409_s8] sm:$0x3] %v11844_v50 }
0x1c9e   :  { %11850 = vsyncpa [#allocation3], 1 }
0x1c9f   :  { %11851 = vsyncpa [#allocation5], 1 }
0x1ca0   :  { %11852 = vsyncpa [#allocation8], 1 }
0x1ca1   :  { %11853 = vsyncpa [#allocation11], 1 }

</bundles_post_ra>
